<compile_context>
chip_gen: v7x
topology: tpu7x:2x2x1
jax: 0.10.0
libtpu: 0.0.40
codegen_flags: <defaults>
</compile_context>

<pallas_src>
import jax
import jax.numpy as jnp
from jax.experimental import pallas as pl
from jax.experimental.pallas import tpu as pltpu


NARROW_K = 16  # narrow fan-ins (pts=3, views=3, uv=10) are zero-padded to this


def default_cfg():
    return dict(D=8, D_xyz=3, W=128, skip=4,
                input_ch=3, input_ch_views=3,
                input_ch_textureCodes=10, input_ch_shapeCodes=128)


# -----------------------------------------------------------------------------
# Logical parameters (per-layer (w, b), w: [C_in, C_out], y = x @ w + b).
# Matches NeRF.initialize(): xavier_uniform with gain=calculate_gain('relu');
# biases keep the PyTorch Linear default U(-1/sqrt(fan_in), 1/sqrt(fan_in)).
# -----------------------------------------------------------------------------
def init_nerf_params(key, cfg):
    gain = 2.0 ** 0.5
    keys = iter(jax.random.split(key, 64))
    W = cfg["W"]

    def linear(cin, cout):
        kw, kb = jax.random.split(next(keys))
        bw = gain * (6.0 / (cin + cout)) ** 0.5
        w = jax.random.uniform(kw, (cin, cout), jnp.float32, -bw, bw)
        bb = 1.0 / (cin ** 0.5)
        b = jax.random.uniform(kb, (cout,), jnp.float32, -bb, bb)
        return w, b

    layers = []
    # xyzEncode = skipMLP(D=D_xyz, W, input_ch, skip=None): D_xyz + 1 layers
    layers.append(linear(cfg["input_ch"], W))
    for _ in range(cfg["D_xyz"]):
        layers.append(linear(W, W))

    def skip_mlp(a_ch):
        ich = a_ch + W
        layers.append(linear(ich, W))                    # linears1[0]
        for _ in range(cfg["skip"]):                     # linears1[1..skip]
            layers.append(linear(W, W))
        layers.append(linear(W + ich, W))                # linears2[0]
        for _ in range(cfg["D"] - cfg["skip"] - 2):      # linears2[1..]
            layers.append(linear(W, W))

    skip_mlp(cfg["input_ch_shapeCodes"])                 # linear_BiM_xyz
    layers.append(linear(W, 1))                          # alpha_linear
    skip_mlp(cfg["input_ch_textureCodes"])               # linear_uv_xyzBiM
    layers.append(linear(cfg["input_ch_views"] + W, W // 2))   # linear_view_xyBMuv
    layers.append(linear(W // 2, 3))                     # rgb_linear
    return layers


# -----------------------------------------------------------------------------
# Pack the logical layers into the kernel's stacked / split / padded format.
# All concat-consuming layers are split along fan-in (cat([a,b]) @ W ==
# a @ Wa + b @ Wb); narrow chunks are row-padded to NARROW_K; the view layer
# output is column-padded W//2 -> W (zero bias columns); rgb/alpha heads are
# zero-padded to 4 output columns so the final concat disappears.
# -----------------------------------------------------------------------------
def pack_nerf_params(layers, cfg, param_dtype=jnp.bfloat16):
    W = cfg["W"]
    a_bm = cfg["input_ch_shapeCodes"]
    a_uv = cfg["input_ch_textureCodes"]
    assert a_bm == W, "BiM packing assumes shape-code width == W"
    assert W % 128 == 0, "W must be lane-aligned"
    assert max(cfg["input_ch"], cfg["input_ch_views"], a_uv) <= NARROW_K

    it = iter(layers)
    wq, wn, bias = [], [], []

    def pad_w(w, rows=None, cols=None):
        rows = rows or w.shape[0]
        cols = cols or w.shape[1]
        return jnp.pad(w, ((0, rows - w.shape[0]), (0, cols - w.shape[1])))

    def add_bias(b, cols=None):
        cols = cols or b.shape[0]
        bias.append(jnp.pad(b, (0, cols - b.shape[0]))[None, :])   # (1, cols)

    # --- xyzEncode -----------------------------------------------------------
    w, b = next(it)
    wn.append(pad_w(w, rows=NARROW_K))                 # wn[0]: pts layer
    add_bias(b)
    for _ in range(cfg["D_xyz"]):
        w, b = next(it); wq.append(w); add_bias(b)

    # --- linear_BiM_xyz skip-MLP (a_ch == W) -----------------------------------
    w, b = next(it)                                     # linears1[0]: (2W, W)
    wq.append(w[:a_bm]); wq.append(w[a_bm:]); add_bias(b)
    for _ in range(cfg["skip"]):
        w, b = next(it); wq.append(w); add_bias(b)
    w, b = next(it)                                     # linears2[0]: (3W, W)
    wq.append(w[:a_bm]); wq.append(w[a_bm:a_bm + W]); wq.append(w[a_bm + W:])
    add_bias(b)
    for _ in range(cfg["D"] - cfg["skip"] - 2):
        w, b = next(it); wq.append(w); add_bias(b)

    # --- alpha head (fused into the 4-wide output later) -----------------------
    w_alpha, b_alpha = next(it)                         # (W, 1)

    # --- linear_uv_xyzBiM skip-MLP (a_ch = 10 -> padded 16) ---------------------
    w, b = next(it)                                     # linears1[0]: (10+W, W)
    wn.append(pad_w(w[:a_uv], rows=NARROW_K))           # wn[1]
    wq.append(w[a_uv:]); add_bias(b)
    for _ in range(cfg["skip"]):
        w, b = next(it); wq.append(w); add_bias(b)
    w, b = next(it)                                     # linears2[0]: (10+2W, W)
    wn.append(pad_w(w[:a_uv], rows=NARROW_K))           # wn[2]
    wq.append(w[a_uv:a_uv + W]); wq.append(w[a_uv + W:]); add_bias(b)
    for _ in range(cfg["D"] - cfg["skip"] - 2):
        w, b = next(it); wq.append(w); add_bias(b)

    # --- view layer: cat([views, rgbc]) -> W//2, output zero-padded to W lanes --
    w, b = next(it)                                     # (3+W, W//2)
    nv = cfg["input_ch_views"]
    wn.append(pad_w(w[:nv], rows=NARROW_K, cols=W))     # wn[3]
    wq.append(pad_w(w[nv:], cols=W))
    add_bias(b, cols=W)                                 # padded bias cols are zero

    # --- rgb head, fused with alpha into one (.., 4) epilogue -------------------
    w_rgb, b_rgb = next(it)                             # (W//2, 3)
    w_rgb_pad = jnp.zeros((W, 4), jnp.float32).at[: W // 2, :3].set(w_rgb)
    w_alpha_pad = jnp.zeros((W, 4), jnp.float32).at[:, 3:].set(w_alpha)
    b_head = jnp.concatenate([b_rgb, b_alpha])[None, :]  # (1, 4), no padded cols

    return dict(
        wq=jnp.stack(wq).astype(param_dtype),            # (24, W, W)
        wn=jnp.stack(wn).astype(param_dtype),            # (4, NARROW_K, W)
        bias=jnp.stack(bias).astype(jnp.float32),        # (21, 1, W)
        w_rgb=w_rgb_pad.astype(param_dtype),              # (W, 4)
        w_alpha=w_alpha_pad.astype(param_dtype),          # (W, 4)
        b_head=b_head.astype(jnp.float32),                # (1, 4)
    )


# -----------------------------------------------------------------------------
# Fused kernel: the full layer stack runs in VMEM for one row tile.
# -----------------------------------------------------------------------------
def _make_nerf_kernel(cfg, fuse_k256):
    D_xyz, skip = cfg["D_xyz"], cfg["skip"]
    n_post = cfg["D"] - cfg["skip"] - 2

    def kernel(pts_ref, bm_ref, views_ref, uv_ref,
               wq_ref, wn_ref, bias_ref, wrgb_ref, walpha_ref, bhead_ref,
               out_ref):
        cdt = wq_ref.dtype  # matmul dtype (bf16); accumulation is always f32.

        # trace-time counters into the packed weight / bias stacks
        ctr = {"q": 0, "b": 0}

        def wq():
            w = wq_ref[ctr["q"]]; ctr["q"] += 1; return w

        def nb():
            b = bias_ref[ctr["b"]]; ctr["b"] += 1; return b

        def dot(a, w):
            return jnp.dot(a, w, preferred_element_type=jnp.float32)

        def finish(acc, b):
            # bias + ReLU in f32, cast back to the matmul dtype for the next dot
            return jnp.maximum(acc + b, 0.0).astype(cdt)

        pts, bm = pts_ref[...], bm_ref[...]
        views, uv = views_ref[...], uv_ref[...]

        # ---- xyzEncode: plain MLP (skip=None) -------------------------------
        h = finish(dot(pts, wn_ref[0]), nb())
        for _ in range(D_xyz):
            h = finish(dot(h, wq()), nb())
        xyz_code = h

        # ---- linear_BiM_xyz skip-MLP (shape codes are W wide) ----------------
        if fuse_k256:
            # 128-aligned concat -> one K=2W matmul keeps the 256-deep MXU of
            # v6e/v7x fully fed (one weight load instead of two).
            bm_xyz = jnp.concatenate([bm, xyz_code], axis=-1)
            h = finish(dot(bm_xyz, jnp.concatenate([wq(), wq()], axis=0)), nb())
        else:
            h = finish(dot(bm, wq()) + dot(xyz_code, wq()), nb())
        for _ in range(skip):
            h = finish(dot(h, wq()), nb())
        if fuse_k256:
            acc = dot(bm_xyz, jnp.concatenate([wq(), wq()], axis=0))
        else:
            acc = dot(bm, wq()) + dot(xyz_code, wq())
        h = finish(acc + dot(h, wq()), nb())
        for _ in range(n_post):
            h = finish(dot(h, wq()), nb())
        sigma = h

        # ---- linear_uv_xyzBiM skip-MLP (uv codes are narrow -> split dots) ---
        h = finish(dot(uv, wn_ref[1]) + dot(sigma, wq()), nb())
        for _ in range(skip):
            h = finish(dot(h, wq()), nb())
        h = finish(dot(uv, wn_ref[2]) + dot(sigma, wq()) + dot(h, wq()), nb())
        for _ in range(n_post):
            h = finish(dot(h, wq()), nb())

        # ---- view layer (output columns zero-padded to W lanes) --------------
        rgbc = finish(dot(views, wn_ref[3]) + dot(h, wq()), nb())

        # ---- fused rgb/alpha heads: no lane-level concatenate in the epilogue
        out = dot(rgbc, wrgb_ref[...]) + dot(sigma, walpha_ref[...]) + bhead_ref[...]
        out_ref[...] = out.astype(out_ref.dtype)

    return kernel


def _round_up(x, m):
    return ((x + m - 1) // m) * m


def _choose_tile_n(n, desired):
    """Multiple of 256; aim for >= 8 grid steps so both v7x TensorCores get
    several pipelined steps each (never below 256 rows/tile)."""
    if n <= 256:
        return n
    desired = max(256, _round_up(desired, 256))
    by_steps = max(256, _round_up(pl.cdiv(n, 8), 256))
    return min(desired, by_steps)


def _pick_fuse_k256():
    # 256-deep MXUs (v6e/v7x) benefit from the K=2W fused form; keep split dots
    # on 128x128-MXU chips (v2-v5).
    try:
        kind = jax.devices()[0].device_kind.lower()
    except Exception:
        return True
    return not any(t in kind for t in ("v2", "v3", "v4", "v5"))


def nerf_forward(packed, pts, bm, views, uv, cfg, *, tile_n=1024):
    n = pts.shape[0]
    cdt = packed["wq"].dtype

    # Pad narrow inputs to the sublane-aligned K used at pack time, cast all
    # data to the matmul dtype once at the pallas_call boundary.
    def prep(x, k):
        if x.shape[1] != k:
            x = jnp.pad(x, ((0, 0), (0, k - x.shape[1])))
        return x.astype(cdt)

    pts = prep(pts, NARROW_K)
    views = prep(views, NARROW_K)
    uv = prep(uv, NARROW_K)
    bm = bm.astype(cdt)

    tile_n = _choose_tile_n(n, tile_n)
    grid = (pl.cdiv(n, tile_n),)

    data = [pts, bm, views, uv]
    data_specs = [pl.BlockSpec((tile_n, x.shape[1]), lambda i: (i, 0)) for x in data]

    params = [packed["wq"], packed["wn"], packed["bias"],
              packed["w_rgb"], packed["w_alpha"], packed["b_head"]]
    # Whole-array, constant-index blocks: DMA'd once, VMEM-resident across the
    # grid.  (pipeline_mode=pl.Buffered(1) would drop the ~0.8 MB second buffer;
    # not needed at this size -- revisit if W/tile_n scale up on v7x's 64 MiB.)
    param_specs = [pl.BlockSpec(p.shape, lambda i, nd=p.ndim: (0,) * nd)
                   for p in params]

    kernel = _make_nerf_kernel(cfg, fuse_k256=_pick_fuse_k256())

    return pl.pallas_call(
        kernel,
        out_shape=jax.ShapeDtypeStruct((n, 4), jnp.float32),
        grid_spec=pltpu.PrefetchScalarGridSpec(
            num_scalar_prefetch=0,
            grid=grid,
            in_specs=data_specs + param_specs,
            out_specs=pl.BlockSpec((tile_n, 4), lambda i: (i, 0)),
        ),
        compiler_params=pltpu.CompilerParams(
            dimension_semantics=("parallel",),   # independent rows (v7x: 2 TCs)
            # Actual use is ~1 MB weights + a few MB of tiles/temporaries even at
            # tile_n=2048 bf16; 32 MiB is safe on v5e/v6e/v7x.  Re-derive (and
            # cap <= ~48 MiB on v7x) if W or tile_n is scaled up.
            vmem_limit_bytes=32 * 1024 * 1024,
        ),
    )(*data, *params)


# -----------------------------------------------------------------------------
# Pure-JAX reference mirroring the PyTorch forward (real concats, unsplit
# weights).  mm_dtype=bf16 reproduces the kernel's bf16-in / f32-accumulate
# matmul precision; mm_dtype=f32 gives the full-precision PyTorch math.
# -----------------------------------------------------------------------------
def nerf_forward_ref(layers, pts, bm, views, uv, cfg, mm_dtype=jnp.bfloat16):
    it = iter(layers)

    def lin(x, relu=True):
        w, b = next(it)
        y = jnp.dot(x.astype(mm_dtype), w.astype(mm_dtype),
                    preferred_element_type=jnp.float32) + b
        return jnp.maximum(y, 0.0) if relu else y

    h = pts
    for _ in range(cfg["D_xyz"] + 1):                    # xyzEncode
        h = lin(h)
    xyz_code = h

    def skip_mlp(x):
        h = x
        for _ in range(1 + cfg["skip"]):                 # linears1
            h = lin(h)
        h = jnp.concatenate([x, h], axis=1)
        for _ in range(cfg["D"] - cfg["skip"] - 1):      # linears2
            h = lin(h)
        return h

    sigma = skip_mlp(jnp.concatenate([bm, xyz_code], axis=1))   # linear_BiM_xyz
    alpha = lin(sigma, relu=False)                               # alpha_linear
    rgbc = skip_mlp(jnp.concatenate([uv, sigma], axis=1))        # linear_uv_xyzBiM
    rgbc = lin(jnp.concatenate([views, rgbc], axis=1))           # linear_view_xyBMuv
    rgb = lin(rgbc, relu=False)                                  # rgb_linear
    return jnp.concatenate([rgb, alpha], axis=-1)


if __name__ == "__main__":
    cfg = default_cfg()   # D=8, skips=[4], W=128, use_viewdirs=True path
    N = 4096              # small batch of points; grid of 8 parallel row tiles

    key = jax.random.PRNGKey(0)
    kp, k1, k2, k3, k4 = jax.random.split(key, 5)
    layers = init_nerf_params(kp, cfg)
    packed = pack_nerf_params(layers, cfg, param_dtype=jnp.bfloat16)

    pts = jax.random.normal(k1, (N, cfg["input_ch"]), jnp.float32)
    bm = jax.random.normal(k2, (N, cfg["input_ch_shapeCodes"]), jnp.float32)
    views = jax.random.normal(k3, (N, cfg["input_ch_views"]), jnp.float32)
    uv = jax.random.normal(k4, (N, cfg["input_ch_textureCodes"]), jnp.float32)

    out = nerf_forward(packed, pts, bm, views, uv, cfg, tile_n=1024)
    out = jax.block_until_ready(out)
    assert out.shape == (N, 4), out.shape

    # Compare against the PyTorch-structured reference at the same (explicit)
    # bf16-in / f32-accumulate matmul precision as the kernel.
    ref = nerf_forward_ref(layers, pts, bm, views, uv, cfg, mm_dtype=jnp.bfloat16)
    max_err = float(jnp.max(jnp.abs(out - ref)))
    assert jnp.allclose(out, ref, atol=2e-2, rtol=2e-2), f"mismatch, max_err={max_err}"

    print("KERNEL_OK")
</pallas_src>

<mosaic_0001>
module attributes {stable_mosaic.version = 11 : i64} {
  func.func @kernel(%arg0: i32, %arg1: memref<512x16xbf16, #tpu.memory_space<vmem>>, %arg2: memref<512x128xbf16, #tpu.memory_space<vmem>>, %arg3: memref<512x16xbf16, #tpu.memory_space<vmem>>, %arg4: memref<512x16xbf16, #tpu.memory_space<vmem>>, %arg5: memref<24x128x128xbf16, #tpu.memory_space<vmem>>, %arg6: memref<4x16x128xbf16, #tpu.memory_space<vmem>>, %arg7: memref<21x1x128xf32, #tpu.memory_space<vmem>>, %arg8: memref<128x4xbf16, #tpu.memory_space<vmem>>, %arg9: memref<128x4xbf16, #tpu.memory_space<vmem>>, %arg10: memref<1x4xf32, #tpu.memory_space<vmem>>, %arg11: memref<512x4xf32, #tpu.memory_space<vmem>>) attributes {dimension_semantics = [#tpu.dimension_semantics<parallel>], iteration_bounds = array<i64: 8>, scalar_prefetch = 0 : i64, scratch_operands = 0 : i64, tpu.core_type = #tpu.core_type<tc>, window_params = [{transform_indices = @transform_0, window_bounds = array<i64: 512, 16>}, {transform_indices = @transform_1, window_bounds = array<i64: 512, 128>}, {transform_indices = @transform_2, window_bounds = array<i64: 512, 16>}, {transform_indices = @transform_3, window_bounds = array<i64: 512, 16>}, {pipeline_mode = #tpu.pipeline_mode<synchronous>, transform_indices = @transform_4, window_bounds = array<i64: 24, 128, 128>}, {pipeline_mode = #tpu.pipeline_mode<synchronous>, transform_indices = @transform_5, window_bounds = array<i64: 4, 16, 128>}, {pipeline_mode = #tpu.pipeline_mode<synchronous>, transform_indices = @transform_6, window_bounds = array<i64: 21, 1, 128>}, {pipeline_mode = #tpu.pipeline_mode<synchronous>, transform_indices = @transform_7, window_bounds = array<i64: 128, 4>}, {pipeline_mode = #tpu.pipeline_mode<synchronous>, transform_indices = @transform_8, window_bounds = array<i64: 128, 4>}, {pipeline_mode = #tpu.pipeline_mode<synchronous>, transform_indices = @transform_9, window_bounds = array<i64: 1, 4>}, {transform_indices = @transform_10, window_bounds = array<i64: 512, 4>}]} {
    %c0 = arith.constant 0 : index
    %c0_0 = arith.constant 0 : index
    %0 = vector.load %arg1[%c0, %c0_0] : memref<512x16xbf16, #tpu.memory_space<vmem>>, vector<512x16xbf16>
    %c0_1 = arith.constant 0 : index
    %c0_2 = arith.constant 0 : index
    %1 = vector.load %arg2[%c0_1, %c0_2] : memref<512x128xbf16, #tpu.memory_space<vmem>>, vector<512x128xbf16>
    %c0_3 = arith.constant 0 : index
    %c0_4 = arith.constant 0 : index
    %2 = vector.load %arg3[%c0_3, %c0_4] : memref<512x16xbf16, #tpu.memory_space<vmem>>, vector<512x16xbf16>
    %c0_5 = arith.constant 0 : index
    %c0_6 = arith.constant 0 : index
    %3 = vector.load %arg4[%c0_5, %c0_6] : memref<512x16xbf16, #tpu.memory_space<vmem>>, vector<512x16xbf16>
    %c0_7 = arith.constant 0 : index
    %c0_8 = arith.constant 0 : index
    %c0_9 = arith.constant 0 : index
    %4 = vector.load %arg6[%c0_7, %c0_8, %c0_9] : memref<4x16x128xbf16, #tpu.memory_space<vmem>>, vector<1x16x128xbf16>
    %5 = vector.shape_cast %4 : vector<1x16x128xbf16> to vector<16x128xbf16>
    %cst = arith.constant dense<0.000000e+00> : vector<512x128xf32>
    %6 = tpu.matmul %0, %5, %cst {dimension_numbers = #tpu.dot_dimension_numbers<[1], [0], [0], [1], [0, 0, 1, 1], [], []>} : vector<512x16xbf16>, vector<16x128xbf16>, vector<512x128xf32> -> vector<512x128xf32>
    %c0_10 = arith.constant 0 : index
    %c0_11 = arith.constant 0 : index
    %c0_12 = arith.constant 0 : index
    %7 = vector.load %arg7[%c0_10, %c0_11, %c0_12] : memref<21x1x128xf32, #tpu.memory_space<vmem>>, vector<1x1x128xf32>
    %8 = vector.shape_cast %7 : vector<1x1x128xf32> to vector<1x128xf32>
    %9 = vector.broadcast %8 : vector<1x128xf32> to vector<512x128xf32>
    %10 = arith.addf %6, %9 : vector<512x128xf32>
    %cst_13 = arith.constant 0.000000e+00 : f32
    %11 = vector.broadcast %cst_13 : f32 to vector<512x128xf32>
    %12 = arith.maximumf %10, %11 : vector<512x128xf32>
    %13 = arith.truncf %12 : vector<512x128xf32> to vector<512x128xbf16>
    %c0_14 = arith.constant 0 : index
    %c0_15 = arith.constant 0 : index
    %c0_16 = arith.constant 0 : index
    %14 = vector.load %arg5[%c0_14, %c0_15, %c0_16] : memref<24x128x128xbf16, #tpu.memory_space<vmem>>, vector<1x128x128xbf16>
    %15 = vector.shape_cast %14 : vector<1x128x128xbf16> to vector<128x128xbf16>
    %cst_17 = arith.constant dense<0.000000e+00> : vector<512x128xf32>
    %16 = tpu.matmul %13, %15, %cst_17 {dimension_numbers = #tpu.dot_dimension_numbers<[1], [0], [0], [1], [0, 0, 1, 1], [], []>} : vector<512x128xbf16>, vector<128x128xbf16>, vector<512x128xf32> -> vector<512x128xf32>
    %c1 = arith.constant 1 : index
    %c0_18 = arith.constant 0 : index
    %c0_19 = arith.constant 0 : index
    %17 = vector.load %arg7[%c1, %c0_18, %c0_19] : memref<21x1x128xf32, #tpu.memory_space<vmem>>, vector<1x1x128xf32>
    %18 = vector.shape_cast %17 : vector<1x1x128xf32> to vector<1x128xf32>
    %19 = vector.broadcast %18 : vector<1x128xf32> to vector<512x128xf32>
    %20 = arith.addf %16, %19 : vector<512x128xf32>
    %cst_20 = arith.constant 0.000000e+00 : f32
    %21 = vector.broadcast %cst_20 : f32 to vector<512x128xf32>
    %22 = arith.maximumf %20, %21 : vector<512x128xf32>
    %23 = arith.truncf %22 : vector<512x128xf32> to vector<512x128xbf16>
    %c1_21 = arith.constant 1 : index
    %c0_22 = arith.constant 0 : index
    %c0_23 = arith.constant 0 : index
    %24 = vector.load %arg5[%c1_21, %c0_22, %c0_23] : memref<24x128x128xbf16, #tpu.memory_space<vmem>>, vector<1x128x128xbf16>
    %25 = vector.shape_cast %24 : vector<1x128x128xbf16> to vector<128x128xbf16>
    %cst_24 = arith.constant dense<0.000000e+00> : vector<512x128xf32>
    %26 = tpu.matmul %23, %25, %cst_24 {dimension_numbers = #tpu.dot_dimension_numbers<[1], [0], [0], [1], [0, 0, 1, 1], [], []>} : vector<512x128xbf16>, vector<128x128xbf16>, vector<512x128xf32> -> vector<512x128xf32>
    %c2 = arith.constant 2 : index
    %c0_25 = arith.constant 0 : index
    %c0_26 = arith.constant 0 : index
    %27 = vector.load %arg7[%c2, %c0_25, %c0_26] : memref<21x1x128xf32, #tpu.memory_space<vmem>>, vector<1x1x128xf32>
    %28 = vector.shape_cast %27 : vector<1x1x128xf32> to vector<1x128xf32>
    %29 = vector.broadcast %28 : vector<1x128xf32> to vector<512x128xf32>
    %30 = arith.addf %26, %29 : vector<512x128xf32>
    %cst_27 = arith.constant 0.000000e+00 : f32
    %31 = vector.broadcast %cst_27 : f32 to vector<512x128xf32>
    %32 = arith.maximumf %30, %31 : vector<512x128xf32>
    %33 = arith.truncf %32 : vector<512x128xf32> to vector<512x128xbf16>
    %c2_28 = arith.constant 2 : index
    %c0_29 = arith.constant 0 : index
    %c0_30 = arith.constant 0 : index
    %34 = vector.load %arg5[%c2_28, %c0_29, %c0_30] : memref<24x128x128xbf16, #tpu.memory_space<vmem>>, vector<1x128x128xbf16>
    %35 = vector.shape_cast %34 : vector<1x128x128xbf16> to vector<128x128xbf16>
    %cst_31 = arith.constant dense<0.000000e+00> : vector<512x128xf32>
    %36 = tpu.matmul %33, %35, %cst_31 {dimension_numbers = #tpu.dot_dimension_numbers<[1], [0], [0], [1], [0, 0, 1, 1], [], []>} : vector<512x128xbf16>, vector<128x128xbf16>, vector<512x128xf32> -> vector<512x128xf32>
    %c3 = arith.constant 3 : index
    %c0_32 = arith.constant 0 : index
    %c0_33 = arith.constant 0 : index
    %37 = vector.load %arg7[%c3, %c0_32, %c0_33] : memref<21x1x128xf32, #tpu.memory_space<vmem>>, vector<1x1x128xf32>
    %38 = vector.shape_cast %37 : vector<1x1x128xf32> to vector<1x128xf32>
    %39 = vector.broadcast %38 : vector<1x128xf32> to vector<512x128xf32>
    %40 = arith.addf %36, %39 : vector<512x128xf32>
    %cst_34 = arith.constant 0.000000e+00 : f32
    %41 = vector.broadcast %cst_34 : f32 to vector<512x128xf32>
    %42 = arith.maximumf %40, %41 : vector<512x128xf32>
    %43 = arith.truncf %42 : vector<512x128xf32> to vector<512x128xbf16>
    %44 = tpu.concatenate %1, %43 in 1 : vector<512x128xbf16>, vector<512x128xbf16> -> vector<512x256xbf16>
    %c3_35 = arith.constant 3 : index
    %c0_36 = arith.constant 0 : index
    %c0_37 = arith.constant 0 : index
    %45 = vector.load %arg5[%c3_35, %c0_36, %c0_37] : memref<24x128x128xbf16, #tpu.memory_space<vmem>>, vector<1x128x128xbf16>
    %46 = vector.shape_cast %45 : vector<1x128x128xbf16> to vector<128x128xbf16>
    %c4 = arith.constant 4 : index
    %c0_38 = arith.constant 0 : index
    %c0_39 = arith.constant 0 : index
    %47 = vector.load %arg5[%c4, %c0_38, %c0_39] : memref<24x128x128xbf16, #tpu.memory_space<vmem>>, vector<1x128x128xbf16>
    %48 = vector.shape_cast %47 : vector<1x128x128xbf16> to vector<128x128xbf16>
    %49 = tpu.concatenate %46, %48 in 0 : vector<128x128xbf16>, vector<128x128xbf16> -> vector<256x128xbf16>
    %cst_40 = arith.constant dense<0.000000e+00> : vector<512x128xf32>
    %50 = tpu.matmul %44, %49, %cst_40 {dimension_numbers = #tpu.dot_dimension_numbers<[1], [0], [0], [1], [0, 0, 1, 1], [], []>} : vector<512x256xbf16>, vector<256x128xbf16>, vector<512x128xf32> -> vector<512x128xf32>
    %c4_41 = arith.constant 4 : index
    %c0_42 = arith.constant 0 : index
    %c0_43 = arith.constant 0 : index
    %51 = vector.load %arg7[%c4_41, %c0_42, %c0_43] : memref<21x1x128xf32, #tpu.memory_space<vmem>>, vector<1x1x128xf32>
    %52 = vector.shape_cast %51 : vector<1x1x128xf32> to vector<1x128xf32>
    %53 = vector.broadcast %52 : vector<1x128xf32> to vector<512x128xf32>
    %54 = arith.addf %50, %53 : vector<512x128xf32>
    %cst_44 = arith.constant 0.000000e+00 : f32
    %55 = vector.broadcast %cst_44 : f32 to vector<512x128xf32>
    %56 = arith.maximumf %54, %55 : vector<512x128xf32>
    %57 = arith.truncf %56 : vector<512x128xf32> to vector<512x128xbf16>
    %c5 = arith.constant 5 : index
    %c0_45 = arith.constant 0 : index
    %c0_46 = arith.constant 0 : index
    %58 = vector.load %arg5[%c5, %c0_45, %c0_46] : memref<24x128x128xbf16, #tpu.memory_space<vmem>>, vector<1x128x128xbf16>
    %59 = vector.shape_cast %58 : vector<1x128x128xbf16> to vector<128x128xbf16>
    %cst_47 = arith.constant dense<0.000000e+00> : vector<512x128xf32>
    %60 = tpu.matmul %57, %59, %cst_47 {dimension_numbers = #tpu.dot_dimension_numbers<[1], [0], [0], [1], [0, 0, 1, 1], [], []>} : vector<512x128xbf16>, vector<128x128xbf16>, vector<512x128xf32> -> vector<512x128xf32>
    %c5_48 = arith.constant 5 : index
    %c0_49 = arith.constant 0 : index
    %c0_50 = arith.constant 0 : index
    %61 = vector.load %arg7[%c5_48, %c0_49, %c0_50] : memref<21x1x128xf32, #tpu.memory_space<vmem>>, vector<1x1x128xf32>
    %62 = vector.shape_cast %61 : vector<1x1x128xf32> to vector<1x128xf32>
    %63 = vector.broadcast %62 : vector<1x128xf32> to vector<512x128xf32>
    %64 = arith.addf %60, %63 : vector<512x128xf32>
    %cst_51 = arith.constant 0.000000e+00 : f32
    %65 = vector.broadcast %cst_51 : f32 to vector<512x128xf32>
    %66 = arith.maximumf %64, %65 : vector<512x128xf32>
    %67 = arith.truncf %66 : vector<512x128xf32> to vector<512x128xbf16>
    %c6 = arith.constant 6 : index
    %c0_52 = arith.constant 0 : index
    %c0_53 = arith.constant 0 : index
    %68 = vector.load %arg5[%c6, %c0_52, %c0_53] : memref<24x128x128xbf16, #tpu.memory_space<vmem>>, vector<1x128x128xbf16>
    %69 = vector.shape_cast %68 : vector<1x128x128xbf16> to vector<128x128xbf16>
    %cst_54 = arith.constant dense<0.000000e+00> : vector<512x128xf32>
    %70 = tpu.matmul %67, %69, %cst_54 {dimension_numbers = #tpu.dot_dimension_numbers<[1], [0], [0], [1], [0, 0, 1, 1], [], []>} : vector<512x128xbf16>, vector<128x128xbf16>, vector<512x128xf32> -> vector<512x128xf32>
    %c6_55 = arith.constant 6 : index
    %c0_56 = arith.constant 0 : index
    %c0_57 = arith.constant 0 : index
    %71 = vector.load %arg7[%c6_55, %c0_56, %c0_57] : memref<21x1x128xf32, #tpu.memory_space<vmem>>, vector<1x1x128xf32>
    %72 = vector.shape_cast %71 : vector<1x1x128xf32> to vector<1x128xf32>
    %73 = vector.broadcast %72 : vector<1x128xf32> to vector<512x128xf32>
    %74 = arith.addf %70, %73 : vector<512x128xf32>
    %cst_58 = arith.constant 0.000000e+00 : f32
    %75 = vector.broadcast %cst_58 : f32 to vector<512x128xf32>
    %76 = arith.maximumf %74, %75 : vector<512x128xf32>
    %77 = arith.truncf %76 : vector<512x128xf32> to vector<512x128xbf16>
    %c7 = arith.constant 7 : index
    %c0_59 = arith.constant 0 : index
    %c0_60 = arith.constant 0 : index
    %78 = vector.load %arg5[%c7, %c0_59, %c0_60] : memref<24x128x128xbf16, #tpu.memory_space<vmem>>, vector<1x128x128xbf16>
    %79 = vector.shape_cast %78 : vector<1x128x128xbf16> to vector<128x128xbf16>
    %cst_61 = arith.constant dense<0.000000e+00> : vector<512x128xf32>
    %80 = tpu.matmul %77, %79, %cst_61 {dimension_numbers = #tpu.dot_dimension_numbers<[1], [0], [0], [1], [0, 0, 1, 1], [], []>} : vector<512x128xbf16>, vector<128x128xbf16>, vector<512x128xf32> -> vector<512x128xf32>
    %c7_62 = arith.constant 7 : index
    %c0_63 = arith.constant 0 : index
    %c0_64 = arith.constant 0 : index
    %81 = vector.load %arg7[%c7_62, %c0_63, %c0_64] : memref<21x1x128xf32, #tpu.memory_space<vmem>>, vector<1x1x128xf32>
    %82 = vector.shape_cast %81 : vector<1x1x128xf32> to vector<1x128xf32>
    %83 = vector.broadcast %82 : vector<1x128xf32> to vector<512x128xf32>
    %84 = arith.addf %80, %83 : vector<512x128xf32>
    %cst_65 = arith.constant 0.000000e+00 : f32
    %85 = vector.broadcast %cst_65 : f32 to vector<512x128xf32>
    %86 = arith.maximumf %84, %85 : vector<512x128xf32>
    %87 = arith.truncf %86 : vector<512x128xf32> to vector<512x128xbf16>
    %c8 = arith.constant 8 : index
    %c0_66 = arith.constant 0 : index
    %c0_67 = arith.constant 0 : index
    %88 = vector.load %arg5[%c8, %c0_66, %c0_67] : memref<24x128x128xbf16, #tpu.memory_space<vmem>>, vector<1x128x128xbf16>
    %89 = vector.shape_cast %88 : vector<1x128x128xbf16> to vector<128x128xbf16>
    %cst_68 = arith.constant dense<0.000000e+00> : vector<512x128xf32>
    %90 = tpu.matmul %87, %89, %cst_68 {dimension_numbers = #tpu.dot_dimension_numbers<[1], [0], [0], [1], [0, 0, 1, 1], [], []>} : vector<512x128xbf16>, vector<128x128xbf16>, vector<512x128xf32> -> vector<512x128xf32>
    %c8_69 = arith.constant 8 : index
    %c0_70 = arith.constant 0 : index
    %c0_71 = arith.constant 0 : index
    %91 = vector.load %arg7[%c8_69, %c0_70, %c0_71] : memref<21x1x128xf32, #tpu.memory_space<vmem>>, vector<1x1x128xf32>
    %92 = vector.shape_cast %91 : vector<1x1x128xf32> to vector<1x128xf32>
    %93 = vector.broadcast %92 : vector<1x128xf32> to vector<512x128xf32>
    %94 = arith.addf %90, %93 : vector<512x128xf32>
    %cst_72 = arith.constant 0.000000e+00 : f32
    %95 = vector.broadcast %cst_72 : f32 to vector<512x128xf32>
    %96 = arith.maximumf %94, %95 : vector<512x128xf32>
    %97 = arith.truncf %96 : vector<512x128xf32> to vector<512x128xbf16>
    %c9 = arith.constant 9 : index
    %c0_73 = arith.constant 0 : index
    %c0_74 = arith.constant 0 : index
    %98 = vector.load %arg5[%c9, %c0_73, %c0_74] : memref<24x128x128xbf16, #tpu.memory_space<vmem>>, vector<1x128x128xbf16>
    %99 = vector.shape_cast %98 : vector<1x128x128xbf16> to vector<128x128xbf16>
    %c10 = arith.constant 10 : index
    %c0_75 = arith.constant 0 : index
    %c0_76 = arith.constant 0 : index
    %100 = vector.load %arg5[%c10, %c0_75, %c0_76] : memref<24x128x128xbf16, #tpu.memory_space<vmem>>, vector<1x128x128xbf16>
    %101 = vector.shape_cast %100 : vector<1x128x128xbf16> to vector<128x128xbf16>
    %102 = tpu.concatenate %99, %101 in 0 : vector<128x128xbf16>, vector<128x128xbf16> -> vector<256x128xbf16>
    %cst_77 = arith.constant dense<0.000000e+00> : vector<512x128xf32>
    %103 = tpu.matmul %44, %102, %cst_77 {dimension_numbers = #tpu.dot_dimension_numbers<[1], [0], [0], [1], [0, 0, 1, 1], [], []>} : vector<512x256xbf16>, vector<256x128xbf16>, vector<512x128xf32> -> vector<512x128xf32>
    %c11 = arith.constant 11 : index
    %c0_78 = arith.constant 0 : index
    %c0_79 = arith.constant 0 : index
    %104 = vector.load %arg5[%c11, %c0_78, %c0_79] : memref<24x128x128xbf16, #tpu.memory_space<vmem>>, vector<1x128x128xbf16>
    %105 = vector.shape_cast %104 : vector<1x128x128xbf16> to vector<128x128xbf16>
    %cst_80 = arith.constant dense<0.000000e+00> : vector<512x128xf32>
    %106 = tpu.matmul %97, %105, %cst_80 {dimension_numbers = #tpu.dot_dimension_numbers<[1], [0], [0], [1], [0, 0, 1, 1], [], []>} : vector<512x128xbf16>, vector<128x128xbf16>, vector<512x128xf32> -> vector<512x128xf32>
    %107 = arith.addf %103, %106 : vector<512x128xf32>
    %c9_81 = arith.constant 9 : index
    %c0_82 = arith.constant 0 : index
    %c0_83 = arith.constant 0 : index
    %108 = vector.load %arg7[%c9_81, %c0_82, %c0_83] : memref<21x1x128xf32, #tpu.memory_space<vmem>>, vector<1x1x128xf32>
    %109 = vector.shape_cast %108 : vector<1x1x128xf32> to vector<1x128xf32>
    %110 = vector.broadcast %109 : vector<1x128xf32> to vector<512x128xf32>
    %111 = arith.addf %107, %110 : vector<512x128xf32>
    %cst_84 = arith.constant 0.000000e+00 : f32
    %112 = vector.broadcast %cst_84 : f32 to vector<512x128xf32>
    %113 = arith.maximumf %111, %112 : vector<512x128xf32>
    %114 = arith.truncf %113 : vector<512x128xf32> to vector<512x128xbf16>
    %c12 = arith.constant 12 : index
    %c0_85 = arith.constant 0 : index
    %c0_86 = arith.constant 0 : index
    %115 = vector.load %arg5[%c12, %c0_85, %c0_86] : memref<24x128x128xbf16, #tpu.memory_space<vmem>>, vector<1x128x128xbf16>
    %116 = vector.shape_cast %115 : vector<1x128x128xbf16> to vector<128x128xbf16>
    %cst_87 = arith.constant dense<0.000000e+00> : vector<512x128xf32>
    %117 = tpu.matmul %114, %116, %cst_87 {dimension_numbers = #tpu.dot_dimension_numbers<[1], [0], [0], [1], [0, 0, 1, 1], [], []>} : vector<512x128xbf16>, vector<128x128xbf16>, vector<512x128xf32> -> vector<512x128xf32>
    %c10_88 = arith.constant 10 : index
    %c0_89 = arith.constant 0 : index
    %c0_90 = arith.constant 0 : index
    %118 = vector.load %arg7[%c10_88, %c0_89, %c0_90] : memref<21x1x128xf32, #tpu.memory_space<vmem>>, vector<1x1x128xf32>
    %119 = vector.shape_cast %118 : vector<1x1x128xf32> to vector<1x128xf32>
    %120 = vector.broadcast %119 : vector<1x128xf32> to vector<512x128xf32>
    %121 = arith.addf %117, %120 : vector<512x128xf32>
    %cst_91 = arith.constant 0.000000e+00 : f32
    %122 = vector.broadcast %cst_91 : f32 to vector<512x128xf32>
    %123 = arith.maximumf %121, %122 : vector<512x128xf32>
    %124 = arith.truncf %123 : vector<512x128xf32> to vector<512x128xbf16>
    %c13 = arith.constant 13 : index
    %c0_92 = arith.constant 0 : index
    %c0_93 = arith.constant 0 : index
    %125 = vector.load %arg5[%c13, %c0_92, %c0_93] : memref<24x128x128xbf16, #tpu.memory_space<vmem>>, vector<1x128x128xbf16>
    %126 = vector.shape_cast %125 : vector<1x128x128xbf16> to vector<128x128xbf16>
    %cst_94 = arith.constant dense<0.000000e+00> : vector<512x128xf32>
    %127 = tpu.matmul %124, %126, %cst_94 {dimension_numbers = #tpu.dot_dimension_numbers<[1], [0], [0], [1], [0, 0, 1, 1], [], []>} : vector<512x128xbf16>, vector<128x128xbf16>, vector<512x128xf32> -> vector<512x128xf32>
    %c11_95 = arith.constant 11 : index
    %c0_96 = arith.constant 0 : index
    %c0_97 = arith.constant 0 : index
    %128 = vector.load %arg7[%c11_95, %c0_96, %c0_97] : memref<21x1x128xf32, #tpu.memory_space<vmem>>, vector<1x1x128xf32>
    %129 = vector.shape_cast %128 : vector<1x1x128xf32> to vector<1x128xf32>
    %130 = vector.broadcast %129 : vector<1x128xf32> to vector<512x128xf32>
    %131 = arith.addf %127, %130 : vector<512x128xf32>
    %cst_98 = arith.constant 0.000000e+00 : f32
    %132 = vector.broadcast %cst_98 : f32 to vector<512x128xf32>
    %133 = arith.maximumf %131, %132 : vector<512x128xf32>
    %134 = arith.truncf %133 : vector<512x128xf32> to vector<512x128xbf16>
    %c1_99 = arith.constant 1 : index
    %c0_100 = arith.constant 0 : index
    %c0_101 = arith.constant 0 : index
    %135 = vector.load %arg6[%c1_99, %c0_100, %c0_101] : memref<4x16x128xbf16, #tpu.memory_space<vmem>>, vector<1x16x128xbf16>
    %136 = vector.shape_cast %135 : vector<1x16x128xbf16> to vector<16x128xbf16>
    %cst_102 = arith.constant dense<0.000000e+00> : vector<512x128xf32>
    %137 = tpu.matmul %3, %136, %cst_102 {dimension_numbers = #tpu.dot_dimension_numbers<[1], [0], [0], [1], [0, 0, 1, 1], [], []>} : vector<512x16xbf16>, vector<16x128xbf16>, vector<512x128xf32> -> vector<512x128xf32>
    %c14 = arith.constant 14 : index
    %c0_103 = arith.constant 0 : index
    %c0_104 = arith.constant 0 : index
    %138 = vector.load %arg5[%c14, %c0_103, %c0_104] : memref<24x128x128xbf16, #tpu.memory_space<vmem>>, vector<1x128x128xbf16>
    %139 = vector.shape_cast %138 : vector<1x128x128xbf16> to vector<128x128xbf16>
    %cst_105 = arith.constant dense<0.000000e+00> : vector<512x128xf32>
    %140 = tpu.matmul %134, %139, %cst_105 {dimension_numbers = #tpu.dot_dimension_numbers<[1], [0], [0], [1], [0, 0, 1, 1], [], []>} : vector<512x128xbf16>, vector<128x128xbf16>, vector<512x128xf32> -> vector<512x128xf32>
    %141 = arith.addf %137, %140 : vector<512x128xf32>
    %c12_106 = arith.constant 12 : index
    %c0_107 = arith.constant 0 : index
    %c0_108 = arith.constant 0 : index
    %142 = vector.load %arg7[%c12_106, %c0_107, %c0_108] : memref<21x1x128xf32, #tpu.memory_space<vmem>>, vector<1x1x128xf32>
    %143 = vector.shape_cast %142 : vector<1x1x128xf32> to vector<1x128xf32>
    %144 = vector.broadcast %143 : vector<1x128xf32> to vector<512x128xf32>
    %145 = arith.addf %141, %144 : vector<512x128xf32>
    %cst_109 = arith.constant 0.000000e+00 : f32
    %146 = vector.broadcast %cst_109 : f32 to vector<512x128xf32>
    %147 = arith.maximumf %145, %146 : vector<512x128xf32>
    %148 = arith.truncf %147 : vector<512x128xf32> to vector<512x128xbf16>
    %c15 = arith.constant 15 : index
    %c0_110 = arith.constant 0 : index
    %c0_111 = arith.constant 0 : index
    %149 = vector.load %arg5[%c15, %c0_110, %c0_111] : memref<24x128x128xbf16, #tpu.memory_space<vmem>>, vector<1x128x128xbf16>
    %150 = vector.shape_cast %149 : vector<1x128x128xbf16> to vector<128x128xbf16>
    %cst_112 = arith.constant dense<0.000000e+00> : vector<512x128xf32>
    %151 = tpu.matmul %148, %150, %cst_112 {dimension_numbers = #tpu.dot_dimension_numbers<[1], [0], [0], [1], [0, 0, 1, 1], [], []>} : vector<512x128xbf16>, vector<128x128xbf16>, vector<512x128xf32> -> vector<512x128xf32>
    %c13_113 = arith.constant 13 : index
    %c0_114 = arith.constant 0 : index
    %c0_115 = arith.constant 0 : index
    %152 = vector.load %arg7[%c13_113, %c0_114, %c0_115] : memref<21x1x128xf32, #tpu.memory_space<vmem>>, vector<1x1x128xf32>
    %153 = vector.shape_cast %152 : vector<1x1x128xf32> to vector<1x128xf32>
    %154 = vector.broadcast %153 : vector<1x128xf32> to vector<512x128xf32>
    %155 = arith.addf %151, %154 : vector<512x128xf32>
    %cst_116 = arith.constant 0.000000e+00 : f32
    %156 = vector.broadcast %cst_116 : f32 to vector<512x128xf32>
    %157 = arith.maximumf %155, %156 : vector<512x128xf32>
    %158 = arith.truncf %157 : vector<512x128xf32> to vector<512x128xbf16>
    %c16 = arith.constant 16 : index
    %c0_117 = arith.constant 0 : index
    %c0_118 = arith.constant 0 : index
    %159 = vector.load %arg5[%c16, %c0_117, %c0_118] : memref<24x128x128xbf16, #tpu.memory_space<vmem>>, vector<1x128x128xbf16>
    %160 = vector.shape_cast %159 : vector<1x128x128xbf16> to vector<128x128xbf16>
    %cst_119 = arith.constant dense<0.000000e+00> : vector<512x128xf32>
    %161 = tpu.matmul %158, %160, %cst_119 {dimension_numbers = #tpu.dot_dimension_numbers<[1], [0], [0], [1], [0, 0, 1, 1], [], []>} : vector<512x128xbf16>, vector<128x128xbf16>, vector<512x128xf32> -> vector<512x128xf32>
    %c14_120 = arith.constant 14 : index
    %c0_121 = arith.constant 0 : index
    %c0_122 = arith.constant 0 : index
    %162 = vector.load %arg7[%c14_120, %c0_121, %c0_122] : memref<21x1x128xf32, #tpu.memory_space<vmem>>, vector<1x1x128xf32>
    %163 = vector.shape_cast %162 : vector<1x1x128xf32> to vector<1x128xf32>
    %164 = vector.broadcast %163 : vector<1x128xf32> to vector<512x128xf32>
    %165 = arith.addf %161, %164 : vector<512x128xf32>
    %cst_123 = arith.constant 0.000000e+00 : f32
    %166 = vector.broadcast %cst_123 : f32 to vector<512x128xf32>
    %167 = arith.maximumf %165, %166 : vector<512x128xf32>
    %168 = arith.truncf %167 : vector<512x128xf32> to vector<512x128xbf16>
    %c17 = arith.constant 17 : index
    %c0_124 = arith.constant 0 : index
    %c0_125 = arith.constant 0 : index
    %169 = vector.load %arg5[%c17, %c0_124, %c0_125] : memref<24x128x128xbf16, #tpu.memory_space<vmem>>, vector<1x128x128xbf16>
    %170 = vector.shape_cast %169 : vector<1x128x128xbf16> to vector<128x128xbf16>
    %cst_126 = arith.constant dense<0.000000e+00> : vector<512x128xf32>
    %171 = tpu.matmul %168, %170, %cst_126 {dimension_numbers = #tpu.dot_dimension_numbers<[1], [0], [0], [1], [0, 0, 1, 1], [], []>} : vector<512x128xbf16>, vector<128x128xbf16>, vector<512x128xf32> -> vector<512x128xf32>
    %c15_127 = arith.constant 15 : index
    %c0_128 = arith.constant 0 : index
    %c0_129 = arith.constant 0 : index
    %172 = vector.load %arg7[%c15_127, %c0_128, %c0_129] : memref<21x1x128xf32, #tpu.memory_space<vmem>>, vector<1x1x128xf32>
    %173 = vector.shape_cast %172 : vector<1x1x128xf32> to vector<1x128xf32>
    %174 = vector.broadcast %173 : vector<1x128xf32> to vector<512x128xf32>
    %175 = arith.addf %171, %174 : vector<512x128xf32>
    %cst_130 = arith.constant 0.000000e+00 : f32
    %176 = vector.broadcast %cst_130 : f32 to vector<512x128xf32>
    %177 = arith.maximumf %175, %176 : vector<512x128xf32>
    %178 = arith.truncf %177 : vector<512x128xf32> to vector<512x128xbf16>
    %c18 = arith.constant 18 : index
    %c0_131 = arith.constant 0 : index
    %c0_132 = arith.constant 0 : index
    %179 = vector.load %arg5[%c18, %c0_131, %c0_132] : memref<24x128x128xbf16, #tpu.memory_space<vmem>>, vector<1x128x128xbf16>
    %180 = vector.shape_cast %179 : vector<1x128x128xbf16> to vector<128x128xbf16>
    %cst_133 = arith.constant dense<0.000000e+00> : vector<512x128xf32>
    %181 = tpu.matmul %178, %180, %cst_133 {dimension_numbers = #tpu.dot_dimension_numbers<[1], [0], [0], [1], [0, 0, 1, 1], [], []>} : vector<512x128xbf16>, vector<128x128xbf16>, vector<512x128xf32> -> vector<512x128xf32>
    %c16_134 = arith.constant 16 : index
    %c0_135 = arith.constant 0 : index
    %c0_136 = arith.constant 0 : index
    %182 = vector.load %arg7[%c16_134, %c0_135, %c0_136] : memref<21x1x128xf32, #tpu.memory_space<vmem>>, vector<1x1x128xf32>
    %183 = vector.shape_cast %182 : vector<1x1x128xf32> to vector<1x128xf32>
    %184 = vector.broadcast %183 : vector<1x128xf32> to vector<512x128xf32>
    %185 = arith.addf %181, %184 : vector<512x128xf32>
    %cst_137 = arith.constant 0.000000e+00 : f32
    %186 = vector.broadcast %cst_137 : f32 to vector<512x128xf32>
    %187 = arith.maximumf %185, %186 : vector<512x128xf32>
    %188 = arith.truncf %187 : vector<512x128xf32> to vector<512x128xbf16>
    %c2_138 = arith.constant 2 : index
    %c0_139 = arith.constant 0 : index
    %c0_140 = arith.constant 0 : index
    %189 = vector.load %arg6[%c2_138, %c0_139, %c0_140] : memref<4x16x128xbf16, #tpu.memory_space<vmem>>, vector<1x16x128xbf16>
    %190 = vector.shape_cast %189 : vector<1x16x128xbf16> to vector<16x128xbf16>
    %cst_141 = arith.constant dense<0.000000e+00> : vector<512x128xf32>
    %191 = tpu.matmul %3, %190, %cst_141 {dimension_numbers = #tpu.dot_dimension_numbers<[1], [0], [0], [1], [0, 0, 1, 1], [], []>} : vector<512x16xbf16>, vector<16x128xbf16>, vector<512x128xf32> -> vector<512x128xf32>
    %c19 = arith.constant 19 : index
    %c0_142 = arith.constant 0 : index
    %c0_143 = arith.constant 0 : index
    %192 = vector.load %arg5[%c19, %c0_142, %c0_143] : memref<24x128x128xbf16, #tpu.memory_space<vmem>>, vector<1x128x128xbf16>
    %193 = vector.shape_cast %192 : vector<1x128x128xbf16> to vector<128x128xbf16>
    %cst_144 = arith.constant dense<0.000000e+00> : vector<512x128xf32>
    %194 = tpu.matmul %134, %193, %cst_144 {dimension_numbers = #tpu.dot_dimension_numbers<[1], [0], [0], [1], [0, 0, 1, 1], [], []>} : vector<512x128xbf16>, vector<128x128xbf16>, vector<512x128xf32> -> vector<512x128xf32>
    %195 = arith.addf %191, %194 : vector<512x128xf32>
    %c20 = arith.constant 20 : index
    %c0_145 = arith.constant 0 : index
    %c0_146 = arith.constant 0 : index
    %196 = vector.load %arg5[%c20, %c0_145, %c0_146] : memref<24x128x128xbf16, #tpu.memory_space<vmem>>, vector<1x128x128xbf16>
    %197 = vector.shape_cast %196 : vector<1x128x128xbf16> to vector<128x128xbf16>
    %cst_147 = arith.constant dense<0.000000e+00> : vector<512x128xf32>
    %198 = tpu.matmul %188, %197, %cst_147 {dimension_numbers = #tpu.dot_dimension_numbers<[1], [0], [0], [1], [0, 0, 1, 1], [], []>} : vector<512x128xbf16>, vector<128x128xbf16>, vector<512x128xf32> -> vector<512x128xf32>
    %199 = arith.addf %195, %198 : vector<512x128xf32>
    %c17_148 = arith.constant 17 : index
    %c0_149 = arith.constant 0 : index
    %c0_150 = arith.constant 0 : index
    %200 = vector.load %arg7[%c17_148, %c0_149, %c0_150] : memref<21x1x128xf32, #tpu.memory_space<vmem>>, vector<1x1x128xf32>
    %201 = vector.shape_cast %200 : vector<1x1x128xf32> to vector<1x128xf32>
    %202 = vector.broadcast %201 : vector<1x128xf32> to vector<512x128xf32>
    %203 = arith.addf %199, %202 : vector<512x128xf32>
    %cst_151 = arith.constant 0.000000e+00 : f32
    %204 = vector.broadcast %cst_151 : f32 to vector<512x128xf32>
    %205 = arith.maximumf %203, %204 : vector<512x128xf32>
    %206 = arith.truncf %205 : vector<512x128xf32> to vector<512x128xbf16>
    %c21 = arith.constant 21 : index
    %c0_152 = arith.constant 0 : index
    %c0_153 = arith.constant 0 : index
    %207 = vector.load %arg5[%c21, %c0_152, %c0_153] : memref<24x128x128xbf16, #tpu.memory_space<vmem>>, vector<1x128x128xbf16>
    %208 = vector.shape_cast %207 : vector<1x128x128xbf16> to vector<128x128xbf16>
    %cst_154 = arith.constant dense<0.000000e+00> : vector<512x128xf32>
    %209 = tpu.matmul %206, %208, %cst_154 {dimension_numbers = #tpu.dot_dimension_numbers<[1], [0], [0], [1], [0, 0, 1, 1], [], []>} : vector<512x128xbf16>, vector<128x128xbf16>, vector<512x128xf32> -> vector<512x128xf32>
    %c18_155 = arith.constant 18 : index
    %c0_156 = arith.constant 0 : index
    %c0_157 = arith.constant 0 : index
    %210 = vector.load %arg7[%c18_155, %c0_156, %c0_157] : memref<21x1x128xf32, #tpu.memory_space<vmem>>, vector<1x1x128xf32>
    %211 = vector.shape_cast %210 : vector<1x1x128xf32> to vector<1x128xf32>
    %212 = vector.broadcast %211 : vector<1x128xf32> to vector<512x128xf32>
    %213 = arith.addf %209, %212 : vector<512x128xf32>
    %cst_158 = arith.constant 0.000000e+00 : f32
    %214 = vector.broadcast %cst_158 : f32 to vector<512x128xf32>
    %215 = arith.maximumf %213, %214 : vector<512x128xf32>
    %216 = arith.truncf %215 : vector<512x128xf32> to vector<512x128xbf16>
    %c22 = arith.constant 22 : index
    %c0_159 = arith.constant 0 : index
    %c0_160 = arith.constant 0 : index
    %217 = vector.load %arg5[%c22, %c0_159, %c0_160] : memref<24x128x128xbf16, #tpu.memory_space<vmem>>, vector<1x128x128xbf16>
    %218 = vector.shape_cast %217 : vector<1x128x128xbf16> to vector<128x128xbf16>
    %cst_161 = arith.constant dense<0.000000e+00> : vector<512x128xf32>
    %219 = tpu.matmul %216, %218, %cst_161 {dimension_numbers = #tpu.dot_dimension_numbers<[1], [0], [0], [1], [0, 0, 1, 1], [], []>} : vector<512x128xbf16>, vector<128x128xbf16>, vector<512x128xf32> -> vector<512x128xf32>
    %c19_162 = arith.constant 19 : index
    %c0_163 = arith.constant 0 : index
    %c0_164 = arith.constant 0 : index
    %220 = vector.load %arg7[%c19_162, %c0_163, %c0_164] : memref<21x1x128xf32, #tpu.memory_space<vmem>>, vector<1x1x128xf32>
    %221 = vector.shape_cast %220 : vector<1x1x128xf32> to vector<1x128xf32>
    %222 = vector.broadcast %221 : vector<1x128xf32> to vector<512x128xf32>
    %223 = arith.addf %219, %222 : vector<512x128xf32>
    %cst_165 = arith.constant 0.000000e+00 : f32
    %224 = vector.broadcast %cst_165 : f32 to vector<512x128xf32>
    %225 = arith.maximumf %223, %224 : vector<512x128xf32>
    %226 = arith.truncf %225 : vector<512x128xf32> to vector<512x128xbf16>
    %c3_166 = arith.constant 3 : index
    %c0_167 = arith.constant 0 : index
    %c0_168 = arith.constant 0 : index
    %227 = vector.load %arg6[%c3_166, %c0_167, %c0_168] : memref<4x16x128xbf16, #tpu.memory_space<vmem>>, vector<1x16x128xbf16>
    %228 = vector.shape_cast %227 : vector<1x16x128xbf16> to vector<16x128xbf16>
    %cst_169 = arith.constant dense<0.000000e+00> : vector<512x128xf32>
    %229 = tpu.matmul %2, %228, %cst_169 {dimension_numbers = #tpu.dot_dimension_numbers<[1], [0], [0], [1], [0, 0, 1, 1], [], []>} : vector<512x16xbf16>, vector<16x128xbf16>, vector<512x128xf32> -> vector<512x128xf32>
    %c23 = arith.constant 23 : index
    %c0_170 = arith.constant 0 : index
    %c0_171 = arith.constant 0 : index
    %230 = vector.load %arg5[%c23, %c0_170, %c0_171] : memref<24x128x128xbf16, #tpu.memory_space<vmem>>, vector<1x128x128xbf16>
    %231 = vector.shape_cast %230 : vector<1x128x128xbf16> to vector<128x128xbf16>
    %cst_172 = arith.constant dense<0.000000e+00> : vector<512x128xf32>
    %232 = tpu.matmul %226, %231, %cst_172 {dimension_numbers = #tpu.dot_dimension_numbers<[1], [0], [0], [1], [0, 0, 1, 1], [], []>} : vector<512x128xbf16>, vector<128x128xbf16>, vector<512x128xf32> -> vector<512x128xf32>
    %233 = arith.addf %229, %232 : vector<512x128xf32>
    %c20_173 = arith.constant 20 : index
    %c0_174 = arith.constant 0 : index
    %c0_175 = arith.constant 0 : index
    %234 = vector.load %arg7[%c20_173, %c0_174, %c0_175] : memref<21x1x128xf32, #tpu.memory_space<vmem>>, vector<1x1x128xf32>
    %235 = vector.shape_cast %234 : vector<1x1x128xf32> to vector<1x128xf32>
    %236 = vector.broadcast %235 : vector<1x128xf32> to vector<512x128xf32>
    %237 = arith.addf %233, %236 : vector<512x128xf32>
    %cst_176 = arith.constant 0.000000e+00 : f32
    %238 = vector.broadcast %cst_176 : f32 to vector<512x128xf32>
    %239 = arith.maximumf %237, %238 : vector<512x128xf32>
    %240 = arith.truncf %239 : vector<512x128xf32> to vector<512x128xbf16>
    %c0_177 = arith.constant 0 : index
    %c0_178 = arith.constant 0 : index
    %241 = vector.load %arg8[%c0_177, %c0_178] : memref<128x4xbf16, #tpu.memory_space<vmem>>, vector<128x4xbf16>
    %cst_179 = arith.constant dense<0.000000e+00> : vector<512x4xf32>
    %242 = tpu.matmul %240, %241, %cst_179 {dimension_numbers = #tpu.dot_dimension_numbers<[1], [0], [0], [1], [0, 0, 1, 1], [], []>} : vector<512x128xbf16>, vector<128x4xbf16>, vector<512x4xf32> -> vector<512x4xf32>
    %c0_180 = arith.constant 0 : index
    %c0_181 = arith.constant 0 : index
    %243 = vector.load %arg9[%c0_180, %c0_181] : memref<128x4xbf16, #tpu.memory_space<vmem>>, vector<128x4xbf16>
    %cst_182 = arith.constant dense<0.000000e+00> : vector<512x4xf32>
    %244 = tpu.matmul %134, %243, %cst_182 {dimension_numbers = #tpu.dot_dimension_numbers<[1], [0], [0], [1], [0, 0, 1, 1], [], []>} : vector<512x128xbf16>, vector<128x4xbf16>, vector<512x4xf32> -> vector<512x4xf32>
    %245 = arith.addf %242, %244 : vector<512x4xf32>
    %c0_183 = arith.constant 0 : index
    %c0_184 = arith.constant 0 : index
    %246 = vector.load %arg10[%c0_183, %c0_184] : memref<1x4xf32, #tpu.memory_space<vmem>>, vector<1x4xf32>
    %247 = vector.broadcast %246 : vector<1x4xf32> to vector<512x4xf32>
    %248 = arith.addf %245, %247 : vector<512x4xf32>
    %c0_185 = arith.constant 0 : index
    %c0_186 = arith.constant 0 : index
    %249 = vector.load %arg11[%c0_185, %c0_186] : memref<512x4xf32, #tpu.memory_space<vmem>>, vector<512x4xf32>
    tpu.vector_store %arg11[%c0_185, %c0_186], %248 {strides = array<i32>} : memref<512x4xf32, #tpu.memory_space<vmem>>, vector<512x4xf32>,
    return
  }
  func.func @transform_0(%arg0: i32) -> (i32, i32) {
    %c0_i32 = arith.constant 0 : i32
    %c0_i32_0 = arith.constant 0 : i32
    return %arg0, %c0_i32 : i32, i32
  }
  func.func @transform_1(%arg0: i32) -> (i32, i32) {
    %c0_i32 = arith.constant 0 : i32
    %c0_i32_0 = arith.constant 0 : i32
    return %arg0, %c0_i32 : i32, i32
  }
  func.func @transform_2(%arg0: i32) -> (i32, i32) {
    %c0_i32 = arith.constant 0 : i32
    %c0_i32_0 = arith.constant 0 : i32
    return %arg0, %c0_i32 : i32, i32
  }
  func.func @transform_3(%arg0: i32) -> (i32, i32) {
    %c0_i32 = arith.constant 0 : i32
    %c0_i32_0 = arith.constant 0 : i32
    return %arg0, %c0_i32 : i32, i32
  }
  func.func @transform_4(%arg0: i32) -> (i32, i32, i32) {
    %c0_i32 = arith.constant 0 : i32
    %c0_i32_0 = arith.constant 0 : i32
    %c0_i32_1 = arith.constant 0 : i32
    %c0_i32_2 = arith.constant 0 : i32
    return %c0_i32, %c0_i32_0, %c0_i32_1 : i32, i32, i32
  }
  func.func @transform_5(%arg0: i32) -> (i32, i32, i32) {
    %c0_i32 = arith.constant 0 : i32
    %c0_i32_0 = arith.constant 0 : i32
    %c0_i32_1 = arith.constant 0 : i32
    %c0_i32_2 = arith.constant 0 : i32
    return %c0_i32, %c0_i32_0, %c0_i32_1 : i32, i32, i32
  }
  func.func @transform_6(%arg0: i32) -> (i32, i32, i32) {
    %c0_i32 = arith.constant 0 : i32
    %c0_i32_0 = arith.constant 0 : i32
    %c0_i32_1 = arith.constant 0 : i32
    %c0_i32_2 = arith.constant 0 : i32
    return %c0_i32, %c0_i32_0, %c0_i32_1 : i32, i32, i32
  }
  func.func @transform_7(%arg0: i32) -> (i32, i32) {
    %c0_i32 = arith.constant 0 : i32
    %c0_i32_0 = arith.constant 0 : i32
    %c0_i32_1 = arith.constant 0 : i32
    return %c0_i32, %c0_i32_0 : i32, i32
  }
  func.func @transform_8(%arg0: i32) -> (i32, i32) {
    %c0_i32 = arith.constant 0 : i32
    %c0_i32_0 = arith.constant 0 : i32
    %c0_i32_1 = arith.constant 0 : i32
    return %c0_i32, %c0_i32_0 : i32, i32
  }
  func.func @transform_9(%arg0: i32) -> (i32, i32) {
    %c0_i32 = arith.constant 0 : i32
    %c0_i32_0 = arith.constant 0 : i32
    %c0_i32_1 = arith.constant 0 : i32
    return %c0_i32, %c0_i32_0 : i32, i32
  }
  func.func @transform_10(%arg0: i32) -> (i32, i32) {
    %c0_i32 = arith.constant 0 : i32
    %c0_i32_0 = arith.constant 0 : i32
    return %arg0, %c0_i32 : i32, i32
  }
}

</mosaic_0001>

<bundles_post_ra>
// kernel: tpu_custom_call.1
= control target key start
LH: loop header
LB: loop body
LE: loop exit
PB: predicated region body
PF: predicated region fallthrough
CT: control target
= control target key end

     0   :  { %s18950_s13 = smov 0   ;;  %s22027_s0 = inlined_call_operand.vmem [shape: bf16[4096,16], index: 0, kind: input, shape index: {}]   ;;  %s22028_s1 = inlined_call_operand.vmem [shape: bf16[4096,128], index: 1, kind: input, shape index: {}]   ;;  %s22029_s2 = inlined_call_operand.vmem [shape: bf16[4096,16], index: 2, kind: input, shape index: {}]   ;;  %s22030_s3 = inlined_call_operand.vmem [shape: bf16[4096,16], index: 3, kind: input, shape index: {}]   ;;  %s22031_s4 = inlined_call_operand.vmem [shape: bf16[24,128,128], index: 4, kind: input, shape index: {}]   ;;  %s22032_s5 = inlined_call_operand.vmem [shape: bf16[4,16,128], index: 5, kind: input, shape index: {}]   ;;  %s22033_s6 = inlined_call_operand.vmem [shape: f32[21,1,128], index: 6, kind: input, shape index: {}]   ;;  %s22034_s7 = inlined_call_operand.vmem [shape: bf16[128,4], index: 7, kind: input, shape index: {}]   ;;  %s22035_s8 = inlined_call_operand.vmem [shape: bf16[128,4], index: 8, kind: input, shape index: {}]   ;;  %s22036_s9 = inlined_call_operand.vmem [shape: f32[1,4], index: 9, kind: input, shape index: {}]   ;;  %s22037_s10 = inlined_call_operand.vmem [shape: f32[4096,4], index: 10, kind: output, shape index: {}]  }
   0x1 LB: > { %s14192_s14 = sadd.s32 4294967295, %s18892_s13   ;;  %p14196_p0 = scmp.ge.s32.totalorder %s18892_s13, 1  ;;  %s18892_s13 = sphi %s18950_s13, %s20_s13  }
   0x2   : > { %p346_p1 = scmp.lt.s32.totalorder %s18892_s13, 9 }
   0x4   : > { %p347_p2 = pnand %p14196_p0, %p346_p1 }
   0x5   : > { %v18474_v0 = vld [vmem:[%s22032_s5] sm:$0xff] (!%p347_p2)   ;;  %s14197_s17 = sshll.u32 (!%p347_p2), %s14192_s14, 6  ;;  %v18504_v2 = vld [vmem:[%s22031_s4 + $0x8] sm:$0xff] (!%p347_p2)   ;;  %vm861_vm0 = vcmask (!%p347_p2), 130048   ;;  %v18505_v3 = vld [vmem:[%s22031_s4 + $0x10] sm:$0xff] (!%p347_p2)   ;;  %vm14035_vm1 = vcmask (!%p347_p2), 31744  }
   0x6   : > { %350 = sbr.rel (%p347_p2) target bundleno = 5434 (0x153a), region = 60  ;;  %p400_p3 = scmp.lt.s32.totalorder (!%p347_p2), %s14197_s17, 511  ;;  %16105 = vmatprep.subr.bf16.mxu0 (!%p347_p2), %v18474_v0  ;;  %v18501_v1 = vld [vmem:[%s22031_s4] sm:$0xff] (!%p347_p2)   ;;  %v18506_v7 = vld [vmem:[%s22031_s4 + $0x18] sm:$0xff] (!%p347_p2)   ;;  %v18510_v17 = vld [vmem:[%s22031_s4 + $0x28] sm:$0xff] (!%p347_p2)  }
   0x7   : > { %16106 = vmatpush3.bf16.msra.mxu0 (!%p347_p2), %v18474_v0  ;;  %16171 = vmatprep.subr.bf16.mxu1 (!%p347_p2), %v18501_v1  ;;  %v18507_v8 = vld [vmem:[%s22031_s4 + $0x20] sm:$0xff] (!%p347_p2)   ;;  %v18511_v32 = vld [vmem:[%s22031_s4 + $0x30] sm:$0xff] (!%p347_p2)   ;;  %v18512_v33 = vld [vmem:[%s22031_s4 + $0x38] sm:$0xff] (!%p347_p2)  }
   0x8   : > { %16172 = vmatpush3.bf16.msra.mxu1 (!%p347_p2), %v18501_v1  ;;  %v18515_v41 = vld [vmem:[%s22031_s4 + $0x40] sm:$0xff] (!%p347_p2)   ;;  %v18516_v42 = vld [vmem:[%s22031_s4 + $0x48] sm:$0xff] (!%p347_p2)   ;;  %v18517_v43 = vld [vmem:[%s22031_s4 + $0x50] sm:$0xff] (!%p347_p2)  }
   0x9   : > { %16173 = vmatprep.subr.bf16.mxu1 (!%p347_p2), %v18504_v2  ;;  %16251 = vmatprep.subr.bf16.mxu0 (!%p347_p2), %v18515_v41  ;;  %v18518_v44 = vld [vmem:[%s22031_s4 + $0x58] sm:$0xff] (!%p347_p2)   ;;  %v18519_v45 = vld [vmem:[%s22031_s4 + $0x60] sm:$0xff] (!%p347_p2)   ;;  %v18520_v46 = vld [vmem:[%s22031_s4 + $0x68] sm:$0xff] (!%p347_p2)  }
   0xa   : > { %v18521_v47 = vld [vmem:[%s22031_s4 + $0x70] sm:$0xff] (!%p347_p2)   ;;  %v18522_v48 = vld [vmem:[%s22031_s4 + $0x78] sm:$0xff] (!%p347_p2)   ;;  %v19093_v49 = vld [vmem:[%s22033_s6] ss:$0 sm:$0xff] (!%p347_p2) }
   0xc   : > { %16174 = vmatpush3.bf16.msra.mxu1 (!%p347_p2), %v18504_v2 }
   0xd   : > { %s22039_s17 = smov (!%p400_p3, %s14197_s17), 511  ;;  %16175 = vmatprep.subr.bf16.mxu1 %v18505_v3 }
   0xe   : > { %s18970_s22 = sshll.u32 %s22039_s17, 2 }
   0xf   : > { %s18976_s25 = scalar_lea.vmem %s22027_s0, %s18970_s22  ;;  %s19024_s18 = scalar_lea.vmem %s22028_s1, %s18970_s22 }
  0x10   : > { %v18475_v4 = vld [vmem:[%s18976_s25] sm:$0xff]   ;;  %v18476_v5 = vld [vmem:[%s18976_s25 + $0x8] sm:$0xff]   ;;  %v18477_v6 = vld [vmem:[%s18976_s25 + $0x10] sm:$0xff]   ;;  %16176 = vmatpush3.bf16.msra.mxu1 %v18505_v3  ;;  %s20546_s14 = scalar_lea.vmem %s22030_s3, %s18970_s22  ;;  %s21570_s16 = scalar_lea.vmem %s22029_s2, %s18970_s22 }
  0x11   : > { %16107 = vmatprep.mubr.msk.bf16.mxu0 %vm861_vm0, %v18475_v4  ;;  %v18478_v9 = vld [vmem:[%s18976_s25 + $0x18] sm:$0xff]   ;;  %16177 = vmatprep.subr.bf16.mxu1 %v18506_v7  ;;  %v18479_v10 = vld [vmem:[%s18976_s25 + $0x20] sm:$0xff]   ;;  %v18480_v11 = vld [vmem:[%s18976_s25 + $0x28] sm:$0xff]  }
  0x12   : > { %16108 = vmatmul.mubr.msk.bf16.vlgmr.msra.gmra.mrb[0].mxu0 %vm861_vm0, %v18476_v5  ;;  %v18481_v12 = vld [vmem:[%s18976_s25 + $0x30] sm:$0xff]   ;;  %v18482_v13 = vld [vmem:[%s18976_s25 + $0x38] sm:$0xff]   ;;  %v18483_v14 = vld [vmem:[%s18976_s25 + $0x40] sm:$0xff]  }
  0x13   : > { %16111 = vmatprep.mubr.msk.bf16.mxu0 %vm861_vm0, %v18477_v6  ;;  %v18484_v15 = vld [vmem:[%s18976_s25 + $0x48] sm:$0xff]   ;;  %v18485_v16 = vld [vmem:[%s18976_s25 + $0x50] sm:$0xff]   ;;  %v18486_v18 = vld [vmem:[%s18976_s25 + $0x58] sm:$0xff]   ;;  %16252 = vmatpush3.bf16.msra.mxu0 %v18515_v41 }
  0x14   : > { %16178 = vmatpush3.bf16.msra.mxu1 %v18506_v7  ;;  %v18487_v19 = vld [vmem:[%s18976_s25 + $0x60] sm:$0xff]   ;;  %v18488_v20 = vld [vmem:[%s18976_s25 + $0x68] sm:$0xff]   ;;  %v18489_v21 = vld [vmem:[%s18976_s25 + $0x70] sm:$0xff]   ;;  %16253 = vmatprep.subr.bf16.mxu0 %v18516_v42 }
  0x15   : > { %16179 = vmatprep.subr.bf16.mxu1 %v18507_v8  ;;  %v18490_v22 = vld [vmem:[%s18976_s25 + $0x78] sm:$0xff]   ;;  %v18491_v23 = vld [vmem:[%s18976_s25 + $0x80] sm:$0xff]   ;;  %v18492_v24 = vld [vmem:[%s18976_s25 + $0x88] sm:$0xff]  }
  0x16   : > { %v18493_v25 = vld [vmem:[%s18976_s25 + $0x90] sm:$0xff]   ;;  %v18494_v26 = vld [vmem:[%s18976_s25 + $0x98] sm:$0xff]   ;;  %v18495_v27 = vld [vmem:[%s18976_s25 + $0xa0] sm:$0xff]  }
  0x17   : > { %v18496_v28 = vld [vmem:[%s18976_s25 + $0xa8] sm:$0xff]   ;;  %v18497_v29 = vld [vmem:[%s18976_s25 + $0xb0] sm:$0xff]   ;;  %v18498_v30 = vld [vmem:[%s18976_s25 + $0xb8] sm:$0xff]   ;;  %16254 = vmatpush3.bf16.msra.mxu0 %v18516_v42 }
  0x18   : > { %16180 = vmatpush3.bf16.msra.mxu1 %v18507_v8  ;;  %v18499_v31 = vld [vmem:[%s18976_s25 + $0xc0] sm:$0xff]   ;;  %v18500_v34 = vld [vmem:[%s18976_s25 + $0xc8] sm:$0xff]   ;;  %v18502_v35 = vld [vmem:[%s18976_s25 + $0xd0] sm:$0xff]   ;;  %16255 = vmatprep.subr.bf16.mxu0 %v18517_v43 }
  0x19   : > { %16181 = vmatprep.subr.bf16.mxu1 %v18510_v17  ;;  %v18503_v36 = vld [vmem:[%s18976_s25 + $0xd8] sm:$0xff]   ;;  %v18508_v37 = vld [vmem:[%s18976_s25 + $0xe0] sm:$0xff]   ;;  %v18509_v38 = vld [vmem:[%s18976_s25 + $0xe8] sm:$0xff]  }
  0x1a   : > { %16112 = vmatmul.mubr.msk.bf16.gmra.mrb[4].mxu0 %vm861_vm0, %v18478_v9  ;;  %v18513_v39 = vld [vmem:[%s18976_s25 + $0xf0] sm:$0xff]   ;;  %v18514_v40 = vld [vmem:[%s18976_s25 + $0xf8] sm:$0xff]  }
  0x1b   : > { %16115 = vmatprep.mubr.msk.bf16.mxu0 %vm861_vm0, %v18479_v10  ;;  %16256 = vmatpush3.bf16.msra.mxu0 %v18517_v43 }
  0x1c   : > { %16182 = vmatpush3.bf16.msra.mxu1 %v18510_v17  ;;  %16257 = vmatprep.subr.bf16.mxu0 %v18518_v44 }
  0x1d   : > { %16183 = vmatprep.subr.bf16.mxu1 %v18511_v32 }
  0x1f   : > { %16258 = vmatpush3.bf16.msra.mxu0 %v18518_v44 }
  0x20   : > { %16184 = vmatpush3.bf16.msra.mxu1 %v18511_v32  ;;  %16259 = vmatprep.subr.bf16.mxu0 %v18519_v45 }
  0x21   : > { %16185 = vmatprep.subr.bf16.mxu1 %v18512_v33 }
  0x22   : > { %16116 = vmatmul.mubr.msk.bf16.gmra.mrb[8].mxu0 %vm861_vm0, %v18480_v11 }
  0x23   : > { %16119 = vmatprep.mubr.msk.bf16.mxu0 %vm861_vm0, %v18481_v12  ;;  %16260 = vmatpush3.bf16.msra.mxu0 %v18519_v45 }
  0x24   : > { %16186 = vmatpush3.bf16.msra.mxu1 %v18512_v33  ;;  %16261 = vmatprep.subr.bf16.mxu0 %v18520_v46 }
  0x27   : > { %16262 = vmatpush3.bf16.msra.mxu0 %v18520_v46 }
  0x28   : > { %16263 = vmatprep.subr.bf16.mxu0 %v18521_v47 }
  0x2a   : > { %16120 = vmatmul.mubr.msk.bf16.gmra.mrb[12].mxu0 %vm861_vm0, %v18482_v13 }
  0x2b   : > { %16123 = vmatprep.mubr.msk.bf16.mxu0 %vm861_vm0, %v18483_v14  ;;  %16264 = vmatpush3.bf16.msra.mxu0 %v18521_v47 }
  0x2c   : > { %16265 = vmatprep.subr.bf16.mxu0 %v18522_v48 }
  0x2f   : > { %16266 = vmatpush3.bf16.msra.mxu0 %v18522_v48 }
  0x32   : > { %16124 = vmatmul.mubr.msk.bf16.gmra.mrb[16].mxu0 %vm861_vm0, %v18484_v15 }
  0x33   : > { %16127 = vmatprep.mubr.msk.bf16.mxu0 %vm861_vm0, %v18485_v16 }
  0x3a   : > { %16128 = vmatmul.mubr.msk.bf16.gmra.mrb[20].mxu0 %vm861_vm0, %v18486_v18 }
  0x3b   : > { %16131 = vmatprep.mubr.msk.bf16.mxu0 %vm861_vm0, %v18487_v19 }
  0x42   : > { %16132 = vmatmul.mubr.msk.bf16.gmra.mrb[24].mxu0 %vm861_vm0, %v18488_v20 }
  0x43   : > { %16135 = vmatprep.mubr.msk.bf16.mxu0 %vm861_vm0, %v18489_v21 }
  0x4a   : > { %16136 = vmatmul.mubr.msk.bf16.gmra.mrb[28].mxu0 %vm861_vm0, %v18490_v22 }
  0x4b   : > { %16139 = vmatprep.mubr.msk.bf16.mxu0 %vm861_vm0, %v18491_v23 }
  0x52   : > { %16140 = vmatmul.mubr.msk.bf16.gmra.mrb[32].mxu0 %vm861_vm0, %v18492_v24 }
  0x53   : > { %16143 = vmatprep.mubr.msk.bf16.mxu0 %vm861_vm0, %v18493_v25 }
  0x5a   : > { %16144 = vmatmul.mubr.msk.bf16.gmra.mrb[36].mxu0 %vm861_vm0, %v18494_v26 }
  0x5b   : > { %16147 = vmatprep.mubr.msk.bf16.mxu0 %vm861_vm0, %v18495_v27 }
  0x62   : > { %16148 = vmatmul.mubr.msk.bf16.gmra.mrb[40].mxu0 %vm861_vm0, %v18496_v28 }
  0x63   : > { %16151 = vmatprep.mubr.msk.bf16.mxu0 %vm861_vm0, %v18497_v29 }
  0x6a   : > { %16152 = vmatmul.mubr.msk.bf16.gmra.mrb[44].mxu0 %vm861_vm0, %v18498_v30 }
  0x6b   : > { %16155 = vmatprep.mubr.msk.bf16.mxu0 %vm861_vm0, %v18499_v31 }
  0x72   : > { %16156 = vmatmul.mubr.msk.bf16.gmra.mrb[48].mxu0 %vm861_vm0, %v18500_v34 }
  0x73   : > { %16159 = vmatprep.mubr.msk.bf16.mxu0 %vm861_vm0, %v18502_v35 }
  0x7a   : > { %16160 = vmatmul.mubr.msk.bf16.gmra.mrb[52].mxu0 %vm861_vm0, %v18503_v36 }
  0x7b   : > { %16163 = vmatprep.mubr.msk.bf16.mxu0 %vm861_vm0, %v18508_v37 }
  0x82   : > { %16164 = vmatmul.mubr.msk.bf16.gmra.mrb[56].mxu0 %vm861_vm0, %v18509_v38 }
  0x83   : > { %16167 = vmatprep.mubr.msk.bf16.mxu0 %vm861_vm0, %v18513_v39 }
  0x8a   : > { %16168 = vmatmul.mubr.msk.bf16.gmra.mrb[60].mxu0 %vm861_vm0, %v18514_v40 }
  0xe5   : > { %v16109_v50 = vpop.f32.mrb[0].mxu0 }
  0xe6   : > { %v1001_v51 = vadd.f32 %v16109_v50, %v19093_v49  ;;  %v992_v52 = vpop.f32.mrb[1].mxu0 }
  0xe7   : > { %v16110_v53 = vpop.f32.mrb[2].mxu0  ;;  %v993_v54 = vadd.f32 %v19093_v49, %v992_v52 }
  0xe8   : > { %v1004_v55 = vadd.f32 %v16110_v53, %v19093_v49  ;;  %v995_v56 = vpop.f32.mrb[3].mxu0  ;;  %v1249_v58 = vmax.f32 %v1001_v51, 0.0 }
  0xe9   : > { %v996_v57 = vadd.f32 %v19093_v49, %v995_v56  ;;  %v1247_v60 = vmax.f32 %v993_v54, 0.0 }
  0xea   : > { %v1250_v59 = vmax.f32 %v1004_v55, 0.0 }
  0xeb   : > { %v1248_v61 = vmax.f32 %v996_v57, 0.0 }
  0xec   : > { %v1312_v62 = vpack.c.bf16 %v1250_v59, %v1249_v58 }
  0xed   : > { %v16113_v63 = vpop.f32.mrb[4].mxu0  ;;  %v1311_v0 = vpack.c.bf16 %v1248_v61, %v1247_v60 }
  0xee   : > { %v1017_v1 = vadd.f32 %v16113_v63, %v19093_v49  ;;  %v1008_v2 = vpop.f32.mrb[5].mxu0 }
  0xef   : > { %v1009_v3 = vadd.f32 %v19093_v49, %v1008_v2  ;;  %v16114_v4 = vpop.f32.mrb[6].mxu0  ;;  %16187 = vmatprep.mubr.bf16.mxu1 %v1311_v0 }
  0xf0   : > { %v1253_v5 = vmax.f32 %v1017_v1, 0.0  ;;  %v1020_v6 = vadd.f32 %v16114_v4, %v19093_v49  ;;  %v1011_v7 = vpop.f32.mrb[7].mxu0  ;;  %16188 = vmatmul.mubr.bf16.vlgmr.msra.gmra.mrb[0].mxu1 %v1312_v62 }
  0xf1   : > { %v1251_v8 = vmax.f32 %v1009_v3, 0.0  ;;  %v1012_v9 = vadd.f32 %v19093_v49, %v1011_v7 }
  0xf2   : > { %v1254_v10 = vmax.f32 %v1020_v6, 0.0 }
  0xf3   : > { %v1252_v11 = vmax.f32 %v1012_v9, 0.0 }
  0xf4   : > { %v1314_v12 = vpack.c.bf16 %v1254_v10, %v1253_v5 }
  0xf5   : > { %v16117_v13 = vpop.f32.mrb[8].mxu0  ;;  %v1313_v14 = vpack.c.bf16 %v1252_v11, %v1251_v8 }
  0xf6   : > { %v1033_v15 = vadd.f32 %v16117_v13, %v19093_v49  ;;  %v1024_v16 = vpop.f32.mrb[9].mxu0 }
  0xf7   : > { %v1025_v17 = vadd.f32 %v19093_v49, %v1024_v16  ;;  %16191 = vmatprep.mubr.bf16.mxu1 %v1313_v14  ;;  %v16118_v18 = vpop.f32.mrb[10].mxu0 }
  0xf8   : > { %v1257_v19 = vmax.f32 %v1033_v15, 0.0  ;;  %v1036_v20 = vadd.f32 %v16118_v18, %v19093_v49  ;;  %16192 = vmatmul.mubr.bf16.gmra.mrb[4].mxu1 %v1314_v12  ;;  %v1027_v21 = vpop.f32.mrb[11].mxu0 }
  0xf9   : > { %v1255_v22 = vmax.f32 %v1025_v17, 0.0  ;;  %v1028_v23 = vadd.f32 %v19093_v49, %v1027_v21 }
  0xfa   : > { %v1258_v24 = vmax.f32 %v1036_v20, 0.0 }
  0xfb   : > { %v1256_v25 = vmax.f32 %v1028_v23, 0.0 }
  0xfc   : > { %v1316_v26 = vpack.c.bf16 %v1258_v24, %v1257_v19 }
  0xfd   : > { %v1315_v27 = vpack.c.bf16 %v1256_v25, %v1255_v22  ;;  %v16121_v28 = vpop.f32.mrb[12].mxu0 }
  0xfe   : > { %v1049_v29 = vadd.f32 %v16121_v28, %v19093_v49  ;;  %v1040_v30 = vpop.f32.mrb[13].mxu0 }
  0xff   : > { %16195 = vmatprep.mubr.bf16.mxu1 %v1315_v27  ;;  %v1041_v31 = vadd.f32 %v19093_v49, %v1040_v30  ;;  %v16122_v32 = vpop.f32.mrb[14].mxu0 }
 0x100   : > { %16196 = vmatmul.mubr.bf16.gmra.mrb[8].mxu1 %v1316_v26  ;;  %v1261_v33 = vmax.f32 %v1049_v29, 0.0  ;;  %v1052_v34 = vadd.f32 %v16122_v32, %v19093_v49  ;;  %v1043_v35 = vpop.f32.mrb[15].mxu0 }
 0x101   : > { %v1259_v36 = vmax.f32 %v1041_v31, 0.0  ;;  %v1044_v37 = vadd.f32 %v19093_v49, %v1043_v35 }
 0x102   : > { %v1262_v38 = vmax.f32 %v1052_v34, 0.0 }
 0x103   : > { %v1260_v39 = vmax.f32 %v1044_v37, 0.0 }
 0x104   : > { %v1318_v40 = vpack.c.bf16 %v1262_v38, %v1261_v33 }
 0x105   : > { %v1317_v41 = vpack.c.bf16 %v1260_v39, %v1259_v36  ;;  %v16125_v42 = vpop.f32.mrb[16].mxu0 }
 0x106   : > { %v1065_v43 = vadd.f32 %v16125_v42, %v19093_v49  ;;  %v1056_v44 = vpop.f32.mrb[17].mxu0 }
 0x107   : > { %16199 = vmatprep.mubr.bf16.mxu1 %v1317_v41  ;;  %v1057_v45 = vadd.f32 %v19093_v49, %v1056_v44  ;;  %v16126_v46 = vpop.f32.mrb[18].mxu0 }
 0x108   : > { %16200 = vmatmul.mubr.bf16.gmra.mrb[12].mxu1 %v1318_v40  ;;  %v1265_v47 = vmax.f32 %v1065_v43, 0.0  ;;  %v1068_v48 = vadd.f32 %v16126_v46, %v19093_v49  ;;  %v1059_v50 = vpop.f32.mrb[19].mxu0 }
 0x109   : > { %v1263_v51 = vmax.f32 %v1057_v45, 0.0  ;;  %v1060_v52 = vadd.f32 %v19093_v49, %v1059_v50 }
 0x10a   : > { %v1266_v53 = vmax.f32 %v1068_v48, 0.0 }
 0x10b   : > { %v1264_v54 = vmax.f32 %v1060_v52, 0.0 }
 0x10c   : > { %v1320_v55 = vpack.c.bf16 %v1266_v53, %v1265_v47 }
 0x10d   : > { %v1319_v56 = vpack.c.bf16 %v1264_v54, %v1263_v51  ;;  %v16129_v57 = vpop.f32.mrb[20].mxu0 }
 0x10e   : > { %v1081_v58 = vadd.f32 %v16129_v57, %v19093_v49  ;;  %v1072_v59 = vpop.f32.mrb[21].mxu0 }
 0x10f   : > { %16203 = vmatprep.mubr.bf16.mxu1 %v1319_v56  ;;  %v1073_v60 = vadd.f32 %v19093_v49, %v1072_v59  ;;  %v16130_v61 = vpop.f32.mrb[22].mxu0 }
 0x110   : > { %16204 = vmatmul.mubr.bf16.gmra.mrb[16].mxu1 %v1320_v55  ;;  %v1269_v62 = vmax.f32 %v1081_v58, 0.0  ;;  %v1084_v63 = vadd.f32 %v16130_v61, %v19093_v49  ;;  %v1075_v0 = vpop.f32.mrb[23].mxu0 }
 0x111   : > { %v1267_v1 = vmax.f32 %v1073_v60, 0.0  ;;  %v1076_v2 = vadd.f32 %v19093_v49, %v1075_v0 }
 0x112   : > { %v1270_v3 = vmax.f32 %v1084_v63, 0.0 }
 0x113   : > { %v1268_v4 = vmax.f32 %v1076_v2, 0.0 }
 0x114   : > { %v1322_v5 = vpack.c.bf16 %v1270_v3, %v1269_v62 }
 0x115   : > { %v1321_v6 = vpack.c.bf16 %v1268_v4, %v1267_v1  ;;  %v16133_v7 = vpop.f32.mrb[24].mxu0 }
 0x116   : > { %v1097_v8 = vadd.f32 %v16133_v7, %v19093_v49  ;;  %v1088_v9 = vpop.f32.mrb[25].mxu0 }
 0x117   : > { %16207 = vmatprep.mubr.bf16.mxu1 %v1321_v6  ;;  %v1089_v10 = vadd.f32 %v19093_v49, %v1088_v9  ;;  %v16134_v11 = vpop.f32.mrb[26].mxu0 }
 0x118   : > { %16208 = vmatmul.mubr.bf16.gmra.mrb[20].mxu1 %v1322_v5  ;;  %v1273_v12 = vmax.f32 %v1097_v8, 0.0  ;;  %v1100_v13 = vadd.f32 %v16134_v11, %v19093_v49  ;;  %v1091_v14 = vpop.f32.mrb[27].mxu0 }
 0x119   : > { %v1271_v15 = vmax.f32 %v1089_v10, 0.0  ;;  %v1092_v16 = vadd.f32 %v19093_v49, %v1091_v14 }
 0x11a   : > { %v1274_v17 = vmax.f32 %v1100_v13, 0.0 }
 0x11b   : > { %v1272_v18 = vmax.f32 %v1092_v16, 0.0 }
 0x11c   : > { %v1324_v19 = vpack.c.bf16 %v1274_v17, %v1273_v12 }
 0x11d   : > { %v1323_v20 = vpack.c.bf16 %v1272_v18, %v1271_v15  ;;  %v16137_v21 = vpop.f32.mrb[28].mxu0 }
 0x11e   : > { %v1113_v22 = vadd.f32 %v16137_v21, %v19093_v49  ;;  %v1104_v23 = vpop.f32.mrb[29].mxu0 }
 0x11f   : > { %16211 = vmatprep.mubr.bf16.mxu1 %v1323_v20  ;;  %v1105_v24 = vadd.f32 %v19093_v49, %v1104_v23  ;;  %v16138_v25 = vpop.f32.mrb[30].mxu0 }
 0x120   : > { %16212 = vmatmul.mubr.bf16.gmra.mrb[24].mxu1 %v1324_v19  ;;  %v1277_v26 = vmax.f32 %v1113_v22, 0.0  ;;  %v1116_v27 = vadd.f32 %v16138_v25, %v19093_v49  ;;  %v1107_v28 = vpop.f32.mrb[31].mxu0 }
 0x121   : > { %v1275_v29 = vmax.f32 %v1105_v24, 0.0  ;;  %v1108_v30 = vadd.f32 %v19093_v49, %v1107_v28 }
 0x122   : > { %v1278_v31 = vmax.f32 %v1116_v27, 0.0 }
 0x123   : > { %v1276_v32 = vmax.f32 %v1108_v30, 0.0 }
 0x124   : > { %v1326_v33 = vpack.c.bf16 %v1278_v31, %v1277_v26 }
 0x125   : > { %v1325_v34 = vpack.c.bf16 %v1276_v32, %v1275_v29  ;;  %v16141_v35 = vpop.f32.mrb[32].mxu0 }
 0x126   : > { %v1129_v36 = vadd.f32 %v16141_v35, %v19093_v49  ;;  %v1120_v37 = vpop.f32.mrb[33].mxu0 }
 0x127   : > { %16215 = vmatprep.mubr.bf16.mxu1 %v1325_v34  ;;  %v1121_v38 = vadd.f32 %v19093_v49, %v1120_v37  ;;  %v16142_v39 = vpop.f32.mrb[34].mxu0 }
 0x128   : > { %16216 = vmatmul.mubr.bf16.gmra.mrb[28].mxu1 %v1326_v33  ;;  %v1281_v40 = vmax.f32 %v1129_v36, 0.0  ;;  %v1132_v41 = vadd.f32 %v16142_v39, %v19093_v49  ;;  %v1123_v42 = vpop.f32.mrb[35].mxu0 }
 0x129   : > { %v1279_v43 = vmax.f32 %v1121_v38, 0.0  ;;  %v1124_v44 = vadd.f32 %v19093_v49, %v1123_v42 }
 0x12a   : > { %v1282_v45 = vmax.f32 %v1132_v41, 0.0 }
 0x12b   : > { %v1280_v46 = vmax.f32 %v1124_v44, 0.0 }
 0x12c   : > { %v1328_v47 = vpack.c.bf16 %v1282_v45, %v1281_v40 }
 0x12d   : > { %v1327_v48 = vpack.c.bf16 %v1280_v46, %v1279_v43  ;;  %v16145_v50 = vpop.f32.mrb[36].mxu0 }
 0x12e   : > { %v1145_v51 = vadd.f32 %v16145_v50, %v19093_v49  ;;  %v1136_v52 = vpop.f32.mrb[37].mxu0 }
 0x12f   : > { %16219 = vmatprep.mubr.bf16.mxu1 %v1327_v48  ;;  %v1137_v53 = vadd.f32 %v19093_v49, %v1136_v52  ;;  %v16146_v54 = vpop.f32.mrb[38].mxu0 }
 0x130   : > { %16220 = vmatmul.mubr.bf16.gmra.mrb[32].mxu1 %v1328_v47  ;;  %v1285_v55 = vmax.f32 %v1145_v51, 0.0  ;;  %v1148_v56 = vadd.f32 %v16146_v54, %v19093_v49  ;;  %v1139_v57 = vpop.f32.mrb[39].mxu0 }
 0x131   : > { %v1283_v58 = vmax.f32 %v1137_v53, 0.0  ;;  %v1140_v59 = vadd.f32 %v19093_v49, %v1139_v57 }
 0x132   : > { %v1286_v60 = vmax.f32 %v1148_v56, 0.0 }
 0x133   : > { %v1284_v61 = vmax.f32 %v1140_v59, 0.0 }
 0x134   : > { %v1330_v62 = vpack.c.bf16 %v1286_v60, %v1285_v55 }
 0x135   : > { %v1329_v63 = vpack.c.bf16 %v1284_v61, %v1283_v58  ;;  %v16149_v0 = vpop.f32.mrb[40].mxu0 }
 0x136   : > { %v1161_v1 = vadd.f32 %v16149_v0, %v19093_v49  ;;  %v1152_v2 = vpop.f32.mrb[41].mxu0 }
 0x137   : > { %16223 = vmatprep.mubr.bf16.mxu1 %v1329_v63  ;;  %v1153_v3 = vadd.f32 %v19093_v49, %v1152_v2  ;;  %v16150_v4 = vpop.f32.mrb[42].mxu0 }
 0x138   : > { %16224 = vmatmul.mubr.bf16.gmra.mrb[36].mxu1 %v1330_v62  ;;  %v1289_v5 = vmax.f32 %v1161_v1, 0.0  ;;  %v1164_v6 = vadd.f32 %v16150_v4, %v19093_v49  ;;  %v1155_v7 = vpop.f32.mrb[43].mxu0 }
 0x139   : > { %v1287_v8 = vmax.f32 %v1153_v3, 0.0  ;;  %v1156_v9 = vadd.f32 %v19093_v49, %v1155_v7 }
 0x13a   : > { %v1290_v10 = vmax.f32 %v1164_v6, 0.0 }
 0x13b   : > { %v1288_v11 = vmax.f32 %v1156_v9, 0.0 }
 0x13c   : > { %v1332_v12 = vpack.c.bf16 %v1290_v10, %v1289_v5 }
 0x13d   : > { %v1331_v13 = vpack.c.bf16 %v1288_v11, %v1287_v8  ;;  %v16153_v14 = vpop.f32.mrb[44].mxu0 }
 0x13e   : > { %v1177_v15 = vadd.f32 %v16153_v14, %v19093_v49  ;;  %v1168_v16 = vpop.f32.mrb[45].mxu0 }
 0x13f   : > { %16227 = vmatprep.mubr.bf16.mxu1 %v1331_v13  ;;  %v1169_v17 = vadd.f32 %v19093_v49, %v1168_v16  ;;  %v16154_v18 = vpop.f32.mrb[46].mxu0 }
 0x140   : > { %16228 = vmatmul.mubr.bf16.gmra.mrb[40].mxu1 %v1332_v12  ;;  %v1293_v19 = vmax.f32 %v1177_v15, 0.0  ;;  %v1180_v20 = vadd.f32 %v16154_v18, %v19093_v49  ;;  %v1171_v21 = vpop.f32.mrb[47].mxu0 }
 0x141   : > { %v1291_v22 = vmax.f32 %v1169_v17, 0.0  ;;  %v1172_v23 = vadd.f32 %v19093_v49, %v1171_v21  ;;  %v18523_v21 = vld [vmem:[%s22031_s4 + $0x80] sm:$0xff]  }
 0x142   : > { %v1294_v24 = vmax.f32 %v1180_v20, 0.0  ;;  %16331 = vmatprep.subr.bf16.mxu1 %v18523_v21 }
 0x143   : > { %v1292_v25 = vmax.f32 %v1172_v23, 0.0  ;;  %16332 = vmatpush3.bf16.msra.mxu1 %v18523_v21  ;;  %v18526_v23 = vld [vmem:[%s22031_s4 + $0x98] sm:$0xff]  }
 0x144   : > { %v1334_v26 = vpack.c.bf16 %v1294_v24, %v1293_v19  ;;  %v18527_v24 = vld [vmem:[%s22031_s4 + $0xa0] sm:$0xff]  }
 0x145   : > { %v1333_v27 = vpack.c.bf16 %v1292_v25, %v1291_v22  ;;  %v16157_v28 = vpop.f32.mrb[48].mxu0  ;;  %v18524_v22 = vld [vmem:[%s22031_s4 + $0x88] sm:$0xff]  }
 0x146   : > { %v1193_v29 = vadd.f32 %v16157_v28, %v19093_v49  ;;  %v1184_v30 = vpop.f32.mrb[49].mxu0  ;;  %16333 = vmatprep.subr.bf16.mxu1 %v18524_v22  ;;  %v18528_v25 = vld [vmem:[%s22031_s4 + $0xa8] sm:$0xff]   ;;  %v19186_v28 = vld [vmem:[%s22033_s6 + $0x1] ss:$0 sm:$0xff] }
 0x147   : > { %16231 = vmatprep.mubr.bf16.mxu1 %v1333_v27  ;;  %v1185_v31 = vadd.f32 %v19093_v49, %v1184_v30  ;;  %v16158_v32 = vpop.f32.mrb[50].mxu0  ;;  %16334 = vmatpush3.bf16.msra.mxu1 %v18524_v22  ;;  %v18530_v27 = vld [vmem:[%s22031_s4 + $0xb8] sm:$0xff]  }
 0x148   : > { %16232 = vmatmul.mubr.bf16.gmra.mrb[44].mxu1 %v1334_v26  ;;  %v1297_v33 = vmax.f32 %v1193_v29, 0.0  ;;  %v1196_v34 = vadd.f32 %v16158_v32, %v19093_v49  ;;  %v1187_v35 = vpop.f32.mrb[51].mxu0  ;;  %v18529_v26 = vld [vmem:[%s22031_s4 + $0xb0] sm:$0xff]  }
 0x149   : > { %v1295_v36 = vmax.f32 %v1185_v31, 0.0  ;;  %v1188_v37 = vadd.f32 %v19093_v49, %v1187_v35 }
 0x14a   : > { %v1298_v38 = vmax.f32 %v1196_v34, 0.0 }
 0x14b   : > { %v1296_v39 = vmax.f32 %v1188_v37, 0.0 }
 0x14c   : > { %v1336_v40 = vpack.c.bf16 %v1298_v38, %v1297_v33 }
 0x14d   : > { %v1335_v41 = vpack.c.bf16 %v1296_v39, %v1295_v36  ;;  %v16161_v42 = vpop.f32.mrb[52].mxu0 }
 0x14e   : > { %v1209_v43 = vadd.f32 %v16161_v42, %v19093_v49  ;;  %v1200_v44 = vpop.f32.mrb[53].mxu0 }
 0x14f   : > { %16235 = vmatprep.mubr.bf16.mxu1 %v1335_v41  ;;  %v1201_v45 = vadd.f32 %v19093_v49, %v1200_v44  ;;  %v16162_v46 = vpop.f32.mrb[54].mxu0 }
 0x150   : > { %16236 = vmatmul.mubr.bf16.gmra.mrb[48].mxu1 %v1336_v40  ;;  %v1301_v47 = vmax.f32 %v1209_v43, 0.0  ;;  %v1212_v48 = vadd.f32 %v16162_v46, %v19093_v49  ;;  %v1203_v50 = vpop.f32.mrb[55].mxu0 }
 0x151   : > { %v1299_v51 = vmax.f32 %v1201_v45, 0.0  ;;  %v1204_v52 = vadd.f32 %v19093_v49, %v1203_v50 }
 0x152   : > { %v1302_v53 = vmax.f32 %v1212_v48, 0.0 }
 0x153   : > { %v1300_v54 = vmax.f32 %v1204_v52, 0.0 }
 0x154   : > { %v1338_v55 = vpack.c.bf16 %v1302_v53, %v1301_v47 }
 0x155   : > { %v1337_v56 = vpack.c.bf16 %v1300_v54, %v1299_v51  ;;  %v16165_v57 = vpop.f32.mrb[56].mxu0 }
 0x156   : > { %v1225_v58 = vadd.f32 %v16165_v57, %v19093_v49  ;;  %v1216_v59 = vpop.f32.mrb[57].mxu0 }
 0x157   : > { %16239 = vmatprep.mubr.bf16.mxu1 %v1337_v56  ;;  %v1217_v60 = vadd.f32 %v19093_v49, %v1216_v59  ;;  %v16166_v61 = vpop.f32.mrb[58].mxu0 }
 0x158   : > { %16240 = vmatmul.mubr.bf16.gmra.mrb[52].mxu1 %v1338_v55  ;;  %v1305_v62 = vmax.f32 %v1225_v58, 0.0  ;;  %v1228_v63 = vadd.f32 %v16166_v61, %v19093_v49  ;;  %v1219_v0 = vpop.f32.mrb[59].mxu0 }
 0x159   : > { %v1303_v1 = vmax.f32 %v1217_v60, 0.0  ;;  %v1220_v2 = vadd.f32 %v19093_v49, %v1219_v0 }
 0x15a   : > { %v1306_v3 = vmax.f32 %v1228_v63, 0.0 }
 0x15b   : > { %v1304_v4 = vmax.f32 %v1220_v2, 0.0 }
 0x15c   : > { %v1340_v5 = vpack.c.bf16 %v1306_v3, %v1305_v62 }
 0x15d   : > { %v1339_v6 = vpack.c.bf16 %v1304_v4, %v1303_v1  ;;  %v16169_v7 = vpop.f32.mrb[60].mxu0 }
 0x15e   : > { %v1241_v8 = vadd.f32 %v16169_v7, %v19093_v49  ;;  %v1232_v9 = vpop.f32.mrb[61].mxu0 }
 0x15f   : > { %16243 = vmatprep.mubr.bf16.mxu1 %v1339_v6  ;;  %v1233_v10 = vadd.f32 %v19093_v49, %v1232_v9  ;;  %v16170_v11 = vpop.f32.mrb[62].mxu0 }
 0x160   : > { %16244 = vmatmul.mubr.bf16.gmra.mrb[56].mxu1 %v1340_v5  ;;  %v1309_v12 = vmax.f32 %v1241_v8, 0.0  ;;  %v1244_v13 = vadd.f32 %v16170_v11, %v19093_v49  ;;  %v1235_v14 = vpop.f32.mrb[63].mxu0 }
 0x161   : > { %v1307_v15 = vmax.f32 %v1233_v10, 0.0  ;;  %v1236_v16 = vadd.f32 %v19093_v49, %v1235_v14  ;;  %v18525_v49 = vld [vmem:[%s22031_s4 + $0x90] sm:$0xff]  }
 0x162   : > { %v1310_v17 = vmax.f32 %v1244_v13, 0.0  ;;  %16335 = vmatprep.subr.bf16.mxu1 %v18525_v49 }
 0x163   : > { %v1308_v18 = vmax.f32 %v1236_v16, 0.0  ;;  %16336 = vmatpush3.bf16.msra.mxu1 %v18525_v49 }
 0x164   : > { %v1342_v19 = vpack.c.bf16 %v1310_v17, %v1309_v12  ;;  %16337 = vmatprep.subr.bf16.mxu1 %v18526_v23 }
 0x165   : > { %v1341_v20 = vpack.c.bf16 %v1308_v18, %v1307_v15 }
 0x167   : > { %16247 = vmatprep.mubr.bf16.mxu1 %v1341_v20  ;;  %16338 = vmatpush3.bf16.msra.mxu1 %v18526_v23 }
 0x168   : > { %16248 = vmatmul.mubr.bf16.gmra.mrb[60].mxu1 %v1342_v19  ;;  %16339 = vmatprep.subr.bf16.mxu1 %v18527_v24 }
 0x16b   : > { %16340 = vmatpush3.bf16.msra.mxu1 %v18527_v24 }
 0x16c   : > { %16341 = vmatprep.subr.bf16.mxu1 %v18528_v25 }
 0x16f   : > { %16342 = vmatpush3.bf16.msra.mxu1 %v18528_v25 }
 0x170   : > { %16343 = vmatprep.subr.bf16.mxu1 %v18529_v26 }
 0x173   : > { %16344 = vmatpush3.bf16.msra.mxu1 %v18529_v26 }
 0x174   : > { %16345 = vmatprep.subr.bf16.mxu1 %v18530_v27 }
 0x177   : > { %16346 = vmatpush3.bf16.msra.mxu1 %v18530_v27 }
 0x1c3   : > { %v16189_v29 = vpop.f32.mrb[0].mxu1 }
 0x1c4   : > { %v1458_v30 = vadd.f32 %v16189_v29, %v19186_v28  ;;  %v1449_v31 = vpop.f32.mrb[1].mxu1 }
 0x1c5   : > { %v1450_v32 = vadd.f32 %v19186_v28, %v1449_v31  ;;  %v16190_v33 = vpop.f32.mrb[2].mxu1 }
 0x1c6   : > { %v1461_v34 = vadd.f32 %v16190_v33, %v19186_v28  ;;  %v1452_v35 = vpop.f32.mrb[3].mxu1  ;;  %v1706_v37 = vmax.f32 %v1458_v30, 0.0 }
 0x1c7   : > { %v1453_v36 = vadd.f32 %v19186_v28, %v1452_v35  ;;  %v1704_v39 = vmax.f32 %v1450_v32, 0.0 }
 0x1c8   : > { %v1707_v38 = vmax.f32 %v1461_v34, 0.0 }
 0x1c9   : > { %v1705_v40 = vmax.f32 %v1453_v36, 0.0 }
 0x1ca   : > { %v1769_v41 = vpack.c.bf16 %v1707_v38, %v1706_v37 }
 0x1cb   : > { %v16193_v42 = vpop.f32.mrb[4].mxu1  ;;  %v1768_v43 = vpack.c.bf16 %v1705_v40, %v1704_v39 }
 0x1cc   : > { %v1474_v44 = vadd.f32 %v16193_v42, %v19186_v28  ;;  %v1465_v45 = vpop.f32.mrb[5].mxu1 }
 0x1cd   : > { %v1466_v46 = vadd.f32 %v19186_v28, %v1465_v45  ;;  %v16194_v47 = vpop.f32.mrb[6].mxu1  ;;  %16267 = vmatprep.mubr.bf16.mxu0 %v1768_v43 }
 0x1ce   : > { %v1710_v48 = vmax.f32 %v1474_v44, 0.0  ;;  %v1477_v50 = vadd.f32 %v16194_v47, %v19186_v28  ;;  %v1468_v51 = vpop.f32.mrb[7].mxu1  ;;  %16268 = vmatmul.mubr.bf16.vlgmr.msra.gmra.mrb[64].mxu0 %v1769_v41 }
 0x1cf   : > { %v1708_v52 = vmax.f32 %v1466_v46, 0.0  ;;  %v1469_v53 = vadd.f32 %v19186_v28, %v1468_v51 }
 0x1d0   : > { %v1711_v54 = vmax.f32 %v1477_v50, 0.0 }
 0x1d1   : > { %v1709_v55 = vmax.f32 %v1469_v53, 0.0 }
 0x1d2   : > { %v1771_v56 = vpack.c.bf16 %v1711_v54, %v1710_v48 }
 0x1d3   : > { %v16197_v57 = vpop.f32.mrb[8].mxu1  ;;  %v1770_v58 = vpack.c.bf16 %v1709_v55, %v1708_v52 }
 0x1d4   : > { %v1490_v59 = vadd.f32 %v16197_v57, %v19186_v28  ;;  %v1481_v60 = vpop.f32.mrb[9].mxu1 }
 0x1d5   : > { %v1482_v61 = vadd.f32 %v19186_v28, %v1481_v60  ;;  %16271 = vmatprep.mubr.bf16.mxu0 %v1770_v58  ;;  %v16198_v62 = vpop.f32.mrb[10].mxu1 }
 0x1d6   : > { %v1714_v63 = vmax.f32 %v1490_v59, 0.0  ;;  %v1493_v0 = vadd.f32 %v16198_v62, %v19186_v28  ;;  %16272 = vmatmul.mubr.bf16.gmra.mrb[68].mxu0 %v1771_v56  ;;  %v1484_v1 = vpop.f32.mrb[11].mxu1 }
 0x1d7   : > { %v1712_v2 = vmax.f32 %v1482_v61, 0.0  ;;  %v1485_v3 = vadd.f32 %v19186_v28, %v1484_v1 }
 0x1d8   : > { %v1715_v4 = vmax.f32 %v1493_v0, 0.0 }
 0x1d9   : > { %v1713_v5 = vmax.f32 %v1485_v3, 0.0 }
 0x1da   : > { %v1773_v6 = vpack.c.bf16 %v1715_v4, %v1714_v63 }
 0x1db   : > { %v1772_v7 = vpack.c.bf16 %v1713_v5, %v1712_v2  ;;  %v16201_v8 = vpop.f32.mrb[12].mxu1 }
 0x1dc   : > { %v1506_v9 = vadd.f32 %v16201_v8, %v19186_v28  ;;  %v1497_v10 = vpop.f32.mrb[13].mxu1 }
 0x1dd   : > { %16275 = vmatprep.mubr.bf16.mxu0 %v1772_v7  ;;  %v1498_v11 = vadd.f32 %v19186_v28, %v1497_v10  ;;  %v16202_v12 = vpop.f32.mrb[14].mxu1 }
 0x1de   : > { %16276 = vmatmul.mubr.bf16.gmra.mrb[72].mxu0 %v1773_v6  ;;  %v1718_v13 = vmax.f32 %v1506_v9, 0.0  ;;  %v1509_v14 = vadd.f32 %v16202_v12, %v19186_v28  ;;  %v1500_v15 = vpop.f32.mrb[15].mxu1 }
 0x1df   : > { %v1716_v16 = vmax.f32 %v1498_v11, 0.0  ;;  %v1501_v17 = vadd.f32 %v19186_v28, %v1500_v15 }
 0x1e0   : > { %v1719_v18 = vmax.f32 %v1509_v14, 0.0 }
 0x1e1   : > { %v1717_v19 = vmax.f32 %v1501_v17, 0.0 }
 0x1e2   : > { %v1775_v20 = vpack.c.bf16 %v1719_v18, %v1718_v13 }
 0x1e3   : > { %v1774_v21 = vpack.c.bf16 %v1717_v19, %v1716_v16  ;;  %v16205_v22 = vpop.f32.mrb[16].mxu1 }
 0x1e4   : > { %v1522_v49 = vadd.f32 %v16205_v22, %v19186_v28  ;;  %v1513_v23 = vpop.f32.mrb[17].mxu1 }
 0x1e5   : > { %16279 = vmatprep.mubr.bf16.mxu0 %v1774_v21  ;;  %v1514_v24 = vadd.f32 %v19186_v28, %v1513_v23  ;;  %v16206_v25 = vpop.f32.mrb[18].mxu1 }
 0x1e6   : > { %16280 = vmatmul.mubr.bf16.gmra.mrb[76].mxu0 %v1775_v20  ;;  %v1722_v26 = vmax.f32 %v1522_v49, 0.0  ;;  %v1525_v27 = vadd.f32 %v16206_v25, %v19186_v28  ;;  %v1516_v29 = vpop.f32.mrb[19].mxu1 }
 0x1e7   : > { %v1720_v30 = vmax.f32 %v1514_v24, 0.0  ;;  %v1517_v31 = vadd.f32 %v19186_v28, %v1516_v29 }
 0x1e8   : > { %v1723_v32 = vmax.f32 %v1525_v27, 0.0 }
 0x1e9   : > { %v1721_v33 = vmax.f32 %v1517_v31, 0.0 }
 0x1ea   : > { %v1777_v34 = vpack.c.bf16 %v1723_v32, %v1722_v26 }
 0x1eb   : > { %v1776_v35 = vpack.c.bf16 %v1721_v33, %v1720_v30  ;;  %v16209_v36 = vpop.f32.mrb[20].mxu1 }
 0x1ec   : > { %v1538_v37 = vadd.f32 %v16209_v36, %v19186_v28  ;;  %v1529_v38 = vpop.f32.mrb[21].mxu1 }
 0x1ed   : > { %16283 = vmatprep.mubr.bf16.mxu0 %v1776_v35  ;;  %v1530_v39 = vadd.f32 %v19186_v28, %v1529_v38  ;;  %v16210_v40 = vpop.f32.mrb[22].mxu1 }
 0x1ee   : > { %16284 = vmatmul.mubr.bf16.gmra.mrb[80].mxu0 %v1777_v34  ;;  %v1726_v41 = vmax.f32 %v1538_v37, 0.0  ;;  %v1541_v42 = vadd.f32 %v16210_v40, %v19186_v28  ;;  %v1532_v43 = vpop.f32.mrb[23].mxu1 }
 0x1ef   : > { %v1724_v44 = vmax.f32 %v1530_v39, 0.0  ;;  %v1533_v45 = vadd.f32 %v19186_v28, %v1532_v43 }
 0x1f0   : > { %v1727_v46 = vmax.f32 %v1541_v42, 0.0 }
 0x1f1   : > { %v1725_v47 = vmax.f32 %v1533_v45, 0.0 }
 0x1f2   : > { %v1779_v48 = vpack.c.bf16 %v1727_v46, %v1726_v41 }
 0x1f3   : > { %v1778_v50 = vpack.c.bf16 %v1725_v47, %v1724_v44  ;;  %v16213_v51 = vpop.f32.mrb[24].mxu1 }
 0x1f4   : > { %v1554_v52 = vadd.f32 %v16213_v51, %v19186_v28  ;;  %v1545_v53 = vpop.f32.mrb[25].mxu1 }
 0x1f5   : > { %16287 = vmatprep.mubr.bf16.mxu0 %v1778_v50  ;;  %v1546_v54 = vadd.f32 %v19186_v28, %v1545_v53  ;;  %v16214_v55 = vpop.f32.mrb[26].mxu1 }
 0x1f6   : > { %16288 = vmatmul.mubr.bf16.gmra.mrb[84].mxu0 %v1779_v48  ;;  %v1730_v56 = vmax.f32 %v1554_v52, 0.0  ;;  %v1557_v57 = vadd.f32 %v16214_v55, %v19186_v28  ;;  %v1548_v58 = vpop.f32.mrb[27].mxu1 }
 0x1f7   : > { %v1728_v59 = vmax.f32 %v1546_v54, 0.0  ;;  %v1549_v60 = vadd.f32 %v19186_v28, %v1548_v58 }
 0x1f8   : > { %v1731_v61 = vmax.f32 %v1557_v57, 0.0 }
 0x1f9   : > { %v1729_v62 = vmax.f32 %v1549_v60, 0.0 }
 0x1fa   : > { %v1781_v63 = vpack.c.bf16 %v1731_v61, %v1730_v56 }
 0x1fb   : > { %v1780_v0 = vpack.c.bf16 %v1729_v62, %v1728_v59  ;;  %v16217_v1 = vpop.f32.mrb[28].mxu1 }
 0x1fc   : > { %v1570_v2 = vadd.f32 %v16217_v1, %v19186_v28  ;;  %v1561_v3 = vpop.f32.mrb[29].mxu1 }
 0x1fd   : > { %16291 = vmatprep.mubr.bf16.mxu0 %v1780_v0  ;;  %v1562_v4 = vadd.f32 %v19186_v28, %v1561_v3  ;;  %v16218_v5 = vpop.f32.mrb[30].mxu1 }
 0x1fe   : > { %16292 = vmatmul.mubr.bf16.gmra.mrb[88].mxu0 %v1781_v63  ;;  %v1734_v6 = vmax.f32 %v1570_v2, 0.0  ;;  %v1573_v7 = vadd.f32 %v16218_v5, %v19186_v28  ;;  %v1564_v8 = vpop.f32.mrb[31].mxu1 }
 0x1ff   : > { %v1732_v9 = vmax.f32 %v1562_v4, 0.0  ;;  %v1565_v10 = vadd.f32 %v19186_v28, %v1564_v8 }
 0x200   : > { %v1735_v11 = vmax.f32 %v1573_v7, 0.0 }
 0x201   : > { %v1733_v12 = vmax.f32 %v1565_v10, 0.0 }
 0x202   : > { %v1783_v13 = vpack.c.bf16 %v1735_v11, %v1734_v6 }
 0x203   : > { %v1782_v14 = vpack.c.bf16 %v1733_v12, %v1732_v9  ;;  %v16221_v15 = vpop.f32.mrb[32].mxu1 }
 0x204   : > { %v1586_v16 = vadd.f32 %v16221_v15, %v19186_v28  ;;  %v1577_v17 = vpop.f32.mrb[33].mxu1 }
 0x205   : > { %16295 = vmatprep.mubr.bf16.mxu0 %v1782_v14  ;;  %v1578_v18 = vadd.f32 %v19186_v28, %v1577_v17  ;;  %v16222_v19 = vpop.f32.mrb[34].mxu1 }
 0x206   : > { %16296 = vmatmul.mubr.bf16.gmra.mrb[92].mxu0 %v1783_v13  ;;  %v1738_v20 = vmax.f32 %v1586_v16, 0.0  ;;  %v1589_v21 = vadd.f32 %v16222_v19, %v19186_v28  ;;  %v1580_v22 = vpop.f32.mrb[35].mxu1 }
 0x207   : > { %v1736_v49 = vmax.f32 %v1578_v18, 0.0  ;;  %v1581_v23 = vadd.f32 %v19186_v28, %v1580_v22 }
 0x208   : > { %v1739_v24 = vmax.f32 %v1589_v21, 0.0 }
 0x209   : > { %v1737_v25 = vmax.f32 %v1581_v23, 0.0 }
 0x20a   : > { %v1785_v26 = vpack.c.bf16 %v1739_v24, %v1738_v20 }
 0x20b   : > { %v1784_v27 = vpack.c.bf16 %v1737_v25, %v1736_v49  ;;  %v16225_v29 = vpop.f32.mrb[36].mxu1 }
 0x20c   : > { %v1602_v30 = vadd.f32 %v16225_v29, %v19186_v28  ;;  %v1593_v31 = vpop.f32.mrb[37].mxu1 }
 0x20d   : > { %16299 = vmatprep.mubr.bf16.mxu0 %v1784_v27  ;;  %v1594_v32 = vadd.f32 %v19186_v28, %v1593_v31  ;;  %v16226_v33 = vpop.f32.mrb[38].mxu1 }
 0x20e   : > { %16300 = vmatmul.mubr.bf16.gmra.mrb[96].mxu0 %v1785_v26  ;;  %v1742_v34 = vmax.f32 %v1602_v30, 0.0  ;;  %v1605_v35 = vadd.f32 %v16226_v33, %v19186_v28  ;;  %v1596_v36 = vpop.f32.mrb[39].mxu1 }
 0x20f   : > { %v1740_v37 = vmax.f32 %v1594_v32, 0.0  ;;  %v1597_v38 = vadd.f32 %v19186_v28, %v1596_v36 }
 0x210   : > { %v1743_v39 = vmax.f32 %v1605_v35, 0.0 }
 0x211   : > { %v1741_v40 = vmax.f32 %v1597_v38, 0.0 }
 0x212   : > { %v1787_v41 = vpack.c.bf16 %v1743_v39, %v1742_v34 }
 0x213   : > { %v1786_v42 = vpack.c.bf16 %v1741_v40, %v1740_v37  ;;  %v16229_v43 = vpop.f32.mrb[40].mxu1 }
 0x214   : > { %v1618_v44 = vadd.f32 %v16229_v43, %v19186_v28  ;;  %v1609_v45 = vpop.f32.mrb[41].mxu1 }
 0x215   : > { %16303 = vmatprep.mubr.bf16.mxu0 %v1786_v42  ;;  %v1610_v46 = vadd.f32 %v19186_v28, %v1609_v45  ;;  %v16230_v47 = vpop.f32.mrb[42].mxu1 }
 0x216   : > { %16304 = vmatmul.mubr.bf16.gmra.mrb[100].mxu0 %v1787_v41  ;;  %v1746_v48 = vmax.f32 %v1618_v44, 0.0  ;;  %v1621_v50 = vadd.f32 %v16230_v47, %v19186_v28  ;;  %v1612_v51 = vpop.f32.mrb[43].mxu1 }
 0x217   : > { %v1744_v52 = vmax.f32 %v1610_v46, 0.0  ;;  %v1613_v53 = vadd.f32 %v19186_v28, %v1612_v51 }
 0x218   : > { %v1747_v54 = vmax.f32 %v1621_v50, 0.0 }
 0x219   : > { %v1745_v55 = vmax.f32 %v1613_v53, 0.0 }
 0x21a   : > { %v1789_v56 = vpack.c.bf16 %v1747_v54, %v1746_v48 }
 0x21b   : > { %v1788_v57 = vpack.c.bf16 %v1745_v55, %v1744_v52  ;;  %v16233_v58 = vpop.f32.mrb[44].mxu1 }
 0x21c   : > { %v1634_v59 = vadd.f32 %v16233_v58, %v19186_v28  ;;  %v1625_v60 = vpop.f32.mrb[45].mxu1 }
 0x21d   : > { %16307 = vmatprep.mubr.bf16.mxu0 %v1788_v57  ;;  %v1626_v61 = vadd.f32 %v19186_v28, %v1625_v60  ;;  %v16234_v62 = vpop.f32.mrb[46].mxu1 }
 0x21e   : > { %16308 = vmatmul.mubr.bf16.gmra.mrb[104].mxu0 %v1789_v56  ;;  %v1750_v63 = vmax.f32 %v1634_v59, 0.0  ;;  %v1637_v0 = vadd.f32 %v16234_v62, %v19186_v28  ;;  %v1628_v1 = vpop.f32.mrb[47].mxu1 }
 0x21f   : > { %v1748_v2 = vmax.f32 %v1626_v61, 0.0  ;;  %v1629_v3 = vadd.f32 %v19186_v28, %v1628_v1  ;;  %v18531_v1 = vld [vmem:[%s22031_s4 + $0xc0] sm:$0xff]  }
 0x220   : > { %v1751_v4 = vmax.f32 %v1637_v0, 0.0 }
 0x221   : > { %v1749_v5 = vmax.f32 %v1629_v3, 0.0  ;;  %v18533_v3 = vld [vmem:[%s22031_s4 + $0xd0] sm:$0xff]  }
 0x222   : > { %v1791_v6 = vpack.c.bf16 %v1751_v4, %v1750_v63  ;;  %v18534_v4 = vld [vmem:[%s22031_s4 + $0xd8] sm:$0xff]  }
 0x223   : > { %v1790_v7 = vpack.c.bf16 %v1749_v5, %v1748_v2  ;;  %v16237_v8 = vpop.f32.mrb[48].mxu1  ;;  %v18894_v2 = vmov 0   ;;  %v18535_v5 = vld [vmem:[%s22031_s4 + $0xe0] sm:$0xff]  }
 0x224   : > { %v1650_v9 = vadd.f32 %v16237_v8, %v19186_v28  ;;  %v1641_v10 = vpop.f32.mrb[49].mxu1  ;;  %3046 = vmatprep.subr.bf16.mxu0 %v18894_v2  ;;  %v18538_v8 = vld [vmem:[%s22031_s4 + $0xf8] sm:$0xff]  }
 0x225   : > { %16311 = vmatprep.mubr.bf16.mxu0 %v1790_v7  ;;  %v1642_v11 = vadd.f32 %v19186_v28, %v1641_v10  ;;  %v16238_v12 = vpop.f32.mrb[50].mxu1  ;;  %3047 = vmatpush1.bf16.msra.mxu0 %v18531_v1  ;;  %v18537_v7 = vld [vmem:[%s22031_s4 + $0xf0] sm:$0xff]   ;;  %v18540_v10 = vld [vmem:[%s22031_s4 + $0x108] sm:$0xff]  }
 0x226   : > { %16312 = vmatmul.mubr.bf16.gmra.mrb[108].mxu0 %v1791_v6  ;;  %v1754_v13 = vmax.f32 %v1650_v9, 0.0  ;;  %v1653_v14 = vadd.f32 %v16238_v12, %v19186_v28  ;;  %v1644_v15 = vpop.f32.mrb[51].mxu1  ;;  %3048 = vmatprep.subr.bf16.mxu0 %v18894_v2  ;;  %v18536_v6 = vld [vmem:[%s22031_s4 + $0xe8] sm:$0xff]   ;;  %v18539_v9 = vld [vmem:[%s22031_s4 + $0x100] sm:$0xff]   ;;  %v18542_v12 = vld [vmem:[%s22031_s4 + $0x118] sm:$0xff]  }
 0x227   : > { %v1752_v16 = vmax.f32 %v1642_v11, 0.0  ;;  %v1645_v17 = vadd.f32 %v19186_v28, %v1644_v15  ;;  %v18541_v11 = vld [vmem:[%s22031_s4 + $0x110] sm:$0xff]  }
 0x228   : > { %v1755_v18 = vmax.f32 %v1653_v14, 0.0  ;;  %v18544_v14 = vld [vmem:[%s22031_s4 + $0x128] sm:$0xff]   ;;  %v18545_v15 = vld [vmem:[%s22031_s4 + $0x130] sm:$0xff]  }
 0x229   : > { %v1753_v19 = vmax.f32 %v1645_v17, 0.0 }
 0x22a   : > { %v1793_v20 = vpack.c.bf16 %v1755_v18, %v1754_v13  ;;  %v18543_v13 = vld [vmem:[%s22031_s4 + $0x120] sm:$0xff]  }
 0x22b   : > { %v1792_v21 = vpack.c.bf16 %v1753_v19, %v1752_v16  ;;  %v16241_v22 = vpop.f32.mrb[52].mxu1  ;;  %v19316_v16 = vld [vmem:[%s22033_s6 + $0x2] ss:$0 sm:$0xff] }
 0x22c   : > { %v1666_v49 = vadd.f32 %v16241_v22, %v19186_v28  ;;  %v1657_v23 = vpop.f32.mrb[53].mxu1 }
 0x22d   : > { %16315 = vmatprep.mubr.bf16.mxu0 %v1792_v21  ;;  %v1658_v24 = vadd.f32 %v19186_v28, %v1657_v23  ;;  %v16242_v25 = vpop.f32.mrb[54].mxu1 }
 0x22e   : > { %16316 = vmatmul.mubr.bf16.gmra.mrb[112].mxu0 %v1793_v20  ;;  %v1758_v26 = vmax.f32 %v1666_v49, 0.0  ;;  %v1669_v27 = vadd.f32 %v16242_v25, %v19186_v28  ;;  %v1660_v29 = vpop.f32.mrb[55].mxu1 }
 0x22f   : > { %v1756_v30 = vmax.f32 %v1658_v24, 0.0  ;;  %v1661_v31 = vadd.f32 %v19186_v28, %v1660_v29 }
 0x230   : > { %v1759_v32 = vmax.f32 %v1669_v27, 0.0 }
 0x231   : > { %v1757_v33 = vmax.f32 %v1661_v31, 0.0 }
 0x232   : > { %v1795_v34 = vpack.c.bf16 %v1759_v32, %v1758_v26 }
 0x233   : > { %v1794_v35 = vpack.c.bf16 %v1757_v33, %v1756_v30  ;;  %v16245_v36 = vpop.f32.mrb[56].mxu1 }
 0x234   : > { %v1682_v37 = vadd.f32 %v16245_v36, %v19186_v28  ;;  %v1673_v38 = vpop.f32.mrb[57].mxu1 }
 0x235   : > { %16319 = vmatprep.mubr.bf16.mxu0 %v1794_v35  ;;  %v1674_v39 = vadd.f32 %v19186_v28, %v1673_v38  ;;  %v16246_v40 = vpop.f32.mrb[58].mxu1 }
 0x236   : > { %16320 = vmatmul.mubr.bf16.gmra.mrb[116].mxu0 %v1795_v34  ;;  %v1762_v41 = vmax.f32 %v1682_v37, 0.0  ;;  %v1685_v42 = vadd.f32 %v16246_v40, %v19186_v28  ;;  %v1676_v43 = vpop.f32.mrb[59].mxu1 }
 0x237   : > { %v1760_v44 = vmax.f32 %v1674_v39, 0.0  ;;  %v1677_v45 = vadd.f32 %v19186_v28, %v1676_v43 }
 0x238   : > { %v1763_v46 = vmax.f32 %v1685_v42, 0.0 }
 0x239   : > { %v1761_v47 = vmax.f32 %v1677_v45, 0.0 }
 0x23a   : > { %v1797_v48 = vpack.c.bf16 %v1763_v46, %v1762_v41 }
 0x23b   : > { %v1796_v50 = vpack.c.bf16 %v1761_v47, %v1760_v44  ;;  %v16249_v51 = vpop.f32.mrb[60].mxu1 }
 0x23c   : > { %v1698_v52 = vadd.f32 %v16249_v51, %v19186_v28  ;;  %v1689_v53 = vpop.f32.mrb[61].mxu1 }
 0x23d   : > { %16323 = vmatprep.mubr.bf16.mxu0 %v1796_v50  ;;  %v1690_v54 = vadd.f32 %v19186_v28, %v1689_v53  ;;  %v16250_v55 = vpop.f32.mrb[62].mxu1 }
 0x23e   : > { %16324 = vmatmul.mubr.bf16.gmra.mrb[120].mxu0 %v1797_v48  ;;  %v1766_v56 = vmax.f32 %v1698_v52, 0.0  ;;  %v1701_v57 = vadd.f32 %v16250_v55, %v19186_v28  ;;  %v1692_v58 = vpop.f32.mrb[63].mxu1 }
 0x23f   : > { %v1764_v59 = vmax.f32 %v1690_v54, 0.0  ;;  %v1693_v60 = vadd.f32 %v19186_v28, %v1692_v58  ;;  %v18532_v28 = vld [vmem:[%s22031_s4 + $0xc8] sm:$0xff]  }
 0x240   : > { %v1767_v61 = vmax.f32 %v1701_v57, 0.0  ;;  %3049 = vmatpush1.bf16.msra.mxu0 %v18532_v28 }
 0x241   : > { %v1765_v62 = vmax.f32 %v1693_v60, 0.0  ;;  %3050 = vmatprep.subr.bf16.mxu0 %v18894_v2 }
 0x242   : > { %v1799_v63 = vpack.c.bf16 %v1767_v61, %v1766_v56 }
 0x243   : > { %v1798_v0 = vpack.c.bf16 %v1765_v62, %v1764_v59 }
 0x244   : > { %3051 = vmatpush1.bf16.msra.mxu0 %v18533_v3 }
 0x245   : > { %16327 = vmatprep.mubr.bf16.mxu0 %v1798_v0  ;;  %3052 = vmatprep.subr.bf16.mxu0 %v18894_v2 }
 0x246   : > { %16328 = vmatmul.mubr.bf16.gmra.mrb[124].mxu0 %v1799_v63 }
 0x248   : > { %3053 = vmatpush1.bf16.msra.mxu0 %v18534_v4 }
 0x249   : > { %3054 = vmatprep.subr.bf16.mxu0 %v18894_v2 }
 0x24c   : > { %3055 = vmatpush1.bf16.msra.mxu0 %v18535_v5 }
 0x24d   : > { %3056 = vmatprep.subr.bf16.mxu0 %v18894_v2 }
 0x250   : > { %3057 = vmatpush1.bf16.msra.mxu0 %v18536_v6 }
 0x251   : > { %3058 = vmatprep.subr.bf16.mxu0 %v18894_v2 }
 0x254   : > { %3059 = vmatpush1.bf16.msra.mxu0 %v18537_v7 }
 0x255   : > { %3060 = vmatprep.subr.bf16.mxu0 %v18894_v2 }
 0x258   : > { %3061 = vmatpush1.bf16.msra.mxu0 %v18538_v8 }
 0x259   : > { %3062 = vmatprep.subr.bf16.mxu0 %v18894_v2 }
 0x25c   : > { %3063 = vmatpush1.bf16.msra.mxu0 %v18539_v9 }
 0x25d   : > { %3064 = vmatprep.subr.bf16.mxu0 %v18894_v2 }
 0x260   : > { %3065 = vmatpush1.bf16.msra.mxu0 %v18540_v10 }
 0x261   : > { %3066 = vmatprep.subr.bf16.mxu0 %v18894_v2 }
 0x264   : > { %3067 = vmatpush1.bf16.msra.mxu0 %v18541_v11 }
 0x265   : > { %3068 = vmatprep.subr.bf16.mxu0 %v18894_v2 }
 0x268   : > { %3069 = vmatpush1.bf16.msra.mxu0 %v18542_v12 }
 0x269   : > { %3070 = vmatprep.subr.bf16.mxu0 %v18894_v2 }
 0x26c   : > { %3071 = vmatpush1.bf16.msra.mxu0 %v18543_v13 }
 0x26d   : > { %3072 = vmatprep.subr.bf16.mxu0 %v18894_v2 }
 0x270   : > { %3073 = vmatpush1.bf16.msra.mxu0 %v18544_v14 }
 0x271   : > { %3074 = vmatprep.subr.bf16.mxu0 %v18894_v2 }
 0x274   : > { %3075 = vmatpush1.bf16.msra.mxu0 %v18545_v15 }
 0x275   : > { %3076 = vmatprep.subr.bf16.mxu0 %v18894_v2 }
 0x2a1   : > { %v16269_v17 = vpop.f32.mrb[64].mxu0 }
 0x2a2   : > { %v1916_v18 = vadd.f32 %v16269_v17, %v19316_v16  ;;  %v1907_v19 = vpop.f32.mrb[65].mxu0 }
 0x2a3   : > { %v1908_v20 = vadd.f32 %v19316_v16, %v1907_v19  ;;  %v16270_v21 = vpop.f32.mrb[66].mxu0 }
 0x2a4   : > { %v1919_v22 = vadd.f32 %v16270_v21, %v19316_v16  ;;  %v1910_v49 = vpop.f32.mrb[67].mxu0  ;;  %v2164_v24 = vmax.f32 %v1916_v18, 0.0 }
 0x2a5   : > { %v1911_v23 = vadd.f32 %v19316_v16, %v1910_v49  ;;  %v2162_v26 = vmax.f32 %v1908_v20, 0.0 }
 0x2a6   : > { %v2165_v25 = vmax.f32 %v1919_v22, 0.0 }
 0x2a7   : > { %v2163_v27 = vmax.f32 %v1911_v23, 0.0 }
 0x2a8   : > { %v2227_v29 = vpack.c.bf16 %v2165_v25, %v2164_v24 }
 0x2a9   : > { %v16273_v30 = vpop.f32.mrb[68].mxu0  ;;  %v2226_v31 = vpack.c.bf16 %v2163_v27, %v2162_v26 }
 0x2aa   : > { %v1932_v32 = vadd.f32 %v16273_v30, %v19316_v16  ;;  %v1923_v33 = vpop.f32.mrb[69].mxu0 }
 0x2ab   : > { %v1924_v34 = vadd.f32 %v19316_v16, %v1923_v33  ;;  %v16274_v35 = vpop.f32.mrb[70].mxu0  ;;  %16347 = vmatprep.mubr.bf16.mxu1 %v2226_v31 }
 0x2ac   : > { %v1935_v36 = vadd.f32 %v16274_v35, %v19316_v16  ;;  %v1926_v37 = vpop.f32.mrb[71].mxu0  ;;  %16348 = vmatmul.mubr.bf16.vlgmr.msra.gmra.mrb[64].mxu1 %v2227_v29  ;;  %v2168_v39 = vmax.f32 %v1932_v32, 0.0 }
 0x2ad   : > { %v1927_v38 = vadd.f32 %v19316_v16, %v1926_v37  ;;  %v2166_v41 = vmax.f32 %v1924_v34, 0.0 }
 0x2ae   : > { %v2169_v40 = vmax.f32 %v1935_v36, 0.0 }
 0x2af   : > { %v2167_v42 = vmax.f32 %v1927_v38, 0.0 }
 0x2b0   : > { %v2229_v43 = vpack.c.bf16 %v2169_v40, %v2168_v39 }
 0x2b1   : > { %v16277_v44 = vpop.f32.mrb[72].mxu0  ;;  %v2228_v45 = vpack.c.bf16 %v2167_v42, %v2166_v41 }
 0x2b2   : > { %v1948_v46 = vadd.f32 %v16277_v44, %v19316_v16  ;;  %v1939_v47 = vpop.f32.mrb[73].mxu0 }
 0x2b3   : > { %v1940_v48 = vadd.f32 %v19316_v16, %v1939_v47  ;;  %16351 = vmatprep.mubr.bf16.mxu1 %v2228_v45  ;;  %v16278_v50 = vpop.f32.mrb[74].mxu0 }
 0x2b4   : > { %v2172_v51 = vmax.f32 %v1948_v46, 0.0  ;;  %v1951_v52 = vadd.f32 %v16278_v50, %v19316_v16  ;;  %16352 = vmatmul.mubr.bf16.gmra.mrb[68].mxu1 %v2229_v43  ;;  %v1942_v53 = vpop.f32.mrb[75].mxu0 }
 0x2b5   : > { %v2170_v54 = vmax.f32 %v1940_v48, 0.0  ;;  %v1943_v55 = vadd.f32 %v19316_v16, %v1942_v53 }
 0x2b6   : > { %v2173_v56 = vmax.f32 %v1951_v52, 0.0 }
 0x2b7   : > { %v2171_v57 = vmax.f32 %v1943_v55, 0.0 }
 0x2b8   : > { %v2231_v58 = vpack.c.bf16 %v2173_v56, %v2172_v51 }
 0x2b9   : > { %v2230_v59 = vpack.c.bf16 %v2171_v57, %v2170_v54  ;;  %v16281_v60 = vpop.f32.mrb[76].mxu0 }
 0x2ba   : > { %v1964_v61 = vadd.f32 %v16281_v60, %v19316_v16  ;;  %v1955_v62 = vpop.f32.mrb[77].mxu0 }
 0x2bb   : > { %16355 = vmatprep.mubr.bf16.mxu1 %v2230_v59  ;;  %v1956_v63 = vadd.f32 %v19316_v16, %v1955_v62  ;;  %v16282_v0 = vpop.f32.mrb[78].mxu0 }
 0x2bc   : > { %16356 = vmatmul.mubr.bf16.gmra.mrb[72].mxu1 %v2231_v58  ;;  %v2176_v1 = vmax.f32 %v1964_v61, 0.0  ;;  %v1967_v28 = vadd.f32 %v16282_v0, %v19316_v16  ;;  %v1958_v3 = vpop.f32.mrb[79].mxu0 }
 0x2bd   : > { %v2174_v4 = vmax.f32 %v1956_v63, 0.0  ;;  %v1959_v5 = vadd.f32 %v19316_v16, %v1958_v3 }
 0x2be   : > { %v2177_v6 = vmax.f32 %v1967_v28, 0.0 }
 0x2bf   : > { %v2175_v7 = vmax.f32 %v1959_v5, 0.0 }
 0x2c0   : > { %v2233_v8 = vpack.c.bf16 %v2177_v6, %v2176_v1 }
 0x2c1   : > { %v2232_v9 = vpack.c.bf16 %v2175_v7, %v2174_v4  ;;  %v16285_v10 = vpop.f32.mrb[80].mxu0 }
 0x2c2   : > { %v1980_v11 = vadd.f32 %v16285_v10, %v19316_v16  ;;  %v1971_v12 = vpop.f32.mrb[81].mxu0 }
 0x2c3   : > { %16359 = vmatprep.mubr.bf16.mxu1 %v2232_v9  ;;  %v1972_v13 = vadd.f32 %v19316_v16, %v1971_v12  ;;  %v16286_v14 = vpop.f32.mrb[82].mxu0 }
 0x2c4   : > { %16360 = vmatmul.mubr.bf16.gmra.mrb[76].mxu1 %v2233_v8  ;;  %v2180_v15 = vmax.f32 %v1980_v11, 0.0  ;;  %v1983_v17 = vadd.f32 %v16286_v14, %v19316_v16  ;;  %v1974_v18 = vpop.f32.mrb[83].mxu0 }
 0x2c5   : > { %v2178_v19 = vmax.f32 %v1972_v13, 0.0  ;;  %v1975_v20 = vadd.f32 %v19316_v16, %v1974_v18 }
 0x2c6   : > { %v2181_v21 = vmax.f32 %v1983_v17, 0.0 }
 0x2c7   : > { %v2179_v22 = vmax.f32 %v1975_v20, 0.0 }
 0x2c8   : > { %v2235_v49 = vpack.c.bf16 %v2181_v21, %v2180_v15 }
 0x2c9   : > { %v2234_v23 = vpack.c.bf16 %v2179_v22, %v2178_v19  ;;  %v16289_v24 = vpop.f32.mrb[84].mxu0 }
 0x2ca   : > { %v1996_v25 = vadd.f32 %v16289_v24, %v19316_v16  ;;  %v1987_v26 = vpop.f32.mrb[85].mxu0 }
 0x2cb   : > { %16363 = vmatprep.mubr.bf16.mxu1 %v2234_v23  ;;  %v1988_v27 = vadd.f32 %v19316_v16, %v1987_v26  ;;  %v16290_v29 = vpop.f32.mrb[86].mxu0 }
 0x2cc   : > { %16364 = vmatmul.mubr.bf16.gmra.mrb[80].mxu1 %v2235_v49  ;;  %v2184_v30 = vmax.f32 %v1996_v25, 0.0  ;;  %v1999_v31 = vadd.f32 %v16290_v29, %v19316_v16  ;;  %v1990_v32 = vpop.f32.mrb[87].mxu0 }
 0x2cd   : > { %v2182_v33 = vmax.f32 %v1988_v27, 0.0  ;;  %v1991_v34 = vadd.f32 %v19316_v16, %v1990_v32 }
 0x2ce   : > { %v2185_v35 = vmax.f32 %v1999_v31, 0.0 }
 0x2cf   : > { %v2183_v36 = vmax.f32 %v1991_v34, 0.0 }
 0x2d0   : > { %v2237_v37 = vpack.c.bf16 %v2185_v35, %v2184_v30 }
 0x2d1   : > { %v2236_v38 = vpack.c.bf16 %v2183_v36, %v2182_v33  ;;  %v16293_v39 = vpop.f32.mrb[88].mxu0 }
 0x2d2   : > { %v2012_v40 = vadd.f32 %v16293_v39, %v19316_v16  ;;  %v2003_v41 = vpop.f32.mrb[89].mxu0 }
 0x2d3   : > { %16367 = vmatprep.mubr.bf16.mxu1 %v2236_v38  ;;  %v2004_v42 = vadd.f32 %v19316_v16, %v2003_v41  ;;  %v16294_v43 = vpop.f32.mrb[90].mxu0 }
 0x2d4   : > { %16368 = vmatmul.mubr.bf16.gmra.mrb[84].mxu1 %v2237_v37  ;;  %v2188_v44 = vmax.f32 %v2012_v40, 0.0  ;;  %v2015_v45 = vadd.f32 %v16294_v43, %v19316_v16  ;;  %v2006_v46 = vpop.f32.mrb[91].mxu0 }
 0x2d5   : > { %v2186_v47 = vmax.f32 %v2004_v42, 0.0  ;;  %v2007_v48 = vadd.f32 %v19316_v16, %v2006_v46 }
 0x2d6   : > { %v2189_v50 = vmax.f32 %v2015_v45, 0.0 }
 0x2d7   : > { %v2187_v51 = vmax.f32 %v2007_v48, 0.0 }
 0x2d8   : > { %v2239_v52 = vpack.c.bf16 %v2189_v50, %v2188_v44 }
 0x2d9   : > { %v2238_v53 = vpack.c.bf16 %v2187_v51, %v2186_v47  ;;  %v16297_v54 = vpop.f32.mrb[92].mxu0 }
 0x2da   : > { %v2028_v55 = vadd.f32 %v16297_v54, %v19316_v16  ;;  %v2019_v56 = vpop.f32.mrb[93].mxu0 }
 0x2db   : > { %16371 = vmatprep.mubr.bf16.mxu1 %v2238_v53  ;;  %v2020_v57 = vadd.f32 %v19316_v16, %v2019_v56  ;;  %v16298_v58 = vpop.f32.mrb[94].mxu0 }
 0x2dc   : > { %16372 = vmatmul.mubr.bf16.gmra.mrb[88].mxu1 %v2239_v52  ;;  %v2192_v59 = vmax.f32 %v2028_v55, 0.0  ;;  %v2031_v60 = vadd.f32 %v16298_v58, %v19316_v16  ;;  %v2022_v61 = vpop.f32.mrb[95].mxu0 }
 0x2dd   : > { %v2190_v62 = vmax.f32 %v2020_v57, 0.0  ;;  %v2023_v63 = vadd.f32 %v19316_v16, %v2022_v61 }
 0x2de   : > { %v2193_v0 = vmax.f32 %v2031_v60, 0.0 }
 0x2df   : > { %v2191_v1 = vmax.f32 %v2023_v63, 0.0 }
 0x2e0   : > { %v2241_v28 = vpack.c.bf16 %v2193_v0, %v2192_v59 }
 0x2e1   : > { %v2240_v3 = vpack.c.bf16 %v2191_v1, %v2190_v62  ;;  %v16301_v4 = vpop.f32.mrb[96].mxu0 }
 0x2e2   : > { %v2044_v5 = vadd.f32 %v16301_v4, %v19316_v16  ;;  %v2035_v6 = vpop.f32.mrb[97].mxu0 }
 0x2e3   : > { %16375 = vmatprep.mubr.bf16.mxu1 %v2240_v3  ;;  %v2036_v7 = vadd.f32 %v19316_v16, %v2035_v6  ;;  %v16302_v8 = vpop.f32.mrb[98].mxu0 }
 0x2e4   : > { %16376 = vmatmul.mubr.bf16.gmra.mrb[92].mxu1 %v2241_v28  ;;  %v2196_v9 = vmax.f32 %v2044_v5, 0.0  ;;  %v2047_v10 = vadd.f32 %v16302_v8, %v19316_v16  ;;  %v2038_v11 = vpop.f32.mrb[99].mxu0  ;;  %v18546_v8 = vld [vmem:[%s22031_s4 + $0x138] sm:$0xff]  }
 0x2e5   : > { %v2194_v12 = vmax.f32 %v2036_v7, 0.0  ;;  %v2039_v13 = vadd.f32 %v19316_v16, %v2038_v11  ;;  %3077 = vmatpush1.bf16.msra.mxu0 %v18546_v8 }
 0x2e6   : > { %v2197_v14 = vmax.f32 %v2047_v10, 0.0 }
 0x2e7   : > { %v2195_v15 = vmax.f32 %v2039_v13, 0.0 }
 0x2e8   : > { %v2243_v17 = vpack.c.bf16 %v2197_v14, %v2196_v9 }
 0x2e9   : > { %v2242_v18 = vpack.c.bf16 %v2195_v15, %v2194_v12  ;;  %v16305_v19 = vpop.f32.mrb[100].mxu0 }
 0x2ea   : > { %v2060_v20 = vadd.f32 %v16305_v19, %v19316_v16  ;;  %v2051_v21 = vpop.f32.mrb[101].mxu0 }
 0x2eb   : > { %16379 = vmatprep.mubr.bf16.mxu1 %v2242_v18  ;;  %v2052_v22 = vadd.f32 %v19316_v16, %v2051_v21  ;;  %v16306_v49 = vpop.f32.mrb[102].mxu0 }
 0x2ec   : > { %16380 = vmatmul.mubr.bf16.gmra.mrb[96].mxu1 %v2243_v17  ;;  %v2200_v23 = vmax.f32 %v2060_v20, 0.0  ;;  %v2063_v24 = vadd.f32 %v16306_v49, %v19316_v16  ;;  %v2054_v25 = vpop.f32.mrb[103].mxu0 }
 0x2ed   : > { %v2198_v26 = vmax.f32 %v2052_v22, 0.0  ;;  %v2055_v27 = vadd.f32 %v19316_v16, %v2054_v25 }
 0x2ee   : > { %v2201_v29 = vmax.f32 %v2063_v24, 0.0 }
 0x2ef   : > { %v2199_v30 = vmax.f32 %v2055_v27, 0.0 }
 0x2f0   : > { %v2245_v31 = vpack.c.bf16 %v2201_v29, %v2200_v23 }
 0x2f1   : > { %v2244_v32 = vpack.c.bf16 %v2199_v30, %v2198_v26  ;;  %v16309_v33 = vpop.f32.mrb[104].mxu0 }
 0x2f2   : > { %v2076_v34 = vadd.f32 %v16309_v33, %v19316_v16  ;;  %v2067_v35 = vpop.f32.mrb[105].mxu0 }
 0x2f3   : > { %16383 = vmatprep.mubr.bf16.mxu1 %v2244_v32  ;;  %v2068_v36 = vadd.f32 %v19316_v16, %v2067_v35  ;;  %v16310_v37 = vpop.f32.mrb[106].mxu0 }
 0x2f4   : > { %16384 = vmatmul.mubr.bf16.gmra.mrb[100].mxu1 %v2245_v31  ;;  %v2204_v38 = vmax.f32 %v2076_v34, 0.0  ;;  %v2079_v39 = vadd.f32 %v16310_v37, %v19316_v16  ;;  %v2070_v40 = vpop.f32.mrb[107].mxu0 }
 0x2f5   : > { %v2202_v41 = vmax.f32 %v2068_v36, 0.0  ;;  %v2071_v42 = vadd.f32 %v19316_v16, %v2070_v40 }
 0x2f6   : > { %v2205_v43 = vmax.f32 %v2079_v39, 0.0 }
 0x2f7   : > { %v2203_v44 = vmax.f32 %v2071_v42, 0.0 }
 0x2f8   : > { %v2247_v45 = vpack.c.bf16 %v2205_v43, %v2204_v38 }
 0x2f9   : > { %v2246_v46 = vpack.c.bf16 %v2203_v44, %v2202_v41  ;;  %v16313_v47 = vpop.f32.mrb[108].mxu0 }
 0x2fa   : > { %v2092_v48 = vadd.f32 %v16313_v47, %v19316_v16  ;;  %v2083_v50 = vpop.f32.mrb[109].mxu0 }
 0x2fb   : > { %16387 = vmatprep.mubr.bf16.mxu1 %v2246_v46  ;;  %v2084_v51 = vadd.f32 %v19316_v16, %v2083_v50  ;;  %v16314_v52 = vpop.f32.mrb[110].mxu0 }
 0x2fc   : > { %16388 = vmatmul.mubr.bf16.gmra.mrb[104].mxu1 %v2247_v45  ;;  %v2208_v53 = vmax.f32 %v2092_v48, 0.0  ;;  %v2095_v54 = vadd.f32 %v16314_v52, %v19316_v16  ;;  %v2086_v55 = vpop.f32.mrb[111].mxu0 }
 0x2fd   : > { %v2206_v56 = vmax.f32 %v2084_v51, 0.0  ;;  %v2087_v57 = vadd.f32 %v19316_v16, %v2086_v55 }
 0x2fe   : > { %v2209_v58 = vmax.f32 %v2095_v54, 0.0 }
 0x2ff   : > { %v2207_v59 = vmax.f32 %v2087_v57, 0.0  ;;  %v19388_v57 = vld [vmem:[%s22033_s6 + $0x3] ss:$0 sm:$0xff] }
 0x300   : > { %v2249_v60 = vpack.c.bf16 %v2209_v58, %v2208_v53 }
 0x301   : > { %v2248_v61 = vpack.c.bf16 %v2207_v59, %v2206_v56  ;;  %v16317_v62 = vpop.f32.mrb[112].mxu0 }
 0x302   : > { %v2108_v63 = vadd.f32 %v16317_v62, %v19316_v16  ;;  %v2099_v0 = vpop.f32.mrb[113].mxu0 }
 0x303   : > { %16391 = vmatprep.mubr.bf16.mxu1 %v2248_v61  ;;  %v2100_v1 = vadd.f32 %v19316_v16, %v2099_v0  ;;  %v16318_v28 = vpop.f32.mrb[114].mxu0 }
 0x304   : > { %16392 = vmatmul.mubr.bf16.gmra.mrb[108].mxu1 %v2249_v60  ;;  %v2212_v3 = vmax.f32 %v2108_v63, 0.0  ;;  %v2111_v4 = vadd.f32 %v16318_v28, %v19316_v16  ;;  %v2102_v5 = vpop.f32.mrb[115].mxu0 }
 0x305   : > { %v2210_v6 = vmax.f32 %v2100_v1, 0.0  ;;  %v2103_v7 = vadd.f32 %v19316_v16, %v2102_v5  ;;  %v18547_v5 = vld [vmem:[%s19024_s18] sm:$0xff]  }
 0x306   : > { %v2213_v9 = vmax.f32 %v2111_v4, 0.0 }
 0x307   : > { %v2211_v10 = vmax.f32 %v2103_v7, 0.0 }
 0x308   : > { %v2251_v11 = vpack.c.bf16 %v2213_v9, %v2212_v3 }
 0x309   : > { %v2250_v12 = vpack.c.bf16 %v2211_v10, %v2210_v6  ;;  %v16321_v13 = vpop.f32.mrb[116].mxu0 }
 0x30a   : > { %v2124_v14 = vadd.f32 %v16321_v13, %v19316_v16  ;;  %v2115_v15 = vpop.f32.mrb[117].mxu0 }
 0x30b   : > { %16395 = vmatprep.mubr.bf16.mxu1 %v2250_v12  ;;  %v2116_v17 = vadd.f32 %v19316_v16, %v2115_v15  ;;  %v16322_v18 = vpop.f32.mrb[118].mxu0 }
 0x30c   : > { %16396 = vmatmul.mubr.bf16.gmra.mrb[112].mxu1 %v2251_v11  ;;  %v2216_v19 = vmax.f32 %v2124_v14, 0.0  ;;  %v2127_v20 = vadd.f32 %v16322_v18, %v19316_v16  ;;  %v2118_v21 = vpop.f32.mrb[119].mxu0 }
 0x30d   : > { %v2214_v22 = vmax.f32 %v2116_v17, 0.0  ;;  %v2119_v49 = vadd.f32 %v19316_v16, %v2118_v21  ;;  %v18548_v21 = vld [vmem:[%s19024_s18 + $0x8] sm:$0xff]  }
 0x30e   : > { %v2217_v23 = vmax.f32 %v2127_v20, 0.0 }
 0x30f   : > { %v2215_v24 = vmax.f32 %v2119_v49, 0.0 }
 0x310   : > { %v2253_v25 = vpack.c.bf16 %v2217_v23, %v2216_v19 }
 0x311   : > { %v2252_v26 = vpack.c.bf16 %v2215_v24, %v2214_v22  ;;  %v16325_v27 = vpop.f32.mrb[120].mxu0 }
 0x312   : > { %v2140_v29 = vadd.f32 %v16325_v27, %v19316_v16  ;;  %v2131_v30 = vpop.f32.mrb[121].mxu0 }
 0x313   : > { %16399 = vmatprep.mubr.bf16.mxu1 %v2252_v26  ;;  %v2132_v31 = vadd.f32 %v19316_v16, %v2131_v30  ;;  %v16326_v32 = vpop.f32.mrb[122].mxu0 }
 0x314   : > { %16400 = vmatmul.mubr.bf16.gmra.mrb[116].mxu1 %v2253_v25  ;;  %v2220_v33 = vmax.f32 %v2140_v29, 0.0  ;;  %v2143_v34 = vadd.f32 %v16326_v32, %v19316_v16  ;;  %v2134_v35 = vpop.f32.mrb[123].mxu0 }
 0x315   : > { %v2218_v36 = vmax.f32 %v2132_v31, 0.0  ;;  %v2135_v37 = vadd.f32 %v19316_v16, %v2134_v35 }
 0x316   : > { %v2221_v38 = vmax.f32 %v2143_v34, 0.0 }
 0x317   : > { %v2219_v39 = vmax.f32 %v2135_v37, 0.0 }
 0x318   : > { %v2255_v40 = vpack.c.bf16 %v2221_v38, %v2220_v33 }
 0x319   : > { %v2254_v41 = vpack.c.bf16 %v2219_v39, %v2218_v36  ;;  %v16329_v42 = vpop.f32.mrb[124].mxu0  ;;  %v18549_v36 = vld [vmem:[%s19024_s18 + $0x10] sm:$0xff]  }
 0x31a   : > { %v2156_v43 = vadd.f32 %v16329_v42, %v19316_v16  ;;  %v2147_v44 = vpop.f32.mrb[125].mxu0 }
 0x31b   : > { %16403 = vmatprep.mubr.bf16.mxu1 %v2254_v41  ;;  %v2148_v45 = vadd.f32 %v19316_v16, %v2147_v44  ;;  %v16330_v46 = vpop.f32.mrb[126].mxu0 }
 0x31c   : > { %16404 = vmatmul.mubr.bf16.gmra.mrb[120].mxu1 %v2255_v40  ;;  %v2224_v47 = vmax.f32 %v2156_v43, 0.0  ;;  %v2159_v48 = vadd.f32 %v16330_v46, %v19316_v16  ;;  %v2150_v50 = vpop.f32.mrb[127].mxu0 }
 0x31d   : > { %v2222_v51 = vmax.f32 %v2148_v45, 0.0  ;;  %v2151_v52 = vadd.f32 %v19316_v16, %v2150_v50 }
 0x31e   : > { %v2225_v53 = vmax.f32 %v2159_v48, 0.0 }
 0x31f   : > { %v2223_v54 = vmax.f32 %v2151_v52, 0.0  ;;  %v18550_v52 = vld [vmem:[%s19024_s18 + $0x18] sm:$0xff]  }
 0x320   : > { %v2257_v55 = vpack.c.bf16 %v2225_v53, %v2224_v47 }
 0x321   : > { %v2256_v56 = vpack.c.bf16 %v2223_v54, %v2222_v51 }
 0x323   : > { %16407 = vmatprep.mubr.bf16.mxu1 %v2256_v56 }
 0x324   : > { %16408 = vmatmul.mubr.bf16.gmra.mrb[124].mxu1 %v2257_v55 }
 0x37f   : > { %v16349_v58 = vpop.f32.mrb[64].mxu1 }
 0x380   : > { %v2374_v59 = vadd.f32 %v16349_v58, %v19388_v57  ;;  %v2365_v60 = vpop.f32.mrb[65].mxu1 }
 0x381   : > { %v2366_v61 = vadd.f32 %v19388_v57, %v2365_v60  ;;  %v16350_v62 = vpop.f32.mrb[66].mxu1 }
 0x382   : > { %v2377_v16 = vadd.f32 %v16350_v62, %v19388_v57  ;;  %v2368_v63 = vpop.f32.mrb[67].mxu1  ;;  %v2622_v1 = vmax.f32 %v2374_v59, 0.0 }
 0x383   : > { %v2369_v0 = vadd.f32 %v19388_v57, %v2368_v63  ;;  %v2620_v3 = vmax.f32 %v2366_v61, 0.0 }
 0x384   : > { %v2623_v28 = vmax.f32 %v2377_v16, 0.0 }
 0x385   : > { %v2621_v4 = vmax.f32 %v2369_v0, 0.0 }
 0x386   : > { %v19395_v6 = vpack.c.bf16 %v2623_v28, %v2622_v1 }
 0x387   : > { %v16353_v7 = vpop.f32.mrb[68].mxu1  ;;  %v19397_v8 = vpack.c.bf16 %v2621_v4, %v2620_v3  ;;  %v18551_v3 = vld [vmem:[%s19024_s18 + $0x20] sm:$0xff]  }
 0x388   : > { %v2390_v9 = vadd.f32 %v16353_v7, %v19388_v57  ;;  %v2381_v10 = vpop.f32.mrb[69].mxu1 }
 0x389   : > { %v2382_v11 = vadd.f32 %v19388_v57, %v2381_v10  ;;  %v16354_v12 = vpop.f32.mrb[70].mxu1  ;;  %3078 = vmatprep.mubr.bf16.mxu0 %v19397_v8 }
 0x38a   : > { %v2393_v13 = vadd.f32 %v16354_v12, %v19388_v57  ;;  %v2384_v14 = vpop.f32.mrb[71].mxu1  ;;  %3079 = vmatmul.mubr.bf16.vlgmr.msra.gmra.mrb[128].mxu0 %v18547_v5  ;;  %v2626_v17 = vmax.f32 %v2390_v9, 0.0 }
 0x38b   : > { %v2385_v15 = vadd.f32 %v19388_v57, %v2384_v14  ;;  %3086 = vmatprep.mubr.bf16.mxu0 %v19395_v6  ;;  %v2624_v19 = vmax.f32 %v2382_v11, 0.0 }
 0x38c   : > { %v2627_v18 = vmax.f32 %v2393_v13, 0.0 }
 0x38d   : > { %v2625_v20 = vmax.f32 %v2385_v15, 0.0 }
 0x38e   : > { %v19406_v22 = vpack.c.bf16 %v2627_v18, %v2626_v17 }
 0x38f   : > { %v16357_v49 = vpop.f32.mrb[72].mxu1  ;;  %v19408_v23 = vpack.c.bf16 %v2625_v20, %v2624_v19 }
 0x390   : > { %v2406_v24 = vadd.f32 %v16357_v49, %v19388_v57  ;;  %v2397_v25 = vpop.f32.mrb[73].mxu1 }
 0x391   : > { %v2398_v26 = vadd.f32 %v19388_v57, %v2397_v25  ;;  %v16358_v27 = vpop.f32.mrb[74].mxu1 }
 0x392   : > { %v2630_v29 = vmax.f32 %v2406_v24, 0.0  ;;  %v2409_v30 = vadd.f32 %v16358_v27, %v19388_v57  ;;  %3087 = vmatmul.mubr.bf16.gmra.mrb[132].mxu0 %v18548_v21  ;;  %v2400_v31 = vpop.f32.mrb[75].mxu1  ;;  %v18552_v21 = vld [vmem:[%s19024_s18 + $0x28] sm:$0xff]  }
 0x393   : > { %v2628_v32 = vmax.f32 %v2398_v26, 0.0  ;;  %v2401_v33 = vadd.f32 %v19388_v57, %v2400_v31  ;;  %3094 = vmatprep.mubr.bf16.mxu0 %v19408_v23 }
 0x394   : > { %v2631_v34 = vmax.f32 %v2409_v30, 0.0 }
 0x395   : > { %v2629_v35 = vmax.f32 %v2401_v33, 0.0 }
 0x396   : > { %v19416_v37 = vpack.c.bf16 %v2631_v34, %v2630_v29 }
 0x397   : > { %v16361_v38 = vpop.f32.mrb[76].mxu1  ;;  %v19418_v39 = vpack.c.bf16 %v2629_v35, %v2628_v32 }
 0x398   : > { %v2422_v40 = vadd.f32 %v16361_v38, %v19388_v57  ;;  %v2413_v41 = vpop.f32.mrb[77].mxu1 }
 0x399   : > { %v2414_v42 = vadd.f32 %v19388_v57, %v2413_v41  ;;  %v16362_v43 = vpop.f32.mrb[78].mxu1 }
 0x39a   : > { %3095 = vmatmul.mubr.bf16.gmra.mrb[136].mxu0 %v18549_v36  ;;  %v2634_v44 = vmax.f32 %v2422_v40, 0.0  ;;  %v2425_v45 = vadd.f32 %v16362_v43, %v19388_v57  ;;  %v2416_v46 = vpop.f32.mrb[79].mxu1  ;;  %v18553_v40 = vld [vmem:[%s19024_s18 + $0x30] sm:$0xff]  }
 0x39b   : > { %3102 = vmatprep.mubr.bf16.mxu0 %v19406_v22  ;;  %v2632_v47 = vmax.f32 %v2414_v42, 0.0  ;;  %v2417_v48 = vadd.f32 %v19388_v57, %v2416_v46 }
 0x39c   : > { %v2635_v50 = vmax.f32 %v2425_v45, 0.0 }
 0x39d   : > { %v2633_v51 = vmax.f32 %v2417_v48, 0.0 }
 0x39e   : > { %v19426_v53 = vpack.c.bf16 %v2635_v50, %v2634_v44 }
 0x39f   : > { %v16365_v54 = vpop.f32.mrb[80].mxu1  ;;  %v19428_v55 = vpack.c.bf16 %v2633_v51, %v2632_v47 }
 0x3a0   : > { %v2438_v56 = vadd.f32 %v16365_v54, %v19388_v57  ;;  %v2429_v58 = vpop.f32.mrb[81].mxu1 }
 0x3a1   : > { %v2430_v59 = vadd.f32 %v19388_v57, %v2429_v58  ;;  %v16366_v60 = vpop.f32.mrb[82].mxu1 }
 0x3a2   : > { %3103 = vmatmul.mubr.bf16.gmra.mrb[140].mxu0 %v18550_v52  ;;  %v2638_v61 = vmax.f32 %v2438_v56, 0.0  ;;  %v2441_v62 = vadd.f32 %v16366_v60, %v19388_v57  ;;  %v2432_v16 = vpop.f32.mrb[83].mxu1 }
 0x3a3   : > { %3110 = vmatprep.mubr.bf16.mxu0 %v19418_v39  ;;  %v2636_v63 = vmax.f32 %v2430_v59, 0.0  ;;  %v2433_v0 = vadd.f32 %v19388_v57, %v2432_v16  ;;  %v18554_v59 = vld [vmem:[%s19024_s18 + $0x38] sm:$0xff]  }
 0x3a4   : > { %v2639_v1 = vmax.f32 %v2441_v62, 0.0 }
 0x3a5   : > { %v2637_v28 = vmax.f32 %v2433_v0, 0.0 }
 0x3a6   : > { %v19436_v4 = vpack.c.bf16 %v2639_v1, %v2638_v61 }
 0x3a7   : > { %v16369_v5 = vpop.f32.mrb[84].mxu1  ;;  %v19438_v7 = vpack.c.bf16 %v2637_v28, %v2636_v63 }
 0x3a8   : > { %v2454_v9 = vadd.f32 %v16369_v5, %v19388_v57  ;;  %v2445_v10 = vpop.f32.mrb[85].mxu1 }
 0x3a9   : > { %v2446_v11 = vadd.f32 %v19388_v57, %v2445_v10  ;;  %v16370_v12 = vpop.f32.mrb[86].mxu1 }
 0x3aa   : > { %3111 = vmatmul.mubr.bf16.gmra.mrb[144].mxu0 %v18551_v3  ;;  %v2642_v13 = vmax.f32 %v2454_v9, 0.0  ;;  %v2457_v14 = vadd.f32 %v16370_v12, %v19388_v57  ;;  %v2448_v15 = vpop.f32.mrb[87].mxu1 }
 0x3ab   : > { %3118 = vmatprep.mubr.bf16.mxu0 %v19416_v37  ;;  %v2640_v17 = vmax.f32 %v2446_v11, 0.0  ;;  %v2449_v18 = vadd.f32 %v19388_v57, %v2448_v15 }
 0x3ac   : > { %v2643_v19 = vmax.f32 %v2457_v14, 0.0 }
 0x3ad   : > { %v2641_v20 = vmax.f32 %v2449_v18, 0.0 }
 0x3ae   : > { %v19446_v49 = vpack.c.bf16 %v2643_v19, %v2642_v13  ;;  %v18555_v13 = vld [vmem:[%s19024_s18 + $0x40] sm:$0xff]  }
 0x3af   : > { %v16373_v24 = vpop.f32.mrb[88].mxu1  ;;  %v19448_v25 = vpack.c.bf16 %v2641_v20, %v2640_v17 }
 0x3b0   : > { %v2470_v26 = vadd.f32 %v16373_v24, %v19388_v57  ;;  %v2461_v27 = vpop.f32.mrb[89].mxu1 }
 0x3b1   : > { %v2462_v29 = vadd.f32 %v19388_v57, %v2461_v27  ;;  %v16374_v30 = vpop.f32.mrb[90].mxu1 }
 0x3b2   : > { %3119 = vmatmul.mubr.bf16.gmra.mrb[148].mxu0 %v18552_v21  ;;  %v2646_v31 = vmax.f32 %v2470_v26, 0.0  ;;  %v2473_v32 = vadd.f32 %v16374_v30, %v19388_v57  ;;  %v2464_v33 = vpop.f32.mrb[91].mxu1 }
 0x3b3   : > { %3126 = vmatprep.mubr.bf16.mxu0 %v19428_v55  ;;  %v2644_v34 = vmax.f32 %v2462_v29, 0.0  ;;  %v2465_v35 = vadd.f32 %v19388_v57, %v2464_v33 }
 0x3b4   : > { %v2647_v36 = vmax.f32 %v2473_v32, 0.0 }
 0x3b5   : > { %v2645_v38 = vmax.f32 %v2465_v35, 0.0 }
 0x3b6   : > { %v19456_v41 = vpack.c.bf16 %v2647_v36, %v2646_v31  ;;  %v18572_v31 = vld [vmem:[%s22031_s4 + $0x140] sm:$0xff]  }
 0x3b7   : > { %v16377_v42 = vpop.f32.mrb[92].mxu1  ;;  %v19458_v43 = vpack.c.bf16 %v2645_v38, %v2644_v34  ;;  %16411 = vmatprep.subr.bf16.mxu1 %v18572_v31  ;;  %v18556_v34 = vld [vmem:[%s19024_s18 + $0x48] sm:$0xff]  }
 0x3b8   : > { %v2486_v44 = vadd.f32 %v16377_v42, %v19388_v57  ;;  %v2477_v45 = vpop.f32.mrb[93].mxu1  ;;  %16412 = vmatpush3.bf16.msra.mxu1 %v18572_v31 }
 0x3b9   : > { %v2478_v46 = vadd.f32 %v19388_v57, %v2477_v45  ;;  %v16378_v47 = vpop.f32.mrb[94].mxu1 }
 0x3ba   : > { %3127 = vmatmul.mubr.bf16.gmra.mrb[152].mxu0 %v18553_v40  ;;  %v2650_v48 = vmax.f32 %v2486_v44, 0.0  ;;  %v2489_v50 = vadd.f32 %v16378_v47, %v19388_v57  ;;  %v2480_v51 = vpop.f32.mrb[95].mxu1  ;;  %v18574_v44 = vld [vmem:[%s22031_s4 + $0x148] sm:$0xff]  }
 0x3bb   : > { %3134 = vmatprep.mubr.bf16.mxu0 %v19426_v53  ;;  %v2648_v52 = vmax.f32 %v2478_v46, 0.0  ;;  %v2481_v54 = vadd.f32 %v19388_v57, %v2480_v51  ;;  %16413 = vmatprep.subr.bf16.mxu1 %v18574_v44 }
 0x3bc   : > { %v2651_v56 = vmax.f32 %v2489_v50, 0.0  ;;  %16414 = vmatpush3.bf16.msra.mxu1 %v18574_v44 }
 0x3bd   : > { %v2649_v58 = vmax.f32 %v2481_v54, 0.0  ;;  %v18575_v54 = vld [vmem:[%s22031_s4 + $0x150] sm:$0xff]  }
 0x3be   : > { %v19466_v60 = vpack.c.bf16 %v2651_v56, %v2650_v48  ;;  %16415 = vmatprep.subr.bf16.mxu1 %v18575_v54 }
 0x3bf   : > { %v16381_v61 = vpop.f32.mrb[96].mxu1  ;;  %v19468_v62 = vpack.c.bf16 %v2649_v58, %v2648_v52 }
 0x3c0   : > { %v2502_v16 = vadd.f32 %v16381_v61, %v19388_v57  ;;  %v2493_v63 = vpop.f32.mrb[97].mxu1  ;;  %16416 = vmatpush3.bf16.msra.mxu1 %v18575_v54 }
 0x3c1   : > { %v2494_v0 = vadd.f32 %v19388_v57, %v2493_v63  ;;  %v16382_v1 = vpop.f32.mrb[98].mxu1 }
 0x3c2   : > { %3135 = vmatmul.mubr.bf16.gmra.mrb[156].mxu0 %v18554_v59  ;;  %v2654_v28 = vmax.f32 %v2502_v16, 0.0  ;;  %v2505_v3 = vadd.f32 %v16382_v1, %v19388_v57  ;;  %v2496_v5 = vpop.f32.mrb[99].mxu1  ;;  %v18557_v59 = vld [vmem:[%s19024_s18 + $0x50] sm:$0xff]  }
 0x3c3   : > { %3142 = vmatprep.mubr.bf16.mxu0 %v19438_v7  ;;  %v2652_v9 = vmax.f32 %v2494_v0, 0.0  ;;  %v2497_v10 = vadd.f32 %v19388_v57, %v2496_v5 }
 0x3c4   : > { %v2655_v11 = vmax.f32 %v2505_v3, 0.0 }
 0x3c5   : > { %v2653_v12 = vmax.f32 %v2497_v10, 0.0 }
 0x3c6   : > { %v19476_v14 = vpack.c.bf16 %v2655_v11, %v2654_v28  ;;  %v18577_v28 = vld [vmem:[%s22031_s4 + $0x158] sm:$0xff]  }
 0x3c7   : > { %v16385_v15 = vpop.f32.mrb[100].mxu1  ;;  %v19478_v17 = vpack.c.bf16 %v2653_v12, %v2652_v9  ;;  %16417 = vmatprep.subr.bf16.mxu1 %v18577_v28 }
 0x3c8   : > { %v2518_v18 = vadd.f32 %v16385_v15, %v19388_v57  ;;  %v2509_v19 = vpop.f32.mrb[101].mxu1  ;;  %16418 = vmatpush3.bf16.msra.mxu1 %v18577_v28 }
 0x3c9   : > { %v2510_v20 = vadd.f32 %v19388_v57, %v2509_v19  ;;  %v16386_v21 = vpop.f32.mrb[102].mxu1 }
 0x3ca   : > { %3143 = vmatmul.mubr.bf16.gmra.mrb[160].mxu0 %v18555_v13  ;;  %v2658_v24 = vmax.f32 %v2518_v18, 0.0  ;;  %v2521_v26 = vadd.f32 %v16386_v21, %v19388_v57  ;;  %v2512_v27 = vpop.f32.mrb[103].mxu1  ;;  %v18578_v18 = vld [vmem:[%s22031_s4 + $0x160] sm:$0xff]  }
 0x3cb   : > { %3150 = vmatprep.mubr.bf16.mxu0 %v19436_v4  ;;  %v2656_v29 = vmax.f32 %v2510_v20, 0.0  ;;  %v2513_v30 = vadd.f32 %v19388_v57, %v2512_v27  ;;  %v18558_v20 = vld [vmem:[%s19024_s18 + $0x58] sm:$0xff]   ;;  %16419 = vmatprep.subr.bf16.mxu1 %v18578_v18 }
 0x3cc   : > { %v2659_v32 = vmax.f32 %v2521_v26, 0.0  ;;  %16420 = vmatpush3.bf16.msra.mxu1 %v18578_v18 }
 0x3cd   : > { %v2657_v33 = vmax.f32 %v2513_v30, 0.0  ;;  %v18580_v30 = vld [vmem:[%s22031_s4 + $0x168] sm:$0xff]  }
 0x3ce   : > { %v19489_v35 = vpack.c.bf16 %v2659_v32, %v2658_v24  ;;  %16421 = vmatprep.subr.bf16.mxu1 %v18580_v30 }
 0x3cf   : > { %v16389_v36 = vpop.f32.mrb[104].mxu1  ;;  %v19491_v38 = vpack.c.bf16 %v2657_v33, %v2656_v29 }
 0x3d0   : > { %v2534_v40 = vadd.f32 %v16389_v36, %v19388_v57  ;;  %v2525_v42 = vpop.f32.mrb[105].mxu1  ;;  %16422 = vmatpush3.bf16.msra.mxu1 %v18580_v30 }
 0x3d1   : > { %v2526_v45 = vadd.f32 %v19388_v57, %v2525_v42  ;;  %v16390_v46 = vpop.f32.mrb[106].mxu1 }
 0x3d2   : > { %3151 = vmatmul.mubr.bf16.gmra.mrb[164].mxu0 %v18556_v34  ;;  %v2662_v47 = vmax.f32 %v2534_v40, 0.0  ;;  %v2537_v48 = vadd.f32 %v16390_v46, %v19388_v57  ;;  %v2528_v50 = vpop.f32.mrb[107].mxu1 }
 0x3d3   : > { %3158 = vmatprep.mubr.bf16.mxu0 %v19448_v25  ;;  %v2660_v51 = vmax.f32 %v2526_v45, 0.0  ;;  %v2529_v52 = vadd.f32 %v19388_v57, %v2528_v50  ;;  %v18581_v45 = vld [vmem:[%s22031_s4 + $0x170] sm:$0xff]  }
 0x3d4   : > { %v2663_v56 = vmax.f32 %v2537_v48, 0.0  ;;  %16423 = vmatprep.subr.bf16.mxu1 %v18581_v45 }
 0x3d5   : > { %v2661_v58 = vmax.f32 %v2529_v52, 0.0  ;;  %16424 = vmatpush3.bf16.msra.mxu1 %v18581_v45 }
 0x3d6   : > { %v19505_v61 = vpack.c.bf16 %v2663_v56, %v2662_v47  ;;  %v18559_v47 = vld [vmem:[%s19024_s18 + $0x60] sm:$0xff]   ;;  %v18583_v56 = vld [vmem:[%s22031_s4 + $0x178] sm:$0xff]  }
 0x3d7   : > { %v16393_v16 = vpop.f32.mrb[108].mxu1  ;;  %v19507_v63 = vpack.c.bf16 %v2661_v58, %v2660_v51  ;;  %16425 = vmatprep.subr.bf16.mxu1 %v18583_v56 }
 0x3d8   : > { %v2550_v0 = vadd.f32 %v16393_v16, %v19388_v57  ;;  %v2541_v1 = vpop.f32.mrb[109].mxu1 }
 0x3d9   : > { %v2542_v3 = vadd.f32 %v19388_v57, %v2541_v1  ;;  %v16394_v5 = vpop.f32.mrb[110].mxu1  ;;  %16426 = vmatpush3.bf16.msra.mxu1 %v18583_v56 }
 0x3da   : > { %3159 = vmatmul.mubr.bf16.gmra.mrb[168].mxu0 %v18557_v59  ;;  %v2666_v9 = vmax.f32 %v2550_v0, 0.0  ;;  %v2553_v10 = vadd.f32 %v16394_v5, %v19388_v57  ;;  %v2544_v11 = vpop.f32.mrb[111].mxu1 }
 0x3db   : > { %3166 = vmatprep.mubr.bf16.mxu0 %v19446_v49  ;;  %v2664_v12 = vmax.f32 %v2542_v3, 0.0  ;;  %v2545_v13 = vadd.f32 %v19388_v57, %v2544_v11 }
 0x3dc   : > { %v2667_v15 = vmax.f32 %v2553_v10, 0.0  ;;  %v18560_v10 = vld [vmem:[%s19024_s18 + $0x68] sm:$0xff]  }
 0x3dd   : > { %v2665_v19 = vmax.f32 %v2545_v13, 0.0 }
 0x3de   : > { %v19521_v21 = vpack.c.bf16 %v2667_v15, %v2666_v9 }
 0x3df   : > { %v16397_v24 = vpop.f32.mrb[112].mxu1  ;;  %v19523_v26 = vpack.c.bf16 %v2665_v19, %v2664_v12 }
 0x3e0   : > { %v2566_v27 = vadd.f32 %v16397_v24, %v19388_v57  ;;  %v2557_v29 = vpop.f32.mrb[113].mxu1 }
 0x3e1   : > { %v2558_v31 = vadd.f32 %v19388_v57, %v2557_v29  ;;  %v16398_v32 = vpop.f32.mrb[114].mxu1 }
 0x3e2   : > { %3167 = vmatmul.mubr.bf16.gmra.mrb[172].mxu0 %v18558_v20  ;;  %v2670_v33 = vmax.f32 %v2566_v27, 0.0  ;;  %v2569_v34 = vadd.f32 %v16398_v32, %v19388_v57  ;;  %v2560_v36 = vpop.f32.mrb[115].mxu1 }
 0x3e3   : > { %3174 = vmatprep.mubr.bf16.mxu0 %v19458_v43  ;;  %v2668_v40 = vmax.f32 %v2558_v31, 0.0  ;;  %v2561_v42 = vadd.f32 %v19388_v57, %v2560_v36 }
 0x3e4   : > { %v2671_v44 = vmax.f32 %v2569_v34, 0.0  ;;  %v18561_v34 = vld [vmem:[%s19024_s18 + $0x70] sm:$0xff]  }
 0x3e5   : > { %v2669_v46 = vmax.f32 %v2561_v42, 0.0 }
 0x3e6   : > { %v19537_v48 = vpack.c.bf16 %v2671_v44, %v2670_v33 }
 0x3e7   : > { %v16401_v50 = vpop.f32.mrb[116].mxu1  ;;  %v19539_v51 = vpack.c.bf16 %v2669_v46, %v2668_v40 }
 0x3e8   : > { %v2582_v52 = vadd.f32 %v16401_v50, %v19388_v57  ;;  %v2573_v54 = vpop.f32.mrb[117].mxu1 }
 0x3e9   : > { %v2574_v58 = vadd.f32 %v19388_v57, %v2573_v54  ;;  %v16402_v59 = vpop.f32.mrb[118].mxu1 }
 0x3ea   : > { %3175 = vmatmul.mubr.bf16.gmra.mrb[176].mxu0 %v18559_v47  ;;  %v2674_v16 = vmax.f32 %v2582_v52, 0.0  ;;  %v2585_v0 = vadd.f32 %v16402_v59, %v19388_v57  ;;  %v2576_v1 = vpop.f32.mrb[119].mxu1 }
 0x3eb   : > { %3182 = vmatprep.mubr.bf16.mxu0 %v19456_v41  ;;  %v2672_v28 = vmax.f32 %v2574_v58, 0.0  ;;  %v2577_v3 = vadd.f32 %v19388_v57, %v2576_v1 }
 0x3ec   : > { %v2675_v5 = vmax.f32 %v2585_v0, 0.0  ;;  %v18562_v0 = vld [vmem:[%s19024_s18 + $0x78] sm:$0xff]  }
 0x3ed   : > { %v2673_v9 = vmax.f32 %v2577_v3, 0.0  ;;  %v18563_v3 = vld [vmem:[%s19024_s18 + $0x80] sm:$0xff]  }
 0x3ee   : > { %v19550_v11 = vpack.c.bf16 %v2675_v5, %v2674_v16  ;;  %v18564_v5 = vld [vmem:[%s19024_s18 + $0x88] sm:$0xff]  }
 0x3ef   : > { %v16405_v12 = vpop.f32.mrb[120].mxu1  ;;  %v19552_v13 = vpack.c.bf16 %v2673_v9, %v2672_v28  ;;  %v18566_v9 = vld [vmem:[%s19024_s18 + $0x98] sm:$0xff]  }
 0x3f0   : > { %v2598_v15 = vadd.f32 %v16405_v12, %v19388_v57  ;;  %v2589_v18 = vpop.f32.mrb[121].mxu1  ;;  %v18568_v12 = vld [vmem:[%s19024_s18 + $0xa8] sm:$0xff]  }
 0x3f1   : > { %v2590_v19 = vadd.f32 %v19388_v57, %v2589_v18  ;;  %v16406_v20 = vpop.f32.mrb[122].mxu1  ;;  %v18570_v18 = vld [vmem:[%s19024_s18 + $0xb8] sm:$0xff]  }
 0x3f2   : > { %3183 = vmatmul.mubr.bf16.gmra.mrb[180].mxu0 %v18560_v10  ;;  %v2678_v24 = vmax.f32 %v2598_v15, 0.0  ;;  %v2601_v27 = vadd.f32 %v16406_v20, %v19388_v57  ;;  %v2592_v29 = vpop.f32.mrb[123].mxu1  ;;  %v18567_v10 = vld [vmem:[%s19024_s18 + $0xa0] sm:$0xff]   ;;  %v18569_v15 = vld [vmem:[%s19024_s18 + $0xb0] sm:$0xff]   ;;  %v18573_v20 = vld [vmem:[%s19024_s18 + $0xc8] sm:$0xff]  }
 0x3f3   : > { %3190 = vmatprep.mubr.bf16.mxu0 %v19468_v62  ;;  %v2676_v30 = vmax.f32 %v2590_v19, 0.0  ;;  %v2593_v31 = vadd.f32 %v19388_v57, %v2592_v29  ;;  %v18571_v19 = vld [vmem:[%s19024_s18 + $0xc0] sm:$0xff]  }
 0x3f4   : > { %v2679_v32 = vmax.f32 %v2601_v27, 0.0  ;;  %v19600_v27 = vld [vmem:[%s22033_s6 + $0x4] ss:$0 sm:$0xff] }
 0x3f5   : > { %v2677_v33 = vmax.f32 %v2593_v31, 0.0 }
 0x3f6   : > { %v19560_v36 = vpack.c.bf16 %v2679_v32, %v2678_v24  ;;  %v18576_v24 = vld [vmem:[%s19024_s18 + $0xd0] sm:$0xff]   ;;  %v18579_v32 = vld [vmem:[%s19024_s18 + $0xd8] sm:$0xff]  }
 0x3f7   : > { %v16409_v40 = vpop.f32.mrb[124].mxu1  ;;  %v19562_v42 = vpack.c.bf16 %v2677_v33, %v2676_v30 }
 0x3f8   : > { %v2614_v44 = vadd.f32 %v16409_v40, %v19388_v57  ;;  %v2605_v45 = vpop.f32.mrb[125].mxu1 }
 0x3f9   : > { %v2606_v46 = vadd.f32 %v19388_v57, %v2605_v45  ;;  %v16410_v47 = vpop.f32.mrb[126].mxu1 }
 0x3fa   : > { %3191 = vmatmul.mubr.bf16.gmra.mrb[184].mxu0 %v18561_v34  ;;  %v2682_v50 = vmax.f32 %v2614_v44, 0.0  ;;  %v2617_v52 = vadd.f32 %v16410_v47, %v19388_v57  ;;  %v2608_v54 = vpop.f32.mrb[127].mxu1 }
 0x3fb   : > { %3198 = vmatprep.mubr.bf16.mxu0 %v19466_v60  ;;  %v2680_v56 = vmax.f32 %v2606_v46, 0.0  ;;  %v2609_v58 = vadd.f32 %v19388_v57, %v2608_v54  ;;  %v18565_v57 = vld [vmem:[%s19024_s18 + $0x90] sm:$0xff]   ;;  %v18582_v54 = vld [vmem:[%s19024_s18 + $0xe0] sm:$0xff]  }
 0x3fc   : > { %v2683_v59 = vmax.f32 %v2617_v52, 0.0 }
 0x3fd   : > { %v2681_v16 = vmax.f32 %v2609_v58, 0.0 }
 0x3fe   : > { %v19570_v1 = vpack.c.bf16 %v2683_v59, %v2682_v50 }
 0x3ff   : > { %v19572_v28 = vpack.c.bf16 %v2681_v16, %v2680_v56 }
 0x402   : > { %3199 = vmatmul.mubr.bf16.gmra.mrb[188].mxu0 %v18562_v0 }
 0x403   : > { %3206 = vmatprep.mubr.bf16.mxu0 %v19478_v17 }
 0x40a   : > { %3207 = vmatmul.mubr.bf16.gmra.mrb[192].mxu0 %v18563_v3 }
 0x40b   : > { %3214 = vmatprep.mubr.bf16.mxu0 %v19476_v14 }
 0x412   : > { %3215 = vmatmul.mubr.bf16.gmra.mrb[196].mxu0 %v18564_v5 }
 0x413   : > { %3222 = vmatprep.mubr.bf16.mxu0 %v19491_v38 }
 0x41a   : > { %3223 = vmatmul.mubr.bf16.gmra.mrb[200].mxu0 %v18565_v57 }
 0x41b   : > { %3230 = vmatprep.mubr.bf16.mxu0 %v19489_v35 }
 0x422   : > { %3231 = vmatmul.mubr.bf16.gmra.mrb[204].mxu0 %v18566_v9 }
 0x423   : > { %3238 = vmatprep.mubr.bf16.mxu0 %v19507_v63 }
 0x42a   : > { %3239 = vmatmul.mubr.bf16.gmra.mrb[208].mxu0 %v18567_v10  ;;  %v18584_v10 = vld [vmem:[%s19024_s18 + $0xe8] sm:$0xff]  }
 0x42b   : > { %3246 = vmatprep.mubr.bf16.mxu0 %v19505_v61 }
 0x432   : > { %3247 = vmatmul.mubr.bf16.gmra.mrb[212].mxu0 %v18568_v12 }
 0x433   : > { %3254 = vmatprep.mubr.bf16.mxu0 %v19523_v26 }
 0x43a   : > { %3255 = vmatmul.mubr.bf16.gmra.mrb[216].mxu0 %v18569_v15 }
 0x43b   : > { %3262 = vmatprep.mubr.bf16.mxu0 %v19521_v21 }
 0x442   : > { %3263 = vmatmul.mubr.bf16.gmra.mrb[220].mxu0 %v18570_v18 }
 0x443   : > { %3270 = vmatprep.mubr.bf16.mxu0 %v19539_v51 }
 0x44a   : > { %3271 = vmatmul.mubr.bf16.gmra.mrb[224].mxu0 %v18571_v19 }
 0x44b   : > { %3278 = vmatprep.mubr.bf16.mxu0 %v19537_v48 }
 0x452   : > { %3279 = vmatmul.mubr.bf16.gmra.mrb[228].mxu0 %v18573_v20 }
 0x453   : > { %3286 = vmatprep.mubr.bf16.mxu0 %v19552_v13 }
 0x45a   : > { %3287 = vmatmul.mubr.bf16.gmra.mrb[232].mxu0 %v18576_v24 }
 0x45b   : > { %3294 = vmatprep.mubr.bf16.mxu0 %v19550_v11 }
 0x45d   : > { %v3080_v29 = vpop.f32.mrb[128].mxu0 }
 0x45e   : > { %v3081_v30 = vadd.f32 %v19600_v27, %v3080_v29  ;;  %v3082_v31 = vpop.f32.mrb[129].mxu0 }
 0x45f   : > { %v3083_v33 = vpop.f32.mrb[130].mxu0 }
 0x460   : > { %v3084_v34 = vadd.f32 %v19600_v27, %v3083_v33  ;;  %v3085_v40 = vpop.f32.mrb[131].mxu0  ;;  %v3335_v44 = vmax.f32 %v3081_v30, 0.0 }
 0x462   : > { %v3336_v45 = vmax.f32 %v3084_v34, 0.0  ;;  %3295 = vmatmul.mubr.bf16.gmra.mrb[236].mxu0 %v18579_v32  ;;  %v18585_v32 = vld [vmem:[%s19024_s18 + $0xf0] sm:$0xff]  }
 0x463   : > { %3302 = vmatprep.mubr.bf16.mxu0 %v19562_v42 }
 0x464   : > { %v3399_v46 = vpack.c.bf16 %v3336_v45, %v3335_v44 }
 0x465   : > { %v3088_v47 = vpop.f32.mrb[132].mxu0 }
 0x466   : > { %v3089_v50 = vadd.f32 %v19600_v27, %v3088_v47  ;;  %v3090_v52 = vpop.f32.mrb[133].mxu0  ;;  %16427 = vmatprep.mubr.bf16.mxu1 %v3399_v46 }
 0x467   : > { %v3091_v56 = vpop.f32.mrb[134].mxu0 }
 0x468   : > { %v3092_v58 = vadd.f32 %v19600_v27, %v3091_v56  ;;  %v3093_v59 = vpop.f32.mrb[135].mxu0  ;;  %v3337_v16 = vmax.f32 %v3089_v50, 0.0 }
 0x46a   : > { %v3338_v0 = vmax.f32 %v3092_v58, 0.0  ;;  %3303 = vmatmul.mubr.bf16.gmra.mrb[240].mxu0 %v18582_v54  ;;  %v18586_v54 = vld [vmem:[%s19024_s18 + $0xf8] sm:$0xff]  }
 0x46b   : > { %3310 = vmatprep.mubr.bf16.mxu0 %v19560_v36 }
 0x46c   : > { %v3400_v3 = vpack.c.bf16 %v3338_v0, %v3337_v16 }
 0x46d   : > { %v3096_v5 = vpop.f32.mrb[136].mxu0 }
 0x46e   : > { %v3097_v57 = vadd.f32 %v19600_v27, %v3096_v5  ;;  %v3098_v9 = vpop.f32.mrb[137].mxu0  ;;  %16428 = vmatmul.mubr.bf16.vlgmr.msra.gmra.mrb[128].mxu1 %v3400_v3 }
 0x46f   : > { %v3099_v12 = vpop.f32.mrb[138].mxu0 }
 0x470   : > { %v3100_v15 = vadd.f32 %v19600_v27, %v3099_v12  ;;  %v3101_v18 = vpop.f32.mrb[139].mxu0  ;;  %v3339_v19 = vmax.f32 %v3097_v57, 0.0 }
 0x472   : > { %v3340_v20 = vmax.f32 %v3100_v15, 0.0  ;;  %3311 = vmatmul.mubr.bf16.gmra.mrb[244].mxu0 %v18584_v10 }
 0x473   : > { %3318 = vmatprep.mubr.bf16.mxu0 %v19572_v28 }
 0x474   : > { %v3401_v24 = vpack.c.bf16 %v3340_v20, %v3339_v19 }
 0x475   : > { %v3104_v29 = vpop.f32.mrb[140].mxu0 }
 0x476   : > { %v3105_v30 = vadd.f32 %v19600_v27, %v3104_v29  ;;  %v3106_v31 = vpop.f32.mrb[141].mxu0  ;;  %16431 = vmatprep.mubr.bf16.mxu1 %v3401_v24 }
 0x477   : > { %v3107_v33 = vpop.f32.mrb[142].mxu0 }
 0x478   : > { %v3108_v34 = vadd.f32 %v19600_v27, %v3107_v33  ;;  %v3109_v40 = vpop.f32.mrb[143].mxu0  ;;  %v3341_v44 = vmax.f32 %v3105_v30, 0.0 }
 0x47a   : > { %v3342_v45 = vmax.f32 %v3108_v34, 0.0  ;;  %3319 = vmatmul.mubr.bf16.gmra.mrb[248].mxu0 %v18585_v32 }
 0x47b   : > { %3326 = vmatprep.mubr.bf16.mxu0 %v19570_v1 }
 0x47c   : > { %v3402_v46 = vpack.c.bf16 %v3342_v45, %v3341_v44 }
 0x47d   : > { %v3112_v47 = vpop.f32.mrb[144].mxu0 }
 0x47e   : > { %v3113_v50 = vadd.f32 %v19600_v27, %v3112_v47  ;;  %v3114_v52 = vpop.f32.mrb[145].mxu0  ;;  %16432 = vmatmul.mubr.bf16.gmra.mrb[132].mxu1 %v3402_v46 }
 0x47f   : > { %v3115_v56 = vpop.f32.mrb[146].mxu0 }
 0x480   : > { %v3116_v58 = vadd.f32 %v19600_v27, %v3115_v56  ;;  %v3117_v59 = vpop.f32.mrb[147].mxu0  ;;  %v3343_v16 = vmax.f32 %v3113_v50, 0.0 }
 0x482   : > { %v3344_v0 = vmax.f32 %v3116_v58, 0.0  ;;  %3327 = vmatmul.mubr.bf16.gmra.mrb[252].mxu0 %v18586_v54 }
 0x484   : > { %v3403_v3 = vpack.c.bf16 %v3344_v0, %v3343_v16 }
 0x485   : > { %v3120_v5 = vpop.f32.mrb[148].mxu0 }
 0x486   : > { %v3121_v57 = vadd.f32 %v19600_v27, %v3120_v5  ;;  %v3122_v9 = vpop.f32.mrb[149].mxu0  ;;  %16435 = vmatprep.mubr.bf16.mxu1 %v3403_v3 }
 0x487   : > { %v3123_v10 = vpop.f32.mrb[150].mxu0 }
 0x488   : > { %v3124_v12 = vadd.f32 %v19600_v27, %v3123_v10  ;;  %v3125_v15 = vpop.f32.mrb[151].mxu0  ;;  %v3345_v18 = vmax.f32 %v3121_v57, 0.0 }
 0x48a   : > { %v3346_v19 = vmax.f32 %v3124_v12, 0.0 }
 0x48c   : > { %v3404_v20 = vpack.c.bf16 %v3346_v19, %v3345_v18 }
 0x48d   : > { %v3128_v24 = vpop.f32.mrb[152].mxu0 }
 0x48e   : > { %v3129_v29 = vadd.f32 %v19600_v27, %v3128_v24  ;;  %v3130_v30 = vpop.f32.mrb[153].mxu0  ;;  %16436 = vmatmul.mubr.bf16.gmra.mrb[136].mxu1 %v3404_v20 }
 0x48f   : > { %v3131_v31 = vpop.f32.mrb[154].mxu0 }
 0x490   : > { %v3132_v32 = vadd.f32 %v19600_v27, %v3131_v31  ;;  %v3133_v33 = vpop.f32.mrb[155].mxu0  ;;  %v3347_v34 = vmax.f32 %v3129_v29, 0.0 }
 0x492   : > { %v3348_v40 = vmax.f32 %v3132_v32, 0.0 }
 0x494   : > { %v3405_v44 = vpack.c.bf16 %v3348_v40, %v3347_v34 }
 0x495   : > { %v3136_v45 = vpop.f32.mrb[156].mxu0 }
 0x496   : > { %v3137_v46 = vadd.f32 %v19600_v27, %v3136_v45  ;;  %v3138_v47 = vpop.f32.mrb[157].mxu0  ;;  %16439 = vmatprep.mubr.bf16.mxu1 %v3405_v44 }
 0x497   : > { %v3139_v50 = vpop.f32.mrb[158].mxu0 }
 0x498   : > { %v3140_v52 = vadd.f32 %v19600_v27, %v3139_v50  ;;  %v3141_v54 = vpop.f32.mrb[159].mxu0  ;;  %v3349_v56 = vmax.f32 %v3137_v46, 0.0 }
 0x49a   : > { %v3350_v58 = vmax.f32 %v3140_v52, 0.0 }
 0x49c   : > { %v3406_v59 = vpack.c.bf16 %v3350_v58, %v3349_v56 }
 0x49d   : > { %v3144_v16 = vpop.f32.mrb[160].mxu0 }
 0x49e   : > { %v3145_v0 = vadd.f32 %v19600_v27, %v3144_v16  ;;  %v3146_v3 = vpop.f32.mrb[161].mxu0  ;;  %16440 = vmatmul.mubr.bf16.gmra.mrb[140].mxu1 %v3406_v59 }
 0x49f   : > { %v3147_v5 = vpop.f32.mrb[162].mxu0 }
 0x4a0   : > { %v3148_v57 = vadd.f32 %v19600_v27, %v3147_v5  ;;  %v3149_v9 = vpop.f32.mrb[163].mxu0  ;;  %v3351_v10 = vmax.f32 %v3145_v0, 0.0 }
 0x4a2   : > { %v3352_v12 = vmax.f32 %v3148_v57, 0.0 }
 0x4a4   : > { %v3407_v15 = vpack.c.bf16 %v3352_v12, %v3351_v10 }
 0x4a5   : > { %v3152_v18 = vpop.f32.mrb[164].mxu0 }
 0x4a6   : > { %v3153_v19 = vadd.f32 %v19600_v27, %v3152_v18  ;;  %v3154_v20 = vpop.f32.mrb[165].mxu0  ;;  %16443 = vmatprep.mubr.bf16.mxu1 %v3407_v15 }
 0x4a7   : > { %v3155_v24 = vpop.f32.mrb[166].mxu0 }
 0x4a8   : > { %v3156_v29 = vadd.f32 %v19600_v27, %v3155_v24  ;;  %v3157_v30 = vpop.f32.mrb[167].mxu0  ;;  %v3353_v31 = vmax.f32 %v3153_v19, 0.0 }
 0x4aa   : > { %v3354_v32 = vmax.f32 %v3156_v29, 0.0 }
 0x4ac   : > { %v3408_v33 = vpack.c.bf16 %v3354_v32, %v3353_v31  ;;  %v18587_v31 = vld [vmem:[%s22031_s4 + $0x180] sm:$0xff]  }
 0x4ad   : > { %v3160_v34 = vpop.f32.mrb[168].mxu0  ;;  %16491 = vmatprep.subr.bf16.mxu1 %v18587_v31 }
 0x4ae   : > { %v3161_v40 = vadd.f32 %v19600_v27, %v3160_v34  ;;  %v3162_v44 = vpop.f32.mrb[169].mxu0  ;;  %16444 = vmatmul.mubr.bf16.gmra.mrb[144].mxu1 %v3408_v33 }
 0x4af   : > { %v3163_v45 = vpop.f32.mrb[170].mxu0  ;;  %16492 = vmatpush3.bf16.msra.mxu1 %v18587_v31 }
 0x4b0   : > { %v3164_v46 = vadd.f32 %v19600_v27, %v3163_v45  ;;  %v3165_v47 = vpop.f32.mrb[171].mxu0  ;;  %v3355_v50 = vmax.f32 %v3161_v40, 0.0 }
 0x4b2   : > { %v3356_v52 = vmax.f32 %v3164_v46, 0.0  ;;  %v18588_v46 = vld [vmem:[%s22031_s4 + $0x188] sm:$0xff]  }
 0x4b3   : > { %16493 = vmatprep.subr.bf16.mxu1 %v18588_v46 }
 0x4b4   : > { %v3409_v54 = vpack.c.bf16 %v3356_v52, %v3355_v50  ;;  %16494 = vmatpush3.bf16.msra.mxu1 %v18588_v46 }
 0x4b5   : > { %v3168_v56 = vpop.f32.mrb[172].mxu0 }
 0x4b6   : > { %v3169_v58 = vadd.f32 %v19600_v27, %v3168_v56  ;;  %v3170_v59 = vpop.f32.mrb[173].mxu0  ;;  %16447 = vmatprep.mubr.bf16.mxu1 %v3409_v54  ;;  %v18589_v54 = vld [vmem:[%s22031_s4 + $0x190] sm:$0xff]  }
 0x4b7   : > { %v3171_v16 = vpop.f32.mrb[174].mxu0  ;;  %16495 = vmatprep.subr.bf16.mxu1 %v18589_v54 }
 0x4b8   : > { %v3172_v0 = vadd.f32 %v19600_v27, %v3171_v16  ;;  %v3173_v3 = vpop.f32.mrb[175].mxu0  ;;  %v3357_v5 = vmax.f32 %v3169_v58, 0.0  ;;  %16496 = vmatpush3.bf16.msra.mxu1 %v18589_v54 }
 0x4ba   : > { %v3358_v57 = vmax.f32 %v3172_v0, 0.0 }
 0x4bc   : > { %v3410_v9 = vpack.c.bf16 %v3358_v57, %v3357_v5  ;;  %v18590_v5 = vld [vmem:[%s22031_s4 + $0x198] sm:$0xff]  }
 0x4bd   : > { %v3176_v10 = vpop.f32.mrb[176].mxu0  ;;  %16497 = vmatprep.subr.bf16.mxu1 %v18590_v5 }
 0x4be   : > { %v3177_v12 = vadd.f32 %v19600_v27, %v3176_v10  ;;  %v3178_v15 = vpop.f32.mrb[177].mxu0  ;;  %16448 = vmatmul.mubr.bf16.gmra.mrb[148].mxu1 %v3410_v9 }
 0x4bf   : > { %v3179_v18 = vpop.f32.mrb[178].mxu0  ;;  %16498 = vmatpush3.bf16.msra.mxu1 %v18590_v5 }
 0x4c0   : > { %v3180_v19 = vadd.f32 %v19600_v27, %v3179_v18  ;;  %v3181_v20 = vpop.f32.mrb[179].mxu0  ;;  %v3359_v24 = vmax.f32 %v3177_v12, 0.0  ;;  %v18591_v12 = vld [vmem:[%s22031_s4 + $0x1a0] sm:$0xff]  }
 0x4c1   : > { %16499 = vmatprep.subr.bf16.mxu1 %v18591_v12 }
 0x4c2   : > { %v3360_v29 = vmax.f32 %v3180_v19, 0.0 }
 0x4c3   : > { %16500 = vmatpush3.bf16.msra.mxu1 %v18591_v12 }
 0x4c4   : > { %v3411_v30 = vpack.c.bf16 %v3360_v29, %v3359_v24 }
 0x4c5   : > { %v3184_v32 = vpop.f32.mrb[180].mxu0 }
 0x4c6   : > { %v3185_v33 = vadd.f32 %v19600_v27, %v3184_v32  ;;  %v3186_v34 = vpop.f32.mrb[181].mxu0  ;;  %16451 = vmatprep.mubr.bf16.mxu1 %v3411_v30  ;;  %v18592_v30 = vld [vmem:[%s22031_s4 + $0x1a8] sm:$0xff]  }
 0x4c7   : > { %v3187_v40 = vpop.f32.mrb[182].mxu0  ;;  %16501 = vmatprep.subr.bf16.mxu1 %v18592_v30  ;;  %v18593_v34 = vld [vmem:[%s22031_s4 + $0x1b0] sm:$0xff]  }
 0x4c8   : > { %v3188_v44 = vadd.f32 %v19600_v27, %v3187_v40  ;;  %v3189_v45 = vpop.f32.mrb[183].mxu0  ;;  %v3361_v47 = vmax.f32 %v3185_v33, 0.0  ;;  %16502 = vmatpush3.bf16.msra.mxu1 %v18592_v30 }
 0x4c9   : > { %16503 = vmatprep.subr.bf16.mxu1 %v18593_v34 }
 0x4ca   : > { %v3362_v50 = vmax.f32 %v3188_v44, 0.0 }
 0x4cc   : > { %v3412_v52 = vpack.c.bf16 %v3362_v50, %v3361_v47  ;;  %16504 = vmatpush3.bf16.msra.mxu1 %v18593_v34 }
 0x4cd   : > { %v3192_v56 = vpop.f32.mrb[184].mxu0 }
 0x4ce   : > { %v3193_v58 = vadd.f32 %v19600_v27, %v3192_v56  ;;  %v3194_v59 = vpop.f32.mrb[185].mxu0  ;;  %16452 = vmatmul.mubr.bf16.gmra.mrb[152].mxu1 %v3412_v52  ;;  %v18594_v52 = vld [vmem:[%s22031_s4 + $0x1b8] sm:$0xff]  }
 0x4cf   : > { %v3195_v16 = vpop.f32.mrb[186].mxu0  ;;  %16505 = vmatprep.subr.bf16.mxu1 %v18594_v52 }
 0x4d0   : > { %v3196_v0 = vadd.f32 %v19600_v27, %v3195_v16  ;;  %v3197_v3 = vpop.f32.mrb[187].mxu0  ;;  %v3363_v57 = vmax.f32 %v3193_v58, 0.0  ;;  %16506 = vmatpush3.bf16.msra.mxu1 %v18594_v52 }
 0x4d2   : > { %v3364_v9 = vmax.f32 %v3196_v0, 0.0 }
 0x4d4   : > { %v3413_v10 = vpack.c.bf16 %v3364_v9, %v3363_v57 }
 0x4d5   : > { %v3200_v15 = vpop.f32.mrb[188].mxu0 }
 0x4d6   : > { %v3201_v18 = vadd.f32 %v19600_v27, %v3200_v15  ;;  %v3202_v19 = vpop.f32.mrb[189].mxu0  ;;  %16455 = vmatprep.mubr.bf16.mxu1 %v3413_v10 }
 0x4d7   : > { %v3203_v20 = vpop.f32.mrb[190].mxu0 }
 0x4d8   : > { %v3204_v24 = vadd.f32 %v19600_v27, %v3203_v20  ;;  %v3205_v29 = vpop.f32.mrb[191].mxu0  ;;  %v3365_v31 = vmax.f32 %v3201_v18, 0.0 }
 0x4da   : > { %v3366_v32 = vmax.f32 %v3204_v24, 0.0 }
 0x4dc   : > { %v3414_v33 = vpack.c.bf16 %v3366_v32, %v3365_v31 }
 0x4dd   : > { %v3208_v40 = vpop.f32.mrb[192].mxu0 }
 0x4de   : > { %v3209_v44 = vadd.f32 %v19600_v27, %v3208_v40  ;;  %v3210_v45 = vpop.f32.mrb[193].mxu0  ;;  %16456 = vmatmul.mubr.bf16.gmra.mrb[156].mxu1 %v3414_v33 }
 0x4df   : > { %v3211_v46 = vpop.f32.mrb[194].mxu0 }
 0x4e0   : > { %v3212_v47 = vadd.f32 %v19600_v27, %v3211_v46  ;;  %v3213_v50 = vpop.f32.mrb[195].mxu0  ;;  %v3367_v54 = vmax.f32 %v3209_v44, 0.0 }
 0x4e2   : > { %v3368_v56 = vmax.f32 %v3212_v47, 0.0 }
 0x4e4   : > { %v3415_v58 = vpack.c.bf16 %v3368_v56, %v3367_v54 }
 0x4e5   : > { %v3216_v59 = vpop.f32.mrb[196].mxu0 }
 0x4e6   : > { %v3217_v16 = vadd.f32 %v19600_v27, %v3216_v59  ;;  %v3218_v0 = vpop.f32.mrb[197].mxu0  ;;  %16459 = vmatprep.mubr.bf16.mxu1 %v3415_v58 }
 0x4e7   : > { %v3219_v3 = vpop.f32.mrb[198].mxu0 }
 0x4e8   : > { %v3220_v5 = vadd.f32 %v19600_v27, %v3219_v3  ;;  %v3221_v57 = vpop.f32.mrb[199].mxu0  ;;  %v3369_v9 = vmax.f32 %v3217_v16, 0.0 }
 0x4ea   : > { %v3370_v10 = vmax.f32 %v3220_v5, 0.0 }
 0x4ec   : > { %v3416_v12 = vpack.c.bf16 %v3370_v10, %v3369_v9 }
 0x4ed   : > { %v3224_v15 = vpop.f32.mrb[200].mxu0 }
 0x4ee   : > { %v3225_v18 = vadd.f32 %v19600_v27, %v3224_v15  ;;  %v3226_v19 = vpop.f32.mrb[201].mxu0  ;;  %16460 = vmatmul.mubr.bf16.gmra.mrb[160].mxu1 %v3416_v12 }
 0x4ef   : > { %v3227_v20 = vpop.f32.mrb[202].mxu0 }
 0x4f0   : > { %v3228_v24 = vadd.f32 %v19600_v27, %v3227_v20  ;;  %v3229_v29 = vpop.f32.mrb[203].mxu0  ;;  %v3371_v30 = vmax.f32 %v3225_v18, 0.0 }
 0x4f2   : > { %v3372_v31 = vmax.f32 %v3228_v24, 0.0 }
 0x4f4   : > { %v3417_v32 = vpack.c.bf16 %v3372_v31, %v3371_v30 }
 0x4f5   : > { %v3232_v33 = vpop.f32.mrb[204].mxu0 }
 0x4f6   : > { %v3233_v34 = vadd.f32 %v19600_v27, %v3232_v33  ;;  %v3234_v40 = vpop.f32.mrb[205].mxu0  ;;  %16463 = vmatprep.mubr.bf16.mxu1 %v3417_v32 }
 0x4f7   : > { %v3235_v44 = vpop.f32.mrb[206].mxu0 }
 0x4f8   : > { %v3236_v45 = vadd.f32 %v19600_v27, %v3235_v44  ;;  %v3237_v46 = vpop.f32.mrb[207].mxu0  ;;  %v3373_v47 = vmax.f32 %v3233_v34, 0.0 }
 0x4fa   : > { %v3374_v50 = vmax.f32 %v3236_v45, 0.0 }
 0x4fc   : > { %v3418_v52 = vpack.c.bf16 %v3374_v50, %v3373_v47 }
 0x4fd   : > { %v3240_v54 = vpop.f32.mrb[208].mxu0 }
 0x4fe   : > { %v3241_v56 = vadd.f32 %v19600_v27, %v3240_v54  ;;  %v3242_v58 = vpop.f32.mrb[209].mxu0  ;;  %16464 = vmatmul.mubr.bf16.gmra.mrb[164].mxu1 %v3418_v52 }
 0x4ff   : > { %v3243_v59 = vpop.f32.mrb[210].mxu0 }
 0x500   : > { %v3244_v16 = vadd.f32 %v19600_v27, %v3243_v59  ;;  %v3245_v0 = vpop.f32.mrb[211].mxu0  ;;  %v3375_v3 = vmax.f32 %v3241_v56, 0.0 }
 0x502   : > { %v3376_v5 = vmax.f32 %v3244_v16, 0.0 }
 0x504   : > { %v3419_v57 = vpack.c.bf16 %v3376_v5, %v3375_v3 }
 0x505   : > { %v3248_v9 = vpop.f32.mrb[212].mxu0 }
 0x506   : > { %v3249_v10 = vadd.f32 %v19600_v27, %v3248_v9  ;;  %v3250_v12 = vpop.f32.mrb[213].mxu0  ;;  %16467 = vmatprep.mubr.bf16.mxu1 %v3419_v57 }
 0x507   : > { %v3251_v15 = vpop.f32.mrb[214].mxu0 }
 0x508   : > { %v3252_v18 = vadd.f32 %v19600_v27, %v3251_v15  ;;  %v3253_v19 = vpop.f32.mrb[215].mxu0  ;;  %v3377_v20 = vmax.f32 %v3249_v10, 0.0 }
 0x50a   : > { %v3378_v24 = vmax.f32 %v3252_v18, 0.0 }
 0x50c   : > { %v3420_v29 = vpack.c.bf16 %v3378_v24, %v3377_v20  ;;  %v18595_v20 = vld [vmem:[%s22031_s4 + $0x1c0] sm:$0xff]  }
 0x50d   : > { %v3256_v30 = vpop.f32.mrb[216].mxu0  ;;  %16571 = vmatprep.subr.bf16.mxu0 %v18595_v20 }
 0x50e   : > { %v3257_v31 = vadd.f32 %v19600_v27, %v3256_v30  ;;  %v3258_v32 = vpop.f32.mrb[217].mxu0  ;;  %16468 = vmatmul.mubr.bf16.gmra.mrb[168].mxu1 %v3420_v29  ;;  %16572 = vmatpush3.bf16.msra.mxu0 %v18595_v20 }
 0x50f   : > { %v3259_v33 = vpop.f32.mrb[218].mxu0 }
 0x510   : > { %v3260_v34 = vadd.f32 %v19600_v27, %v3259_v33  ;;  %v3261_v40 = vpop.f32.mrb[219].mxu0  ;;  %v3379_v44 = vmax.f32 %v3257_v31, 0.0 }
 0x512   : > { %v3380_v45 = vmax.f32 %v3260_v34, 0.0 }
 0x514   : > { %v3421_v46 = vpack.c.bf16 %v3380_v45, %v3379_v44 }
 0x515   : > { %v3264_v47 = vpop.f32.mrb[220].mxu0 }
 0x516   : > { %v3265_v50 = vadd.f32 %v19600_v27, %v3264_v47  ;;  %v3266_v52 = vpop.f32.mrb[221].mxu0  ;;  %16471 = vmatprep.mubr.bf16.mxu1 %v3421_v46 }
 0x517   : > { %v3267_v54 = vpop.f32.mrb[222].mxu0 }
 0x518   : > { %v3268_v56 = vadd.f32 %v19600_v27, %v3267_v54  ;;  %v3269_v58 = vpop.f32.mrb[223].mxu0  ;;  %v3381_v59 = vmax.f32 %v3265_v50, 0.0 }
 0x51a   : > { %v3382_v16 = vmax.f32 %v3268_v56, 0.0 }
 0x51c   : > { %v3422_v0 = vpack.c.bf16 %v3382_v16, %v3381_v59 }
 0x51d   : > { %v3272_v3 = vpop.f32.mrb[224].mxu0 }
 0x51e   : > { %v3273_v5 = vadd.f32 %v19600_v27, %v3272_v3  ;;  %v3274_v57 = vpop.f32.mrb[225].mxu0  ;;  %16472 = vmatmul.mubr.bf16.gmra.mrb[172].mxu1 %v3422_v0 }
 0x51f   : > { %v3275_v9 = vpop.f32.mrb[226].mxu0 }
 0x520   : > { %v3276_v10 = vadd.f32 %v19600_v27, %v3275_v9  ;;  %v3277_v12 = vpop.f32.mrb[227].mxu0  ;;  %v3383_v15 = vmax.f32 %v3273_v5, 0.0 }
 0x522   : > { %v3384_v18 = vmax.f32 %v3276_v10, 0.0 }
 0x524   : > { %v3423_v19 = vpack.c.bf16 %v3384_v18, %v3383_v15 }
 0x525   : > { %v3280_v24 = vpop.f32.mrb[228].mxu0 }
 0x526   : > { %v3281_v29 = vadd.f32 %v19600_v27, %v3280_v24  ;;  %v3282_v30 = vpop.f32.mrb[229].mxu0  ;;  %16475 = vmatprep.mubr.bf16.mxu1 %v3423_v19 }
 0x527   : > { %v3283_v31 = vpop.f32.mrb[230].mxu0 }
 0x528   : > { %v3284_v32 = vadd.f32 %v19600_v27, %v3283_v31  ;;  %v3285_v33 = vpop.f32.mrb[231].mxu0  ;;  %v3385_v34 = vmax.f32 %v3281_v29, 0.0  ;;  %v19698_v29 = vld [vmem:[%s22033_s6 + $0x5] ss:$0 sm:$0xff] }
 0x52a   : > { %v3386_v40 = vmax.f32 %v3284_v32, 0.0 }
 0x52c   : > { %v3424_v44 = vpack.c.bf16 %v3386_v40, %v3385_v34 }
 0x52d   : > { %v3288_v45 = vpop.f32.mrb[232].mxu0 }
 0x52e   : > { %v3289_v46 = vadd.f32 %v19600_v27, %v3288_v45  ;;  %v3290_v47 = vpop.f32.mrb[233].mxu0  ;;  %16476 = vmatmul.mubr.bf16.gmra.mrb[176].mxu1 %v3424_v44 }
 0x52f   : > { %v3291_v50 = vpop.f32.mrb[234].mxu0 }
 0x530   : > { %v3292_v52 = vadd.f32 %v19600_v27, %v3291_v50  ;;  %v3293_v54 = vpop.f32.mrb[235].mxu0  ;;  %v3387_v56 = vmax.f32 %v3289_v46, 0.0 }
 0x531   : > { %v18596_v54 = vld [vmem:[%s22031_s4 + $0x1c8] sm:$0xff]  }
 0x532   : > { %v3388_v58 = vmax.f32 %v3292_v52, 0.0  ;;  %16573 = vmatprep.subr.bf16.mxu0 %v18596_v54 }
 0x533   : > { %16574 = vmatpush3.bf16.msra.mxu0 %v18596_v54 }
 0x534   : > { %v3425_v59 = vpack.c.bf16 %v3388_v58, %v3387_v56 }
 0x535   : > { %v3296_v16 = vpop.f32.mrb[236].mxu0 }
 0x536   : > { %v3297_v0 = vadd.f32 %v19600_v27, %v3296_v16  ;;  %v3298_v3 = vpop.f32.mrb[237].mxu0  ;;  %16479 = vmatprep.mubr.bf16.mxu1 %v3425_v59 }
 0x537   : > { %v3299_v5 = vpop.f32.mrb[238].mxu0 }
 0x538   : > { %v3300_v57 = vadd.f32 %v19600_v27, %v3299_v5  ;;  %v3301_v9 = vpop.f32.mrb[239].mxu0  ;;  %v3389_v10 = vmax.f32 %v3297_v0, 0.0 }
 0x53a   : > { %v3390_v12 = vmax.f32 %v3300_v57, 0.0 }
 0x53c   : > { %v3426_v15 = vpack.c.bf16 %v3390_v12, %v3389_v10 }
 0x53d   : > { %v3304_v18 = vpop.f32.mrb[240].mxu0 }
 0x53e   : > { %v3305_v19 = vadd.f32 %v19600_v27, %v3304_v18  ;;  %v3306_v20 = vpop.f32.mrb[241].mxu0  ;;  %16480 = vmatmul.mubr.bf16.gmra.mrb[180].mxu1 %v3426_v15 }
 0x53f   : > { %v3307_v24 = vpop.f32.mrb[242].mxu0 }
 0x540   : > { %v3308_v30 = vadd.f32 %v19600_v27, %v3307_v24  ;;  %v3309_v31 = vpop.f32.mrb[243].mxu0  ;;  %v3391_v33 = vmax.f32 %v3305_v19, 0.0 }
 0x541   : > { %v16429_v32 = vpop.f32.mrb[128].mxu1 }
 0x542   : > { %v3392_v34 = vmax.f32 %v3308_v30, 0.0  ;;  %v3547_v40 = vadd.f32 %v16429_v32, %v19698_v29  ;;  %v3538_v44 = vpop.f32.mrb[129].mxu1 }
 0x543   : > { %v3539_v45 = vadd.f32 %v19698_v29, %v3538_v44  ;;  %v16430_v46 = vpop.f32.mrb[130].mxu1 }
 0x544   : > { %v3550_v47 = vadd.f32 %v16430_v46, %v19698_v29  ;;  %v3541_v50 = vpop.f32.mrb[131].mxu1  ;;  %v3427_v52 = vpack.c.bf16 %v3392_v34, %v3391_v33  ;;  %v3795_v59 = vmax.f32 %v3547_v40, 0.0 }
 0x545   : > { %v3542_v56 = vadd.f32 %v19698_v29, %v3541_v50  ;;  %v3312_v58 = vpop.f32.mrb[244].mxu0  ;;  %v3793_v5 = vmax.f32 %v3539_v45, 0.0 }
 0x546   : > { %v3796_v16 = vmax.f32 %v3550_v47, 0.0  ;;  %v3313_v0 = vadd.f32 %v19600_v27, %v3312_v58  ;;  %v3314_v3 = vpop.f32.mrb[245].mxu0  ;;  %16483 = vmatprep.mubr.bf16.mxu1 %v3427_v52 }
 0x547   : > { %v3794_v57 = vmax.f32 %v3542_v56, 0.0  ;;  %v3315_v9 = vpop.f32.mrb[246].mxu0 }
 0x548   : > { %v3858_v10 = vpack.c.bf16 %v3796_v16, %v3795_v59  ;;  %v3316_v12 = vadd.f32 %v19600_v27, %v3315_v9  ;;  %v3317_v15 = vpop.f32.mrb[247].mxu0  ;;  %v3393_v19 = vmax.f32 %v3313_v0, 0.0 }
 0x549   : > { %v3857_v18 = vpack.c.bf16 %v3794_v57, %v3793_v5 }
 0x54a   : > { %v3394_v20 = vmax.f32 %v3316_v12, 0.0 }
 0x54c   : > { %v3428_v24 = vpack.c.bf16 %v3394_v20, %v3393_v19 }
 0x54d   : > { %v3320_v30 = vpop.f32.mrb[248].mxu0 }
 0x54e   : > { %v3321_v31 = vadd.f32 %v19600_v27, %v3320_v30  ;;  %v3322_v32 = vpop.f32.mrb[249].mxu0  ;;  %16484 = vmatmul.mubr.bf16.gmra.mrb[184].mxu1 %v3428_v24 }
 0x54f   : > { %v3323_v33 = vpop.f32.mrb[250].mxu0 }
 0x550   : > { %v3324_v34 = vadd.f32 %v19600_v27, %v3323_v33  ;;  %v3325_v40 = vpop.f32.mrb[251].mxu0  ;;  %v3395_v45 = vmax.f32 %v3321_v31, 0.0 }
 0x551   : > { %v16433_v44 = vpop.f32.mrb[132].mxu1 }
 0x552   : > { %v3396_v46 = vmax.f32 %v3324_v34, 0.0  ;;  %v3563_v47 = vadd.f32 %v16433_v44, %v19698_v29  ;;  %v3554_v50 = vpop.f32.mrb[133].mxu1 }
 0x553   : > { %v3555_v52 = vadd.f32 %v19698_v29, %v3554_v50  ;;  %v16434_v54 = vpop.f32.mrb[134].mxu1 }
 0x554   : > { %v3566_v56 = vadd.f32 %v16434_v54, %v19698_v29  ;;  %v3557_v58 = vpop.f32.mrb[135].mxu1  ;;  %v3429_v59 = vpack.c.bf16 %v3396_v46, %v3395_v45  ;;  %v3799_v3 = vmax.f32 %v3563_v47, 0.0 }
 0x555   : > { %v3558_v16 = vadd.f32 %v19698_v29, %v3557_v58  ;;  %v3328_v0 = vpop.f32.mrb[252].mxu0  ;;  %v3797_v12 = vmax.f32 %v3555_v52, 0.0 }
 0x556   : > { %v3800_v5 = vmax.f32 %v3566_v56, 0.0  ;;  %v3329_v57 = vadd.f32 %v19600_v27, %v3328_v0  ;;  %v3330_v9 = vpop.f32.mrb[253].mxu0  ;;  %16487 = vmatprep.mubr.bf16.mxu1 %v3429_v59 }
 0x557   : > { %v3798_v15 = vmax.f32 %v3558_v16, 0.0  ;;  %v3331_v19 = vpop.f32.mrb[254].mxu0 }
 0x558   : > { %v3332_v20 = vadd.f32 %v19600_v27, %v3331_v19  ;;  %v3333_v24 = vpop.f32.mrb[255].mxu0  ;;  %v3860_v30 = vpack.c.bf16 %v3800_v5, %v3799_v3  ;;  %v3397_v32 = vmax.f32 %v3329_v57, 0.0  ;;  %v18597_v27 = vld [vmem:[%s22031_s4 + $0x1d0] sm:$0xff]  }
 0x559   : > { %v3859_v31 = vpack.c.bf16 %v3798_v15, %v3797_v12  ;;  %16575 = vmatprep.subr.bf16.mxu0 %v18597_v27 }
 0x55a   : > { %v3398_v33 = vmax.f32 %v3332_v20, 0.0  ;;  %16576 = vmatpush3.bf16.msra.mxu0 %v18597_v27 }
 0x55c   : > { %v3430_v34 = vpack.c.bf16 %v3398_v33, %v3397_v32 }
 0x55e   : > { %16488 = vmatmul.mubr.bf16.gmra.mrb[188].mxu1 %v3430_v34 }
 0x55f   : > { %16507 = vmatprep.mubr.bf16.mxu1 %v3857_v18 }
 0x561   : > { %v16437_v40 = vpop.f32.mrb[136].mxu1 }
 0x562   : > { %v3579_v44 = vadd.f32 %v16437_v40, %v19698_v29  ;;  %v3570_v45 = vpop.f32.mrb[137].mxu1 }
 0x563   : > { %v3571_v46 = vadd.f32 %v19698_v29, %v3570_v45  ;;  %v16438_v47 = vpop.f32.mrb[138].mxu1 }
 0x564   : > { %v3582_v50 = vadd.f32 %v16438_v47, %v19698_v29  ;;  %v3573_v52 = vpop.f32.mrb[139].mxu1  ;;  %v3803_v56 = vmax.f32 %v3579_v44, 0.0 }
 0x565   : > { %v3574_v54 = vadd.f32 %v19698_v29, %v3573_v52  ;;  %v3801_v18 = vmax.f32 %v3571_v46, 0.0  ;;  %v18598_v52 = vld [vmem:[%s22031_s4 + $0x1d8] sm:$0xff]  }
 0x566   : > { %v3804_v58 = vmax.f32 %v3582_v50, 0.0  ;;  %16508 = vmatmul.mubr.bf16.vlgmr.msra.gmra.mrb[192].mxu1 %v3858_v10  ;;  %16577 = vmatprep.subr.bf16.mxu0 %v18598_v52 }
 0x567   : > { %v3802_v59 = vmax.f32 %v3574_v54, 0.0  ;;  %16511 = vmatprep.mubr.bf16.mxu1 %v3859_v31  ;;  %16578 = vmatpush3.bf16.msra.mxu0 %v18598_v52 }
 0x568   : > { %v3862_v16 = vpack.c.bf16 %v3804_v58, %v3803_v56 }
 0x569   : > { %v3861_v0 = vpack.c.bf16 %v3802_v59, %v3801_v18 }
 0x56e   : > { %16512 = vmatmul.mubr.bf16.gmra.mrb[196].mxu1 %v3860_v30 }
 0x56f   : > { %16515 = vmatprep.mubr.bf16.mxu1 %v3861_v0 }
 0x571   : > { %v16441_v3 = vpop.f32.mrb[140].mxu1 }
 0x572   : > { %v3595_v5 = vadd.f32 %v16441_v3, %v19698_v29  ;;  %v3586_v57 = vpop.f32.mrb[141].mxu1 }
 0x573   : > { %v3587_v9 = vadd.f32 %v19698_v29, %v3586_v57  ;;  %v16442_v12 = vpop.f32.mrb[142].mxu1 }
 0x574   : > { %v3598_v15 = vadd.f32 %v16442_v12, %v19698_v29  ;;  %v3589_v19 = vpop.f32.mrb[143].mxu1  ;;  %v3807_v20 = vmax.f32 %v3595_v5, 0.0 }
 0x575   : > { %v3590_v10 = vadd.f32 %v19698_v29, %v3589_v19  ;;  %v3805_v31 = vmax.f32 %v3587_v9, 0.0 }
 0x576   : > { %v3808_v24 = vmax.f32 %v3598_v15, 0.0  ;;  %16516 = vmatmul.mubr.bf16.gmra.mrb[200].mxu1 %v3862_v16 }
 0x577   : > { %v3806_v32 = vmax.f32 %v3590_v10, 0.0 }
 0x578   : > { %v3864_v33 = vpack.c.bf16 %v3808_v24, %v3807_v20 }
 0x579   : > { %v3863_v30 = vpack.c.bf16 %v3806_v32, %v3805_v31 }
 0x57b   : > { %16519 = vmatprep.mubr.bf16.mxu1 %v3863_v30 }
 0x57e   : > { %16520 = vmatmul.mubr.bf16.gmra.mrb[204].mxu1 %v3864_v33 }
 0x581   : > { %v16445_v34 = vpop.f32.mrb[144].mxu1 }
 0x582   : > { %v3611_v40 = vadd.f32 %v16445_v34, %v19698_v29  ;;  %v3602_v44 = vpop.f32.mrb[145].mxu1 }
 0x583   : > { %v3603_v45 = vadd.f32 %v19698_v29, %v3602_v44  ;;  %v16446_v46 = vpop.f32.mrb[146].mxu1 }
 0x584   : > { %v3614_v47 = vadd.f32 %v16446_v46, %v19698_v29  ;;  %v3605_v50 = vpop.f32.mrb[147].mxu1  ;;  %v3811_v54 = vmax.f32 %v3611_v40, 0.0 }
 0x585   : > { %v3606_v27 = vadd.f32 %v19698_v29, %v3605_v50  ;;  %v3809_v58 = vmax.f32 %v3603_v45, 0.0  ;;  %v18599_v50 = vld [vmem:[%s22031_s4 + $0x1e0] sm:$0xff]  }
 0x586   : > { %v3812_v56 = vmax.f32 %v3614_v47, 0.0  ;;  %16579 = vmatprep.subr.bf16.mxu0 %v18599_v50 }
 0x587   : > { %v3810_v18 = vmax.f32 %v3606_v27, 0.0  ;;  %16580 = vmatpush3.bf16.msra.mxu0 %v18599_v50 }
 0x588   : > { %v3866_v59 = vpack.c.bf16 %v3812_v56, %v3811_v54 }
 0x589   : > { %v3865_v16 = vpack.c.bf16 %v3810_v18, %v3809_v58 }
 0x58b   : > { %16523 = vmatprep.mubr.bf16.mxu1 %v3865_v16 }
 0x58c   : > { %16524 = vmatmul.mubr.bf16.gmra.mrb[208].mxu1 %v3866_v59 }
 0x591   : > { %v16449_v0 = vpop.f32.mrb[148].mxu1 }
 0x592   : > { %v3627_v3 = vadd.f32 %v16449_v0, %v19698_v29  ;;  %v3618_v5 = vpop.f32.mrb[149].mxu1 }
 0x593   : > { %v3619_v57 = vadd.f32 %v19698_v29, %v3618_v5  ;;  %v16450_v9 = vpop.f32.mrb[150].mxu1 }
 0x594   : > { %v3630_v12 = vadd.f32 %v16450_v9, %v19698_v29  ;;  %v3621_v15 = vpop.f32.mrb[151].mxu1  ;;  %v3815_v10 = vmax.f32 %v3627_v3, 0.0 }
 0x595   : > { %v3622_v19 = vadd.f32 %v19698_v29, %v3621_v15  ;;  %v3813_v24 = vmax.f32 %v3619_v57, 0.0 }
 0x596   : > { %v3816_v20 = vmax.f32 %v3630_v12, 0.0 }
 0x597   : > { %v3814_v31 = vmax.f32 %v3622_v19, 0.0 }
 0x598   : > { %v3868_v32 = vpack.c.bf16 %v3816_v20, %v3815_v10  ;;  %v18600_v20 = vld [vmem:[%s22031_s4 + $0x1e8] sm:$0xff]  }
 0x599   : > { %v3867_v33 = vpack.c.bf16 %v3814_v31, %v3813_v24  ;;  %16581 = vmatprep.subr.bf16.mxu0 %v18600_v20 }
 0x59a   : > { %16582 = vmatpush3.bf16.msra.mxu0 %v18600_v20 }
 0x59b   : > { %16527 = vmatprep.mubr.bf16.mxu1 %v3867_v33 }
 0x59c   : > { %16528 = vmatmul.mubr.bf16.gmra.mrb[212].mxu1 %v3868_v32 }
 0x5a1   : > { %v16453_v30 = vpop.f32.mrb[152].mxu1 }
 0x5a2   : > { %v3643_v34 = vadd.f32 %v16453_v30, %v19698_v29  ;;  %v3634_v40 = vpop.f32.mrb[153].mxu1  ;;  %v18601_v30 = vld [vmem:[%s22031_s4 + $0x1f0] sm:$0xff]  }
 0x5a3   : > { %v3635_v44 = vadd.f32 %v19698_v29, %v3634_v40  ;;  %v16454_v45 = vpop.f32.mrb[154].mxu1  ;;  %16583 = vmatprep.subr.bf16.mxu0 %v18601_v30 }
 0x5a4   : > { %v3646_v46 = vadd.f32 %v16454_v45, %v19698_v29  ;;  %v3637_v47 = vpop.f32.mrb[155].mxu1  ;;  %v3819_v27 = vmax.f32 %v3643_v34, 0.0  ;;  %16584 = vmatpush3.bf16.msra.mxu0 %v18601_v30  ;;  %v18602_v34 = vld [vmem:[%s22031_s4 + $0x1f8] sm:$0xff]  }
 0x5a5   : > { %v3638_v52 = vadd.f32 %v19698_v29, %v3637_v47  ;;  %v3817_v56 = vmax.f32 %v3635_v44, 0.0  ;;  %16585 = vmatprep.subr.bf16.mxu0 %v18602_v34 }
 0x5a6   : > { %v3820_v54 = vmax.f32 %v3646_v46, 0.0 }
 0x5a7   : > { %v3818_v58 = vmax.f32 %v3638_v52, 0.0 }
 0x5a8   : > { %v3870_v18 = vpack.c.bf16 %v3820_v54, %v3819_v27  ;;  %16586 = vmatpush3.bf16.msra.mxu0 %v18602_v34 }
 0x5a9   : > { %v3869_v59 = vpack.c.bf16 %v3818_v58, %v3817_v56 }
 0x5ab   : > { %16531 = vmatprep.mubr.bf16.mxu1 %v3869_v59 }
 0x5ac   : > { %16532 = vmatmul.mubr.bf16.gmra.mrb[216].mxu1 %v3870_v18 }
 0x5b1   : > { %v16457_v16 = vpop.f32.mrb[156].mxu1 }
 0x5b2   : > { %v3659_v0 = vadd.f32 %v16457_v16, %v19698_v29  ;;  %v3650_v3 = vpop.f32.mrb[157].mxu1 }
 0x5b3   : > { %v3651_v5 = vadd.f32 %v19698_v29, %v3650_v3  ;;  %v16458_v57 = vpop.f32.mrb[158].mxu1 }
 0x5b4   : > { %v3662_v9 = vadd.f32 %v16458_v57, %v19698_v29  ;;  %v3653_v12 = vpop.f32.mrb[159].mxu1  ;;  %v3823_v19 = vmax.f32 %v3659_v0, 0.0 }
 0x5b5   : > { %v3654_v15 = vadd.f32 %v19698_v29, %v3653_v12  ;;  %v3821_v24 = vmax.f32 %v3651_v5, 0.0 }
 0x5b6   : > { %v3824_v10 = vmax.f32 %v3662_v9, 0.0 }
 0x5b7   : > { %v3822_v31 = vmax.f32 %v3654_v15, 0.0 }
 0x5b8   : > { %v3872_v32 = vpack.c.bf16 %v3824_v10, %v3823_v19 }
 0x5b9   : > { %v3871_v33 = vpack.c.bf16 %v3822_v31, %v3821_v24 }
 0x5bb   : > { %16535 = vmatprep.mubr.bf16.mxu1 %v3871_v33 }
 0x5bc   : > { %16536 = vmatmul.mubr.bf16.gmra.mrb[220].mxu1 %v3872_v32 }
 0x5c1   : > { %v16461_v40 = vpop.f32.mrb[160].mxu1 }
 0x5c2   : > { %v3675_v44 = vadd.f32 %v16461_v40, %v19698_v29  ;;  %v3666_v45 = vpop.f32.mrb[161].mxu1 }
 0x5c3   : > { %v3667_v46 = vadd.f32 %v19698_v29, %v3666_v45  ;;  %v16462_v47 = vpop.f32.mrb[162].mxu1 }
 0x5c4   : > { %v3678_v50 = vadd.f32 %v16462_v47, %v19698_v29  ;;  %v3669_v52 = vpop.f32.mrb[163].mxu1  ;;  %v3827_v54 = vmax.f32 %v3675_v44, 0.0 }
 0x5c5   : > { %v3670_v27 = vadd.f32 %v19698_v29, %v3669_v52  ;;  %v3825_v58 = vmax.f32 %v3667_v46, 0.0 }
 0x5c6   : > { %v3828_v56 = vmax.f32 %v3678_v50, 0.0 }
 0x5c7   : > { %v3826_v18 = vmax.f32 %v3670_v27, 0.0 }
 0x5c8   : > { %v3874_v59 = vpack.c.bf16 %v3828_v56, %v3827_v54 }
 0x5c9   : > { %v3873_v16 = vpack.c.bf16 %v3826_v18, %v3825_v58 }
 0x5cb   : > { %16539 = vmatprep.mubr.bf16.mxu1 %v3873_v16 }
 0x5cc   : > { %16540 = vmatmul.mubr.bf16.gmra.mrb[224].mxu1 %v3874_v59 }
 0x5d1   : > { %v16465_v0 = vpop.f32.mrb[164].mxu1 }
 0x5d2   : > { %v3691_v3 = vadd.f32 %v16465_v0, %v19698_v29  ;;  %v3682_v5 = vpop.f32.mrb[165].mxu1 }
 0x5d3   : > { %v3683_v57 = vadd.f32 %v19698_v29, %v3682_v5  ;;  %v16466_v9 = vpop.f32.mrb[166].mxu1 }
 0x5d4   : > { %v3694_v12 = vadd.f32 %v16466_v9, %v19698_v29  ;;  %v3685_v15 = vpop.f32.mrb[167].mxu1  ;;  %v3831_v10 = vmax.f32 %v3691_v3, 0.0 }
 0x5d5   : > { %v3686_v19 = vadd.f32 %v19698_v29, %v3685_v15  ;;  %v3829_v24 = vmax.f32 %v3683_v57, 0.0 }
 0x5d6   : > { %v3832_v20 = vmax.f32 %v3694_v12, 0.0 }
 0x5d7   : > { %v3830_v31 = vmax.f32 %v3686_v19, 0.0 }
 0x5d8   : > { %v3876_v32 = vpack.c.bf16 %v3832_v20, %v3831_v10 }
 0x5d9   : > { %v3875_v33 = vpack.c.bf16 %v3830_v31, %v3829_v24 }
 0x5db   : > { %16543 = vmatprep.mubr.bf16.mxu1 %v3875_v33 }
 0x5dc   : > { %16544 = vmatmul.mubr.bf16.gmra.mrb[228].mxu1 %v3876_v32 }
 0x5e1   : > { %v16469_v30 = vpop.f32.mrb[168].mxu1 }
 0x5e2   : > { %v3707_v34 = vadd.f32 %v16469_v30, %v19698_v29  ;;  %v3698_v40 = vpop.f32.mrb[169].mxu1 }
 0x5e3   : > { %v3699_v44 = vadd.f32 %v19698_v29, %v3698_v40  ;;  %v16470_v45 = vpop.f32.mrb[170].mxu1 }
 0x5e4   : > { %v3710_v46 = vadd.f32 %v16470_v45, %v19698_v29  ;;  %v3701_v47 = vpop.f32.mrb[171].mxu1  ;;  %v3835_v52 = vmax.f32 %v3707_v34, 0.0 }
 0x5e5   : > { %v3702_v50 = vadd.f32 %v19698_v29, %v3701_v47  ;;  %v3833_v54 = vmax.f32 %v3699_v44, 0.0 }
 0x5e6   : > { %v3836_v27 = vmax.f32 %v3710_v46, 0.0 }
 0x5e7   : > { %v3834_v56 = vmax.f32 %v3702_v50, 0.0 }
 0x5e8   : > { %v3878_v58 = vpack.c.bf16 %v3836_v27, %v3835_v52 }
 0x5e9   : > { %v3877_v18 = vpack.c.bf16 %v3834_v56, %v3833_v54 }
 0x5eb   : > { %16547 = vmatprep.mubr.bf16.mxu1 %v3877_v18 }
 0x5ec   : > { %16548 = vmatmul.mubr.bf16.gmra.mrb[232].mxu1 %v3878_v58 }
 0x5f1   : > { %v16473_v59 = vpop.f32.mrb[172].mxu1 }
 0x5f2   : > { %v3723_v16 = vadd.f32 %v16473_v59, %v19698_v29  ;;  %v3714_v0 = vpop.f32.mrb[173].mxu1 }
 0x5f3   : > { %v3715_v3 = vadd.f32 %v19698_v29, %v3714_v0  ;;  %v16474_v5 = vpop.f32.mrb[174].mxu1 }
 0x5f4   : > { %v3726_v57 = vadd.f32 %v16474_v5, %v19698_v29  ;;  %v3717_v9 = vpop.f32.mrb[175].mxu1  ;;  %v3839_v15 = vmax.f32 %v3723_v16, 0.0 }
 0x5f5   : > { %v3718_v12 = vadd.f32 %v19698_v29, %v3717_v9  ;;  %v3837_v10 = vmax.f32 %v3715_v3, 0.0 }
 0x5f6   : > { %v3840_v19 = vmax.f32 %v3726_v57, 0.0 }
 0x5f7   : > { %v3838_v20 = vmax.f32 %v3718_v12, 0.0 }
 0x5f8   : > { %v3880_v24 = vpack.c.bf16 %v3840_v19, %v3839_v15 }
 0x5f9   : > { %v3879_v31 = vpack.c.bf16 %v3838_v20, %v3837_v10 }
 0x5fb   : > { %16551 = vmatprep.mubr.bf16.mxu1 %v3879_v31 }
 0x5fc   : > { %16552 = vmatmul.mubr.bf16.gmra.mrb[236].mxu1 %v3880_v24 }
 0x601   : > { %v16477_v32 = vpop.f32.mrb[176].mxu1 }
 0x602   : > { %v3739_v33 = vadd.f32 %v16477_v32, %v19698_v29  ;;  %v3730_v30 = vpop.f32.mrb[177].mxu1 }
 0x603   : > { %v3731_v34 = vadd.f32 %v19698_v29, %v3730_v30  ;;  %v16478_v40 = vpop.f32.mrb[178].mxu1 }
 0x604   : > { %v3742_v44 = vadd.f32 %v16478_v40, %v19698_v29  ;;  %v3733_v45 = vpop.f32.mrb[179].mxu1  ;;  %v3843_v47 = vmax.f32 %v3739_v33, 0.0 }
 0x605   : > { %v3734_v46 = vadd.f32 %v19698_v29, %v3733_v45  ;;  %v3841_v52 = vmax.f32 %v3731_v34, 0.0 }
 0x606   : > { %v3844_v50 = vmax.f32 %v3742_v44, 0.0 }
 0x607   : > { %v3842_v27 = vmax.f32 %v3734_v46, 0.0 }
 0x608   : > { %v3882_v54 = vpack.c.bf16 %v3844_v50, %v3843_v47 }
 0x609   : > { %v3881_v56 = vpack.c.bf16 %v3842_v27, %v3841_v52 }
 0x60b   : > { %16555 = vmatprep.mubr.bf16.mxu1 %v3881_v56 }
 0x60c   : > { %16556 = vmatmul.mubr.bf16.gmra.mrb[240].mxu1 %v3882_v54 }
 0x611   : > { %v16481_v58 = vpop.f32.mrb[180].mxu1 }
 0x612   : > { %v3755_v18 = vadd.f32 %v16481_v58, %v19698_v29  ;;  %v3746_v59 = vpop.f32.mrb[181].mxu1 }
 0x613   : > { %v3747_v16 = vadd.f32 %v19698_v29, %v3746_v59  ;;  %v16482_v0 = vpop.f32.mrb[182].mxu1 }
 0x614   : > { %v3758_v3 = vadd.f32 %v16482_v0, %v19698_v29  ;;  %v3749_v5 = vpop.f32.mrb[183].mxu1  ;;  %v3847_v9 = vmax.f32 %v3755_v18, 0.0 }
 0x615   : > { %v3750_v57 = vadd.f32 %v19698_v29, %v3749_v5  ;;  %v3845_v15 = vmax.f32 %v3747_v16, 0.0 }
 0x616   : > { %v3848_v12 = vmax.f32 %v3758_v3, 0.0 }
 0x617   : > { %v3846_v19 = vmax.f32 %v3750_v57, 0.0 }
 0x618   : > { %v3884_v10 = vpack.c.bf16 %v3848_v12, %v3847_v9 }
 0x619   : > { %v3883_v20 = vpack.c.bf16 %v3846_v19, %v3845_v15  ;;  %v19795_v15 = vld [vmem:[%s22033_s6 + $0x6] ss:$0 sm:$0xff] }
 0x61b   : > { %16559 = vmatprep.mubr.bf16.mxu1 %v3883_v20 }
 0x61c   : > { %16560 = vmatmul.mubr.bf16.gmra.mrb[244].mxu1 %v3884_v10 }
 0x621   : > { %v16485_v24 = vpop.f32.mrb[184].mxu1 }
 0x622   : > { %v3771_v31 = vadd.f32 %v16485_v24, %v19698_v29  ;;  %v3762_v32 = vpop.f32.mrb[185].mxu1 }
 0x623   : > { %v3763_v33 = vadd.f32 %v19698_v29, %v3762_v32  ;;  %v16486_v30 = vpop.f32.mrb[186].mxu1 }
 0x624   : > { %v3774_v34 = vadd.f32 %v16486_v30, %v19698_v29  ;;  %v3765_v40 = vpop.f32.mrb[187].mxu1  ;;  %v3851_v45 = vmax.f32 %v3771_v31, 0.0 }
 0x625   : > { %v3766_v44 = vadd.f32 %v19698_v29, %v3765_v40  ;;  %v3849_v47 = vmax.f32 %v3763_v33, 0.0 }
 0x626   : > { %v3852_v46 = vmax.f32 %v3774_v34, 0.0 }
 0x627   : > { %v3850_v50 = vmax.f32 %v3766_v44, 0.0 }
 0x628   : > { %v3886_v52 = vpack.c.bf16 %v3852_v46, %v3851_v45 }
 0x629   : > { %v3885_v27 = vpack.c.bf16 %v3850_v50, %v3849_v47 }
 0x62b   : > { %16563 = vmatprep.mubr.bf16.mxu1 %v3885_v27 }
 0x62c   : > { %16564 = vmatmul.mubr.bf16.gmra.mrb[248].mxu1 %v3886_v52 }
 0x631   : > { %v16489_v54 = vpop.f32.mrb[188].mxu1 }
 0x632   : > { %v3787_v56 = vadd.f32 %v16489_v54, %v19698_v29  ;;  %v3778_v58 = vpop.f32.mrb[189].mxu1 }
 0x633   : > { %v3779_v18 = vadd.f32 %v19698_v29, %v3778_v58  ;;  %v16490_v59 = vpop.f32.mrb[190].mxu1 }
 0x634   : > { %v3790_v16 = vadd.f32 %v16490_v59, %v19698_v29  ;;  %v3781_v0 = vpop.f32.mrb[191].mxu1  ;;  %v3855_v5 = vmax.f32 %v3787_v56, 0.0 }
 0x635   : > { %v3782_v3 = vadd.f32 %v19698_v29, %v3781_v0  ;;  %v3853_v9 = vmax.f32 %v3779_v18, 0.0 }
 0x636   : > { %v3856_v57 = vmax.f32 %v3790_v16, 0.0 }
 0x637   : > { %v3854_v12 = vmax.f32 %v3782_v3, 0.0 }
 0x638   : > { %v3888_v19 = vpack.c.bf16 %v3856_v57, %v3855_v5 }
 0x639   : > { %v16509_v10 = vpop.f32.mrb[192].mxu1  ;;  %v3887_v20 = vpack.c.bf16 %v3854_v12, %v3853_v9 }
 0x63a   : > { %v4005_v24 = vadd.f32 %v16509_v10, %v19795_v15  ;;  %v3996_v31 = vpop.f32.mrb[193].mxu1 }
 0x63b   : > { %v3997_v32 = vadd.f32 %v19795_v15, %v3996_v31  ;;  %v16510_v33 = vpop.f32.mrb[194].mxu1  ;;  %16567 = vmatprep.mubr.bf16.mxu1 %v3887_v20 }
 0x63c   : > { %v4008_v29 = vadd.f32 %v16510_v33, %v19795_v15  ;;  %v3999_v30 = vpop.f32.mrb[195].mxu1  ;;  %16568 = vmatmul.mubr.bf16.gmra.mrb[252].mxu1 %v3888_v19  ;;  %v4253_v40 = vmax.f32 %v4005_v24, 0.0 }
 0x63d   : > { %v4000_v34 = vadd.f32 %v19795_v15, %v3999_v30  ;;  %v4251_v45 = vmax.f32 %v3997_v32, 0.0 }
 0x63e   : > { %v4254_v44 = vmax.f32 %v4008_v29, 0.0 }
 0x63f   : > { %v4252_v46 = vmax.f32 %v4000_v34, 0.0 }
 0x640   : > { %v4316_v47 = vpack.c.bf16 %v4254_v44, %v4253_v40 }
 0x641   : > { %v16513_v50 = vpop.f32.mrb[196].mxu1  ;;  %v4315_v52 = vpack.c.bf16 %v4252_v46, %v4251_v45 }
 0x642   : > { %v4021_v27 = vadd.f32 %v16513_v50, %v19795_v15  ;;  %v4012_v54 = vpop.f32.mrb[197].mxu1 }
 0x643   : > { %v4013_v56 = vadd.f32 %v19795_v15, %v4012_v54  ;;  %v16514_v58 = vpop.f32.mrb[198].mxu1  ;;  %16587 = vmatprep.mubr.bf16.mxu0 %v4315_v52 }
 0x644   : > { %v4024_v18 = vadd.f32 %v16514_v58, %v19795_v15  ;;  %v4015_v59 = vpop.f32.mrb[199].mxu1  ;;  %16588 = vmatmul.mubr.bf16.vlgmr.msra.gmra.mrb[0].mxu0 %v4316_v47  ;;  %v4257_v0 = vmax.f32 %v4021_v27, 0.0 }
 0x645   : > { %v4016_v16 = vadd.f32 %v19795_v15, %v4015_v59  ;;  %v4255_v5 = vmax.f32 %v4013_v56, 0.0 }
 0x646   : > { %v4258_v3 = vmax.f32 %v4024_v18, 0.0 }
 0x647   : > { %v4256_v57 = vmax.f32 %v4016_v16, 0.0 }
 0x648   : > { %v4318_v9 = vpack.c.bf16 %v4258_v3, %v4257_v0 }
 0x649   : > { %v16517_v12 = vpop.f32.mrb[200].mxu1  ;;  %v4317_v19 = vpack.c.bf16 %v4256_v57, %v4255_v5 }
 0x64a   : > { %v4037_v10 = vadd.f32 %v16517_v12, %v19795_v15  ;;  %v4028_v20 = vpop.f32.mrb[201].mxu1 }
 0x64b   : > { %v4029_v24 = vadd.f32 %v19795_v15, %v4028_v20  ;;  %v16518_v31 = vpop.f32.mrb[202].mxu1  ;;  %16591 = vmatprep.mubr.bf16.mxu0 %v4317_v19 }
 0x64c   : > { %v4040_v32 = vadd.f32 %v16518_v31, %v19795_v15  ;;  %v4031_v33 = vpop.f32.mrb[203].mxu1  ;;  %16592 = vmatmul.mubr.bf16.gmra.mrb[4].mxu0 %v4318_v9  ;;  %v4261_v30 = vmax.f32 %v4037_v10, 0.0 }
 0x64d   : > { %v4032_v29 = vadd.f32 %v19795_v15, %v4031_v33  ;;  %v4259_v40 = vmax.f32 %v4029_v24, 0.0 }
 0x64e   : > { %v4262_v34 = vmax.f32 %v4040_v32, 0.0 }
 0x64f   : > { %v4260_v44 = vmax.f32 %v4032_v29, 0.0 }
 0x650   : > { %v4320_v45 = vpack.c.bf16 %v4262_v34, %v4261_v30 }
 0x651   : > { %v16521_v46 = vpop.f32.mrb[204].mxu1  ;;  %v4319_v47 = vpack.c.bf16 %v4260_v44, %v4259_v40 }
 0x652   : > { %v4053_v50 = vadd.f32 %v16521_v46, %v19795_v15  ;;  %v4044_v52 = vpop.f32.mrb[205].mxu1 }
 0x653   : > { %v4045_v27 = vadd.f32 %v19795_v15, %v4044_v52  ;;  %v16522_v54 = vpop.f32.mrb[206].mxu1  ;;  %16595 = vmatprep.mubr.bf16.mxu0 %v4319_v47 }
 0x654   : > { %v4056_v56 = vadd.f32 %v16522_v54, %v19795_v15  ;;  %v4047_v58 = vpop.f32.mrb[207].mxu1  ;;  %16596 = vmatmul.mubr.bf16.gmra.mrb[8].mxu0 %v4320_v45  ;;  %v4265_v59 = vmax.f32 %v4053_v50, 0.0 }
 0x655   : > { %v4048_v18 = vadd.f32 %v19795_v15, %v4047_v58  ;;  %v4263_v0 = vmax.f32 %v4045_v27, 0.0 }
 0x656   : > { %v4266_v16 = vmax.f32 %v4056_v56, 0.0 }
 0x657   : > { %v4264_v3 = vmax.f32 %v4048_v18, 0.0 }
 0x658   : > { %v4322_v5 = vpack.c.bf16 %v4266_v16, %v4265_v59 }
 0x659   : > { %v4321_v57 = vpack.c.bf16 %v4264_v3, %v4263_v0 }
 0x65b   : > { %16599 = vmatprep.mubr.bf16.mxu0 %v4321_v57 }
 0x65c   : > { %16600 = vmatmul.mubr.bf16.gmra.mrb[12].mxu0 %v4322_v5 }
 0x65f   : > { %v16525_v9 = vpop.f32.mrb[208].mxu1 }
 0x660   : > { %v4069_v12 = vadd.f32 %v16525_v9, %v19795_v15  ;;  %v4060_v19 = vpop.f32.mrb[209].mxu1 }
 0x661   : > { %v4061_v10 = vadd.f32 %v19795_v15, %v4060_v19  ;;  %v16526_v20 = vpop.f32.mrb[210].mxu1 }
 0x662   : > { %v4072_v24 = vadd.f32 %v16526_v20, %v19795_v15  ;;  %v4063_v31 = vpop.f32.mrb[211].mxu1  ;;  %v4269_v33 = vmax.f32 %v4069_v12, 0.0  ;;  %v18603_v12 = vld [vmem:[%s22031_s4 + $0x200] sm:$0xff]  }
 0x663   : > { %v4064_v32 = vadd.f32 %v19795_v15, %v4063_v31  ;;  %v4267_v30 = vmax.f32 %v4061_v10, 0.0  ;;  %16651 = vmatprep.subr.bf16.mxu1 %v18603_v12 }
 0x664   : > { %v4270_v29 = vmax.f32 %v4072_v24, 0.0  ;;  %16652 = vmatpush3.bf16.msra.mxu1 %v18603_v12 }
 0x665   : > { %v4268_v34 = vmax.f32 %v4064_v32, 0.0 }
 0x666   : > { %v4324_v40 = vpack.c.bf16 %v4270_v29, %v4269_v33  ;;  %v18604_v29 = vld [vmem:[%s22031_s4 + $0x208] sm:$0xff]  }
 0x667   : > { %v4323_v44 = vpack.c.bf16 %v4268_v34, %v4267_v30  ;;  %16653 = vmatprep.subr.bf16.mxu1 %v18604_v29 }
 0x668   : > { %16654 = vmatpush3.bf16.msra.mxu1 %v18604_v29 }
 0x669   : > { %16603 = vmatprep.mubr.bf16.mxu0 %v4323_v44 }
 0x66a   : > { %16604 = vmatmul.mubr.bf16.gmra.mrb[16].mxu0 %v4324_v40 }
 0x66f   : > { %v16529_v45 = vpop.f32.mrb[212].mxu1 }
 0x670   : > { %v4085_v46 = vadd.f32 %v16529_v45, %v19795_v15  ;;  %v4076_v47 = vpop.f32.mrb[213].mxu1  ;;  %v18605_v45 = vld [vmem:[%s22031_s4 + $0x210] sm:$0xff]  }
 0x671   : > { %v4077_v50 = vadd.f32 %v19795_v15, %v4076_v47  ;;  %v16530_v52 = vpop.f32.mrb[214].mxu1  ;;  %16655 = vmatprep.subr.bf16.mxu1 %v18605_v45 }
 0x672   : > { %v4088_v27 = vadd.f32 %v16530_v52, %v19795_v15  ;;  %v4079_v54 = vpop.f32.mrb[215].mxu1  ;;  %v4273_v58 = vmax.f32 %v4085_v46, 0.0  ;;  %v18606_v46 = vld [vmem:[%s22031_s4 + $0x218] sm:$0xff]   ;;  %16656 = vmatpush3.bf16.msra.mxu1 %v18605_v45 }
 0x673   : > { %v4080_v56 = vadd.f32 %v19795_v15, %v4079_v54  ;;  %v4271_v59 = vmax.f32 %v4077_v50, 0.0  ;;  %16657 = vmatprep.subr.bf16.mxu1 %v18606_v46 }
 0x674   : > { %v4274_v18 = vmax.f32 %v4088_v27, 0.0  ;;  %v18607_v27 = vld [vmem:[%s22031_s4 + $0x220] sm:$0xff]  }
 0x675   : > { %v4272_v16 = vmax.f32 %v4080_v56, 0.0 }
 0x676   : > { %v4326_v0 = vpack.c.bf16 %v4274_v18, %v4273_v58  ;;  %16658 = vmatpush3.bf16.msra.mxu1 %v18606_v46 }
 0x677   : > { %v4325_v3 = vpack.c.bf16 %v4272_v16, %v4271_v59  ;;  %16659 = vmatprep.subr.bf16.mxu1 %v18607_v27 }
 0x679   : > { %16607 = vmatprep.mubr.bf16.mxu0 %v4325_v3  ;;  %v18608_v3 = vld [vmem:[%s22031_s4 + $0x228] sm:$0xff]  }
 0x67a   : > { %16608 = vmatmul.mubr.bf16.gmra.mrb[20].mxu0 %v4326_v0  ;;  %16660 = vmatpush3.bf16.msra.mxu1 %v18607_v27 }
 0x67b   : > { %16661 = vmatprep.subr.bf16.mxu1 %v18608_v3 }
 0x67e   : > { %16662 = vmatpush3.bf16.msra.mxu1 %v18608_v3 }
 0x67f   : > { %v16533_v5 = vpop.f32.mrb[216].mxu1 }
 0x680   : > { %v4101_v57 = vadd.f32 %v16533_v5, %v19795_v15  ;;  %v4092_v9 = vpop.f32.mrb[217].mxu1 }
 0x681   : > { %v4093_v19 = vadd.f32 %v19795_v15, %v4092_v9  ;;  %v16534_v10 = vpop.f32.mrb[218].mxu1 }
 0x682   : > { %v4104_v20 = vadd.f32 %v16534_v10, %v19795_v15  ;;  %v4095_v24 = vpop.f32.mrb[219].mxu1  ;;  %v4277_v32 = vmax.f32 %v4101_v57, 0.0  ;;  %v18610_v10 = vld [vmem:[%s22031_s4 + $0x238] sm:$0xff]  }
 0x683   : > { %v4096_v31 = vadd.f32 %v19795_v15, %v4095_v24  ;;  %v4275_v30 = vmax.f32 %v4093_v19, 0.0  ;;  %v18609_v19 = vld [vmem:[%s22031_s4 + $0x230] sm:$0xff]  }
 0x684   : > { %v4278_v33 = vmax.f32 %v4104_v20, 0.0  ;;  %16663 = vmatprep.subr.bf16.mxu1 %v18609_v19 }
 0x685   : > { %v4276_v34 = vmax.f32 %v4096_v31, 0.0  ;;  %16664 = vmatpush3.bf16.msra.mxu1 %v18609_v19 }
 0x686   : > { %v4328_v40 = vpack.c.bf16 %v4278_v33, %v4277_v32  ;;  %16665 = vmatprep.subr.bf16.mxu1 %v18610_v10 }
 0x687   : > { %v4327_v44 = vpack.c.bf16 %v4276_v34, %v4275_v30 }
 0x689   : > { %16611 = vmatprep.mubr.bf16.mxu0 %v4327_v44  ;;  %16666 = vmatpush3.bf16.msra.mxu1 %v18610_v10 }
 0x68a   : > { %16612 = vmatmul.mubr.bf16.gmra.mrb[24].mxu0 %v4328_v40  ;;  %5747 = vmatprep.subr.bf16.mxu1 %v18894_v2 }
 0x68f   : > { %v16537_v47 = vpop.f32.mrb[220].mxu1 }
 0x690   : > { %v4117_v50 = vadd.f32 %v16537_v47, %v19795_v15  ;;  %v4108_v52 = vpop.f32.mrb[221].mxu1 }
 0x691   : > { %v4109_v54 = vadd.f32 %v19795_v15, %v4108_v52  ;;  %v16538_v56 = vpop.f32.mrb[222].mxu1 }
 0x692   : > { %v4120_v58 = vadd.f32 %v16538_v56, %v19795_v15  ;;  %v4111_v18 = vpop.f32.mrb[223].mxu1  ;;  %v4281_v16 = vmax.f32 %v4117_v50, 0.0 }
 0x693   : > { %v4112_v59 = vadd.f32 %v19795_v15, %v4111_v18  ;;  %v4279_v5 = vmax.f32 %v4109_v54, 0.0 }
 0x694   : > { %v4282_v0 = vmax.f32 %v4120_v58, 0.0 }
 0x695   : > { %v4280_v57 = vmax.f32 %v4112_v59, 0.0 }
 0x696   : > { %v4330_v9 = vpack.c.bf16 %v4282_v0, %v4281_v16 }
 0x697   : > { %v4329_v12 = vpack.c.bf16 %v4280_v57, %v4279_v5 }
 0x699   : > { %16615 = vmatprep.mubr.bf16.mxu0 %v4329_v12 }
 0x69a   : > { %16616 = vmatmul.mubr.bf16.gmra.mrb[28].mxu0 %v4330_v9 }
 0x69f   : > { %v16541_v20 = vpop.f32.mrb[224].mxu1 }
 0x6a0   : > { %v4133_v24 = vadd.f32 %v16541_v20, %v19795_v15  ;;  %v4124_v31 = vpop.f32.mrb[225].mxu1 }
 0x6a1   : > { %v4125_v32 = vadd.f32 %v19795_v15, %v4124_v31  ;;  %v16542_v33 = vpop.f32.mrb[226].mxu1 }
 0x6a2   : > { %v4136_v29 = vadd.f32 %v16542_v33, %v19795_v15  ;;  %v4127_v30 = vpop.f32.mrb[227].mxu1  ;;  %v4285_v40 = vmax.f32 %v4133_v24, 0.0 }
 0x6a3   : > { %v4128_v34 = vadd.f32 %v19795_v15, %v4127_v30  ;;  %v4283_v45 = vmax.f32 %v4125_v32, 0.0 }
 0x6a4   : > { %v4286_v44 = vmax.f32 %v4136_v29, 0.0 }
 0x6a5   : > { %v4284_v46 = vmax.f32 %v4128_v34, 0.0 }
 0x6a6   : > { %v4332_v47 = vpack.c.bf16 %v4286_v44, %v4285_v40 }
 0x6a7   : > { %v4331_v50 = vpack.c.bf16 %v4284_v46, %v4283_v45 }
 0x6a9   : > { %16619 = vmatprep.mubr.bf16.mxu0 %v4331_v50 }
 0x6aa   : > { %16620 = vmatmul.mubr.bf16.gmra.mrb[32].mxu0 %v4332_v47 }
 0x6af   : > { %v16545_v52 = vpop.f32.mrb[228].mxu1 }
 0x6b0   : > { %v4149_v27 = vadd.f32 %v16545_v52, %v19795_v15  ;;  %v4140_v54 = vpop.f32.mrb[229].mxu1 }
 0x6b1   : > { %v4141_v56 = vadd.f32 %v19795_v15, %v4140_v54  ;;  %v16546_v58 = vpop.f32.mrb[230].mxu1 }
 0x6b2   : > { %v4152_v18 = vadd.f32 %v16546_v58, %v19795_v15  ;;  %v4143_v59 = vpop.f32.mrb[231].mxu1  ;;  %v4289_v0 = vmax.f32 %v4149_v27, 0.0 }
 0x6b3   : > { %v4144_v16 = vadd.f32 %v19795_v15, %v4143_v59  ;;  %v4287_v5 = vmax.f32 %v4141_v56, 0.0 }
 0x6b4   : > { %v4290_v3 = vmax.f32 %v4152_v18, 0.0 }
 0x6b5   : > { %v4288_v57 = vmax.f32 %v4144_v16, 0.0 }
 0x6b6   : > { %v4334_v9 = vpack.c.bf16 %v4290_v3, %v4289_v0 }
 0x6b7   : > { %v4333_v12 = vpack.c.bf16 %v4288_v57, %v4287_v5 }
 0x6b9   : > { %16623 = vmatprep.mubr.bf16.mxu0 %v4333_v12 }
 0x6ba   : > { %16624 = vmatmul.mubr.bf16.gmra.mrb[36].mxu0 %v4334_v9 }
 0x6bf   : > { %v16549_v19 = vpop.f32.mrb[232].mxu1 }
 0x6c0   : > { %v4165_v10 = vadd.f32 %v16549_v19, %v19795_v15  ;;  %v4156_v20 = vpop.f32.mrb[233].mxu1 }
 0x6c1   : > { %v4157_v24 = vadd.f32 %v19795_v15, %v4156_v20  ;;  %v16550_v31 = vpop.f32.mrb[234].mxu1 }
 0x6c2   : > { %v4168_v32 = vadd.f32 %v16550_v31, %v19795_v15  ;;  %v4159_v33 = vpop.f32.mrb[235].mxu1  ;;  %v4293_v30 = vmax.f32 %v4165_v10, 0.0 }
 0x6c3   : > { %v4160_v29 = vadd.f32 %v19795_v15, %v4159_v33  ;;  %v4291_v40 = vmax.f32 %v4157_v24, 0.0 }
 0x6c4   : > { %v4294_v34 = vmax.f32 %v4168_v32, 0.0 }
 0x6c5   : > { %v4292_v44 = vmax.f32 %v4160_v29, 0.0 }
 0x6c6   : > { %v4336_v45 = vpack.c.bf16 %v4294_v34, %v4293_v30 }
 0x6c7   : > { %v4335_v46 = vpack.c.bf16 %v4292_v44, %v4291_v40 }
 0x6c9   : > { %16627 = vmatprep.mubr.bf16.mxu0 %v4335_v46 }
 0x6ca   : > { %16628 = vmatmul.mubr.bf16.gmra.mrb[40].mxu0 %v4336_v45 }
 0x6cf   : > { %v16553_v47 = vpop.f32.mrb[236].mxu1 }
 0x6d0   : > { %v4181_v50 = vadd.f32 %v16553_v47, %v19795_v15  ;;  %v4172_v52 = vpop.f32.mrb[237].mxu1 }
 0x6d1   : > { %v4173_v27 = vadd.f32 %v19795_v15, %v4172_v52  ;;  %v16554_v54 = vpop.f32.mrb[238].mxu1 }
 0x6d2   : > { %v4184_v56 = vadd.f32 %v16554_v54, %v19795_v15  ;;  %v4175_v58 = vpop.f32.mrb[239].mxu1  ;;  %v4297_v59 = vmax.f32 %v4181_v50, 0.0 }
 0x6d3   : > { %v4176_v18 = vadd.f32 %v19795_v15, %v4175_v58  ;;  %v4295_v0 = vmax.f32 %v4173_v27, 0.0 }
 0x6d4   : > { %v4298_v16 = vmax.f32 %v4184_v56, 0.0 }
 0x6d5   : > { %v4296_v3 = vmax.f32 %v4176_v18, 0.0 }
 0x6d6   : > { %v4338_v5 = vpack.c.bf16 %v4298_v16, %v4297_v59 }
 0x6d7   : > { %v4337_v57 = vpack.c.bf16 %v4296_v3, %v4295_v0 }
 0x6d9   : > { %16631 = vmatprep.mubr.bf16.mxu0 %v4337_v57 }
 0x6da   : > { %16632 = vmatmul.mubr.bf16.gmra.mrb[44].mxu0 %v4338_v5 }
 0x6df   : > { %v16557_v9 = vpop.f32.mrb[240].mxu1 }
 0x6e0   : > { %v4197_v12 = vadd.f32 %v16557_v9, %v19795_v15  ;;  %v4188_v19 = vpop.f32.mrb[241].mxu1 }
 0x6e1   : > { %v4189_v10 = vadd.f32 %v19795_v15, %v4188_v19  ;;  %v16558_v20 = vpop.f32.mrb[242].mxu1 }
 0x6e2   : > { %v4200_v24 = vadd.f32 %v16558_v20, %v19795_v15  ;;  %v4191_v31 = vpop.f32.mrb[243].mxu1  ;;  %v4301_v33 = vmax.f32 %v4197_v12, 0.0 }
 0x6e3   : > { %v4192_v32 = vadd.f32 %v19795_v15, %v4191_v31  ;;  %v4299_v30 = vmax.f32 %v4189_v10, 0.0 }
 0x6e4   : > { %v4302_v29 = vmax.f32 %v4200_v24, 0.0 }
 0x6e5   : > { %v4300_v34 = vmax.f32 %v4192_v32, 0.0 }
 0x6e6   : > { %v4340_v40 = vpack.c.bf16 %v4302_v29, %v4301_v33 }
 0x6e7   : > { %v4339_v44 = vpack.c.bf16 %v4300_v34, %v4299_v30 }
 0x6e9   : > { %16635 = vmatprep.mubr.bf16.mxu0 %v4339_v44 }
 0x6ea   : > { %16636 = vmatmul.mubr.bf16.gmra.mrb[48].mxu0 %v4340_v40 }
 0x6ef   : > { %v16561_v45 = vpop.f32.mrb[244].mxu1 }
 0x6f0   : > { %v4213_v46 = vadd.f32 %v16561_v45, %v19795_v15  ;;  %v4204_v47 = vpop.f32.mrb[245].mxu1 }
 0x6f1   : > { %v4205_v50 = vadd.f32 %v19795_v15, %v4204_v47  ;;  %v16562_v52 = vpop.f32.mrb[246].mxu1 }
 0x6f2   : > { %v4216_v27 = vadd.f32 %v16562_v52, %v19795_v15  ;;  %v4207_v54 = vpop.f32.mrb[247].mxu1  ;;  %v4305_v58 = vmax.f32 %v4213_v46, 0.0 }
 0x6f3   : > { %v4208_v56 = vadd.f32 %v19795_v15, %v4207_v54  ;;  %v4303_v59 = vmax.f32 %v4205_v50, 0.0 }
 0x6f4   : > { %v4306_v18 = vmax.f32 %v4216_v27, 0.0 }
 0x6f5   : > { %v4304_v16 = vmax.f32 %v4208_v56, 0.0 }
 0x6f6   : > { %v4342_v0 = vpack.c.bf16 %v4306_v18, %v4305_v58  ;;  %v19889_v58 = vld [vmem:[%s22033_s6 + $0x7] ss:$0 sm:$0xff] }
 0x6f7   : > { %v4341_v3 = vpack.c.bf16 %v4304_v16, %v4303_v59 }
 0x6f9   : > { %16639 = vmatprep.mubr.bf16.mxu0 %v4341_v3 }
 0x6fa   : > { %16640 = vmatmul.mubr.bf16.gmra.mrb[52].mxu0 %v4342_v0 }
 0x6ff   : > { %v16565_v5 = vpop.f32.mrb[248].mxu1 }
 0x700   : > { %v4229_v57 = vadd.f32 %v16565_v5, %v19795_v15  ;;  %v4220_v9 = vpop.f32.mrb[249].mxu1 }
 0x701   : > { %v4221_v12 = vadd.f32 %v19795_v15, %v4220_v9  ;;  %v16566_v19 = vpop.f32.mrb[250].mxu1 }
 0x702   : > { %v4232_v10 = vadd.f32 %v16566_v19, %v19795_v15  ;;  %v4223_v20 = vpop.f32.mrb[251].mxu1  ;;  %v4309_v31 = vmax.f32 %v4229_v57, 0.0 }
 0x703   : > { %v4224_v24 = vadd.f32 %v19795_v15, %v4223_v20  ;;  %v4307_v33 = vmax.f32 %v4221_v12, 0.0 }
 0x704   : > { %v4310_v32 = vmax.f32 %v4232_v10, 0.0 }
 0x705   : > { %v4308_v29 = vmax.f32 %v4224_v24, 0.0 }
 0x706   : > { %v4344_v30 = vpack.c.bf16 %v4310_v32, %v4309_v31 }
 0x707   : > { %v4343_v34 = vpack.c.bf16 %v4308_v29, %v4307_v33 }
 0x709   : > { %16643 = vmatprep.mubr.bf16.mxu0 %v4343_v34  ;;  %v18611_v34 = vld [vmem:[%s22031_s4 + $0x240] sm:$0xff]  }
 0x70a   : > { %16644 = vmatmul.mubr.bf16.gmra.mrb[56].mxu0 %v4344_v30 }
 0x70f   : > { %v16569_v40 = vpop.f32.mrb[252].mxu1 }
 0x710   : > { %v4245_v44 = vadd.f32 %v16569_v40, %v19795_v15  ;;  %v4236_v45 = vpop.f32.mrb[253].mxu1 }
 0x711   : > { %v4237_v46 = vadd.f32 %v19795_v15, %v4236_v45  ;;  %v16570_v47 = vpop.f32.mrb[254].mxu1 }
 0x712   : > { %v4248_v50 = vadd.f32 %v16570_v47, %v19795_v15  ;;  %v4239_v52 = vpop.f32.mrb[255].mxu1  ;;  %v4313_v54 = vmax.f32 %v4245_v44, 0.0 }
 0x713   : > { %v4240_v27 = vadd.f32 %v19795_v15, %v4239_v52  ;;  %v4311_v18 = vmax.f32 %v4237_v46, 0.0 }
 0x714   : > { %v4314_v56 = vmax.f32 %v4248_v50, 0.0 }
 0x715   : > { %v4312_v59 = vmax.f32 %v4240_v27, 0.0  ;;  %v18612_v27 = vld [vmem:[%s22031_s4 + $0x248] sm:$0xff]  }
 0x716   : > { %v4346_v16 = vpack.c.bf16 %v4314_v56, %v4313_v54 }
 0x717   : > { %v16589_v0 = vpop.f32.mrb[0].mxu0  ;;  %v4345_v3 = vpack.c.bf16 %v4312_v59, %v4311_v18 }
 0x718   : > { %v4463_v5 = vadd.f32 %v16589_v0, %v19889_v58  ;;  %v4454_v57 = vpop.f32.mrb[1].mxu0 }
 0x719   : > { %v4455_v9 = vadd.f32 %v19889_v58, %v4454_v57  ;;  %v16590_v12 = vpop.f32.mrb[2].mxu0  ;;  %16647 = vmatprep.mubr.bf16.mxu0 %v4345_v3 }
 0x71a   : > { %v4466_v15 = vadd.f32 %v16590_v12, %v19889_v58  ;;  %v4457_v19 = vpop.f32.mrb[3].mxu0  ;;  %16648 = vmatmul.mubr.bf16.gmra.mrb[60].mxu0 %v4346_v16  ;;  %v4711_v20 = vmax.f32 %v4463_v5, 0.0  ;;  %v18613_v5 = vld [vmem:[%s22031_s4 + $0x250] sm:$0xff]  }
 0x71b   : > { %v4458_v10 = vadd.f32 %v19889_v58, %v4457_v19  ;;  %v4709_v31 = vmax.f32 %v4455_v9, 0.0 }
 0x71c   : > { %v4712_v24 = vmax.f32 %v4466_v15, 0.0 }
 0x71d   : > { %v4710_v32 = vmax.f32 %v4458_v10, 0.0 }
 0x71e   : > { %v4774_v33 = vpack.c.bf16 %v4712_v24, %v4711_v20  ;;  %v18614_v24 = vld [vmem:[%s22031_s4 + $0x258] sm:$0xff]  }
 0x71f   : > { %v16593_v29 = vpop.f32.mrb[4].mxu0  ;;  %v4773_v30 = vpack.c.bf16 %v4710_v32, %v4709_v31 }
 0x720   : > { %v4479_v40 = vadd.f32 %v16593_v29, %v19889_v58  ;;  %v4470_v44 = vpop.f32.mrb[5].mxu0 }
 0x721   : > { %v4471_v45 = vadd.f32 %v19889_v58, %v4470_v44  ;;  %v16594_v46 = vpop.f32.mrb[6].mxu0  ;;  %16667 = vmatprep.mubr.bf16.mxu1 %v4773_v30  ;;  %v18615_v44 = vld [vmem:[%s22031_s4 + $0x260] sm:$0xff]  }
 0x722   : > { %v4482_v47 = vadd.f32 %v16594_v46, %v19889_v58  ;;  %v4473_v50 = vpop.f32.mrb[7].mxu0  ;;  %16668 = vmatmul.mubr.bf16.vlgmr.msra.gmra.mrb[0].mxu1 %v4774_v33  ;;  %v4715_v54 = vmax.f32 %v4479_v40, 0.0 }
 0x723   : > { %v4474_v52 = vadd.f32 %v19889_v58, %v4473_v50  ;;  %5748 = vmatpush1.bf16.msra.mxu1 %v18611_v34  ;;  %v4713_v18 = vmax.f32 %v4471_v45, 0.0 }
 0x724   : > { %v4716_v56 = vmax.f32 %v4482_v47, 0.0  ;;  %5749 = vmatprep.subr.bf16.mxu1 %v18894_v2 }
 0x725   : > { %v4714_v59 = vmax.f32 %v4474_v52, 0.0 }
 0x726   : > { %v4776_v16 = vpack.c.bf16 %v4716_v56, %v4715_v54  ;;  %v18616_v56 = vld [vmem:[%s22031_s4 + $0x268] sm:$0xff]  }
 0x727   : > { %v16597_v0 = vpop.f32.mrb[8].mxu0  ;;  %v4775_v3 = vpack.c.bf16 %v4714_v59, %v4713_v18  ;;  %5750 = vmatpush1.bf16.msra.mxu1 %v18612_v27 }
 0x728   : > { %v4495_v57 = vadd.f32 %v16597_v0, %v19889_v58  ;;  %v4486_v9 = vpop.f32.mrb[9].mxu0  ;;  %5751 = vmatprep.subr.bf16.mxu1 %v18894_v2 }
 0x729   : > { %v4487_v12 = vadd.f32 %v19889_v58, %v4486_v9  ;;  %v16598_v15 = vpop.f32.mrb[10].mxu0  ;;  %16671 = vmatprep.mubr.bf16.mxu1 %v4775_v3  ;;  %v18618_v9 = vld [vmem:[%s22031_s4 + $0x278] sm:$0xff]  }
 0x72a   : > { %v4498_v19 = vadd.f32 %v16598_v15, %v19889_v58  ;;  %v4489_v10 = vpop.f32.mrb[11].mxu0  ;;  %16672 = vmatmul.mubr.bf16.gmra.mrb[4].mxu1 %v4776_v16  ;;  %v4719_v31 = vmax.f32 %v4495_v57, 0.0  ;;  %v18617_v57 = vld [vmem:[%s22031_s4 + $0x270] sm:$0xff]  }
 0x72b   : > { %v4490_v20 = vadd.f32 %v19889_v58, %v4489_v10  ;;  %5752 = vmatpush1.bf16.msra.mxu1 %v18613_v5  ;;  %v4717_v33 = vmax.f32 %v4487_v12, 0.0 }
 0x72c   : > { %v4720_v32 = vmax.f32 %v4498_v19, 0.0  ;;  %5753 = vmatprep.subr.bf16.mxu1 %v18894_v2 }
 0x72d   : > { %v4718_v29 = vmax.f32 %v4490_v20, 0.0 }
 0x72e   : > { %v4778_v30 = vpack.c.bf16 %v4720_v32, %v4719_v31 }
 0x72f   : > { %v16601_v34 = vpop.f32.mrb[12].mxu0  ;;  %v4777_v40 = vpack.c.bf16 %v4718_v29, %v4717_v33  ;;  %5754 = vmatpush1.bf16.msra.mxu1 %v18614_v24 }
 0x730   : > { %v4511_v45 = vadd.f32 %v16601_v34, %v19889_v58  ;;  %v4502_v46 = vpop.f32.mrb[13].mxu0  ;;  %5755 = vmatprep.subr.bf16.mxu1 %v18894_v2 }
 0x731   : > { %v4503_v47 = vadd.f32 %v19889_v58, %v4502_v46  ;;  %v16602_v50 = vpop.f32.mrb[14].mxu0  ;;  %16675 = vmatprep.mubr.bf16.mxu1 %v4777_v40  ;;  %v18620_v46 = vld [vmem:[%s22031_s4 + $0x288] sm:$0xff]  }
 0x732   : > { %v4514_v52 = vadd.f32 %v16602_v50, %v19889_v58  ;;  %v4505_v27 = vpop.f32.mrb[15].mxu0  ;;  %16676 = vmatmul.mubr.bf16.gmra.mrb[8].mxu1 %v4778_v30  ;;  %v4723_v18 = vmax.f32 %v4511_v45, 0.0 }
 0x733   : > { %v4506_v54 = vadd.f32 %v19889_v58, %v4505_v27  ;;  %5756 = vmatpush1.bf16.msra.mxu1 %v18615_v44  ;;  %v4721_v16 = vmax.f32 %v4503_v47, 0.0  ;;  %v18619_v44 = vld [vmem:[%s22031_s4 + $0x280] sm:$0xff]  }
 0x734   : > { %v4724_v59 = vmax.f32 %v4514_v52, 0.0  ;;  %5757 = vmatprep.subr.bf16.mxu1 %v18894_v2 }
 0x735   : > { %v4722_v0 = vmax.f32 %v4506_v54, 0.0 }
 0x736   : > { %v4780_v3 = vpack.c.bf16 %v4724_v59, %v4723_v18 }
 0x737   : > { %v4779_v5 = vpack.c.bf16 %v4722_v0, %v4721_v16  ;;  %5758 = vmatpush1.bf16.msra.mxu1 %v18616_v56 }
 0x738   : > { %5759 = vmatprep.subr.bf16.mxu1 %v18894_v2 }
 0x739   : > { %16679 = vmatprep.mubr.bf16.mxu1 %v4779_v5 }
 0x73a   : > { %16680 = vmatmul.mubr.bf16.gmra.mrb[12].mxu1 %v4780_v3 }
 0x73b   : > { %5760 = vmatpush1.bf16.msra.mxu1 %v18617_v57 }
 0x73c   : > { %5761 = vmatprep.subr.bf16.mxu1 %v18894_v2 }
 0x73d   : > { %v16605_v12 = vpop.f32.mrb[16].mxu0 }
 0x73e   : > { %v4527_v15 = vadd.f32 %v16605_v12, %v19889_v58  ;;  %v4518_v19 = vpop.f32.mrb[17].mxu0 }
 0x73f   : > { %v4519_v10 = vadd.f32 %v19889_v58, %v4518_v19  ;;  %v16606_v20 = vpop.f32.mrb[18].mxu0  ;;  %5762 = vmatpush1.bf16.msra.mxu1 %v18618_v9  ;;  %v18621_v9 = vld [vmem:[%s22031_s4 + $0x290] sm:$0xff]  }
 0x740   : > { %v4530_v24 = vadd.f32 %v16606_v20, %v19889_v58  ;;  %v4521_v31 = vpop.f32.mrb[19].mxu0  ;;  %5763 = vmatprep.subr.bf16.mxu1 %v18894_v2  ;;  %v4727_v33 = vmax.f32 %v4527_v15, 0.0  ;;  %v18622_v15 = vld [vmem:[%s22031_s4 + $0x298] sm:$0xff]  }
 0x741   : > { %v4522_v32 = vadd.f32 %v19889_v58, %v4521_v31  ;;  %v4725_v30 = vmax.f32 %v4519_v10, 0.0 }
 0x742   : > { %v4728_v29 = vmax.f32 %v4530_v24, 0.0  ;;  %v18623_v24 = vld [vmem:[%s22031_s4 + $0x2c0] sm:$0xff]  }
 0x743   : > { %v4726_v34 = vmax.f32 %v4522_v32, 0.0  ;;  %5764 = vmatpush1.bf16.msra.mxu1 %v18619_v44  ;;  %16731 = vmatprep.subr.bf16.mxu0 %v18623_v24  ;;  %v18625_v44 = vld [vmem:[%s22031_s4 + $0x2c8] sm:$0xff]  }
 0x744   : > { %v4782_v40 = vpack.c.bf16 %v4728_v29, %v4727_v33  ;;  %5765 = vmatprep.subr.bf16.mxu1 %v18894_v2  ;;  %16732 = vmatpush3.bf16.msra.mxu0 %v18623_v24 }
 0x745   : > { %v4781_v45 = vpack.c.bf16 %v4726_v34, %v4725_v30  ;;  %16733 = vmatprep.subr.bf16.mxu0 %v18625_v44 }
 0x747   : > { %16683 = vmatprep.mubr.bf16.mxu1 %v4781_v45  ;;  %5766 = vmatpush1.bf16.msra.mxu1 %v18620_v46 }
 0x748   : > { %16684 = vmatmul.mubr.bf16.gmra.mrb[16].mxu1 %v4782_v40  ;;  %5767 = vmatprep.subr.bf16.mxu1 %v18894_v2 }
 0x749   : > { %16734 = vmatpush3.bf16.msra.mxu0 %v18625_v44 }
 0x74b   : > { %5768 = vmatpush1.bf16.msra.mxu1 %v18621_v9 }
 0x74c   : > { %5769 = vmatprep.subr.bf16.mxu1 %v18894_v2 }
 0x74d   : > { %v16609_v47 = vpop.f32.mrb[20].mxu0 }
 0x74e   : > { %v4543_v50 = vadd.f32 %v16609_v47, %v19889_v58  ;;  %v4534_v52 = vpop.f32.mrb[21].mxu0 }
 0x74f   : > { %v4535_v27 = vadd.f32 %v19889_v58, %v4534_v52  ;;  %v16610_v54 = vpop.f32.mrb[22].mxu0  ;;  %5770 = vmatpush1.bf16.msra.mxu1 %v18622_v15 }
 0x750   : > { %v4546_v56 = vadd.f32 %v16610_v54, %v19889_v58  ;;  %v4537_v18 = vpop.f32.mrb[23].mxu0  ;;  %v4731_v16 = vmax.f32 %v4543_v50, 0.0  ;;  %5771 = vmatprep.subr.bf16.mxu1 %v18894_v2  ;;  %v18624_v50 = vld [vmem:[%s22031_s4 + $0x2a0] sm:$0xff]   ;;  %v18627_v54 = vld [vmem:[%s22031_s4 + $0x2a8] sm:$0xff]  }
 0x751   : > { %v4538_v59 = vadd.f32 %v19889_v58, %v4537_v18  ;;  %v4729_v3 = vmax.f32 %v4535_v27, 0.0  ;;  %v18626_v27 = vld [vmem:[%s22031_s4 + $0x2d0] sm:$0xff]  }
 0x752   : > { %v4732_v0 = vmax.f32 %v4546_v56, 0.0  ;;  %16735 = vmatprep.subr.bf16.mxu0 %v18626_v27  ;;  %v18628_v56 = vld [vmem:[%s22031_s4 + $0x2d8] sm:$0xff]  }
 0x753   : > { %v4730_v5 = vmax.f32 %v4538_v59, 0.0  ;;  %5772 = vmatpush1.bf16.msra.mxu1 %v18624_v50  ;;  %16736 = vmatpush3.bf16.msra.mxu0 %v18626_v27 }
 0x754   : > { %v4784_v57 = vpack.c.bf16 %v4732_v0, %v4731_v16  ;;  %5773 = vmatprep.subr.bf16.mxu1 %v18894_v2  ;;  %16737 = vmatprep.subr.bf16.mxu0 %v18628_v56  ;;  %v18629_v0 = vld [vmem:[%s22031_s4 + $0x2e0] sm:$0xff]  }
 0x755   : > { %v4783_v12 = vpack.c.bf16 %v4730_v5, %v4729_v3 }
 0x757   : > { %16687 = vmatprep.mubr.bf16.mxu1 %v4783_v12  ;;  %5774 = vmatpush1.bf16.msra.mxu1 %v18627_v54 }
 0x758   : > { %16688 = vmatmul.mubr.bf16.gmra.mrb[20].mxu1 %v4784_v57  ;;  %5775 = vmatprep.subr.bf16.mxu1 %v18894_v2 }
 0x759   : > { %16738 = vmatpush3.bf16.msra.mxu0 %v18628_v56 }
 0x75a   : > { %16739 = vmatprep.subr.bf16.mxu0 %v18629_v0 }
 0x75d   : > { %v16613_v19 = vpop.f32.mrb[24].mxu0  ;;  %16740 = vmatpush3.bf16.msra.mxu0 %v18629_v0 }
 0x75e   : > { %v4559_v10 = vadd.f32 %v16613_v19, %v19889_v58  ;;  %v4550_v20 = vpop.f32.mrb[25].mxu0 }
 0x75f   : > { %v4551_v31 = vadd.f32 %v19889_v58, %v4550_v20  ;;  %v16614_v32 = vpop.f32.mrb[26].mxu0 }
 0x760   : > { %v4562_v33 = vadd.f32 %v16614_v32, %v19889_v58  ;;  %v4553_v29 = vpop.f32.mrb[27].mxu0  ;;  %v4735_v34 = vmax.f32 %v4559_v10, 0.0  ;;  %v18631_v10 = vld [vmem:[%s22031_s4 + $0x2e8] sm:$0xff]   ;;  %v18630_v32 = vld [vmem:[%s22031_s4 + $0x2b0] sm:$0xff]  }
 0x761   : > { %v4554_v30 = vadd.f32 %v19889_v58, %v4553_v29  ;;  %v4733_v45 = vmax.f32 %v4551_v31, 0.0  ;;  %16741 = vmatprep.subr.bf16.mxu0 %v18631_v10  ;;  %5776 = vmatpush1.bf16.msra.mxu1 %v18630_v32  ;;  %v18632_v29 = vld [vmem:[%s22031_s4 + $0x2f0] sm:$0xff]  }
 0x762   : > { %v4736_v40 = vmax.f32 %v4562_v33, 0.0  ;;  %16742 = vmatpush3.bf16.msra.mxu0 %v18631_v10  ;;  %5777 = vmatprep.subr.bf16.mxu1 %v18894_v2 }
 0x763   : > { %v4734_v46 = vmax.f32 %v4554_v30, 0.0  ;;  %16743 = vmatprep.subr.bf16.mxu0 %v18632_v29  ;;  %v18634_v30 = vld [vmem:[%s22031_s4 + $0x2f8] sm:$0xff]  }
 0x764   : > { %v4786_v47 = vpack.c.bf16 %v4736_v40, %v4735_v34  ;;  %v18633_v34 = vld [vmem:[%s22031_s4 + $0x2b8] sm:$0xff]  }
 0x765   : > { %v4785_v52 = vpack.c.bf16 %v4734_v46, %v4733_v45  ;;  %5778 = vmatpush1.bf16.msra.mxu1 %v18633_v34 }
 0x766   : > { %16744 = vmatpush3.bf16.msra.mxu0 %v18632_v29 }
 0x767   : > { %16691 = vmatprep.mubr.bf16.mxu1 %v4785_v52  ;;  %16745 = vmatprep.subr.bf16.mxu0 %v18634_v30 }
 0x768   : > { %16692 = vmatmul.mubr.bf16.gmra.mrb[24].mxu1 %v4786_v47 }
 0x76a   : > { %16746 = vmatpush3.bf16.msra.mxu0 %v18634_v30 }
 0x76d   : > { %v16617_v18 = vpop.f32.mrb[28].mxu0 }
 0x76e   : > { %v4575_v59 = vadd.f32 %v16617_v18, %v19889_v58  ;;  %v4566_v16 = vpop.f32.mrb[29].mxu0 }
 0x76f   : > { %v4567_v3 = vadd.f32 %v19889_v58, %v4566_v16  ;;  %v16618_v5 = vpop.f32.mrb[30].mxu0 }
 0x770   : > { %v4578_v57 = vadd.f32 %v16618_v5, %v19889_v58  ;;  %v4569_v9 = vpop.f32.mrb[31].mxu0  ;;  %v4739_v15 = vmax.f32 %v4575_v59, 0.0 }
 0x771   : > { %v4570_v12 = vadd.f32 %v19889_v58, %v4569_v9  ;;  %v4737_v20 = vmax.f32 %v4567_v3, 0.0 }
 0x772   : > { %v4740_v19 = vmax.f32 %v4578_v57, 0.0 }
 0x773   : > { %v4738_v24 = vmax.f32 %v4570_v12, 0.0 }
 0x774   : > { %v4788_v31 = vpack.c.bf16 %v4740_v19, %v4739_v15 }
 0x775   : > { %v4787_v33 = vpack.c.bf16 %v4738_v24, %v4737_v20 }
 0x777   : > { %16695 = vmatprep.mubr.bf16.mxu1 %v4787_v33 }
 0x778   : > { %16696 = vmatmul.mubr.bf16.gmra.mrb[28].mxu1 %v4788_v31 }
 0x77d   : > { %v16621_v40 = vpop.f32.mrb[32].mxu0 }
 0x77e   : > { %v4591_v44 = vadd.f32 %v16621_v40, %v19889_v58  ;;  %v4582_v45 = vpop.f32.mrb[33].mxu0 }
 0x77f   : > { %v4583_v2 = vadd.f32 %v19889_v58, %v4582_v45  ;;  %v16622_v46 = vpop.f32.mrb[34].mxu0 }
 0x780   : > { %v4594_v47 = vadd.f32 %v16622_v46, %v19889_v58  ;;  %v4585_v50 = vpop.f32.mrb[35].mxu0  ;;  %v4743_v27 = vmax.f32 %v4591_v44, 0.0 }
 0x781   : > { %v4586_v52 = vadd.f32 %v19889_v58, %v4585_v50  ;;  %v4741_v56 = vmax.f32 %v4583_v2, 0.0 }
 0x782   : > { %v4744_v54 = vmax.f32 %v4594_v47, 0.0 }
 0x783   : > { %v4742_v18 = vmax.f32 %v4586_v52, 0.0 }
 0x784   : > { %v4790_v59 = vpack.c.bf16 %v4744_v54, %v4743_v27 }
 0x785   : > { %v4789_v16 = vpack.c.bf16 %v4742_v18, %v4741_v56 }
 0x787   : > { %16699 = vmatprep.mubr.bf16.mxu1 %v4789_v16 }
 0x788   : > { %16700 = vmatmul.mubr.bf16.gmra.mrb[32].mxu1 %v4790_v59 }
 0x78d   : > { %v16625_v0 = vpop.f32.mrb[36].mxu0 }
 0x78e   : > { %v4607_v3 = vadd.f32 %v16625_v0, %v19889_v58  ;;  %v4598_v5 = vpop.f32.mrb[37].mxu0 }
 0x78f   : > { %v4599_v57 = vadd.f32 %v19889_v58, %v4598_v5  ;;  %v16626_v9 = vpop.f32.mrb[38].mxu0 }
 0x790   : > { %v4610_v12 = vadd.f32 %v16626_v9, %v19889_v58  ;;  %v4601_v15 = vpop.f32.mrb[39].mxu0  ;;  %v4747_v10 = vmax.f32 %v4607_v3, 0.0 }
 0x791   : > { %v4602_v19 = vadd.f32 %v19889_v58, %v4601_v15  ;;  %v4745_v24 = vmax.f32 %v4599_v57, 0.0 }
 0x792   : > { %v4748_v20 = vmax.f32 %v4610_v12, 0.0 }
 0x793   : > { %v4746_v31 = vmax.f32 %v4602_v19, 0.0 }
 0x794   : > { %v4792_v32 = vpack.c.bf16 %v4748_v20, %v4747_v10 }
 0x795   : > { %v4791_v33 = vpack.c.bf16 %v4746_v31, %v4745_v24 }
 0x797   : > { %16703 = vmatprep.mubr.bf16.mxu1 %v4791_v33 }
 0x798   : > { %16704 = vmatmul.mubr.bf16.gmra.mrb[36].mxu1 %v4792_v32 }
 0x79d   : > { %v16629_v29 = vpop.f32.mrb[40].mxu0 }
 0x79e   : > { %v4623_v30 = vadd.f32 %v16629_v29, %v19889_v58  ;;  %v4614_v34 = vpop.f32.mrb[41].mxu0 }
 0x79f   : > { %v4615_v40 = vadd.f32 %v19889_v58, %v4614_v34  ;;  %v16630_v44 = vpop.f32.mrb[42].mxu0 }
 0x7a0   : > { %v4626_v45 = vadd.f32 %v16630_v44, %v19889_v58  ;;  %v4617_v2 = vpop.f32.mrb[43].mxu0  ;;  %v4751_v47 = vmax.f32 %v4623_v30, 0.0 }
 0x7a1   : > { %v4618_v46 = vadd.f32 %v19889_v58, %v4617_v2  ;;  %v4749_v52 = vmax.f32 %v4615_v40, 0.0 }
 0x7a2   : > { %v4752_v50 = vmax.f32 %v4626_v45, 0.0 }
 0x7a3   : > { %v4750_v27 = vmax.f32 %v4618_v46, 0.0 }
 0x7a4   : > { %v4794_v54 = vpack.c.bf16 %v4752_v50, %v4751_v47 }
 0x7a5   : > { %v4793_v56 = vpack.c.bf16 %v4750_v27, %v4749_v52 }
 0x7a7   : > { %16707 = vmatprep.mubr.bf16.mxu1 %v4793_v56 }
 0x7a8   : > { %16708 = vmatmul.mubr.bf16.gmra.mrb[40].mxu1 %v4794_v54 }
 0x7ad   : > { %v16633_v18 = vpop.f32.mrb[44].mxu0 }
 0x7ae   : > { %v4639_v59 = vadd.f32 %v16633_v18, %v19889_v58  ;;  %v4630_v16 = vpop.f32.mrb[45].mxu0 }
 0x7af   : > { %v4631_v0 = vadd.f32 %v19889_v58, %v4630_v16  ;;  %v16634_v3 = vpop.f32.mrb[46].mxu0 }
 0x7b0   : > { %v4642_v5 = vadd.f32 %v16634_v3, %v19889_v58  ;;  %v4633_v57 = vpop.f32.mrb[47].mxu0  ;;  %v4755_v12 = vmax.f32 %v4639_v59, 0.0 }
 0x7b1   : > { %v4634_v9 = vadd.f32 %v19889_v58, %v4633_v57  ;;  %v4753_v19 = vmax.f32 %v4631_v0, 0.0 }
 0x7b2   : > { %v4756_v15 = vmax.f32 %v4642_v5, 0.0 }
 0x7b3   : > { %v4754_v10 = vmax.f32 %v4634_v9, 0.0 }
 0x7b4   : > { %v4796_v20 = vpack.c.bf16 %v4756_v15, %v4755_v12 }
 0x7b5   : > { %v4795_v24 = vpack.c.bf16 %v4754_v10, %v4753_v19 }
 0x7b7   : > { %16711 = vmatprep.mubr.bf16.mxu1 %v4795_v24 }
 0x7b8   : > { %16712 = vmatmul.mubr.bf16.gmra.mrb[44].mxu1 %v4796_v20 }
 0x7bd   : > { %v16637_v31 = vpop.f32.mrb[48].mxu0 }
 0x7be   : > { %v4655_v32 = vadd.f32 %v16637_v31, %v19889_v58  ;;  %v4646_v33 = vpop.f32.mrb[49].mxu0 }
 0x7bf   : > { %v4647_v29 = vadd.f32 %v19889_v58, %v4646_v33  ;;  %v16638_v30 = vpop.f32.mrb[50].mxu0 }
 0x7c0   : > { %v4658_v34 = vadd.f32 %v16638_v30, %v19889_v58  ;;  %v4649_v40 = vpop.f32.mrb[51].mxu0  ;;  %v4759_v45 = vmax.f32 %v4655_v32, 0.0 }
 0x7c1   : > { %v4650_v44 = vadd.f32 %v19889_v58, %v4649_v40  ;;  %v4757_v46 = vmax.f32 %v4647_v29, 0.0 }
 0x7c2   : > { %v4760_v2 = vmax.f32 %v4658_v34, 0.0 }
 0x7c3   : > { %v4758_v47 = vmax.f32 %v4650_v44, 0.0 }
 0x7c4   : > { %v4798_v50 = vpack.c.bf16 %v4760_v2, %v4759_v45 }
 0x7c5   : > { %v4797_v52 = vpack.c.bf16 %v4758_v47, %v4757_v46 }
 0x7c7   : > { %16715 = vmatprep.mubr.bf16.mxu1 %v4797_v52 }
 0x7c8   : > { %16716 = vmatmul.mubr.bf16.gmra.mrb[48].mxu1 %v4798_v50 }
 0x7cd   : > { %v16641_v27 = vpop.f32.mrb[52].mxu0 }
 0x7ce   : > { %v4671_v54 = vadd.f32 %v16641_v27, %v19889_v58  ;;  %v4662_v56 = vpop.f32.mrb[53].mxu0 }
 0x7cf   : > { %v4663_v18 = vadd.f32 %v19889_v58, %v4662_v56  ;;  %v16642_v59 = vpop.f32.mrb[54].mxu0 }
 0x7d0   : > { %v4674_v16 = vadd.f32 %v16642_v59, %v19889_v58  ;;  %v4665_v0 = vpop.f32.mrb[55].mxu0  ;;  %v4763_v5 = vmax.f32 %v4671_v54, 0.0 }
 0x7d1   : > { %v4666_v3 = vadd.f32 %v19889_v58, %v4665_v0  ;;  %v4761_v9 = vmax.f32 %v4663_v18, 0.0 }
 0x7d2   : > { %v4764_v57 = vmax.f32 %v4674_v16, 0.0 }
 0x7d3   : > { %v4762_v12 = vmax.f32 %v4666_v3, 0.0 }
 0x7d4   : > { %v4800_v15 = vpack.c.bf16 %v4764_v57, %v4763_v5  ;;  %v20045_v57 = vld [vmem:[%s22033_s6 + $0x8] ss:$0 sm:$0xff] }
 0x7d5   : > { %v4799_v19 = vpack.c.bf16 %v4762_v12, %v4761_v9 }
 0x7d7   : > { %16719 = vmatprep.mubr.bf16.mxu1 %v4799_v19 }
 0x7d8   : > { %16720 = vmatmul.mubr.bf16.gmra.mrb[52].mxu1 %v4800_v15 }
 0x7dd   : > { %v16645_v10 = vpop.f32.mrb[56].mxu0 }
 0x7de   : > { %v4687_v20 = vadd.f32 %v16645_v10, %v19889_v58  ;;  %v4678_v24 = vpop.f32.mrb[57].mxu0 }
 0x7df   : > { %v4679_v31 = vadd.f32 %v19889_v58, %v4678_v24  ;;  %v16646_v32 = vpop.f32.mrb[58].mxu0 }
 0x7e0   : > { %v4690_v33 = vadd.f32 %v16646_v32, %v19889_v58  ;;  %v4681_v29 = vpop.f32.mrb[59].mxu0  ;;  %v4767_v34 = vmax.f32 %v4687_v20, 0.0 }
 0x7e1   : > { %v4682_v30 = vadd.f32 %v19889_v58, %v4681_v29  ;;  %v4765_v44 = vmax.f32 %v4679_v31, 0.0 }
 0x7e2   : > { %v4768_v40 = vmax.f32 %v4690_v33, 0.0 }
 0x7e3   : > { %v4766_v45 = vmax.f32 %v4682_v30, 0.0 }
 0x7e4   : > { %v4802_v2 = vpack.c.bf16 %v4768_v40, %v4767_v34 }
 0x7e5   : > { %v4801_v46 = vpack.c.bf16 %v4766_v45, %v4765_v44 }
 0x7e7   : > { %16723 = vmatprep.mubr.bf16.mxu1 %v4801_v46 }
 0x7e8   : > { %16724 = vmatmul.mubr.bf16.gmra.mrb[56].mxu1 %v4802_v2 }
 0x7ed   : > { %v16649_v47 = vpop.f32.mrb[60].mxu0 }
 0x7ee   : > { %v4703_v50 = vadd.f32 %v16649_v47, %v19889_v58  ;;  %v4694_v52 = vpop.f32.mrb[61].mxu0 }
 0x7ef   : > { %v4695_v27 = vadd.f32 %v19889_v58, %v4694_v52  ;;  %v16650_v54 = vpop.f32.mrb[62].mxu0 }
 0x7f0   : > { %v4706_v56 = vadd.f32 %v16650_v54, %v19889_v58  ;;  %v4697_v18 = vpop.f32.mrb[63].mxu0  ;;  %v4771_v16 = vmax.f32 %v4703_v50, 0.0 }
 0x7f1   : > { %v4698_v59 = vadd.f32 %v19889_v58, %v4697_v18  ;;  %v4769_v3 = vmax.f32 %v4695_v27, 0.0 }
 0x7f2   : > { %v4772_v0 = vmax.f32 %v4706_v56, 0.0 }
 0x7f3   : > { %v4770_v5 = vmax.f32 %v4698_v59, 0.0 }
 0x7f4   : > { %v4804_v9 = vpack.c.bf16 %v4772_v0, %v4771_v16 }
 0x7f5   : > { %v16669_v12 = vpop.f32.mrb[0].mxu1  ;;  %v4803_v15 = vpack.c.bf16 %v4770_v5, %v4769_v3 }
 0x7f6   : > { %v4921_v19 = vadd.f32 %v16669_v12, %v20045_v57  ;;  %v4912_v10 = vpop.f32.mrb[1].mxu1 }
 0x7f7   : > { %v4913_v20 = vadd.f32 %v20045_v57, %v4912_v10  ;;  %v16670_v24 = vpop.f32.mrb[2].mxu1  ;;  %16727 = vmatprep.mubr.bf16.mxu1 %v4803_v15 }
 0x7f8   : > { %v4924_v58 = vadd.f32 %v16670_v24, %v20045_v57  ;;  %v4915_v31 = vpop.f32.mrb[3].mxu1  ;;  %16728 = vmatmul.mubr.bf16.gmra.mrb[60].mxu1 %v4804_v9  ;;  %v5169_v33 = vmax.f32 %v4921_v19, 0.0 }
 0x7f9   : > { %v4916_v32 = vadd.f32 %v20045_v57, %v4915_v31  ;;  %5779 = vmatprep.mubr.bf16.mxu1 %v19397_v8  ;;  %v5167_v30 = vmax.f32 %v4913_v20, 0.0  ;;  %v18814_v8 = vld [vmem:[%s19024_s18] sm:$0xff]  }
 0x7fa   : > { %v5170_v29 = vmax.f32 %v4924_v58, 0.0 }
 0x7fb   : > { %v5168_v34 = vmax.f32 %v4916_v32, 0.0 }
 0x7fc   : > { %v5232_v40 = vpack.c.bf16 %v5170_v29, %v5169_v33 }
 0x7fd   : > { %v16673_v44 = vpop.f32.mrb[4].mxu1  ;;  %v5231_v45 = vpack.c.bf16 %v5168_v34, %v5167_v30 }
 0x7fe   : > { %v4937_v2 = vadd.f32 %v16673_v44, %v20045_v57  ;;  %v4928_v46 = vpop.f32.mrb[5].mxu1 }
 0x7ff   : > { %v4929_v47 = vadd.f32 %v20045_v57, %v4928_v46  ;;  %v16674_v50 = vpop.f32.mrb[6].mxu1  ;;  %16747 = vmatprep.mubr.bf16.mxu0 %v5231_v45 }
 0x800   : > { %v4940_v52 = vadd.f32 %v16674_v50, %v20045_v57  ;;  %v4931_v27 = vpop.f32.mrb[7].mxu1  ;;  %16748 = vmatmul.mubr.bf16.vlgmr.msra.gmra.mrb[64].mxu0 %v5232_v40  ;;  %5780 = vmatmul.mubr.bf16.vlgmr.msra.gmra.mrb[64].mxu1 %v18814_v8  ;;  %v5173_v56 = vmax.f32 %v4937_v2, 0.0 }
 0x801   : > { %v4932_v54 = vadd.f32 %v20045_v57, %v4931_v27  ;;  %5787 = vmatprep.mubr.bf16.mxu1 %v19395_v6  ;;  %v5171_v59 = vmax.f32 %v4929_v47, 0.0  ;;  %v18815_v6 = vld [vmem:[%s19024_s18 + $0x8] sm:$0xff]  }
 0x802   : > { %v5174_v18 = vmax.f32 %v4940_v52, 0.0 }
 0x803   : > { %v5172_v16 = vmax.f32 %v4932_v54, 0.0 }
 0x804   : > { %v5234_v0 = vpack.c.bf16 %v5174_v18, %v5173_v56 }
 0x805   : > { %v16677_v3 = vpop.f32.mrb[8].mxu1  ;;  %v5233_v5 = vpack.c.bf16 %v5172_v16, %v5171_v59  ;;  %v18817_v59 = vld [vmem:[%s19024_s18 + $0x18] sm:$0xff]  }
 0x806   : > { %v4953_v9 = vadd.f32 %v16677_v3, %v20045_v57  ;;  %v4944_v12 = vpop.f32.mrb[9].mxu1 }
 0x807   : > { %v4945_v15 = vadd.f32 %v20045_v57, %v4944_v12  ;;  %v16678_v19 = vpop.f32.mrb[10].mxu1  ;;  %16751 = vmatprep.mubr.bf16.mxu0 %v5233_v5 }
 0x808   : > { %v4956_v10 = vadd.f32 %v16678_v19, %v20045_v57  ;;  %v4947_v20 = vpop.f32.mrb[11].mxu1  ;;  %16752 = vmatmul.mubr.bf16.gmra.mrb[68].mxu0 %v5234_v0  ;;  %5788 = vmatmul.mubr.bf16.gmra.mrb[68].mxu1 %v18815_v6  ;;  %v5177_v58 = vmax.f32 %v4953_v9, 0.0 }
 0x809   : > { %v4948_v24 = vadd.f32 %v20045_v57, %v4947_v20  ;;  %5795 = vmatprep.mubr.bf16.mxu1 %v19408_v23  ;;  %v5175_v32 = vmax.f32 %v4945_v15, 0.0  ;;  %v18816_v23 = vld [vmem:[%s19024_s18 + $0x10] sm:$0xff]   ;;  %v18818_v20 = vld [vmem:[%s19024_s18 + $0x20] sm:$0xff]  }
 0x80a   : > { %v5178_v31 = vmax.f32 %v4956_v10, 0.0 }
 0x80b   : > { %v5176_v33 = vmax.f32 %v4948_v24, 0.0 }
 0x80c   : > { %v5236_v29 = vpack.c.bf16 %v5178_v31, %v5177_v58  ;;  %v18819_v31 = vld [vmem:[%s19024_s18 + $0x28] sm:$0xff]  }
 0x80d   : > { %v16681_v30 = vpop.f32.mrb[12].mxu1  ;;  %v5235_v34 = vpack.c.bf16 %v5176_v33, %v5175_v32 }
 0x80e   : > { %v4969_v40 = vadd.f32 %v16681_v30, %v20045_v57  ;;  %v4960_v44 = vpop.f32.mrb[13].mxu1 }
 0x80f   : > { %v4961_v45 = vadd.f32 %v20045_v57, %v4960_v44  ;;  %v16682_v2 = vpop.f32.mrb[14].mxu1  ;;  %16755 = vmatprep.mubr.bf16.mxu0 %v5235_v34 }
 0x810   : > { %v4972_v46 = vadd.f32 %v16682_v2, %v20045_v57  ;;  %v4963_v47 = vpop.f32.mrb[15].mxu1  ;;  %16756 = vmatmul.mubr.bf16.gmra.mrb[72].mxu0 %v5236_v29  ;;  %5796 = vmatmul.mubr.bf16.gmra.mrb[72].mxu1 %v18816_v23  ;;  %v5181_v52 = vmax.f32 %v4969_v40, 0.0 }
 0x811   : > { %v4964_v50 = vadd.f32 %v20045_v57, %v4963_v47  ;;  %5803 = vmatprep.mubr.bf16.mxu1 %v19406_v22  ;;  %v5179_v8 = vmax.f32 %v4961_v45, 0.0 }
 0x812   : > { %v5182_v27 = vmax.f32 %v4972_v46, 0.0  ;;  %v18820_v46 = vld [vmem:[%s19024_s18 + $0x30] sm:$0xff]  }
 0x813   : > { %v5180_v54 = vmax.f32 %v4964_v50, 0.0 }
 0x814   : > { %v5238_v56 = vpack.c.bf16 %v5182_v27, %v5181_v52  ;;  %v18821_v52 = vld [vmem:[%s19024_s18 + $0x38] sm:$0xff]  }
 0x815   : > { %v5237_v18 = vpack.c.bf16 %v5180_v54, %v5179_v8 }
 0x817   : > { %16759 = vmatprep.mubr.bf16.mxu0 %v5237_v18 }
 0x818   : > { %16760 = vmatmul.mubr.bf16.gmra.mrb[76].mxu0 %v5238_v56  ;;  %5804 = vmatmul.mubr.bf16.gmra.mrb[76].mxu1 %v18817_v59 }
 0x819   : > { %5811 = vmatprep.mubr.bf16.mxu1 %v19418_v39 }
 0x81b   : > { %v16685_v16 = vpop.f32.mrb[16].mxu1 }
 0x81c   : > { %v4985_v0 = vadd.f32 %v16685_v16, %v20045_v57  ;;  %v4976_v3 = vpop.f32.mrb[17].mxu1 }
 0x81d   : > { %v4977_v5 = vadd.f32 %v20045_v57, %v4976_v3  ;;  %v16686_v22 = vpop.f32.mrb[18].mxu1 }
 0x81e   : > { %v4988_v9 = vadd.f32 %v16686_v22, %v20045_v57  ;;  %v4979_v12 = vpop.f32.mrb[19].mxu1  ;;  %v5185_v19 = vmax.f32 %v4985_v0, 0.0 }
 0x81f   : > { %v4980_v15 = vadd.f32 %v20045_v57, %v4979_v12  ;;  %v5183_v6 = vmax.f32 %v4977_v5, 0.0  ;;  %v18822_v5 = vld [vmem:[%s19024_s18 + $0x40] sm:$0xff]  }
 0x820   : > { %v5186_v10 = vmax.f32 %v4988_v9, 0.0  ;;  %5812 = vmatmul.mubr.bf16.gmra.mrb[80].mxu1 %v18818_v20 }
 0x821   : > { %v5184_v24 = vmax.f32 %v4980_v15, 0.0  ;;  %5819 = vmatprep.mubr.bf16.mxu1 %v19416_v37  ;;  %v18635_v15 = vld [vmem:[%s22031_s4 + $0x300] sm:$0xff]  }
 0x822   : > { %v5240_v39 = vpack.c.bf16 %v5186_v10, %v5185_v19  ;;  %16811 = vmatprep.subr.bf16.mxu0 %v18635_v15  ;;  %v18823_v19 = vld [vmem:[%s19024_s18 + $0x48] sm:$0xff]  }
 0x823   : > { %v5239_v58 = vpack.c.bf16 %v5184_v24, %v5183_v6  ;;  %16812 = vmatpush3.bf16.msra.mxu0 %v18635_v15  ;;  %v18636_v10 = vld [vmem:[%s22031_s4 + $0x308] sm:$0xff]   ;;  %v18637_v24 = vld [vmem:[%s22031_s4 + $0x310] sm:$0xff]  }
 0x824   : > { %16813 = vmatprep.subr.bf16.mxu0 %v18636_v10 }
 0x825   : > { %16763 = vmatprep.mubr.bf16.mxu0 %v5239_v58 }
 0x826   : > { %16764 = vmatmul.mubr.bf16.gmra.mrb[80].mxu0 %v5240_v39 }
 0x827   : > { %16814 = vmatpush3.bf16.msra.mxu0 %v18636_v10 }
 0x828   : > { %5820 = vmatmul.mubr.bf16.gmra.mrb[84].mxu1 %v18819_v31  ;;  %16815 = vmatprep.subr.bf16.mxu0 %v18637_v24 }
 0x829   : > { %5827 = vmatprep.mubr.bf16.mxu1 %v19428_v55 }
 0x82b   : > { %v16689_v32 = vpop.f32.mrb[20].mxu1  ;;  %16816 = vmatpush3.bf16.msra.mxu0 %v18637_v24  ;;  %v18828_v24 = vld [vmem:[%s19024_s18 + $0x70] sm:$0xff]  }
 0x82c   : > { %v5001_v33 = vadd.f32 %v16689_v32, %v20045_v57  ;;  %v4992_v29 = vpop.f32.mrb[21].mxu1 }
 0x82d   : > { %v4993_v30 = vadd.f32 %v20045_v57, %v4992_v29  ;;  %v16690_v34 = vpop.f32.mrb[22].mxu1 }
 0x82e   : > { %v5004_v40 = vadd.f32 %v16690_v34, %v20045_v57  ;;  %v4995_v37 = vpop.f32.mrb[23].mxu1  ;;  %v5189_v45 = vmax.f32 %v5001_v33, 0.0  ;;  %v18638_v34 = vld [vmem:[%s22031_s4 + $0x318] sm:$0xff]  }
 0x82f   : > { %v4996_v44 = vadd.f32 %v20045_v57, %v4995_v37  ;;  %v5187_v47 = vmax.f32 %v4993_v30, 0.0  ;;  %v18824_v30 = vld [vmem:[%s19024_s18 + $0x50] sm:$0xff]   ;;  %16817 = vmatprep.subr.bf16.mxu0 %v18638_v34 }
 0x830   : > { %v5190_v2 = vmax.f32 %v5004_v40, 0.0  ;;  %5828 = vmatmul.mubr.bf16.gmra.mrb[88].mxu1 %v18820_v46  ;;  %16818 = vmatpush3.bf16.msra.mxu0 %v18638_v34  ;;  %v18825_v46 = vld [vmem:[%s19024_s18 + $0x58] sm:$0xff]  }
 0x831   : > { %v5188_v23 = vmax.f32 %v4996_v44, 0.0  ;;  %5835 = vmatprep.mubr.bf16.mxu1 %v19426_v53 }
 0x832   : > { %v5242_v55 = vpack.c.bf16 %v5190_v2, %v5189_v45  ;;  %v18639_v2 = vld [vmem:[%s22031_s4 + $0x320] sm:$0xff]  }
 0x833   : > { %v5241_v50 = vpack.c.bf16 %v5188_v23, %v5187_v47  ;;  %16819 = vmatprep.subr.bf16.mxu0 %v18639_v2  ;;  %v18640_v47 = vld [vmem:[%s22031_s4 + $0x328] sm:$0xff]  }
 0x834   : > { %16820 = vmatpush3.bf16.msra.mxu0 %v18639_v2  ;;  %v18830_v2 = vld [vmem:[%s19024_s18 + $0x80] sm:$0xff]  }
 0x835   : > { %16767 = vmatprep.mubr.bf16.mxu0 %v5241_v50  ;;  %16821 = vmatprep.subr.bf16.mxu0 %v18640_v47  ;;  %v18641_v50 = vld [vmem:[%s22031_s4 + $0x330] sm:$0xff]  }
 0x836   : > { %16768 = vmatmul.mubr.bf16.gmra.mrb[84].mxu0 %v5242_v55 }
 0x838   : > { %5836 = vmatmul.mubr.bf16.gmra.mrb[92].mxu1 %v18821_v52  ;;  %16822 = vmatpush3.bf16.msra.mxu0 %v18640_v47 }
 0x839   : > { %5843 = vmatprep.mubr.bf16.mxu1 %v19438_v7  ;;  %16823 = vmatprep.subr.bf16.mxu0 %v18641_v50 }
 0x83b   : > { %v16693_v27 = vpop.f32.mrb[24].mxu1 }
 0x83c   : > { %v5017_v8 = vadd.f32 %v16693_v27, %v20045_v57  ;;  %v5008_v54 = vpop.f32.mrb[25].mxu1  ;;  %16824 = vmatpush3.bf16.msra.mxu0 %v18641_v50 }
 0x83d   : > { %v5009_v56 = vadd.f32 %v20045_v57, %v5008_v54  ;;  %v16694_v18 = vpop.f32.mrb[26].mxu1 }
 0x83e   : > { %v5020_v59 = vadd.f32 %v16694_v18, %v20045_v57  ;;  %v5011_v16 = vpop.f32.mrb[27].mxu1  ;;  %v5193_v0 = vmax.f32 %v5017_v8, 0.0 }
 0x83f   : > { %v5012_v53 = vadd.f32 %v20045_v57, %v5011_v16  ;;  %v5191_v22 = vmax.f32 %v5009_v56, 0.0  ;;  %v18642_v16 = vld [vmem:[%s22031_s4 + $0x338] sm:$0xff]  }
 0x840   : > { %v5194_v3 = vmax.f32 %v5020_v59, 0.0  ;;  %5844 = vmatmul.mubr.bf16.gmra.mrb[96].mxu1 %v18822_v5  ;;  %v18826_v59 = vld [vmem:[%s19024_s18 + $0x60] sm:$0xff]   ;;  %16825 = vmatprep.subr.bf16.mxu0 %v18642_v16 }
 0x841   : > { %v5192_v9 = vmax.f32 %v5012_v53, 0.0  ;;  %5851 = vmatprep.mubr.bf16.mxu1 %v19436_v4  ;;  %16826 = vmatpush3.bf16.msra.mxu0 %v18642_v16 }
 0x842   : > { %v5244_v7 = vpack.c.bf16 %v5194_v3, %v5193_v0 }
 0x843   : > { %v5243_v12 = vpack.c.bf16 %v5192_v9, %v5191_v22  ;;  %v18827_v22 = vld [vmem:[%s19024_s18 + $0x68] sm:$0xff]  }
 0x845   : > { %16771 = vmatprep.mubr.bf16.mxu0 %v5243_v12 }
 0x846   : > { %16772 = vmatmul.mubr.bf16.gmra.mrb[88].mxu0 %v5244_v7 }
 0x848   : > { %5852 = vmatmul.mubr.bf16.gmra.mrb[100].mxu1 %v18823_v19 }
 0x849   : > { %5859 = vmatprep.mubr.bf16.mxu1 %v19448_v25 }
 0x84b   : > { %v16697_v4 = vpop.f32.mrb[28].mxu1 }
 0x84c   : > { %v5033_v20 = vadd.f32 %v16697_v4, %v20045_v57  ;;  %v5024_v6 = vpop.f32.mrb[29].mxu1 }
 0x84d   : > { %v5025_v39 = vadd.f32 %v20045_v57, %v5024_v6  ;;  %v16698_v58 = vpop.f32.mrb[30].mxu1 }
 0x84e   : > { %v5036_v31 = vadd.f32 %v16698_v58, %v20045_v57  ;;  %v5027_v32 = vpop.f32.mrb[31].mxu1  ;;  %v5197_v33 = vmax.f32 %v5033_v20, 0.0 }
 0x84f   : > { %v5028_v25 = vadd.f32 %v20045_v57, %v5027_v32  ;;  %v5195_v40 = vmax.f32 %v5025_v39, 0.0  ;;  %v18829_v32 = vld [vmem:[%s19024_s18 + $0x78] sm:$0xff]  }
 0x850   : > { %v5198_v29 = vmax.f32 %v5036_v31, 0.0  ;;  %5860 = vmatmul.mubr.bf16.gmra.mrb[104].mxu1 %v18824_v30 }
 0x851   : > { %v5196_v37 = vmax.f32 %v5028_v25, 0.0  ;;  %5867 = vmatprep.mubr.bf16.mxu1 %v19446_v49 }
 0x852   : > { %v5246_v44 = vpack.c.bf16 %v5198_v29, %v5197_v33 }
 0x853   : > { %v5245_v45 = vpack.c.bf16 %v5196_v37, %v5195_v40 }
 0x855   : > { %16775 = vmatprep.mubr.bf16.mxu0 %v5245_v45 }
 0x856   : > { %16776 = vmatmul.mubr.bf16.gmra.mrb[92].mxu0 %v5246_v44 }
 0x858   : > { %5868 = vmatmul.mubr.bf16.gmra.mrb[108].mxu1 %v18825_v46 }
 0x859   : > { %5875 = vmatprep.mubr.bf16.mxu1 %v19458_v43 }
 0x85b   : > { %v16701_v49 = vpop.f32.mrb[32].mxu1 }
 0x85c   : > { %v5049_v23 = vadd.f32 %v16701_v49, %v20045_v57  ;;  %v5040_v55 = vpop.f32.mrb[33].mxu1 }
 0x85d   : > { %v5041_v52 = vadd.f32 %v20045_v57, %v5040_v55  ;;  %v16702_v27 = vpop.f32.mrb[34].mxu1 }
 0x85e   : > { %v5052_v8 = vadd.f32 %v16702_v27, %v20045_v57  ;;  %v5043_v54 = vpop.f32.mrb[35].mxu1  ;;  %v5201_v56 = vmax.f32 %v5049_v23, 0.0  ;;  %v18831_v23 = vld [vmem:[%s19024_s18 + $0x88] sm:$0xff]  }
 0x85f   : > { %v5044_v43 = vadd.f32 %v20045_v57, %v5043_v54  ;;  %v5199_v53 = vmax.f32 %v5041_v52, 0.0 }
 0x860   : > { %v5202_v18 = vmax.f32 %v5052_v8, 0.0  ;;  %5876 = vmatmul.mubr.bf16.gmra.mrb[112].mxu1 %v18826_v59  ;;  %v18832_v59 = vld [vmem:[%s19024_s18 + $0x90] sm:$0xff]  }
 0x861   : > { %v5200_v0 = vmax.f32 %v5044_v43, 0.0  ;;  %5883 = vmatprep.mubr.bf16.mxu1 %v19456_v41 }
 0x862   : > { %v5248_v3 = vpack.c.bf16 %v5202_v18, %v5201_v56 }
 0x863   : > { %v5247_v5 = vpack.c.bf16 %v5200_v0, %v5199_v53 }
 0x865   : > { %16779 = vmatprep.mubr.bf16.mxu0 %v5247_v5 }
 0x866   : > { %16780 = vmatmul.mubr.bf16.gmra.mrb[96].mxu0 %v5248_v3  ;;  %v18833_v3 = vld [vmem:[%s19024_s18 + $0x98] sm:$0xff]  }
 0x868   : > { %5884 = vmatmul.mubr.bf16.gmra.mrb[116].mxu1 %v18827_v22 }
 0x869   : > { %5891 = vmatprep.mubr.bf16.mxu1 %v19468_v62 }
 0x86b   : > { %v16705_v9 = vpop.f32.mrb[36].mxu1 }
 0x86c   : > { %v5065_v7 = vadd.f32 %v16705_v9, %v20045_v57  ;;  %v5056_v12 = vpop.f32.mrb[37].mxu1 }
 0x86d   : > { %v5057_v15 = vadd.f32 %v20045_v57, %v5056_v12  ;;  %v16706_v19 = vpop.f32.mrb[38].mxu1 }
 0x86e   : > { %v5068_v41 = vadd.f32 %v16706_v19, %v20045_v57  ;;  %v5059_v10 = vpop.f32.mrb[39].mxu1  ;;  %v5205_v20 = vmax.f32 %v5065_v7, 0.0 }
 0x86f   : > { %v5060_v4 = vadd.f32 %v20045_v57, %v5059_v10  ;;  %v5203_v39 = vmax.f32 %v5057_v15, 0.0 }
 0x870   : > { %v5206_v6 = vmax.f32 %v5068_v41, 0.0  ;;  %5892 = vmatmul.mubr.bf16.gmra.mrb[120].mxu1 %v18828_v24 }
 0x871   : > { %v5204_v58 = vmax.f32 %v5060_v4, 0.0  ;;  %5899 = vmatprep.mubr.bf16.mxu1 %v19466_v60  ;;  %v18834_v4 = vld [vmem:[%s19024_s18 + $0xa0] sm:$0xff]  }
 0x872   : > { %v5250_v62 = vpack.c.bf16 %v5206_v6, %v5205_v20 }
 0x873   : > { %v5249_v31 = vpack.c.bf16 %v5204_v58, %v5203_v39  ;;  %v18835_v39 = vld [vmem:[%s19024_s18 + $0xa8] sm:$0xff]  }
 0x875   : > { %16783 = vmatprep.mubr.bf16.mxu0 %v5249_v31 }
 0x876   : > { %16784 = vmatmul.mubr.bf16.gmra.mrb[100].mxu0 %v5250_v62 }
 0x878   : > { %5900 = vmatmul.mubr.bf16.gmra.mrb[124].mxu1 %v18829_v32 }
 0x879   : > { %5907 = vmatprep.mubr.bf16.mxu1 %v19478_v17 }
 0x87b   : > { %v16709_v25 = vpop.f32.mrb[40].mxu1 }
 0x87c   : > { %v5081_v33 = vadd.f32 %v16709_v25, %v20045_v57  ;;  %v5072_v29 = vpop.f32.mrb[41].mxu1 }
 0x87d   : > { %v5073_v30 = vadd.f32 %v20045_v57, %v5072_v29  ;;  %v16710_v34 = vpop.f32.mrb[42].mxu1 }
 0x87e   : > { %v5084_v40 = vadd.f32 %v16710_v34, %v20045_v57  ;;  %v5075_v60 = vpop.f32.mrb[43].mxu1  ;;  %v5209_v44 = vmax.f32 %v5081_v33, 0.0 }
 0x87f   : > { %v5076_v37 = vadd.f32 %v20045_v57, %v5075_v60  ;;  %v5207_v46 = vmax.f32 %v5073_v30, 0.0 }
 0x880   : > { %v5210_v45 = vmax.f32 %v5084_v40, 0.0  ;;  %5908 = vmatmul.mubr.bf16.gmra.mrb[128].mxu1 %v18830_v2  ;;  %v18836_v40 = vld [vmem:[%s19024_s18 + $0xb0] sm:$0xff]  }
 0x881   : > { %v5208_v47 = vmax.f32 %v5076_v37, 0.0  ;;  %5915 = vmatprep.mubr.bf16.mxu1 %v19476_v14 }
 0x882   : > { %v5252_v17 = vpack.c.bf16 %v5210_v45, %v5209_v44  ;;  %v18837_v45 = vld [vmem:[%s19024_s18 + $0xb8] sm:$0xff]  }
 0x883   : > { %v5251_v49 = vpack.c.bf16 %v5208_v47, %v5207_v46 }
 0x885   : > { %16787 = vmatprep.mubr.bf16.mxu0 %v5251_v49 }
 0x886   : > { %16788 = vmatmul.mubr.bf16.gmra.mrb[104].mxu0 %v5252_v17 }
 0x888   : > { %5916 = vmatmul.mubr.bf16.gmra.mrb[132].mxu1 %v18831_v23 }
 0x889   : > { %5923 = vmatprep.mubr.bf16.mxu1 %v19491_v38 }
 0x88b   : > { %v16713_v55 = vpop.f32.mrb[44].mxu1 }
 0x88c   : > { %v5097_v50 = vadd.f32 %v16713_v55, %v20045_v57  ;;  %v5088_v52 = vpop.f32.mrb[45].mxu1 }
 0x88d   : > { %v5089_v27 = vadd.f32 %v20045_v57, %v5088_v52  ;;  %v16714_v8 = vpop.f32.mrb[46].mxu1 }
 0x88e   : > { %v5100_v54 = vadd.f32 %v16714_v8, %v20045_v57  ;;  %v5091_v14 = vpop.f32.mrb[47].mxu1  ;;  %v5213_v56 = vmax.f32 %v5097_v50, 0.0 }
 0x88f   : > { %v5092_v43 = vadd.f32 %v20045_v57, %v5091_v14  ;;  %v5211_v16 = vmax.f32 %v5089_v27, 0.0  ;;  %v18838_v27 = vld [vmem:[%s19024_s18 + $0xc0] sm:$0xff]  }
 0x890   : > { %v5214_v18 = vmax.f32 %v5100_v54, 0.0  ;;  %5924 = vmatmul.mubr.bf16.gmra.mrb[136].mxu1 %v18832_v59 }
 0x891   : > { %v5212_v53 = vmax.f32 %v5092_v43, 0.0  ;;  %5931 = vmatprep.mubr.bf16.mxu1 %v19489_v35  ;;  %v18839_v43 = vld [vmem:[%s19024_s18 + $0xc8] sm:$0xff]  }
 0x892   : > { %v5254_v38 = vpack.c.bf16 %v5214_v18, %v5213_v56 }
 0x893   : > { %v5253_v0 = vpack.c.bf16 %v5212_v53, %v5211_v16 }
 0x895   : > { %16791 = vmatprep.mubr.bf16.mxu0 %v5253_v0 }
 0x896   : > { %16792 = vmatmul.mubr.bf16.gmra.mrb[108].mxu0 %v5254_v38 }
 0x898   : > { %5932 = vmatmul.mubr.bf16.gmra.mrb[140].mxu1 %v18833_v3 }
 0x899   : > { %5939 = vmatprep.mubr.bf16.mxu1 %v19507_v63 }
 0x89b   : > { %v16717_v5 = vpop.f32.mrb[48].mxu1 }
 0x89c   : > { %v5113_v22 = vadd.f32 %v16717_v5, %v20045_v57  ;;  %v5104_v9 = vpop.f32.mrb[49].mxu1 }
 0x89d   : > { %v5105_v7 = vadd.f32 %v20045_v57, %v5104_v9  ;;  %v16718_v12 = vpop.f32.mrb[50].mxu1 }
 0x89e   : > { %v5116_v15 = vadd.f32 %v16718_v12, %v20045_v57  ;;  %v5107_v35 = vpop.f32.mrb[51].mxu1  ;;  %v5217_v41 = vmax.f32 %v5113_v22, 0.0  ;;  %v18840_v22 = vld [vmem:[%s19024_s18 + $0xd0] sm:$0xff]  }
 0x89f   : > { %v5108_v19 = vadd.f32 %v20045_v57, %v5107_v35  ;;  %v5215_v20 = vmax.f32 %v5105_v7, 0.0 }
 0x8a0   : > { %v5218_v10 = vmax.f32 %v5116_v15, 0.0  ;;  %5940 = vmatmul.mubr.bf16.gmra.mrb[144].mxu1 %v18834_v4 }
 0x8a1   : > { %v5216_v6 = vmax.f32 %v5108_v19, 0.0  ;;  %5947 = vmatprep.mubr.bf16.mxu1 %v19505_v61 }
 0x8a2   : > { %v5256_v63 = vpack.c.bf16 %v5218_v10, %v5217_v41  ;;  %v20193_v41 = vld [vmem:[%s22033_s6 + $0x9] ss:$0 sm:$0xff] }
 0x8a3   : > { %v5255_v24 = vpack.c.bf16 %v5216_v6, %v5215_v20 }
 0x8a5   : > { %16795 = vmatprep.mubr.bf16.mxu0 %v5255_v24 }
 0x8a6   : > { %16796 = vmatmul.mubr.bf16.gmra.mrb[112].mxu0 %v5256_v63 }
 0x8a8   : > { %5948 = vmatmul.mubr.bf16.gmra.mrb[148].mxu1 %v18835_v39  ;;  %v18841_v39 = vld [vmem:[%s19024_s18 + $0xd8] sm:$0xff]  }
 0x8a9   : > { %5955 = vmatprep.mubr.bf16.mxu1 %v19523_v26 }
 0x8ab   : > { %v16721_v58 = vpop.f32.mrb[52].mxu1 }
 0x8ac   : > { %v5129_v62 = vadd.f32 %v16721_v58, %v20045_v57  ;;  %v5120_v31 = vpop.f32.mrb[53].mxu1 }
 0x8ad   : > { %v5121_v32 = vadd.f32 %v20045_v57, %v5120_v31  ;;  %v16722_v25 = vpop.f32.mrb[54].mxu1 }
 0x8ae   : > { %v5132_v33 = vadd.f32 %v16722_v25, %v20045_v57  ;;  %v5123_v61 = vpop.f32.mrb[55].mxu1  ;;  %v5221_v30 = vmax.f32 %v5129_v62, 0.0 }
 0x8af   : > { %v5124_v29 = vadd.f32 %v20045_v57, %v5123_v61  ;;  %v5219_v60 = vmax.f32 %v5121_v32, 0.0 }
 0x8b0   : > { %v5222_v34 = vmax.f32 %v5132_v33, 0.0  ;;  %5956 = vmatmul.mubr.bf16.gmra.mrb[152].mxu1 %v18836_v40 }
 0x8b1   : > { %v5220_v37 = vmax.f32 %v5124_v29, 0.0  ;;  %5963 = vmatprep.mubr.bf16.mxu1 %v19521_v21 }
 0x8b2   : > { %v5258_v26 = vpack.c.bf16 %v5222_v34, %v5221_v30 }
 0x8b3   : > { %v5257_v44 = vpack.c.bf16 %v5220_v37, %v5219_v60 }
 0x8b5   : > { %16799 = vmatprep.mubr.bf16.mxu0 %v5257_v44 }
 0x8b6   : > { %16800 = vmatmul.mubr.bf16.gmra.mrb[116].mxu0 %v5258_v26 }
 0x8b8   : > { %5964 = vmatmul.mubr.bf16.gmra.mrb[156].mxu1 %v18837_v45 }
 0x8b9   : > { %5971 = vmatprep.mubr.bf16.mxu1 %v19539_v51 }
 0x8bb   : > { %v16725_v2 = vpop.f32.mrb[56].mxu1 }
 0x8bc   : > { %v5145_v46 = vadd.f32 %v16725_v2, %v20045_v57  ;;  %v5136_v47 = vpop.f32.mrb[57].mxu1 }
 0x8bd   : > { %v5137_v17 = vadd.f32 %v20045_v57, %v5136_v47  ;;  %v16726_v49 = vpop.f32.mrb[58].mxu1 }
 0x8be   : > { %v5148_v23 = vadd.f32 %v16726_v49, %v20045_v57  ;;  %v5139_v21 = vpop.f32.mrb[59].mxu1  ;;  %v5225_v50 = vmax.f32 %v5145_v46, 0.0 }
 0x8bf   : > { %v5140_v55 = vadd.f32 %v20045_v57, %v5139_v21  ;;  %v5223_v8 = vmax.f32 %v5137_v17, 0.0 }
 0x8c0   : > { %v5226_v52 = vmax.f32 %v5148_v23, 0.0  ;;  %5972 = vmatmul.mubr.bf16.gmra.mrb[160].mxu1 %v18838_v27 }
 0x8c1   : > { %v5224_v54 = vmax.f32 %v5140_v55, 0.0  ;;  %5979 = vmatprep.mubr.bf16.mxu1 %v19537_v48 }
 0x8c2   : > { %v5260_v51 = vpack.c.bf16 %v5226_v52, %v5225_v50 }
 0x8c3   : > { %v5259_v14 = vpack.c.bf16 %v5224_v54, %v5223_v8 }
 0x8c5   : > { %16803 = vmatprep.mubr.bf16.mxu0 %v5259_v14  ;;  %v18843_v14 = vld [vmem:[%s19024_s18 + $0xe8] sm:$0xff]  }
 0x8c6   : > { %16804 = vmatmul.mubr.bf16.gmra.mrb[120].mxu0 %v5260_v51 }
 0x8c8   : > { %5980 = vmatmul.mubr.bf16.gmra.mrb[164].mxu1 %v18839_v43 }
 0x8c9   : > { %5987 = vmatprep.mubr.bf16.mxu1 %v19552_v13 }
 0x8cb   : > { %v16729_v56 = vpop.f32.mrb[60].mxu1 }
 0x8cc   : > { %v5161_v18 = vadd.f32 %v16729_v56, %v20045_v57  ;;  %v5152_v59 = vpop.f32.mrb[61].mxu1 }
 0x8cd   : > { %v5153_v16 = vadd.f32 %v20045_v57, %v5152_v59  ;;  %v16730_v53 = vpop.f32.mrb[62].mxu1 }
 0x8ce   : > { %v5164_v38 = vadd.f32 %v16730_v53, %v20045_v57  ;;  %v5155_v0 = vpop.f32.mrb[63].mxu1  ;;  %v5229_v3 = vmax.f32 %v5161_v18, 0.0 }
 0x8cf   : > { %v5156_v48 = vadd.f32 %v20045_v57, %v5155_v0  ;;  %v5227_v9 = vmax.f32 %v5153_v16, 0.0 }
 0x8d0   : > { %v5230_v5 = vmax.f32 %v5164_v38, 0.0  ;;  %5988 = vmatmul.mubr.bf16.gmra.mrb[168].mxu1 %v18840_v22 }
 0x8d1   : > { %v5228_v7 = vmax.f32 %v5156_v48, 0.0  ;;  %5995 = vmatprep.mubr.bf16.mxu1 %v19550_v11 }
 0x8d2   : > { %v5262_v13 = vpack.c.bf16 %v5230_v5, %v5229_v3 }
 0x8d3   : > { %v16749_v12 = vpop.f32.mrb[64].mxu0  ;;  %v5781_v15 = vpop.f32.mrb[64].mxu1  ;;  %v5261_v35 = vpack.c.bf16 %v5228_v7, %v5227_v9 }
 0x8d4   : > { %v5492_v19 = vpop.f32.mrb[65].mxu0  ;;  %v5783_v57 = vpop.f32.mrb[65].mxu1 }
 0x8d5   : > { %v5782_v10 = vadd.f32 %v5781_v15, %v5492_v19  ;;  %v16750_v4 = vpop.f32.mrb[66].mxu0  ;;  %16807 = vmatprep.mubr.bf16.mxu0 %v5261_v35  ;;  %v5784_v20 = vpop.f32.mrb[66].mxu1 }
 0x8d6   : > { %v5495_v6 = vpop.f32.mrb[67].mxu0  ;;  %16808 = vmatmul.mubr.bf16.gmra.mrb[124].mxu0 %v5262_v13  ;;  %v5786_v63 = vpop.f32.mrb[67].mxu1  ;;  %v18844_v13 = vld [vmem:[%s19024_s18 + $0xf0] sm:$0xff]  }
 0x8d7   : > { %v6044_v11 = vadd.f32 %v20193_v41, %v5782_v10  ;;  %v5785_v24 = vadd.f32 %v5784_v20, %v5495_v6 }
 0x8d8   : > { %5996 = vmatmul.mubr.bf16.gmra.mrb[172].mxu1 %v18841_v39 }
 0x8d9   : > { %v6045_v58 = vadd.f32 %v20193_v41, %v5785_v24  ;;  %6003 = vmatprep.mubr.bf16.mxu1 %v19562_v42  ;;  %v6108_v32 = vmax.f32 %v6044_v11, 0.0  ;;  %v18842_v42 = vld [vmem:[%s19024_s18 + $0xe0] sm:$0xff]   ;;  %v18845_v11 = vld [vmem:[%s19024_s18 + $0xf8] sm:$0xff]  }
 0x8db   : > { %v16753_v62 = vpop.f32.mrb[68].mxu0  ;;  %v5789_v31 = vpop.f32.mrb[68].mxu1  ;;  %v6109_v25 = vmax.f32 %v6045_v58, 0.0 }
 0x8dc   : > { %v5790_v33 = vadd.f32 %v16749_v12, %v5789_v31  ;;  %v5508_v61 = vpop.f32.mrb[69].mxu0  ;;  %v5791_v29 = vpop.f32.mrb[69].mxu1 }
 0x8dd   : > { %v16754_v30 = vpop.f32.mrb[70].mxu0  ;;  %v5792_v34 = vpop.f32.mrb[70].mxu1  ;;  %v6172_v40 = vpack.c.bf16 %v6109_v25, %v6108_v32 }
 0x8de   : > { %v6046_v60 = vadd.f32 %v20193_v41, %v5790_v33  ;;  %v5793_v37 = vadd.f32 %v16750_v4, %v5792_v34  ;;  %v5511_v26 = vpop.f32.mrb[71].mxu0  ;;  %v5794_v44 = vpop.f32.mrb[71].mxu1 }
 0x8df   : > { %16827 = vmatprep.mubr.bf16.mxu0 %v6172_v40 }
 0x8e0   : > { %v6047_v45 = vadd.f32 %v20193_v41, %v5793_v37  ;;  %6004 = vmatmul.mubr.bf16.gmra.mrb[176].mxu1 %v18842_v42  ;;  %v6110_v2 = vmax.f32 %v6046_v60, 0.0 }
 0x8e1   : > { %6011 = vmatprep.mubr.bf16.mxu1 %v19560_v36 }
 0x8e2   : > { %v6111_v46 = vmax.f32 %v6047_v45, 0.0 }
 0x8e3   : > { %v16757_v47 = vpop.f32.mrb[72].mxu0  ;;  %v5797_v17 = vpop.f32.mrb[72].mxu1 }
 0x8e4   : > { %v6173_v49 = vpack.c.bf16 %v6111_v46, %v6110_v2  ;;  %v5524_v23 = vpop.f32.mrb[73].mxu0  ;;  %v5799_v21 = vpop.f32.mrb[73].mxu1  ;;  %v5798_v55 = vadd.f32 %v5797_v17, %v5508_v61 }
 0x8e5   : > { %v16758_v50 = vpop.f32.mrb[74].mxu0  ;;  %v5800_v52 = vpop.f32.mrb[74].mxu1 }
 0x8e6   : > { %v5527_v27 = vpop.f32.mrb[75].mxu0  ;;  %v5802_v8 = vpop.f32.mrb[75].mxu1  ;;  %16828 = vmatmul.mubr.bf16.vlgmr.msra.gmra.mrb[128].mxu0 %v6173_v49  ;;  %v5801_v54 = vadd.f32 %v5800_v52, %v5511_v26  ;;  %v6048_v51 = vadd.f32 %v20193_v41, %v5798_v55 }
 0x8e8   : > { %6012 = vmatmul.mubr.bf16.gmra.mrb[180].mxu1 %v18843_v14  ;;  %v6049_v36 = vadd.f32 %v20193_v41, %v5801_v54  ;;  %v6112_v43 = vmax.f32 %v6048_v51, 0.0 }
 0x8e9   : > { %6019 = vmatprep.mubr.bf16.mxu1 %v19572_v28 }
 0x8ea   : > { %v6113_v56 = vmax.f32 %v6049_v36, 0.0 }
 0x8eb   : > { %v20207_v18 = vpop.f32.mrb[76].mxu0  ;;  %v5805_v59 = vpop.f32.mrb[76].mxu1 }
 0x8ec   : > { %v5806_v16 = vadd.f32 %v16753_v62, %v5805_v59  ;;  %v5540_v53 = vpop.f32.mrb[77].mxu0  ;;  %v5807_v38 = vpop.f32.mrb[77].mxu1  ;;  %v6174_v0 = vpack.c.bf16 %v6113_v56, %v6112_v43 }
 0x8ed   : > { %v20209_v48 = vpop.f32.mrb[78].mxu0  ;;  %v5808_v3 = vpop.f32.mrb[78].mxu1 }
 0x8ee   : > { %v6050_v5 = vadd.f32 %v20193_v41, %v5806_v16  ;;  %v5809_v22 = vadd.f32 %v16754_v30, %v5808_v3  ;;  %v5543_v9 = vpop.f32.mrb[79].mxu0  ;;  %v5810_v7 = vpop.f32.mrb[79].mxu1  ;;  %16831 = vmatprep.mubr.bf16.mxu0 %v6174_v0 }
 0x8f0   : > { %v6051_v28 = vadd.f32 %v20193_v41, %v5809_v22  ;;  %6020 = vmatmul.mubr.bf16.gmra.mrb[184].mxu1 %v18844_v13  ;;  %v6114_v12 = vmax.f32 %v6050_v5, 0.0 }
 0x8f1   : > { %6027 = vmatprep.mubr.bf16.mxu1 %v19570_v1 }
 0x8f2   : > { %v6115_v15 = vmax.f32 %v6051_v28, 0.0 }
 0x8f3   : > { %v5813_v35 = vpop.f32.mrb[80].mxu1 }
 0x8f4   : > { %v6175_v19 = vpack.c.bf16 %v6115_v15, %v6114_v12  ;;  %v5815_v57 = vpop.f32.mrb[81].mxu1  ;;  %v5814_v10 = vadd.f32 %v5813_v35, %v5524_v23 }
 0x8f5   : > { %v5816_v4 = vpop.f32.mrb[82].mxu1 }
 0x8f6   : > { %v5818_v20 = vpop.f32.mrb[83].mxu1  ;;  %16832 = vmatmul.mubr.bf16.gmra.mrb[132].mxu0 %v6175_v19  ;;  %v5817_v6 = vadd.f32 %v5816_v4, %v5527_v27  ;;  %v6052_v63 = vadd.f32 %v20193_v41, %v5814_v10 }
 0x8f8   : > { %6028 = vmatmul.mubr.bf16.gmra.mrb[188].mxu1 %v18845_v11  ;;  %v6053_v24 = vadd.f32 %v20193_v41, %v5817_v6  ;;  %v6116_v62 = vmax.f32 %v6052_v63, 0.0 }
 0x8f9   : > { %v16765_v39 = vpop.f32.mrb[80].mxu0 }
 0x8fa   : > { %v5556_v58 = vpop.f32.mrb[81].mxu0  ;;  %v6117_v1 = vmax.f32 %v6053_v24, 0.0 }
 0x8fb   : > { %v20218_v31 = vpop.f32.mrb[82].mxu0  ;;  %v5821_v32 = vpop.f32.mrb[84].mxu1 }
 0x8fc   : > { %v5822_v25 = vadd.f32 %v16757_v47, %v5821_v32  ;;  %v5559_v33 = vpop.f32.mrb[83].mxu0  ;;  %v5823_v61 = vpop.f32.mrb[85].mxu1  ;;  %v6176_v29 = vpack.c.bf16 %v6117_v1, %v6116_v62 }
 0x8fd   : > { %v5824_v30 = vpop.f32.mrb[86].mxu1 }
 0x8fe   : > { %v6054_v34 = vadd.f32 %v20193_v41, %v5822_v25  ;;  %v5825_v40 = vadd.f32 %v16758_v50, %v5824_v30  ;;  %v5826_v60 = vpop.f32.mrb[87].mxu1  ;;  %16835 = vmatprep.mubr.bf16.mxu0 %v6176_v29 }
 0x900   : > { %v6055_v37 = vadd.f32 %v20193_v41, %v5825_v40  ;;  %v6118_v26 = vmax.f32 %v6054_v34, 0.0 }
 0x902   : > { %v6119_v44 = vmax.f32 %v6055_v37, 0.0 }
 0x903   : > { %v5829_v45 = vpop.f32.mrb[88].mxu1 }
 0x904   : > { %v6177_v42 = vpack.c.bf16 %v6119_v44, %v6118_v26  ;;  %v5831_v2 = vpop.f32.mrb[89].mxu1  ;;  %v5830_v46 = vadd.f32 %v5829_v45, %v5540_v53 }
 0x905   : > { %v5832_v17 = vpop.f32.mrb[90].mxu1 }
 0x906   : > { %v5834_v49 = vpop.f32.mrb[91].mxu1  ;;  %16836 = vmatmul.mubr.bf16.gmra.mrb[136].mxu0 %v6177_v42  ;;  %v5833_v47 = vadd.f32 %v5832_v17, %v5543_v9  ;;  %v6056_v23 = vadd.f32 %v20193_v41, %v5830_v46 }
 0x908   : > { %v6057_v21 = vadd.f32 %v20193_v41, %v5833_v47  ;;  %v6120_v52 = vmax.f32 %v6056_v23, 0.0 }
 0x909   : > { %v16769_v55 = vpop.f32.mrb[84].mxu0 }
 0x90a   : > { %v5572_v50 = vpop.f32.mrb[85].mxu0  ;;  %v6121_v27 = vmax.f32 %v6057_v21, 0.0 }
 0x90b   : > { %v20224_v8 = vpop.f32.mrb[86].mxu0  ;;  %v5837_v54 = vpop.f32.mrb[92].mxu1 }
 0x90c   : > { %v5838_v51 = vadd.f32 %v20207_v18, %v5837_v54  ;;  %v5575_v14 = vpop.f32.mrb[87].mxu0  ;;  %v5839_v36 = vpop.f32.mrb[93].mxu1  ;;  %v6178_v43 = vpack.c.bf16 %v6121_v27, %v6120_v52 }
 0x90d   : > { %v5840_v56 = vpop.f32.mrb[94].mxu1 }
 0x90e   : > { %v6058_v59 = vadd.f32 %v20193_v41, %v5838_v51  ;;  %v5841_v16 = vadd.f32 %v20209_v48, %v5840_v56  ;;  %v5842_v53 = vpop.f32.mrb[95].mxu1  ;;  %16839 = vmatprep.mubr.bf16.mxu0 %v6178_v43 }
 0x910   : > { %v6059_v38 = vadd.f32 %v20193_v41, %v5841_v16  ;;  %v6122_v0 = vmax.f32 %v6058_v59, 0.0 }
 0x912   : > { %v6123_v3 = vmax.f32 %v6059_v38, 0.0 }
 0x913   : > { %v5845_v5 = vpop.f32.mrb[96].mxu1 }
 0x914   : > { %v6179_v22 = vpack.c.bf16 %v6123_v3, %v6122_v0  ;;  %v5847_v9 = vpop.f32.mrb[97].mxu1  ;;  %v5846_v7 = vadd.f32 %v5845_v5, %v5556_v58 }
 0x915   : > { %v5848_v28 = vpop.f32.mrb[98].mxu1 }
 0x916   : > { %v5850_v18 = vpop.f32.mrb[99].mxu1  ;;  %16840 = vmatmul.mubr.bf16.gmra.mrb[140].mxu0 %v6179_v22  ;;  %v5849_v13 = vadd.f32 %v5848_v28, %v5559_v33  ;;  %v6060_v12 = vadd.f32 %v20193_v41, %v5846_v7 }
 0x918   : > { %v6061_v15 = vadd.f32 %v20193_v41, %v5849_v13  ;;  %v6124_v19 = vmax.f32 %v6060_v12, 0.0 }
 0x919   : > { %v16773_v35 = vpop.f32.mrb[88].mxu0 }
 0x91a   : > { %v5588_v48 = vpop.f32.mrb[89].mxu0  ;;  %v6125_v57 = vmax.f32 %v6061_v15, 0.0  ;;  %v18643_v15 = vld [vmem:[%s22031_s4 + $0x340] sm:$0xff]  }
 0x91b   : > { %v20232_v10 = vpop.f32.mrb[90].mxu0  ;;  %v5853_v4 = vpop.f32.mrb[100].mxu1  ;;  %16891 = vmatprep.subr.bf16.mxu0 %v18643_v15 }
 0x91c   : > { %v5854_v20 = vadd.f32 %v16765_v39, %v5853_v4  ;;  %v5591_v6 = vpop.f32.mrb[91].mxu0  ;;  %v5855_v63 = vpop.f32.mrb[101].mxu1  ;;  %v6180_v11 = vpack.c.bf16 %v6125_v57, %v6124_v19  ;;  %16892 = vmatpush3.bf16.msra.mxu0 %v18643_v15 }
 0x91d   : > { %v5856_v24 = vpop.f32.mrb[102].mxu1 }
 0x91e   : > { %v6062_v58 = vadd.f32 %v20193_v41, %v5854_v20  ;;  %v5857_v62 = vadd.f32 %v20218_v31, %v5856_v24  ;;  %v5858_v1 = vpop.f32.mrb[103].mxu1  ;;  %16843 = vmatprep.mubr.bf16.mxu0 %v6180_v11 }
 0x920   : > { %v6063_v32 = vadd.f32 %v20193_v41, %v5857_v62  ;;  %v6126_v25 = vmax.f32 %v6062_v58, 0.0 }
 0x922   : > { %v6127_v33 = vmax.f32 %v6063_v32, 0.0 }
 0x923   : > { %v5861_v61 = vpop.f32.mrb[104].mxu1 }
 0x924   : > { %v6181_v29 = vpack.c.bf16 %v6127_v33, %v6126_v25  ;;  %v5863_v30 = vpop.f32.mrb[105].mxu1  ;;  %v5862_v34 = vadd.f32 %v5861_v61, %v5572_v50 }
 0x925   : > { %v5864_v40 = vpop.f32.mrb[106].mxu1 }
 0x926   : > { %v5866_v39 = vpop.f32.mrb[107].mxu1  ;;  %16844 = vmatmul.mubr.bf16.gmra.mrb[144].mxu0 %v6181_v29  ;;  %v5865_v60 = vadd.f32 %v5864_v40, %v5575_v14  ;;  %v6064_v37 = vadd.f32 %v20193_v41, %v5862_v34  ;;  %v18646_v29 = vld [vmem:[%s22031_s4 + $0x358] sm:$0xff]  }
 0x928   : > { %v6065_v26 = vadd.f32 %v20193_v41, %v5865_v60  ;;  %v6128_v45 = vmax.f32 %v6064_v37, 0.0 }
 0x929   : > { %v20239_v44 = vpop.f32.mrb[92].mxu0 }
 0x92a   : > { %v5604_v31 = vpop.f32.mrb[93].mxu0  ;;  %v6129_v42 = vmax.f32 %v6065_v26, 0.0 }
 0x92b   : > { %v20241_v2 = vpop.f32.mrb[94].mxu0  ;;  %v5869_v46 = vpop.f32.mrb[108].mxu1 }
 0x92c   : > { %v5870_v17 = vadd.f32 %v16769_v55, %v5869_v46  ;;  %v5607_v49 = vpop.f32.mrb[95].mxu0  ;;  %v5871_v47 = vpop.f32.mrb[109].mxu1  ;;  %v6182_v23 = vpack.c.bf16 %v6129_v42, %v6128_v45  ;;  %v18647_v46 = vld [vmem:[%s22031_s4 + $0x360] sm:$0xff]  }
 0x92d   : > { %v5872_v21 = vpop.f32.mrb[110].mxu1 }
 0x92e   : > { %v6066_v50 = vadd.f32 %v20193_v41, %v5870_v17  ;;  %v5873_v52 = vadd.f32 %v20224_v8, %v5872_v21  ;;  %v5874_v27 = vpop.f32.mrb[111].mxu1  ;;  %16847 = vmatprep.mubr.bf16.mxu0 %v6182_v23 }
 0x930   : > { %v6067_v54 = vadd.f32 %v20193_v41, %v5873_v52  ;;  %v6130_v51 = vmax.f32 %v6066_v50, 0.0 }
 0x932   : > { %v6131_v14 = vmax.f32 %v6067_v54, 0.0 }
 0x933   : > { %v5877_v36 = vpop.f32.mrb[112].mxu1 }
 0x934   : > { %v6183_v43 = vpack.c.bf16 %v6131_v14, %v6130_v51  ;;  %v5879_v56 = vpop.f32.mrb[113].mxu1  ;;  %v5878_v59 = vadd.f32 %v5877_v36, %v5588_v48 }
 0x935   : > { %v5880_v16 = vpop.f32.mrb[114].mxu1 }
 0x936   : > { %v5882_v55 = vpop.f32.mrb[115].mxu1  ;;  %16848 = vmatmul.mubr.bf16.gmra.mrb[148].mxu0 %v6183_v43  ;;  %v5881_v53 = vadd.f32 %v5880_v16, %v5591_v6  ;;  %v6068_v38 = vadd.f32 %v20193_v41, %v5878_v59 }
 0x937   : > { %v18650_v55 = vld [vmem:[%s22031_s4 + $0x378] sm:$0xff]  }
 0x938   : > { %v6069_v0 = vadd.f32 %v20193_v41, %v5881_v53  ;;  %v6132_v5 = vmax.f32 %v6068_v38, 0.0 }
 0x939   : > { %v20248_v3 = vpop.f32.mrb[96].mxu0 }
 0x93a   : > { %v20250_v8 = vpop.f32.mrb[97].mxu0  ;;  %v6133_v22 = vmax.f32 %v6069_v0, 0.0 }
 0x93b   : > { %v20252_v9 = vpop.f32.mrb[98].mxu0  ;;  %v5885_v7 = vpop.f32.mrb[116].mxu1 }
 0x93c   : > { %v5886_v28 = vadd.f32 %v16773_v35, %v5885_v7  ;;  %v20254_v18 = vpop.f32.mrb[99].mxu0  ;;  %v5887_v13 = vpop.f32.mrb[117].mxu1  ;;  %v6184_v12 = vpack.c.bf16 %v6133_v22, %v6132_v5  ;;  %v18644_v35 = vld [vmem:[%s22031_s4 + $0x348] sm:$0xff]  }
 0x93d   : > { %v5888_v48 = vpop.f32.mrb[118].mxu1  ;;  %16893 = vmatprep.subr.bf16.mxu0 %v18644_v35 }
 0x93e   : > { %v6070_v19 = vadd.f32 %v20193_v41, %v5886_v28  ;;  %v5889_v57 = vadd.f32 %v20232_v10, %v5888_v48  ;;  %v5890_v4 = vpop.f32.mrb[119].mxu1  ;;  %16851 = vmatprep.mubr.bf16.mxu0 %v6184_v12  ;;  %16894 = vmatpush3.bf16.msra.mxu0 %v18644_v35  ;;  %v18645_v10 = vld [vmem:[%s22031_s4 + $0x350] sm:$0xff]  }
 0x93f   : > { %16895 = vmatprep.subr.bf16.mxu0 %v18645_v10 }
 0x940   : > { %v6071_v20 = vadd.f32 %v20193_v41, %v5889_v57  ;;  %v6134_v6 = vmax.f32 %v6070_v19, 0.0 }
 0x942   : > { %v6135_v63 = vmax.f32 %v6071_v20, 0.0  ;;  %16896 = vmatpush3.bf16.msra.mxu0 %v18645_v10 }
 0x943   : > { %v5893_v11 = vpop.f32.mrb[120].mxu1  ;;  %16897 = vmatprep.subr.bf16.mxu0 %v18646_v29 }
 0x944   : > { %v6185_v24 = vpack.c.bf16 %v6135_v63, %v6134_v6  ;;  %v5895_v58 = vpop.f32.mrb[121].mxu1  ;;  %v5894_v62 = vadd.f32 %v5893_v11, %v5604_v31 }
 0x945   : > { %v5896_v1 = vpop.f32.mrb[122].mxu1 }
 0x946   : > { %v5898_v32 = vpop.f32.mrb[123].mxu1  ;;  %16852 = vmatmul.mubr.bf16.gmra.mrb[152].mxu0 %v6185_v24  ;;  %v5897_v25 = vadd.f32 %v5896_v1, %v5607_v49  ;;  %v6072_v33 = vadd.f32 %v20193_v41, %v5894_v62 }
 0x947   : > { %16898 = vmatpush3.bf16.msra.mxu0 %v18646_v29 }
 0x948   : > { %v6073_v61 = vadd.f32 %v20193_v41, %v5897_v25  ;;  %v6136_v40 = vmax.f32 %v6072_v33, 0.0  ;;  %16899 = vmatprep.subr.bf16.mxu0 %v18647_v46 }
 0x949   : > { %v20273_v30 = vpop.f32.mrb[100].mxu0 }
 0x94a   : > { %v5636_v34 = vpop.f32.mrb[101].mxu0  ;;  %v6137_v39 = vmax.f32 %v6073_v61, 0.0 }
 0x94b   : > { %v20275_v60 = vpop.f32.mrb[102].mxu0  ;;  %v5901_v37 = vpop.f32.mrb[124].mxu1  ;;  %16900 = vmatpush3.bf16.msra.mxu0 %v18647_v46 }
 0x94c   : > { %v5902_v26 = vadd.f32 %v20239_v44, %v5901_v37  ;;  %v5639_v31 = vpop.f32.mrb[103].mxu0  ;;  %v5903_v45 = vpop.f32.mrb[125].mxu1  ;;  %v6186_v42 = vpack.c.bf16 %v6137_v39, %v6136_v40  ;;  %v18648_v44 = vld [vmem:[%s22031_s4 + $0x368] sm:$0xff]  }
 0x94d   : > { %v5904_v17 = vpop.f32.mrb[126].mxu1  ;;  %16901 = vmatprep.subr.bf16.mxu0 %v18648_v44 }
 0x94e   : > { %v6074_v49 = vadd.f32 %v20193_v41, %v5902_v26  ;;  %v5905_v47 = vadd.f32 %v20241_v2, %v5904_v17  ;;  %v5906_v23 = vpop.f32.mrb[127].mxu1  ;;  %16855 = vmatprep.mubr.bf16.mxu0 %v6186_v42  ;;  %v18649_v2 = vld [vmem:[%s22031_s4 + $0x370] sm:$0xff]  }
 0x94f   : > { %16902 = vmatpush3.bf16.msra.mxu0 %v18648_v44 }
 0x950   : > { %v6075_v21 = vadd.f32 %v20193_v41, %v5905_v47  ;;  %v6138_v50 = vmax.f32 %v6074_v49, 0.0  ;;  %16903 = vmatprep.subr.bf16.mxu0 %v18649_v2 }
 0x952   : > { %v6139_v52 = vmax.f32 %v6075_v21, 0.0 }
 0x953   : > { %v5909_v27 = vpop.f32.mrb[128].mxu1  ;;  %16904 = vmatpush3.bf16.msra.mxu0 %v18649_v2 }
 0x954   : > { %v6187_v54 = vpack.c.bf16 %v6139_v52, %v6138_v50  ;;  %v5910_v51 = vadd.f32 %v5909_v27, %v20250_v8  ;;  %v5911_v14 = vpop.f32.mrb[129].mxu1  ;;  %16905 = vmatprep.subr.bf16.mxu0 %v18650_v55 }
 0x955   : > { %v5912_v36 = vpop.f32.mrb[130].mxu1 }
 0x956   : > { %v5913_v43 = vadd.f32 %v5912_v36, %v20254_v18  ;;  %v5914_v56 = vpop.f32.mrb[131].mxu1  ;;  %16856 = vmatmul.mubr.bf16.gmra.mrb[156].mxu0 %v6187_v54  ;;  %v6076_v59 = vadd.f32 %v20193_v41, %v5910_v51 }
 0x957   : > { %16906 = vmatpush3.bf16.msra.mxu0 %v18650_v55 }
 0x958   : > { %v6077_v16 = vadd.f32 %v20193_v41, %v5913_v43  ;;  %v6140_v0 = vmax.f32 %v6076_v59, 0.0 }
 0x959   : > { %v20297_v53 = vpop.f32.mrb[104].mxu0 }
 0x95a   : > { %v5652_v38 = vpop.f32.mrb[105].mxu0  ;;  %v6141_v8 = vmax.f32 %v6077_v16, 0.0 }
 0x95b   : > { %v20299_v5 = vpop.f32.mrb[106].mxu0  ;;  %v5917_v22 = vpop.f32.mrb[132].mxu1 }
 0x95c   : > { %v5918_v7 = vadd.f32 %v20248_v3, %v5917_v22  ;;  %v5655_v28 = vpop.f32.mrb[107].mxu0  ;;  %v5919_v18 = vpop.f32.mrb[133].mxu1  ;;  %v6188_v13 = vpack.c.bf16 %v6141_v8, %v6140_v0 }
 0x95d   : > { %v5920_v12 = vpop.f32.mrb[134].mxu1 }
 0x95e   : > { %v6078_v15 = vadd.f32 %v20193_v41, %v5918_v7  ;;  %v5921_v48 = vadd.f32 %v20252_v9, %v5920_v12  ;;  %v5922_v19 = vpop.f32.mrb[135].mxu1  ;;  %16859 = vmatprep.mubr.bf16.mxu0 %v6188_v13 }
 0x960   : > { %v6079_v57 = vadd.f32 %v20193_v41, %v5921_v48  ;;  %v6142_v4 = vmax.f32 %v6078_v15, 0.0 }
 0x962   : > { %v6143_v20 = vmax.f32 %v6079_v57, 0.0 }
 0x963   : > { %v5925_v35 = vpop.f32.mrb[136].mxu1 }
 0x964   : > { %v6189_v6 = vpack.c.bf16 %v6143_v20, %v6142_v4  ;;  %v5926_v63 = vadd.f32 %v5925_v35, %v5636_v34  ;;  %v5927_v11 = vpop.f32.mrb[137].mxu1 }
 0x965   : > { %v5928_v24 = vpop.f32.mrb[138].mxu1 }
 0x966   : > { %v5929_v3 = vadd.f32 %v5928_v24, %v5639_v31  ;;  %v5930_v58 = vpop.f32.mrb[139].mxu1  ;;  %16860 = vmatmul.mubr.bf16.gmra.mrb[160].mxu0 %v6189_v6  ;;  %v6080_v62 = vadd.f32 %v20193_v41, %v5926_v63 }
 0x968   : > { %v6081_v10 = vadd.f32 %v20193_v41, %v5929_v3  ;;  %v6144_v32 = vmax.f32 %v6080_v62, 0.0 }
 0x969   : > { %v16793_v1 = vpop.f32.mrb[108].mxu0 }
 0x96a   : > { %v5668_v9 = vpop.f32.mrb[109].mxu0  ;;  %v6145_v25 = vmax.f32 %v6081_v10, 0.0 }
 0x96b   : > { %v20307_v33 = vpop.f32.mrb[110].mxu0  ;;  %v5933_v61 = vpop.f32.mrb[140].mxu1 }
 0x96c   : > { %v5934_v29 = vadd.f32 %v20273_v30, %v5933_v61  ;;  %v5671_v40 = vpop.f32.mrb[111].mxu0  ;;  %v5935_v34 = vpop.f32.mrb[141].mxu1  ;;  %v6190_v39 = vpack.c.bf16 %v6145_v25, %v6144_v32 }
 0x96d   : > { %v5936_v37 = vpop.f32.mrb[142].mxu1 }
 0x96e   : > { %v6082_v26 = vadd.f32 %v20193_v41, %v5934_v29  ;;  %v5937_v31 = vadd.f32 %v20275_v60, %v5936_v37  ;;  %v5938_v45 = vpop.f32.mrb[143].mxu1  ;;  %16863 = vmatprep.mubr.bf16.mxu0 %v6190_v39 }
 0x970   : > { %v6083_v42 = vadd.f32 %v20193_v41, %v5937_v31  ;;  %v6146_v46 = vmax.f32 %v6082_v26, 0.0 }
 0x972   : > { %v6147_v17 = vmax.f32 %v6083_v42, 0.0 }
 0x973   : > { %v5941_v49 = vpop.f32.mrb[144].mxu1 }
 0x974   : > { %v6191_v47 = vpack.c.bf16 %v6147_v17, %v6146_v46  ;;  %v5942_v23 = vadd.f32 %v5941_v49, %v5652_v38  ;;  %v5943_v21 = vpop.f32.mrb[145].mxu1 }
 0x975   : > { %v5944_v44 = vpop.f32.mrb[146].mxu1 }
 0x976   : > { %v5945_v30 = vadd.f32 %v5944_v44, %v5655_v28  ;;  %v5946_v50 = vpop.f32.mrb[147].mxu1  ;;  %16864 = vmatmul.mubr.bf16.gmra.mrb[164].mxu0 %v6191_v47  ;;  %v6084_v52 = vadd.f32 %v20193_v41, %v5942_v23 }
 0x978   : > { %v6085_v27 = vadd.f32 %v20193_v41, %v5945_v30  ;;  %v6148_v51 = vmax.f32 %v6084_v52, 0.0 }
 0x979   : > { %v16797_v54 = vpop.f32.mrb[112].mxu0 }
 0x97a   : > { %v5684_v60 = vpop.f32.mrb[113].mxu0  ;;  %v6149_v14 = vmax.f32 %v6085_v27, 0.0  ;;  %v18651_v27 = vld [vmem:[%s22031_s4 + $0x380] sm:$0xff]  }
 0x97b   : > { %v20315_v2 = vpop.f32.mrb[114].mxu0  ;;  %v5949_v36 = vpop.f32.mrb[148].mxu1  ;;  %16971 = vmatprep.subr.bf16.mxu1 %v18651_v27 }
 0x97c   : > { %v5950_v43 = vadd.f32 %v20297_v53, %v5949_v36  ;;  %v5687_v56 = vpop.f32.mrb[115].mxu0  ;;  %v5951_v59 = vpop.f32.mrb[149].mxu1  ;;  %v6192_v16 = vpack.c.bf16 %v6149_v14, %v6148_v51  ;;  %16972 = vmatpush3.bf16.msra.mxu1 %v18651_v27 }
 0x97d   : > { %v5952_v55 = vpop.f32.mrb[150].mxu1 }
 0x97e   : > { %v6086_v38 = vadd.f32 %v20193_v41, %v5950_v43  ;;  %v5953_v0 = vadd.f32 %v20299_v5, %v5952_v55  ;;  %v5954_v8 = vpop.f32.mrb[151].mxu1  ;;  %16867 = vmatprep.mubr.bf16.mxu0 %v6192_v16 }
 0x980   : > { %v6087_v22 = vadd.f32 %v20193_v41, %v5953_v0  ;;  %v6150_v7 = vmax.f32 %v6086_v38, 0.0 }
 0x982   : > { %v6151_v28 = vmax.f32 %v6087_v22, 0.0 }
 0x983   : > { %v5957_v18 = vpop.f32.mrb[152].mxu1 }
 0x984   : > { %v6193_v13 = vpack.c.bf16 %v6151_v28, %v6150_v7  ;;  %v5958_v12 = vadd.f32 %v5957_v18, %v5668_v9  ;;  %v5959_v15 = vpop.f32.mrb[153].mxu1 }
 0x985   : > { %v5960_v48 = vpop.f32.mrb[154].mxu1 }
 0x986   : > { %v5961_v53 = vadd.f32 %v5960_v48, %v5671_v40  ;;  %v5962_v19 = vpop.f32.mrb[155].mxu1  ;;  %16868 = vmatmul.mubr.bf16.gmra.mrb[168].mxu0 %v6193_v13  ;;  %v6088_v57 = vadd.f32 %v20193_v41, %v5958_v12 }
 0x988   : > { %v6089_v4 = vadd.f32 %v20193_v41, %v5961_v53  ;;  %v6152_v35 = vmax.f32 %v6088_v57, 0.0 }
 0x989   : > { %v20323_v20 = vpop.f32.mrb[116].mxu0 }
 0x98a   : > { %v5700_v5 = vpop.f32.mrb[117].mxu0  ;;  %v6153_v6 = vmax.f32 %v6089_v4, 0.0 }
 0x98b   : > { %v20325_v63 = vpop.f32.mrb[118].mxu0  ;;  %v5965_v11 = vpop.f32.mrb[156].mxu1 }
 0x98c   : > { %v5966_v24 = vadd.f32 %v16793_v1, %v5965_v11  ;;  %v5703_v3 = vpop.f32.mrb[119].mxu0  ;;  %v5967_v58 = vpop.f32.mrb[157].mxu1  ;;  %v6194_v62 = vpack.c.bf16 %v6153_v6, %v6152_v35 }
 0x98d   : > { %v5968_v10 = vpop.f32.mrb[158].mxu1 }
 0x98e   : > { %v6090_v9 = vadd.f32 %v20193_v41, %v5966_v24  ;;  %v5969_v32 = vadd.f32 %v20307_v33, %v5968_v10  ;;  %v5970_v25 = vpop.f32.mrb[159].mxu1  ;;  %16871 = vmatprep.mubr.bf16.mxu0 %v6194_v62 }
 0x990   : > { %v6091_v61 = vadd.f32 %v20193_v41, %v5969_v32  ;;  %v6154_v29 = vmax.f32 %v6090_v9, 0.0 }
 0x992   : > { %v6155_v40 = vmax.f32 %v6091_v61, 0.0 }
 0x993   : > { %v5973_v34 = vpop.f32.mrb[160].mxu1 }
 0x994   : > { %v6195_v39 = vpack.c.bf16 %v6155_v40, %v6154_v29  ;;  %v5974_v37 = vadd.f32 %v5973_v34, %v5684_v60  ;;  %v5975_v26 = vpop.f32.mrb[161].mxu1 }
 0x995   : > { %v5976_v31 = vpop.f32.mrb[162].mxu1 }
 0x996   : > { %v5977_v1 = vadd.f32 %v5976_v31, %v5687_v56  ;;  %v5978_v45 = vpop.f32.mrb[163].mxu1  ;;  %16872 = vmatmul.mubr.bf16.gmra.mrb[172].mxu0 %v6195_v39  ;;  %v6092_v42 = vadd.f32 %v20193_v41, %v5974_v37 }
 0x998   : > { %v6093_v46 = vadd.f32 %v20193_v41, %v5977_v1  ;;  %v6156_v49 = vmax.f32 %v6092_v42, 0.0 }
 0x999   : > { %v20332_v17 = vpop.f32.mrb[120].mxu0 }
 0x99a   : > { %v5716_v33 = vpop.f32.mrb[121].mxu0  ;;  %v6157_v47 = vmax.f32 %v6093_v46, 0.0 }
 0x99b   : > { %v20334_v23 = vpop.f32.mrb[122].mxu0  ;;  %v5981_v21 = vpop.f32.mrb[164].mxu1 }
 0x99c   : > { %v5982_v44 = vadd.f32 %v16797_v54, %v5981_v21  ;;  %v5719_v30 = vpop.f32.mrb[123].mxu0  ;;  %v5983_v50 = vpop.f32.mrb[165].mxu1  ;;  %v6196_v52 = vpack.c.bf16 %v6157_v47, %v6156_v49 }
 0x99d   : > { %v5984_v60 = vpop.f32.mrb[166].mxu1 }
 0x99e   : > { %v6094_v51 = vadd.f32 %v20193_v41, %v5982_v44  ;;  %v5985_v14 = vadd.f32 %v20315_v2, %v5984_v60  ;;  %v5986_v36 = vpop.f32.mrb[167].mxu1  ;;  %16875 = vmatprep.mubr.bf16.mxu0 %v6196_v52  ;;  %v18652_v44 = vld [vmem:[%s22031_s4 + $0x388] sm:$0xff]  }
 0x99f   : > { %16973 = vmatprep.subr.bf16.mxu1 %v18652_v44 }
 0x9a0   : > { %v6095_v43 = vadd.f32 %v20193_v41, %v5985_v14  ;;  %v6158_v56 = vmax.f32 %v6094_v51, 0.0  ;;  %16974 = vmatpush3.bf16.msra.mxu1 %v18652_v44 }
 0x9a2   : > { %v6159_v54 = vmax.f32 %v6095_v43, 0.0 }
 0x9a3   : > { %v5989_v59 = vpop.f32.mrb[168].mxu1 }
 0x9a4   : > { %v6197_v16 = vpack.c.bf16 %v6159_v54, %v6158_v56  ;;  %v5990_v55 = vadd.f32 %v5989_v59, %v5700_v5  ;;  %v5991_v38 = vpop.f32.mrb[169].mxu1 }
 0x9a5   : > { %v5992_v0 = vpop.f32.mrb[170].mxu1 }
 0x9a6   : > { %v5993_v8 = vadd.f32 %v5992_v0, %v5703_v3  ;;  %v5994_v22 = vpop.f32.mrb[171].mxu1  ;;  %16876 = vmatmul.mubr.bf16.gmra.mrb[176].mxu0 %v6197_v16  ;;  %v6096_v7 = vadd.f32 %v20193_v41, %v5990_v55 }
 0x9a8   : > { %v6097_v2 = vadd.f32 %v20193_v41, %v5993_v8  ;;  %v6160_v13 = vmax.f32 %v6096_v7, 0.0 }
 0x9a9   : > { %v20344_v28 = vpop.f32.mrb[124].mxu0 }
 0x9aa   : > { %v5732_v18 = vpop.f32.mrb[125].mxu0  ;;  %v6161_v12 = vmax.f32 %v6097_v2, 0.0 }
 0x9ab   : > { %v20346_v15 = vpop.f32.mrb[126].mxu0  ;;  %v5997_v48 = vpop.f32.mrb[172].mxu1 }
 0x9ac   : > { %v5998_v53 = vadd.f32 %v20323_v20, %v5997_v48  ;;  %v5735_v19 = vpop.f32.mrb[127].mxu0  ;;  %v5999_v57 = vpop.f32.mrb[173].mxu1  ;;  %v6198_v4 = vpack.c.bf16 %v6161_v12, %v6160_v13 }
 0x9ad   : > { %v6000_v5 = vpop.f32.mrb[174].mxu1 }
 0x9ae   : > { %v6098_v35 = vadd.f32 %v20193_v41, %v5998_v53  ;;  %v6001_v6 = vadd.f32 %v20325_v63, %v6000_v5  ;;  %v6002_v11 = vpop.f32.mrb[175].mxu1  ;;  %16879 = vmatprep.mubr.bf16.mxu0 %v6198_v4  ;;  %v20356_v63 = vld [vmem:[%s22033_s6 + $0xa] ss:$0 sm:$0xff] }
 0x9b0   : > { %v6099_v24 = vadd.f32 %v20193_v41, %v6001_v6  ;;  %v6162_v3 = vmax.f32 %v6098_v35, 0.0 }
 0x9b2   : > { %v6163_v58 = vmax.f32 %v6099_v24, 0.0 }
 0x9b3   : > { %v6005_v62 = vpop.f32.mrb[176].mxu1 }
 0x9b4   : > { %v6199_v10 = vpack.c.bf16 %v6163_v58, %v6162_v3  ;;  %v6006_v9 = vadd.f32 %v6005_v62, %v5716_v33  ;;  %v6007_v32 = vpop.f32.mrb[177].mxu1 }
 0x9b5   : > { %v6008_v25 = vpop.f32.mrb[178].mxu1 }
 0x9b6   : > { %v6009_v20 = vadd.f32 %v6008_v25, %v5719_v30  ;;  %v6010_v61 = vpop.f32.mrb[179].mxu1  ;;  %16880 = vmatmul.mubr.bf16.gmra.mrb[180].mxu0 %v6199_v10  ;;  %v6100_v29 = vadd.f32 %v20193_v41, %v6006_v9 }
 0x9b8   : > { %v6101_v40 = vadd.f32 %v20193_v41, %v6009_v20  ;;  %v6164_v26 = vmax.f32 %v6100_v29, 0.0 }
 0x9b9   : > { %v16829_v34 = vpop.f32.mrb[128].mxu0 }
 0x9ba   : > { %v6320_v39 = vadd.f32 %v16829_v34, %v20356_v63  ;;  %v6311_v37 = vpop.f32.mrb[129].mxu0  ;;  %v6165_v31 = vmax.f32 %v6101_v40, 0.0 }
 0x9bb   : > { %v6312_v1 = vadd.f32 %v20356_v63, %v6311_v37  ;;  %v6013_v45 = vpop.f32.mrb[180].mxu1  ;;  %v16830_v42 = vpop.f32.mrb[130].mxu0 }
 0x9bc   : > { %v6014_v46 = vadd.f32 %v20332_v17, %v6013_v45  ;;  %v6323_v33 = vadd.f32 %v16830_v42, %v20356_v63  ;;  %v6015_v49 = vpop.f32.mrb[181].mxu1  ;;  %v6314_v47 = vpop.f32.mrb[131].mxu0  ;;  %v6200_v21 = vpack.c.bf16 %v6165_v31, %v6164_v26  ;;  %v6568_v52 = vmax.f32 %v6320_v39, 0.0 }
 0x9bd   : > { %v6315_v30 = vadd.f32 %v20356_v63, %v6314_v47  ;;  %v6016_v50 = vpop.f32.mrb[182].mxu1  ;;  %v6566_v17 = vmax.f32 %v6312_v1, 0.0 }
 0x9be   : > { %v6102_v27 = vadd.f32 %v20193_v41, %v6014_v46  ;;  %v6569_v60 = vmax.f32 %v6323_v33, 0.0  ;;  %v6017_v51 = vadd.f32 %v20334_v23, %v6016_v50  ;;  %v6018_v14 = vpop.f32.mrb[183].mxu1  ;;  %16883 = vmatprep.mubr.bf16.mxu0 %v6200_v21 }
 0x9bf   : > { %v6567_v36 = vmax.f32 %v6315_v30, 0.0 }
 0x9c0   : > { %v6631_v43 = vpack.c.bf16 %v6569_v60, %v6568_v52  ;;  %v6103_v56 = vadd.f32 %v20193_v41, %v6017_v51  ;;  %v6166_v59 = vmax.f32 %v6102_v27, 0.0 }
 0x9c1   : > { %v6630_v54 = vpack.c.bf16 %v6567_v36, %v6566_v17 }
 0x9c2   : > { %v6167_v16 = vmax.f32 %v6103_v56, 0.0 }
 0x9c3   : > { %v6021_v55 = vpop.f32.mrb[184].mxu1 }
 0x9c4   : > { %v6201_v38 = vpack.c.bf16 %v6167_v16, %v6166_v59  ;;  %v6022_v0 = vadd.f32 %v6021_v55, %v5732_v18  ;;  %v6023_v8 = vpop.f32.mrb[185].mxu1 }
 0x9c5   : > { %v6024_v22 = vpop.f32.mrb[186].mxu1 }
 0x9c6   : > { %v6025_v7 = vadd.f32 %v6024_v22, %v5735_v19  ;;  %v6026_v2 = vpop.f32.mrb[187].mxu1  ;;  %16884 = vmatmul.mubr.bf16.gmra.mrb[184].mxu0 %v6201_v38  ;;  %v6104_v23 = vadd.f32 %v20193_v41, %v6022_v0 }
 0x9c8   : > { %v6105_v13 = vadd.f32 %v20193_v41, %v6025_v7  ;;  %v6168_v57 = vmax.f32 %v6104_v23, 0.0 }
 0x9c9   : > { %v16833_v12 = vpop.f32.mrb[132].mxu0 }
 0x9ca   : > { %v6336_v48 = vadd.f32 %v16833_v12, %v20356_v63  ;;  %v6327_v53 = vpop.f32.mrb[133].mxu0  ;;  %v6169_v4 = vmax.f32 %v6105_v13, 0.0 }
 0x9cb   : > { %v6328_v5 = vadd.f32 %v20356_v63, %v6327_v53  ;;  %v6029_v35 = vpop.f32.mrb[188].mxu1  ;;  %v16834_v6 = vpop.f32.mrb[134].mxu0 }
 0x9cc   : > { %v6030_v18 = vadd.f32 %v20344_v28, %v6029_v35  ;;  %v6339_v19 = vadd.f32 %v16834_v6, %v20356_v63  ;;  %v6031_v11 = vpop.f32.mrb[189].mxu1  ;;  %v6330_v24 = vpop.f32.mrb[135].mxu0  ;;  %v6202_v3 = vpack.c.bf16 %v6169_v4, %v6168_v57  ;;  %v6572_v10 = vmax.f32 %v6336_v48, 0.0  ;;  %v18654_v48 = vld [vmem:[%s22031_s4 + $0x398] sm:$0xff]  }
 0x9cd   : > { %v6331_v58 = vadd.f32 %v20356_v63, %v6330_v24  ;;  %v6032_v62 = vpop.f32.mrb[190].mxu1  ;;  %v6570_v61 = vmax.f32 %v6328_v5, 0.0 }
 0x9ce   : > { %v6106_v9 = vadd.f32 %v20193_v41, %v6030_v18  ;;  %v6573_v32 = vmax.f32 %v6339_v19, 0.0  ;;  %v6033_v25 = vadd.f32 %v20346_v15, %v6032_v62  ;;  %v6034_v20 = vpop.f32.mrb[191].mxu1  ;;  %16887 = vmatprep.mubr.bf16.mxu0 %v6202_v3 }
 0x9cf   : > { %v6571_v29 = vmax.f32 %v6331_v58, 0.0 }
 0x9d0   : > { %v6633_v40 = vpack.c.bf16 %v6573_v32, %v6572_v10  ;;  %v6107_v28 = vadd.f32 %v20193_v41, %v6033_v25  ;;  %v6170_v39 = vmax.f32 %v6106_v9, 0.0  ;;  %v18653_v41 = vld [vmem:[%s22031_s4 + $0x390] sm:$0xff]  }
 0x9d1   : > { %v6632_v34 = vpack.c.bf16 %v6571_v29, %v6570_v61  ;;  %16975 = vmatprep.subr.bf16.mxu1 %v18653_v41 }
 0x9d2   : > { %v6171_v37 = vmax.f32 %v6107_v28, 0.0  ;;  %16976 = vmatpush3.bf16.msra.mxu1 %v18653_v41 }
 0x9d3   : > { %16977 = vmatprep.subr.bf16.mxu1 %v18654_v48 }
 0x9d4   : > { %v6203_v26 = vpack.c.bf16 %v6171_v37, %v6170_v39 }
 0x9d6   : > { %16888 = vmatmul.mubr.bf16.gmra.mrb[188].mxu0 %v6203_v26  ;;  %16978 = vmatpush3.bf16.msra.mxu1 %v18654_v48 }
 0x9d7   : > { %16907 = vmatprep.mubr.bf16.mxu0 %v6630_v54 }
 0x9d9   : > { %v16837_v31 = vpop.f32.mrb[136].mxu0 }
 0x9da   : > { %v6352_v1 = vadd.f32 %v16837_v31, %v20356_v63  ;;  %v6343_v45 = vpop.f32.mrb[137].mxu0 }
 0x9db   : > { %v6344_v42 = vadd.f32 %v20356_v63, %v6343_v45  ;;  %v16838_v15 = vpop.f32.mrb[138].mxu0  ;;  %v18655_v45 = vld [vmem:[%s22031_s4 + $0x3a0] sm:$0xff]  }
 0x9dc   : > { %v6355_v46 = vadd.f32 %v16838_v15, %v20356_v63  ;;  %v6346_v33 = vpop.f32.mrb[139].mxu0  ;;  %v6576_v47 = vmax.f32 %v6352_v1, 0.0  ;;  %16979 = vmatprep.subr.bf16.mxu1 %v18655_v45 }
 0x9dd   : > { %v6347_v49 = vadd.f32 %v20356_v63, %v6346_v33  ;;  %v6574_v44 = vmax.f32 %v6344_v42, 0.0  ;;  %16980 = vmatpush3.bf16.msra.mxu1 %v18655_v45 }
 0x9de   : > { %v6577_v21 = vmax.f32 %v6355_v46, 0.0  ;;  %16908 = vmatmul.mubr.bf16.vlgmr.msra.gmra.mrb[192].mxu0 %v6631_v43 }
 0x9df   : > { %v6575_v30 = vmax.f32 %v6347_v49, 0.0  ;;  %16911 = vmatprep.mubr.bf16.mxu0 %v6632_v34 }
 0x9e0   : > { %v6635_v50 = vpack.c.bf16 %v6577_v21, %v6576_v47 }
 0x9e1   : > { %v6634_v52 = vpack.c.bf16 %v6575_v30, %v6574_v44 }
 0x9e6   : > { %16912 = vmatmul.mubr.bf16.gmra.mrb[196].mxu0 %v6633_v40 }
 0x9e7   : > { %16915 = vmatprep.mubr.bf16.mxu0 %v6634_v52 }
 0x9e9   : > { %v16841_v27 = vpop.f32.mrb[140].mxu0 }
 0x9ea   : > { %v6368_v60 = vadd.f32 %v16841_v27, %v20356_v63  ;;  %v6359_v51 = vpop.f32.mrb[141].mxu0 }
 0x9eb   : > { %v6360_v14 = vadd.f32 %v20356_v63, %v6359_v51  ;;  %v16842_v17 = vpop.f32.mrb[142].mxu0 }
 0x9ec   : > { %v6371_v36 = vadd.f32 %v16842_v17, %v20356_v63  ;;  %v6362_v56 = vpop.f32.mrb[143].mxu0  ;;  %v6580_v54 = vmax.f32 %v6368_v60, 0.0 }
 0x9ed   : > { %v6363_v43 = vadd.f32 %v20356_v63, %v6362_v56  ;;  %v6578_v16 = vmax.f32 %v6360_v14, 0.0 }
 0x9ee   : > { %v6581_v59 = vmax.f32 %v6371_v36, 0.0  ;;  %16916 = vmatmul.mubr.bf16.gmra.mrb[200].mxu0 %v6635_v50  ;;  %v18656_v36 = vld [vmem:[%s22031_s4 + $0x3a8] sm:$0xff]  }
 0x9ef   : > { %v6579_v55 = vmax.f32 %v6363_v43, 0.0  ;;  %16981 = vmatprep.subr.bf16.mxu1 %v18656_v36 }
 0x9f0   : > { %v6637_v38 = vpack.c.bf16 %v6581_v59, %v6580_v54  ;;  %16982 = vmatpush3.bf16.msra.mxu1 %v18656_v36 }
 0x9f1   : > { %v6636_v0 = vpack.c.bf16 %v6579_v55, %v6578_v16  ;;  %v18657_v16 = vld [vmem:[%s22031_s4 + $0x3b0] sm:$0xff]   ;;  %v18658_v55 = vld [vmem:[%s22031_s4 + $0x3b8] sm:$0xff]  }
 0x9f2   : > { %16983 = vmatprep.subr.bf16.mxu1 %v18657_v16 }
 0x9f3   : > { %16919 = vmatprep.mubr.bf16.mxu0 %v6636_v0 }
 0x9f4   : > { %16984 = vmatpush3.bf16.msra.mxu1 %v18657_v16 }
 0x9f5   : > { %16985 = vmatprep.subr.bf16.mxu1 %v18658_v55 }
 0x9f6   : > { %16920 = vmatmul.mubr.bf16.gmra.mrb[204].mxu0 %v6637_v38 }
 0x9f8   : > { %16986 = vmatpush3.bf16.msra.mxu1 %v18658_v55 }
 0x9f9   : > { %v16845_v8 = vpop.f32.mrb[144].mxu0 }
 0x9fa   : > { %v6384_v22 = vadd.f32 %v16845_v8, %v20356_v63  ;;  %v6375_v7 = vpop.f32.mrb[145].mxu0 }
 0x9fb   : > { %v6376_v2 = vadd.f32 %v20356_v63, %v6375_v7  ;;  %v16846_v23 = vpop.f32.mrb[146].mxu0 }
 0x9fc   : > { %v6387_v13 = vadd.f32 %v16846_v23, %v20356_v63  ;;  %v6378_v12 = vpop.f32.mrb[147].mxu0  ;;  %v6584_v57 = vmax.f32 %v6384_v22, 0.0 }
 0x9fd   : > { %v6379_v53 = vadd.f32 %v20356_v63, %v6378_v12  ;;  %v6582_v5 = vmax.f32 %v6376_v2, 0.0 }
 0x9fe   : > { %v6585_v4 = vmax.f32 %v6387_v13, 0.0 }
 0x9ff   : > { %v6583_v35 = vmax.f32 %v6379_v53, 0.0 }
 0xa00   : > { %v6639_v6 = vpack.c.bf16 %v6585_v4, %v6584_v57 }
 0xa01   : > { %v6638_v18 = vpack.c.bf16 %v6583_v35, %v6582_v5 }
 0xa03   : > { %16923 = vmatprep.mubr.bf16.mxu0 %v6638_v18 }
 0xa04   : > { %16924 = vmatmul.mubr.bf16.gmra.mrb[208].mxu0 %v6639_v6 }
 0xa09   : > { %v16849_v19 = vpop.f32.mrb[148].mxu0 }
 0xa0a   : > { %v6400_v11 = vadd.f32 %v16849_v19, %v20356_v63  ;;  %v6391_v24 = vpop.f32.mrb[149].mxu0 }
 0xa0b   : > { %v6392_v3 = vadd.f32 %v20356_v63, %v6391_v24  ;;  %v16850_v58 = vpop.f32.mrb[150].mxu0 }
 0xa0c   : > { %v6403_v62 = vadd.f32 %v16850_v58, %v20356_v63  ;;  %v6394_v10 = vpop.f32.mrb[151].mxu0  ;;  %v6588_v32 = vmax.f32 %v6400_v11, 0.0 }
 0xa0d   : > { %v6395_v9 = vadd.f32 %v20356_v63, %v6394_v10  ;;  %v6586_v20 = vmax.f32 %v6392_v3, 0.0 }
 0xa0e   : > { %v6589_v25 = vmax.f32 %v6403_v62, 0.0 }
 0xa0f   : > { %v6587_v61 = vmax.f32 %v6395_v9, 0.0 }
 0xa10   : > { %v6641_v29 = vpack.c.bf16 %v6589_v25, %v6588_v32 }
 0xa11   : > { %v6640_v40 = vpack.c.bf16 %v6587_v61, %v6586_v20 }
 0xa13   : > { %16927 = vmatprep.mubr.bf16.mxu0 %v6640_v40 }
 0xa14   : > { %16928 = vmatmul.mubr.bf16.gmra.mrb[212].mxu0 %v6641_v29 }
 0xa19   : > { %v16853_v28 = vpop.f32.mrb[152].mxu0 }
 0xa1a   : > { %v6416_v34 = vadd.f32 %v16853_v28, %v20356_v63  ;;  %v6407_v39 = vpop.f32.mrb[153].mxu0 }
 0xa1b   : > { %v6408_v37 = vadd.f32 %v20356_v63, %v6407_v39  ;;  %v16854_v26 = vpop.f32.mrb[154].mxu0 }
 0xa1c   : > { %v6419_v31 = vadd.f32 %v16854_v26, %v20356_v63  ;;  %v6410_v1 = vpop.f32.mrb[155].mxu0  ;;  %v6592_v15 = vmax.f32 %v6416_v34, 0.0 }
 0xa1d   : > { %v6411_v42 = vadd.f32 %v20356_v63, %v6410_v1  ;;  %v6590_v33 = vmax.f32 %v6408_v37, 0.0 }
 0xa1e   : > { %v6593_v46 = vmax.f32 %v6419_v31, 0.0 }
 0xa1f   : > { %v6591_v41 = vmax.f32 %v6411_v42, 0.0 }
 0xa20   : > { %v6643_v49 = vpack.c.bf16 %v6593_v46, %v6592_v15 }
 0xa21   : > { %v6642_v47 = vpack.c.bf16 %v6591_v41, %v6590_v33 }
 0xa23   : > { %16931 = vmatprep.mubr.bf16.mxu0 %v6642_v47 }
 0xa24   : > { %16932 = vmatmul.mubr.bf16.gmra.mrb[216].mxu0 %v6643_v49 }
 0xa29   : > { %v16857_v21 = vpop.f32.mrb[156].mxu0 }
 0xa2a   : > { %v6432_v44 = vadd.f32 %v16857_v21, %v20356_v63  ;;  %v6423_v30 = vpop.f32.mrb[157].mxu0 }
 0xa2b   : > { %v6424_v50 = vadd.f32 %v20356_v63, %v6423_v30  ;;  %v16858_v52 = vpop.f32.mrb[158].mxu0 }
 0xa2c   : > { %v6435_v27 = vadd.f32 %v16858_v52, %v20356_v63  ;;  %v6426_v60 = vpop.f32.mrb[159].mxu0  ;;  %v6596_v14 = vmax.f32 %v6432_v44, 0.0 }
 0xa2d   : > { %v6427_v51 = vadd.f32 %v20356_v63, %v6426_v60  ;;  %v6594_v56 = vmax.f32 %v6424_v50, 0.0 }
 0xa2e   : > { %v6597_v17 = vmax.f32 %v6435_v27, 0.0 }
 0xa2f   : > { %v6595_v43 = vmax.f32 %v6427_v51, 0.0 }
 0xa30   : > { %v6645_v54 = vpack.c.bf16 %v6597_v17, %v6596_v14 }
 0xa31   : > { %v6644_v59 = vpack.c.bf16 %v6595_v43, %v6594_v56 }
 0xa33   : > { %16935 = vmatprep.mubr.bf16.mxu0 %v6644_v59 }
 0xa34   : > { %16936 = vmatmul.mubr.bf16.gmra.mrb[220].mxu0 %v6645_v54 }
 0xa39   : > { %v16861_v38 = vpop.f32.mrb[160].mxu0 }
 0xa3a   : > { %v6448_v0 = vadd.f32 %v16861_v38, %v20356_v63  ;;  %v6439_v8 = vpop.f32.mrb[161].mxu0 }
 0xa3b   : > { %v6440_v22 = vadd.f32 %v20356_v63, %v6439_v8  ;;  %v16862_v7 = vpop.f32.mrb[162].mxu0 }
 0xa3c   : > { %v6451_v2 = vadd.f32 %v16862_v7, %v20356_v63  ;;  %v6442_v23 = vpop.f32.mrb[163].mxu0  ;;  %v6600_v12 = vmax.f32 %v6448_v0, 0.0 }
 0xa3d   : > { %v6443_v13 = vadd.f32 %v20356_v63, %v6442_v23  ;;  %v6598_v53 = vmax.f32 %v6440_v22, 0.0 }
 0xa3e   : > { %v6601_v48 = vmax.f32 %v6451_v2, 0.0 }
 0xa3f   : > { %v6599_v57 = vmax.f32 %v6443_v13, 0.0 }
 0xa40   : > { %v6647_v4 = vpack.c.bf16 %v6601_v48, %v6600_v12 }
 0xa41   : > { %v6646_v5 = vpack.c.bf16 %v6599_v57, %v6598_v53 }
 0xa43   : > { %16939 = vmatprep.mubr.bf16.mxu0 %v6646_v5 }
 0xa44   : > { %16940 = vmatmul.mubr.bf16.gmra.mrb[224].mxu0 %v6647_v4 }
 0xa49   : > { %v16865_v35 = vpop.f32.mrb[164].mxu0 }
 0xa4a   : > { %v6464_v6 = vadd.f32 %v16865_v35, %v20356_v63  ;;  %v6455_v18 = vpop.f32.mrb[165].mxu0 }
 0xa4b   : > { %v6456_v19 = vadd.f32 %v20356_v63, %v6455_v18  ;;  %v16866_v11 = vpop.f32.mrb[166].mxu0 }
 0xa4c   : > { %v6467_v24 = vadd.f32 %v16866_v11, %v20356_v63  ;;  %v6458_v3 = vpop.f32.mrb[167].mxu0  ;;  %v6604_v62 = vmax.f32 %v6464_v6, 0.0 }
 0xa4d   : > { %v6459_v58 = vadd.f32 %v20356_v63, %v6458_v3  ;;  %v6602_v9 = vmax.f32 %v6456_v19, 0.0 }
 0xa4e   : > { %v6605_v10 = vmax.f32 %v6467_v24, 0.0 }
 0xa4f   : > { %v6603_v32 = vmax.f32 %v6459_v58, 0.0 }
 0xa50   : > { %v6649_v25 = vpack.c.bf16 %v6605_v10, %v6604_v62 }
 0xa51   : > { %v6648_v20 = vpack.c.bf16 %v6603_v32, %v6602_v9 }
 0xa53   : > { %16943 = vmatprep.mubr.bf16.mxu0 %v6648_v20 }
 0xa54   : > { %16944 = vmatmul.mubr.bf16.gmra.mrb[228].mxu0 %v6649_v25 }
 0xa59   : > { %v16869_v61 = vpop.f32.mrb[168].mxu0 }
 0xa5a   : > { %v6480_v29 = vadd.f32 %v16869_v61, %v20356_v63  ;;  %v6471_v40 = vpop.f32.mrb[169].mxu0 }
 0xa5b   : > { %v6472_v28 = vadd.f32 %v20356_v63, %v6471_v40  ;;  %v16870_v34 = vpop.f32.mrb[170].mxu0 }
 0xa5c   : > { %v6483_v39 = vadd.f32 %v16870_v34, %v20356_v63  ;;  %v6474_v37 = vpop.f32.mrb[171].mxu0  ;;  %v6608_v31 = vmax.f32 %v6480_v29, 0.0 }
 0xa5d   : > { %v6475_v26 = vadd.f32 %v20356_v63, %v6474_v37  ;;  %v6606_v45 = vmax.f32 %v6472_v28, 0.0  ;;  %v18659_v28 = vld [vmem:[%s22032_s5 + $0x8] sm:$0xff]  }
 0xa5e   : > { %v6609_v1 = vmax.f32 %v6483_v39, 0.0  ;;  %17051 = vmatprep.subr.bf16.mxu1 %v18659_v28 }
 0xa5f   : > { %v6607_v42 = vmax.f32 %v6475_v26, 0.0 }
 0xa60   : > { %v6651_v15 = vpack.c.bf16 %v6609_v1, %v6608_v31 }
 0xa61   : > { %v6650_v46 = vpack.c.bf16 %v6607_v42, %v6606_v45 }
 0xa63   : > { %16947 = vmatprep.mubr.bf16.mxu0 %v6650_v46 }
 0xa64   : > { %16948 = vmatmul.mubr.bf16.gmra.mrb[232].mxu0 %v6651_v15 }
 0xa69   : > { %v16873_v33 = vpop.f32.mrb[172].mxu0 }
 0xa6a   : > { %v6496_v41 = vadd.f32 %v16873_v33, %v20356_v63  ;;  %v6487_v49 = vpop.f32.mrb[173].mxu0 }
 0xa6b   : > { %v6488_v47 = vadd.f32 %v20356_v63, %v6487_v49  ;;  %v16874_v21 = vpop.f32.mrb[174].mxu0 }
 0xa6c   : > { %v6499_v44 = vadd.f32 %v16874_v21, %v20356_v63  ;;  %v6490_v30 = vpop.f32.mrb[175].mxu0  ;;  %v6612_v52 = vmax.f32 %v6496_v41, 0.0 }
 0xa6d   : > { %v6491_v50 = vadd.f32 %v20356_v63, %v6490_v30  ;;  %v6610_v60 = vmax.f32 %v6488_v47, 0.0  ;;  %v20460_v30 = vld [vmem:[%s22033_s6 + $0xb] ss:$0 sm:$0xff] }
 0xa6e   : > { %v6613_v27 = vmax.f32 %v6499_v44, 0.0 }
 0xa6f   : > { %v6611_v51 = vmax.f32 %v6491_v50, 0.0 }
 0xa70   : > { %v6653_v14 = vpack.c.bf16 %v6613_v27, %v6612_v52 }
 0xa71   : > { %v6652_v17 = vpack.c.bf16 %v6611_v51, %v6610_v60 }
 0xa73   : > { %16951 = vmatprep.mubr.bf16.mxu0 %v6652_v17 }
 0xa74   : > { %16952 = vmatmul.mubr.bf16.gmra.mrb[236].mxu0 %v6653_v14 }
 0xa79   : > { %v16877_v36 = vpop.f32.mrb[176].mxu0 }
 0xa7a   : > { %v6512_v56 = vadd.f32 %v16877_v36, %v20356_v63  ;;  %v6503_v43 = vpop.f32.mrb[177].mxu0 }
 0xa7b   : > { %v6504_v54 = vadd.f32 %v20356_v63, %v6503_v43  ;;  %v16878_v59 = vpop.f32.mrb[178].mxu0 }
 0xa7c   : > { %v6515_v16 = vadd.f32 %v16878_v59, %v20356_v63  ;;  %v6506_v55 = vpop.f32.mrb[179].mxu0  ;;  %v6616_v0 = vmax.f32 %v6512_v56, 0.0 }
 0xa7d   : > { %v6507_v38 = vadd.f32 %v20356_v63, %v6506_v55  ;;  %v6614_v22 = vmax.f32 %v6504_v54, 0.0 }
 0xa7e   : > { %v6617_v8 = vmax.f32 %v6515_v16, 0.0 }
 0xa7f   : > { %v6615_v7 = vmax.f32 %v6507_v38, 0.0 }
 0xa80   : > { %v6655_v2 = vpack.c.bf16 %v6617_v8, %v6616_v0 }
 0xa81   : > { %v6654_v23 = vpack.c.bf16 %v6615_v7, %v6614_v22 }
 0xa83   : > { %16955 = vmatprep.mubr.bf16.mxu0 %v6654_v23 }
 0xa84   : > { %16956 = vmatmul.mubr.bf16.gmra.mrb[240].mxu0 %v6655_v2 }
 0xa89   : > { %v16881_v13 = vpop.f32.mrb[180].mxu0 }
 0xa8a   : > { %v6528_v12 = vadd.f32 %v16881_v13, %v20356_v63  ;;  %v6519_v48 = vpop.f32.mrb[181].mxu0 }
 0xa8b   : > { %v6520_v53 = vadd.f32 %v20356_v63, %v6519_v48  ;;  %v16882_v57 = vpop.f32.mrb[182].mxu0 }
 0xa8c   : > { %v6531_v4 = vadd.f32 %v16882_v57, %v20356_v63  ;;  %v6522_v5 = vpop.f32.mrb[183].mxu0  ;;  %v6620_v6 = vmax.f32 %v6528_v12, 0.0 }
 0xa8d   : > { %v6523_v35 = vadd.f32 %v20356_v63, %v6522_v5  ;;  %v6618_v19 = vmax.f32 %v6520_v53, 0.0 }
 0xa8e   : > { %v6621_v18 = vmax.f32 %v6531_v4, 0.0 }
 0xa8f   : > { %v6619_v11 = vmax.f32 %v6523_v35, 0.0 }
 0xa90   : > { %v6657_v24 = vpack.c.bf16 %v6621_v18, %v6620_v6 }
 0xa91   : > { %v6656_v3 = vpack.c.bf16 %v6619_v11, %v6618_v19 }
 0xa93   : > { %16959 = vmatprep.mubr.bf16.mxu0 %v6656_v3 }
 0xa94   : > { %16960 = vmatmul.mubr.bf16.gmra.mrb[244].mxu0 %v6657_v24 }
 0xa99   : > { %v16885_v58 = vpop.f32.mrb[184].mxu0 }
 0xa9a   : > { %v6544_v62 = vadd.f32 %v16885_v58, %v20356_v63  ;;  %v6535_v10 = vpop.f32.mrb[185].mxu0 }
 0xa9b   : > { %v6536_v9 = vadd.f32 %v20356_v63, %v6535_v10  ;;  %v16886_v32 = vpop.f32.mrb[186].mxu0 }
 0xa9c   : > { %v6547_v25 = vadd.f32 %v16886_v32, %v20356_v63  ;;  %v6538_v20 = vpop.f32.mrb[187].mxu0  ;;  %v6624_v29 = vmax.f32 %v6544_v62, 0.0 }
 0xa9d   : > { %v6539_v61 = vadd.f32 %v20356_v63, %v6538_v20  ;;  %v6622_v34 = vmax.f32 %v6536_v9, 0.0 }
 0xa9e   : > { %v6625_v40 = vmax.f32 %v6547_v25, 0.0 }
 0xa9f   : > { %v6623_v39 = vmax.f32 %v6539_v61, 0.0 }
 0xaa0   : > { %v6659_v37 = vpack.c.bf16 %v6625_v40, %v6624_v29 }
 0xaa1   : > { %v6658_v26 = vpack.c.bf16 %v6623_v39, %v6622_v34 }
 0xaa3   : > { %16963 = vmatprep.mubr.bf16.mxu0 %v6658_v26 }
 0xaa4   : > { %16964 = vmatmul.mubr.bf16.gmra.mrb[248].mxu0 %v6659_v37 }
 0xaa9   : > { %v16889_v31 = vpop.f32.mrb[188].mxu0 }
 0xaaa   : > { %v6560_v1 = vadd.f32 %v16889_v31, %v20356_v63  ;;  %v6551_v45 = vpop.f32.mrb[189].mxu0 }
 0xaab   : > { %v6552_v42 = vadd.f32 %v20356_v63, %v6551_v45  ;;  %v16890_v15 = vpop.f32.mrb[190].mxu0 }
 0xaac   : > { %v6563_v46 = vadd.f32 %v16890_v15, %v20356_v63  ;;  %v6554_v33 = vpop.f32.mrb[191].mxu0  ;;  %v6628_v49 = vmax.f32 %v6560_v1, 0.0 }
 0xaad   : > { %v6555_v41 = vadd.f32 %v20356_v63, %v6554_v33  ;;  %v6626_v21 = vmax.f32 %v6552_v42, 0.0 }
 0xaae   : > { %v6629_v47 = vmax.f32 %v6563_v46, 0.0 }
 0xaaf   : > { %v6627_v44 = vmax.f32 %v6555_v41, 0.0 }
 0xab0   : > { %v6661_v50 = vpack.c.bf16 %v6629_v47, %v6628_v49 }
 0xab1   : > { %v16909_v52 = vpop.f32.mrb[192].mxu0  ;;  %v6660_v27 = vpack.c.bf16 %v6627_v44, %v6626_v21 }
 0xab2   : > { %v6778_v60 = vadd.f32 %v16909_v52, %v20460_v30  ;;  %v6769_v51 = vpop.f32.mrb[193].mxu0 }
 0xab3   : > { %v6770_v14 = vadd.f32 %v20460_v30, %v6769_v51  ;;  %v16910_v17 = vpop.f32.mrb[194].mxu0  ;;  %16967 = vmatprep.mubr.bf16.mxu0 %v6660_v27 }
 0xab4   : > { %v6781_v63 = vadd.f32 %v16910_v17, %v20460_v30  ;;  %v6772_v36 = vpop.f32.mrb[195].mxu0  ;;  %16968 = vmatmul.mubr.bf16.gmra.mrb[252].mxu0 %v6661_v50  ;;  %v7026_v43 = vmax.f32 %v6778_v60, 0.0 }
 0xab5   : > { %v6773_v56 = vadd.f32 %v20460_v30, %v6772_v36  ;;  %v7024_v59 = vmax.f32 %v6770_v14, 0.0 }
 0xab6   : > { %v7027_v54 = vmax.f32 %v6781_v63, 0.0 }
 0xab7   : > { %v7025_v16 = vmax.f32 %v6773_v56, 0.0 }
 0xab8   : > { %v20466_v55 = vpack.c.bf16 %v7027_v54, %v7026_v43 }
 0xab9   : > { %v16913_v38 = vpop.f32.mrb[196].mxu0  ;;  %v20468_v0 = vpack.c.bf16 %v7025_v16, %v7024_v59 }
 0xaba   : > { %v6794_v8 = vadd.f32 %v16913_v38, %v20460_v30  ;;  %v6785_v22 = vpop.f32.mrb[197].mxu0 }
 0xabb   : > { %v6786_v7 = vadd.f32 %v20460_v30, %v6785_v22  ;;  %v16914_v2 = vpop.f32.mrb[198].mxu0  ;;  %16987 = vmatprep.mubr.bf16.mxu1 %v20468_v0 }
 0xabc   : > { %v6797_v23 = vadd.f32 %v16914_v2, %v20460_v30  ;;  %v6788_v13 = vpop.f32.mrb[199].mxu0  ;;  %16988 = vmatmul.mubr.bf16.vlgmr.msra.gmra.mrb[192].mxu1 %v20466_v55  ;;  %v7030_v48 = vmax.f32 %v6794_v8, 0.0 }
 0xabd   : > { %v6789_v12 = vadd.f32 %v20460_v30, %v6788_v13  ;;  %17052 = vmatpush3.bf16.msra.mxu1 %v18659_v28  ;;  %v7028_v57 = vmax.f32 %v6786_v7, 0.0 }
 0xabe   : > { %v7031_v53 = vmax.f32 %v6797_v23, 0.0 }
 0xabf   : > { %v7029_v4 = vmax.f32 %v6789_v12, 0.0 }
 0xac0   : > { %v20476_v5 = vpack.c.bf16 %v7031_v53, %v7030_v48 }
 0xac1   : > { %v16917_v35 = vpop.f32.mrb[200].mxu0  ;;  %v20478_v6 = vpack.c.bf16 %v7029_v4, %v7028_v57 }
 0xac2   : > { %v6810_v18 = vadd.f32 %v16917_v35, %v20460_v30  ;;  %v6801_v19 = vpop.f32.mrb[201].mxu0 }
 0xac3   : > { %v6802_v11 = vadd.f32 %v20460_v30, %v6801_v19  ;;  %v16918_v24 = vpop.f32.mrb[202].mxu0  ;;  %16991 = vmatprep.mubr.bf16.mxu1 %v20478_v6 }
 0xac4   : > { %v6813_v3 = vadd.f32 %v16918_v24, %v20460_v30  ;;  %v6804_v58 = vpop.f32.mrb[203].mxu0  ;;  %16992 = vmatmul.mubr.bf16.gmra.mrb[196].mxu1 %v20476_v5  ;;  %v7034_v10 = vmax.f32 %v6810_v18, 0.0 }
 0xac5   : > { %v6805_v62 = vadd.f32 %v20460_v30, %v6804_v58  ;;  %v7032_v32 = vmax.f32 %v6802_v11, 0.0 }
 0xac6   : > { %v7035_v9 = vmax.f32 %v6813_v3, 0.0 }
 0xac7   : > { %v7033_v25 = vmax.f32 %v6805_v62, 0.0 }
 0xac8   : > { %v20486_v20 = vpack.c.bf16 %v7035_v9, %v7034_v10 }
 0xac9   : > { %v16921_v61 = vpop.f32.mrb[204].mxu0  ;;  %v20488_v29 = vpack.c.bf16 %v7033_v25, %v7032_v32 }
 0xaca   : > { %v6826_v40 = vadd.f32 %v16921_v61, %v20460_v30  ;;  %v6817_v28 = vpop.f32.mrb[205].mxu0 }
 0xacb   : > { %v6818_v34 = vadd.f32 %v20460_v30, %v6817_v28  ;;  %v16922_v39 = vpop.f32.mrb[206].mxu0  ;;  %16995 = vmatprep.mubr.bf16.mxu1 %v20488_v29 }
 0xacc   : > { %v6829_v37 = vadd.f32 %v16922_v39, %v20460_v30  ;;  %v6820_v26 = vpop.f32.mrb[207].mxu0  ;;  %16996 = vmatmul.mubr.bf16.gmra.mrb[200].mxu1 %v20486_v20  ;;  %v7038_v1 = vmax.f32 %v6826_v40, 0.0 }
 0xacd   : > { %v6821_v31 = vadd.f32 %v20460_v30, %v6820_v26  ;;  %v7036_v42 = vmax.f32 %v6818_v34, 0.0 }
 0xace   : > { %v7039_v45 = vmax.f32 %v6829_v37, 0.0 }
 0xacf   : > { %v7037_v15 = vmax.f32 %v6821_v31, 0.0 }
 0xad0   : > { %v20496_v46 = vpack.c.bf16 %v7039_v45, %v7038_v1 }
 0xad1   : > { %v20498_v33 = vpack.c.bf16 %v7037_v15, %v7036_v42 }
 0xad3   : > { %16999 = vmatprep.mubr.bf16.mxu1 %v20498_v33 }
 0xad4   : > { %17000 = vmatmul.mubr.bf16.gmra.mrb[204].mxu1 %v20496_v46 }
 0xad7   : > { %v16925_v41 = vpop.f32.mrb[208].mxu0 }
 0xad8   : > { %v6842_v49 = vadd.f32 %v16925_v41, %v20460_v30  ;;  %v6833_v47 = vpop.f32.mrb[209].mxu0 }
 0xad9   : > { %v6834_v21 = vadd.f32 %v20460_v30, %v6833_v47  ;;  %v16926_v44 = vpop.f32.mrb[210].mxu0 }
 0xada   : > { %v6845_v50 = vadd.f32 %v16926_v44, %v20460_v30  ;;  %v6836_v52 = vpop.f32.mrb[211].mxu0  ;;  %v7042_v60 = vmax.f32 %v6842_v49, 0.0 }
 0xadb   : > { %v6837_v27 = vadd.f32 %v20460_v30, %v6836_v52  ;;  %v7040_v14 = vmax.f32 %v6834_v21, 0.0 }
 0xadc   : > { %v7043_v51 = vmax.f32 %v6845_v50, 0.0 }
 0xadd   : > { %v7041_v17 = vmax.f32 %v6837_v27, 0.0 }
 0xade   : > { %v20506_v63 = vpack.c.bf16 %v7043_v51, %v7042_v60 }
 0xadf   : > { %v20508_v36 = vpack.c.bf16 %v7041_v17, %v7040_v14 }
 0xae1   : > { %17003 = vmatprep.mubr.bf16.mxu1 %v20508_v36 }
 0xae2   : > { %17004 = vmatmul.mubr.bf16.gmra.mrb[208].mxu1 %v20506_v63 }
 0xae7   : > { %v16929_v56 = vpop.f32.mrb[212].mxu0 }
 0xae8   : > { %v6858_v43 = vadd.f32 %v16929_v56, %v20460_v30  ;;  %v6849_v54 = vpop.f32.mrb[213].mxu0 }
 0xae9   : > { %v6850_v59 = vadd.f32 %v20460_v30, %v6849_v54  ;;  %v16930_v16 = vpop.f32.mrb[214].mxu0 }
 0xaea   : > { %v6861_v38 = vadd.f32 %v16930_v16, %v20460_v30  ;;  %v6852_v8 = vpop.f32.mrb[215].mxu0  ;;  %v7046_v7 = vmax.f32 %v6858_v43, 0.0 }
 0xaeb   : > { %v6853_v22 = vadd.f32 %v20460_v30, %v6852_v8  ;;  %v7044_v23 = vmax.f32 %v6850_v59, 0.0 }
 0xaec   : > { %v7047_v2 = vmax.f32 %v6861_v38, 0.0 }
 0xaed   : > { %v7045_v13 = vmax.f32 %v6853_v22, 0.0 }
 0xaee   : > { %v20516_v12 = vpack.c.bf16 %v7047_v2, %v7046_v7 }
 0xaef   : > { %v20518_v48 = vpack.c.bf16 %v7045_v13, %v7044_v23 }
 0xaf1   : > { %17007 = vmatprep.mubr.bf16.mxu1 %v20518_v48 }
 0xaf2   : > { %17008 = vmatmul.mubr.bf16.gmra.mrb[212].mxu1 %v20516_v12 }
 0xaf7   : > { %v16933_v53 = vpop.f32.mrb[216].mxu0 }
 0xaf8   : > { %v6874_v57 = vadd.f32 %v16933_v53, %v20460_v30  ;;  %v6865_v4 = vpop.f32.mrb[217].mxu0 }
 0xaf9   : > { %v6866_v35 = vadd.f32 %v20460_v30, %v6865_v4  ;;  %v16934_v18 = vpop.f32.mrb[218].mxu0 }
 0xafa   : > { %v6877_v19 = vadd.f32 %v16934_v18, %v20460_v30  ;;  %v6868_v11 = vpop.f32.mrb[219].mxu0  ;;  %v7050_v3 = vmax.f32 %v6874_v57, 0.0 }
 0xafb   : > { %v6869_v24 = vadd.f32 %v20460_v30, %v6868_v11  ;;  %v7048_v62 = vmax.f32 %v6866_v35, 0.0 }
 0xafc   : > { %v7051_v58 = vmax.f32 %v6877_v19, 0.0 }
 0xafd   : > { %v7049_v10 = vmax.f32 %v6869_v24, 0.0 }
 0xafe   : > { %v20526_v9 = vpack.c.bf16 %v7051_v58, %v7050_v3 }
 0xaff   : > { %v20528_v32 = vpack.c.bf16 %v7049_v10, %v7048_v62 }
 0xb01   : > { %17011 = vmatprep.mubr.bf16.mxu1 %v20528_v32 }
 0xb02   : > { %17012 = vmatmul.mubr.bf16.gmra.mrb[216].mxu1 %v20526_v9 }
 0xb07   : > { %v16937_v25 = vpop.f32.mrb[220].mxu0 }
 0xb08   : > { %v6890_v61 = vadd.f32 %v16937_v25, %v20460_v30  ;;  %v6881_v40 = vpop.f32.mrb[221].mxu0 }
 0xb09   : > { %v6882_v28 = vadd.f32 %v20460_v30, %v6881_v40  ;;  %v16938_v34 = vpop.f32.mrb[222].mxu0 }
 0xb0a   : > { %v6893_v39 = vadd.f32 %v16938_v34, %v20460_v30  ;;  %v6884_v37 = vpop.f32.mrb[223].mxu0  ;;  %v7054_v31 = vmax.f32 %v6890_v61, 0.0 }
 0xb0b   : > { %v6885_v26 = vadd.f32 %v20460_v30, %v6884_v37  ;;  %v7052_v45 = vmax.f32 %v6882_v28, 0.0 }
 0xb0c   : > { %v7055_v1 = vmax.f32 %v6893_v39, 0.0 }
 0xb0d   : > { %v7053_v42 = vmax.f32 %v6885_v26, 0.0 }
 0xb0e   : > { %v20536_v15 = vpack.c.bf16 %v7055_v1, %v7054_v31 }
 0xb0f   : > { %v20538_v41 = vpack.c.bf16 %v7053_v42, %v7052_v45 }
 0xb11   : > { %17015 = vmatprep.mubr.bf16.mxu1 %v20538_v41 }
 0xb12   : > { %17016 = vmatmul.mubr.bf16.gmra.mrb[220].mxu1 %v20536_v15 }
 0xb17   : > { %v16941_v49 = vpop.f32.mrb[224].mxu0 }
 0xb18   : > { %v6906_v47 = vadd.f32 %v16941_v49, %v20460_v30  ;;  %v6897_v21 = vpop.f32.mrb[225].mxu0 }
 0xb19   : > { %v6898_v44 = vadd.f32 %v20460_v30, %v6897_v21  ;;  %v16942_v50 = vpop.f32.mrb[226].mxu0 }
 0xb1a   : > { %v6909_v52 = vadd.f32 %v16942_v50, %v20460_v30  ;;  %v6900_v27 = vpop.f32.mrb[227].mxu0  ;;  %v7058_v51 = vmax.f32 %v6906_v47, 0.0 }
 0xb1b   : > { %v6901_v60 = vadd.f32 %v20460_v30, %v6900_v27  ;;  %v7056_v17 = vmax.f32 %v6898_v44, 0.0 }
 0xb1c   : > { %v7059_v14 = vmax.f32 %v6909_v52, 0.0 }
 0xb1d   : > { %v7057_v56 = vmax.f32 %v6901_v60, 0.0 }
 0xb1e   : > { %v20552_v43 = vpack.c.bf16 %v7059_v14, %v7058_v51 }
 0xb1f   : > { %v20554_v54 = vpack.c.bf16 %v7057_v56, %v7056_v17 }
 0xb21   : > { %17019 = vmatprep.mubr.bf16.mxu1 %v20554_v54 }
 0xb22   : > { %17020 = vmatmul.mubr.bf16.gmra.mrb[224].mxu1 %v20552_v43 }
 0xb27   : > { %v16945_v59 = vpop.f32.mrb[228].mxu0 }
 0xb28   : > { %v6922_v16 = vadd.f32 %v16945_v59, %v20460_v30  ;;  %v6913_v38 = vpop.f32.mrb[229].mxu0 }
 0xb29   : > { %v6914_v8 = vadd.f32 %v20460_v30, %v6913_v38  ;;  %v16946_v22 = vpop.f32.mrb[230].mxu0 }
 0xb2a   : > { %v6925_v7 = vadd.f32 %v16946_v22, %v20460_v30  ;;  %v6916_v2 = vpop.f32.mrb[231].mxu0  ;;  %v7062_v13 = vmax.f32 %v6922_v16, 0.0 }
 0xb2b   : > { %v6917_v23 = vadd.f32 %v20460_v30, %v6916_v2  ;;  %v7060_v57 = vmax.f32 %v6914_v8, 0.0 }
 0xb2c   : > { %v7063_v53 = vmax.f32 %v6925_v7, 0.0 }
 0xb2d   : > { %v7061_v4 = vmax.f32 %v6917_v23, 0.0 }
 0xb2e   : > { %v20562_v35 = vpack.c.bf16 %v7063_v53, %v7062_v13 }
 0xb2f   : > { %v20564_v18 = vpack.c.bf16 %v7061_v4, %v7060_v57 }
 0xb31   : > { %17023 = vmatprep.mubr.bf16.mxu1 %v20564_v18 }
 0xb32   : > { %17024 = vmatmul.mubr.bf16.gmra.mrb[228].mxu1 %v20562_v35 }
 0xb37   : > { %v16949_v19 = vpop.f32.mrb[232].mxu0 }
 0xb38   : > { %v6938_v11 = vadd.f32 %v16949_v19, %v20460_v30  ;;  %v6929_v24 = vpop.f32.mrb[233].mxu0 }
 0xb39   : > { %v6930_v3 = vadd.f32 %v20460_v30, %v6929_v24  ;;  %v16950_v58 = vpop.f32.mrb[234].mxu0 }
 0xb3a   : > { %v6941_v62 = vadd.f32 %v16950_v58, %v20460_v30  ;;  %v6932_v10 = vpop.f32.mrb[235].mxu0  ;;  %v7066_v61 = vmax.f32 %v6938_v11, 0.0 }
 0xb3b   : > { %v6933_v25 = vadd.f32 %v20460_v30, %v6932_v10  ;;  %v7064_v28 = vmax.f32 %v6930_v3, 0.0 }
 0xb3c   : > { %v7067_v40 = vmax.f32 %v6941_v62, 0.0 }
 0xb3d   : > { %v7065_v34 = vmax.f32 %v6933_v25, 0.0 }
 0xb3e   : > { %v20572_v39 = vpack.c.bf16 %v7067_v40, %v7066_v61 }
 0xb3f   : > { %v20574_v37 = vpack.c.bf16 %v7065_v34, %v7064_v28 }
 0xb41   : > { %17027 = vmatprep.mubr.bf16.mxu1 %v20574_v37 }
 0xb42   : > { %17028 = vmatmul.mubr.bf16.gmra.mrb[232].mxu1 %v20572_v39 }
 0xb47   : > { %v16953_v26 = vpop.f32.mrb[236].mxu0 }
 0xb48   : > { %v6954_v31 = vadd.f32 %v16953_v26, %v20460_v30  ;;  %v6945_v1 = vpop.f32.mrb[237].mxu0 }
 0xb49   : > { %v6946_v45 = vadd.f32 %v20460_v30, %v6945_v1  ;;  %v16954_v42 = vpop.f32.mrb[238].mxu0 }
 0xb4a   : > { %v6957_v49 = vadd.f32 %v16954_v42, %v20460_v30  ;;  %v6948_v47 = vpop.f32.mrb[239].mxu0  ;;  %v7070_v44 = vmax.f32 %v6954_v31, 0.0  ;;  %v18684_v31 = vld [vmem:[%s22031_s4 + $0x3c0] sm:$0xff]  }
 0xb4b   : > { %v6949_v21 = vadd.f32 %v20460_v30, %v6948_v47  ;;  %v7068_v52 = vmax.f32 %v6946_v45, 0.0  ;;  %17117 = vmatprep.subr.bf16.mxu0 %v18684_v31 }
 0xb4c   : > { %v7071_v50 = vmax.f32 %v6957_v49, 0.0  ;;  %17118 = vmatpush3.bf16.msra.mxu0 %v18684_v31  ;;  %v18697_v31 = vld [vmem:[%s22031_s4 + $0x3e8] sm:$0xff]  }
 0xb4d   : > { %v7069_v27 = vmax.f32 %v6949_v21, 0.0 }
 0xb4e   : > { %v20582_v60 = vpack.c.bf16 %v7071_v50, %v7070_v44 }
 0xb4f   : > { %v20584_v51 = vpack.c.bf16 %v7069_v27, %v7068_v52 }
 0xb51   : > { %17031 = vmatprep.mubr.bf16.mxu1 %v20584_v51 }
 0xb52   : > { %17032 = vmatmul.mubr.bf16.gmra.mrb[236].mxu1 %v20582_v60 }
 0xb57   : > { %v16957_v14 = vpop.f32.mrb[240].mxu0 }
 0xb58   : > { %v6970_v17 = vadd.f32 %v16957_v14, %v20460_v30  ;;  %v6961_v56 = vpop.f32.mrb[241].mxu0 }
 0xb59   : > { %v6962_v59 = vadd.f32 %v20460_v30, %v6961_v56  ;;  %v16958_v16 = vpop.f32.mrb[242].mxu0 }
 0xb5a   : > { %v6973_v38 = vadd.f32 %v16958_v16, %v20460_v30  ;;  %v6964_v8 = vpop.f32.mrb[243].mxu0  ;;  %v7074_v7 = vmax.f32 %v6970_v17, 0.0  ;;  %v18689_v16 = vld [vmem:[%s22031_s4 + $0x3c8] sm:$0xff]  }
 0xb5b   : > { %v6965_v22 = vadd.f32 %v20460_v30, %v6964_v8  ;;  %v7072_v23 = vmax.f32 %v6962_v59, 0.0  ;;  %17119 = vmatprep.subr.bf16.mxu0 %v18689_v16 }
 0xb5c   : > { %v7075_v2 = vmax.f32 %v6973_v38, 0.0  ;;  %17120 = vmatpush3.bf16.msra.mxu0 %v18689_v16  ;;  %v18673_v16 = vld [vmem:[%s20546_s14 + $0x68] sm:$0xff]  }
 0xb5d   : > { %v7073_v13 = vmax.f32 %v6965_v22, 0.0 }
 0xb5e   : > { %v20592_v53 = vpack.c.bf16 %v7075_v2, %v7074_v7 }
 0xb5f   : > { %v20594_v57 = vpack.c.bf16 %v7073_v13, %v7072_v23 }
 0xb61   : > { %17035 = vmatprep.mubr.bf16.mxu1 %v20594_v57 }
 0xb62   : > { %17036 = vmatmul.mubr.bf16.gmra.mrb[240].mxu1 %v20592_v53 }
 0xb67   : > { %v16961_v4 = vpop.f32.mrb[244].mxu0 }
 0xb68   : > { %v6986_v19 = vadd.f32 %v16961_v4, %v20460_v30  ;;  %v6977_v11 = vpop.f32.mrb[245].mxu0 }
 0xb69   : > { %v6978_v24 = vadd.f32 %v20460_v30, %v6977_v11  ;;  %v16962_v3 = vpop.f32.mrb[246].mxu0 }
 0xb6a   : > { %v6989_v58 = vadd.f32 %v16962_v3, %v20460_v30  ;;  %v6980_v62 = vpop.f32.mrb[247].mxu0  ;;  %v7078_v25 = vmax.f32 %v6986_v19, 0.0 }
 0xb6b   : > { %v6981_v10 = vadd.f32 %v20460_v30, %v6980_v62  ;;  %v7076_v40 = vmax.f32 %v6978_v24, 0.0 }
 0xb6c   : > { %v7079_v61 = vmax.f32 %v6989_v58, 0.0 }
 0xb6d   : > { %v7077_v28 = vmax.f32 %v6981_v10, 0.0  ;;  %v18660_v10 = vld [vmem:[%s20546_s14] sm:$0xff]  }
 0xb6e   : > { %v20602_v34 = vpack.c.bf16 %v7079_v61, %v7078_v25  ;;  %v18694_v25 = vld [vmem:[%s22031_s4 + $0x3d0] sm:$0xff]   ;;  %v18661_v61 = vld [vmem:[%s20546_s14 + $0x8] sm:$0xff]  }
 0xb6f   : > { %v20604_v26 = vpack.c.bf16 %v7077_v28, %v7076_v40  ;;  %17121 = vmatprep.subr.bf16.mxu0 %v18694_v25  ;;  %v18696_v40 = vld [vmem:[%s22031_s4 + $0x3e0] sm:$0xff]   ;;  %v18662_v28 = vld [vmem:[%s20546_s14 + $0x10] sm:$0xff]  }
 0xb70   : > { %17122 = vmatpush3.bf16.msra.mxu0 %v18694_v25  ;;  %v18688_v25 = vld [vmem:[%s20546_s14 + $0xd8] sm:$0xff]  }
 0xb71   : > { %17039 = vmatprep.mubr.bf16.mxu1 %v20604_v26 }
 0xb72   : > { %17040 = vmatmul.mubr.bf16.gmra.mrb[244].mxu1 %v20602_v34 }
 0xb77   : > { %v16965_v1 = vpop.f32.mrb[248].mxu0 }
 0xb78   : > { %v7002_v45 = vadd.f32 %v16965_v1, %v20460_v30  ;;  %v6993_v42 = vpop.f32.mrb[249].mxu0  ;;  %v18663_v1 = vld [vmem:[%s20546_s14 + $0x18] sm:$0xff]  }
 0xb79   : > { %v6994_v49 = vadd.f32 %v20460_v30, %v6993_v42  ;;  %v16966_v47 = vpop.f32.mrb[250].mxu0  ;;  %v18664_v42 = vld [vmem:[%s20546_s14 + $0x20] sm:$0xff]  }
 0xb7a   : > { %v7005_v21 = vadd.f32 %v16966_v47, %v20460_v30  ;;  %v6996_v44 = vpop.f32.mrb[251].mxu0  ;;  %v7082_v52 = vmax.f32 %v7002_v45, 0.0  ;;  %v18698_v45 = vld [vmem:[%s22031_s4 + $0x3f0] sm:$0xff]   ;;  %v18665_v47 = vld [vmem:[%s20546_s14 + $0x28] sm:$0xff]  }
 0xb7b   : > { %v6997_v50 = vadd.f32 %v20460_v30, %v6996_v44  ;;  %v7080_v14 = vmax.f32 %v6994_v49, 0.0  ;;  %v18699_v49 = vld [vmem:[%s22031_s4 + $0x3f8] sm:$0xff]  }
 0xb7c   : > { %v7083_v27 = vmax.f32 %v7005_v21, 0.0  ;;  %v18666_v21 = vld [vmem:[%s20546_s14 + $0x30] sm:$0xff]   ;;  %v18667_v44 = vld [vmem:[%s20546_s14 + $0x38] sm:$0xff]  }
 0xb7d   : > { %v7081_v17 = vmax.f32 %v6997_v50, 0.0  ;;  %v18668_v50 = vld [vmem:[%s20546_s14 + $0x40] sm:$0xff]  }
 0xb7e   : > { %v20615_v56 = vpack.c.bf16 %v7083_v27, %v7082_v52  ;;  %v18669_v52 = vld [vmem:[%s20546_s14 + $0x48] sm:$0xff]   ;;  %v18670_v27 = vld [vmem:[%s20546_s14 + $0x50] sm:$0xff]  }
 0xb7f   : > { %v20617_v59 = vpack.c.bf16 %v7081_v17, %v7080_v14  ;;  %v18671_v14 = vld [vmem:[%s20546_s14 + $0x58] sm:$0xff]   ;;  %v18672_v17 = vld [vmem:[%s20546_s14 + $0x60] sm:$0xff]  }
 0xb81   : > { %17043 = vmatprep.mubr.bf16.mxu1 %v20617_v59 }
 0xb82   : > { %17044 = vmatmul.mubr.bf16.gmra.mrb[248].mxu1 %v20615_v56 }
 0xb87   : > { %v16969_v38 = vpop.f32.mrb[252].mxu0 }
 0xb88   : > { %v7018_v8 = vadd.f32 %v16969_v38, %v20460_v30  ;;  %v7009_v22 = vpop.f32.mrb[253].mxu0  ;;  %v18674_v38 = vld [vmem:[%s20546_s14 + $0x70] sm:$0xff]  }
 0xb89   : > { %v7010_v7 = vadd.f32 %v20460_v30, %v7009_v22  ;;  %v16970_v2 = vpop.f32.mrb[254].mxu0  ;;  %v18676_v22 = vld [vmem:[%s20546_s14 + $0x80] sm:$0xff]  }
 0xb8a   : > { %v7021_v23 = vadd.f32 %v16970_v2, %v20460_v30  ;;  %v7012_v13 = vpop.f32.mrb[255].mxu0  ;;  %v7086_v19 = vmax.f32 %v7018_v8, 0.0  ;;  %v18675_v8 = vld [vmem:[%s20546_s14 + $0x78] sm:$0xff]   ;;  %v18678_v2 = vld [vmem:[%s20546_s14 + $0x90] sm:$0xff]  }
 0xb8b   : > { %v7013_v4 = vadd.f32 %v20460_v30, %v7012_v13  ;;  %v7084_v24 = vmax.f32 %v7010_v7, 0.0  ;;  %v18695_v30 = vld [vmem:[%s22031_s4 + $0x3d8] sm:$0xff]   ;;  %v18677_v7 = vld [vmem:[%s20546_s14 + $0x88] sm:$0xff]   ;;  %v18680_v13 = vld [vmem:[%s20546_s14 + $0xa0] sm:$0xff]  }
 0xb8c   : > { %v7087_v11 = vmax.f32 %v7021_v23, 0.0  ;;  %17123 = vmatprep.subr.bf16.mxu0 %v18695_v30  ;;  %v18679_v23 = vld [vmem:[%s20546_s14 + $0x98] sm:$0xff]  }
 0xb8d   : > { %v7085_v3 = vmax.f32 %v7013_v4, 0.0  ;;  %17124 = vmatpush3.bf16.msra.mxu0 %v18695_v30  ;;  %v18681_v4 = vld [vmem:[%s20546_s14 + $0xa8] sm:$0xff]   ;;  %v18690_v30 = vld [vmem:[%s20546_s14 + $0xe0] sm:$0xff]  }
 0xb8e   : > { %v20628_v58 = vpack.c.bf16 %v7087_v11, %v7086_v19  ;;  %17125 = vmatprep.subr.bf16.mxu0 %v18696_v40  ;;  %v18682_v19 = vld [vmem:[%s20546_s14 + $0xb0] sm:$0xff]   ;;  %v18683_v11 = vld [vmem:[%s20546_s14 + $0xb8] sm:$0xff]  }
 0xb8f   : > { %v20630_v62 = vpack.c.bf16 %v7085_v3, %v7084_v24  ;;  %v18685_v24 = vld [vmem:[%s20546_s14 + $0xc0] sm:$0xff]   ;;  %v18686_v3 = vld [vmem:[%s20546_s14 + $0xc8] sm:$0xff]  }
 0xb91   : > { %17047 = vmatprep.mubr.bf16.mxu1 %v20630_v62  ;;  %17126 = vmatpush3.bf16.msra.mxu0 %v18696_v40  ;;  %v18692_v40 = vld [vmem:[%s20546_s14 + $0xf0] sm:$0xff]  }
 0xb92   : > { %17048 = vmatmul.mubr.bf16.gmra.mrb[252].mxu1 %v20628_v58  ;;  %17127 = vmatprep.subr.bf16.mxu0 %v18697_v31 }
 0xb93   : > { %17053 = vmatprep.mubr.msk.bf16.mxu1 %vm861_vm0, %v18660_v10  ;;  %v18687_v10 = vld [vmem:[%s20546_s14 + $0xd0] sm:$0xff]  }
 0xb95   : > { %17128 = vmatpush3.bf16.msra.mxu0 %v18697_v31  ;;  %v18700_v31 = vld [vmem:[%s22031_s4 + $0x400] sm:$0xff]  }
 0xb96   : > { %17129 = vmatprep.subr.bf16.mxu0 %v18698_v45 }
 0xb99   : > { %17130 = vmatpush3.bf16.msra.mxu0 %v18698_v45 }
 0xb9a   : > { %17054 = vmatmul.mubr.msk.bf16.vlgmr.msra.gmra.mrb[192].mxu1 %vm861_vm0, %v18661_v61  ;;  %17131 = vmatprep.subr.bf16.mxu0 %v18699_v49  ;;  %v18691_v61 = vld [vmem:[%s20546_s14 + $0xe8] sm:$0xff]  }
 0xb9b   : > { %17057 = vmatprep.mubr.msk.bf16.mxu1 %vm861_vm0, %v18662_v28  ;;  %v18693_v28 = vld [vmem:[%s20546_s14 + $0xf8] sm:$0xff]  }
 0xb9d   : > { %17132 = vmatpush3.bf16.msra.mxu0 %v18699_v49 }
 0xb9e   : > { %17197 = vmatprep.subr.bf16.mxu0 %v18700_v31 }
 0xba2   : > { %17058 = vmatmul.mubr.msk.bf16.gmra.mrb[196].mxu1 %vm861_vm0, %v18663_v1  ;;  %v20722_v1 = vld [vmem:[%s22033_s6 + $0xc] ss:$0 sm:$0xff] }
 0xba3   : > { %17061 = vmatprep.mubr.msk.bf16.mxu1 %vm861_vm0, %v18664_v42 }
 0xbaa   : > { %17062 = vmatmul.mubr.msk.bf16.gmra.mrb[200].mxu1 %vm861_vm0, %v18665_v47 }
 0xbab   : > { %17065 = vmatprep.mubr.msk.bf16.mxu1 %vm861_vm0, %v18666_v21 }
 0xbb2   : > { %17066 = vmatmul.mubr.msk.bf16.gmra.mrb[204].mxu1 %vm861_vm0, %v18667_v44 }
 0xbb3   : > { %17069 = vmatprep.mubr.msk.bf16.mxu1 %vm861_vm0, %v18668_v50 }
 0xbba   : > { %17070 = vmatmul.mubr.msk.bf16.gmra.mrb[208].mxu1 %vm861_vm0, %v18669_v52 }
 0xbbb   : > { %17073 = vmatprep.mubr.msk.bf16.mxu1 %vm861_vm0, %v18670_v27 }
 0xbc2   : > { %17074 = vmatmul.mubr.msk.bf16.gmra.mrb[212].mxu1 %vm861_vm0, %v18671_v14 }
 0xbc3   : > { %17077 = vmatprep.mubr.msk.bf16.mxu1 %vm861_vm0, %v18672_v17 }
 0xbca   : > { %17078 = vmatmul.mubr.msk.bf16.gmra.mrb[216].mxu1 %vm861_vm0, %v18673_v16 }
 0xbcb   : > { %17081 = vmatprep.mubr.msk.bf16.mxu1 %vm861_vm0, %v18674_v38 }
 0xbd2   : > { %17082 = vmatmul.mubr.msk.bf16.gmra.mrb[220].mxu1 %vm861_vm0, %v18675_v8 }
 0xbd3   : > { %17085 = vmatprep.mubr.msk.bf16.mxu1 %vm861_vm0, %v18676_v22 }
 0xbda   : > { %17086 = vmatmul.mubr.msk.bf16.gmra.mrb[224].mxu1 %vm861_vm0, %v18677_v7 }
 0xbdb   : > { %17089 = vmatprep.mubr.msk.bf16.mxu1 %vm861_vm0, %v18678_v2 }
 0xbe2   : > { %17090 = vmatmul.mubr.msk.bf16.gmra.mrb[228].mxu1 %vm861_vm0, %v18679_v23  ;;  %v18701_v23 = vld [vmem:[%s22031_s4 + $0x408] sm:$0xff]  }
 0xbe3   : > { %17093 = vmatprep.mubr.msk.bf16.mxu1 %vm861_vm0, %v18680_v13 }
 0xbea   : > { %17094 = vmatmul.mubr.msk.bf16.gmra.mrb[232].mxu1 %vm861_vm0, %v18681_v4 }
 0xbeb   : > { %17097 = vmatprep.mubr.msk.bf16.mxu1 %vm861_vm0, %v18682_v19 }
 0xbf2   : > { %17098 = vmatmul.mubr.msk.bf16.gmra.mrb[236].mxu1 %vm861_vm0, %v18683_v11 }
 0xbf3   : > { %17101 = vmatprep.mubr.msk.bf16.mxu1 %vm861_vm0, %v18685_v24 }
 0xbfa   : > { %17102 = vmatmul.mubr.msk.bf16.gmra.mrb[240].mxu1 %vm861_vm0, %v18686_v3 }
 0xbfb   : > { %17105 = vmatprep.mubr.msk.bf16.mxu1 %vm861_vm0, %v18687_v10 }
 0xc02   : > { %17106 = vmatmul.mubr.msk.bf16.gmra.mrb[244].mxu1 %vm861_vm0, %v18688_v25  ;;  %v18702_v25 = vld [vmem:[%s22031_s4 + $0x410] sm:$0xff]  }
 0xc03   : > { %17109 = vmatprep.mubr.msk.bf16.mxu1 %vm861_vm0, %v18690_v30 }
 0xc0a   : > { %17110 = vmatmul.mubr.msk.bf16.gmra.mrb[248].mxu1 %vm861_vm0, %v18691_v61 }
 0xc0b   : > { %17113 = vmatprep.mubr.msk.bf16.mxu1 %vm861_vm0, %v18692_v40 }
 0xc12   : > { %17114 = vmatmul.mubr.msk.bf16.gmra.mrb[252].mxu1 %vm861_vm0, %v18693_v28 }
 0xc6d   : > { %v17055_v45 = vpop.f32.mrb[192].mxu1 }
 0xc6e   : > { %v8038_v42 = vadd.f32 %v17055_v45, %v20722_v1  ;;  %v7773_v49 = vpop.f32.mrb[193].mxu1 }
 0xc6f   : > { %v8036_v47 = vadd.f32 %v20722_v1, %v7773_v49  ;;  %v17056_v21 = vpop.f32.mrb[194].mxu1 }
 0xc70   : > { %v8039_v44 = vadd.f32 %v17056_v21, %v20722_v1  ;;  %v7776_v50 = vpop.f32.mrb[195].mxu1  ;;  %v8102_v27 = vmax.f32 %v8038_v42, 0.0 }
 0xc71   : > { %v8037_v52 = vadd.f32 %v20722_v1, %v7776_v50  ;;  %v8100_v17 = vmax.f32 %v8036_v47, 0.0 }
 0xc72   : > { %v8103_v14 = vmax.f32 %v8039_v44, 0.0 }
 0xc73   : > { %v8101_v16 = vmax.f32 %v8037_v52, 0.0 }
 0xc74   : > { %v8165_v38 = vpack.c.bf16 %v8103_v14, %v8102_v27 }
 0xc75   : > { %v8164_v8 = vpack.c.bf16 %v8101_v16, %v8100_v17  ;;  %v17059_v22 = vpop.f32.mrb[196].mxu1  ;;  %v18704_v17 = vld [vmem:[%s22031_s4 + $0x420] sm:$0xff]  }
 0xc76   : > { %v8042_v7 = vadd.f32 %v17059_v22, %v20722_v1  ;;  %v7789_v2 = vpop.f32.mrb[197].mxu1 }
 0xc77   : > { %v8040_v13 = vadd.f32 %v20722_v1, %v7789_v2  ;;  %v17060_v4 = vpop.f32.mrb[198].mxu1  ;;  %17133 = vmatprep.mubr.bf16.mxu0 %v8164_v8 }
 0xc78   : > { %v8043_v19 = vadd.f32 %v17060_v4, %v20722_v1  ;;  %v7792_v11 = vpop.f32.mrb[199].mxu1  ;;  %17134 = vmatmul.mubr.bf16.vlgmr.msra.gmra.mrb[0].mxu0 %v8165_v38  ;;  %v8106_v3 = vmax.f32 %v8042_v7, 0.0 }
 0xc79   : > { %v8041_v24 = vadd.f32 %v20722_v1, %v7792_v11  ;;  %17198 = vmatpush3.bf16.msra.mxu0 %v18700_v31  ;;  %v8104_v30 = vmax.f32 %v8040_v13, 0.0  ;;  %v18703_v31 = vld [vmem:[%s22031_s4 + $0x418] sm:$0xff]   ;;  %v18705_v13 = vld [vmem:[%s22031_s4 + $0x428] sm:$0xff]  }
 0xc7a   : > { %v8107_v10 = vmax.f32 %v8043_v19, 0.0  ;;  %17199 = vmatprep.subr.bf16.mxu0 %v18701_v23 }
 0xc7b   : > { %v8105_v61 = vmax.f32 %v8041_v24, 0.0 }
 0xc7c   : > { %v8167_v40 = vpack.c.bf16 %v8107_v10, %v8106_v3 }
 0xc7d   : > { %v8166_v28 = vpack.c.bf16 %v8105_v61, %v8104_v30  ;;  %v17063_v45 = vpop.f32.mrb[200].mxu1  ;;  %17200 = vmatpush3.bf16.msra.mxu0 %v18701_v23  ;;  %v18706_v30 = vld [vmem:[%s22031_s4 + $0x430] sm:$0xff]  }
 0xc7e   : > { %v8046_v42 = vadd.f32 %v17063_v45, %v20722_v1  ;;  %v7805_v49 = vpop.f32.mrb[201].mxu1  ;;  %17201 = vmatprep.subr.bf16.mxu0 %v18702_v25 }
 0xc7f   : > { %v8044_v47 = vadd.f32 %v20722_v1, %v7805_v49  ;;  %v17064_v21 = vpop.f32.mrb[202].mxu1  ;;  %17137 = vmatprep.mubr.bf16.mxu0 %v8166_v28 }
 0xc80   : > { %v8047_v44 = vadd.f32 %v17064_v21, %v20722_v1  ;;  %v7808_v50 = vpop.f32.mrb[203].mxu1  ;;  %17138 = vmatmul.mubr.bf16.gmra.mrb[4].mxu0 %v8167_v40  ;;  %v8110_v27 = vmax.f32 %v8046_v42, 0.0 }
 0xc81   : > { %v8045_v52 = vadd.f32 %v20722_v1, %v7808_v50  ;;  %17202 = vmatpush3.bf16.msra.mxu0 %v18702_v25  ;;  %v8108_v16 = vmax.f32 %v8044_v47, 0.0  ;;  %v18707_v47 = vld [vmem:[%s22031_s4 + $0x438] sm:$0xff]  }
 0xc82   : > { %v8111_v14 = vmax.f32 %v8047_v44, 0.0  ;;  %17203 = vmatprep.subr.bf16.mxu0 %v18703_v31 }
 0xc83   : > { %v8109_v38 = vmax.f32 %v8045_v52, 0.0 }
 0xc84   : > { %v8169_v8 = vpack.c.bf16 %v8111_v14, %v8110_v27 }
 0xc85   : > { %v8168_v22 = vpack.c.bf16 %v8109_v38, %v8108_v16  ;;  %v17067_v7 = vpop.f32.mrb[204].mxu1  ;;  %17204 = vmatpush3.bf16.msra.mxu0 %v18703_v31 }
 0xc86   : > { %v8050_v2 = vadd.f32 %v17067_v7, %v20722_v1  ;;  %v7821_v23 = vpop.f32.mrb[205].mxu1  ;;  %17205 = vmatprep.subr.bf16.mxu0 %v18704_v17 }
 0xc87   : > { %v8048_v4 = vadd.f32 %v20722_v1, %v7821_v23  ;;  %v17068_v19 = vpop.f32.mrb[206].mxu1  ;;  %17141 = vmatprep.mubr.bf16.mxu0 %v8168_v22 }
 0xc88   : > { %v8051_v11 = vadd.f32 %v17068_v19, %v20722_v1  ;;  %v7824_v24 = vpop.f32.mrb[207].mxu1  ;;  %17142 = vmatmul.mubr.bf16.gmra.mrb[8].mxu0 %v8169_v8  ;;  %v8114_v10 = vmax.f32 %v8050_v2, 0.0 }
 0xc89   : > { %v8049_v3 = vadd.f32 %v20722_v1, %v7824_v24  ;;  %17206 = vmatpush3.bf16.msra.mxu0 %v18704_v17  ;;  %v8112_v61 = vmax.f32 %v8048_v4, 0.0 }
 0xc8a   : > { %v8115_v25 = vmax.f32 %v8051_v11, 0.0  ;;  %17207 = vmatprep.subr.bf16.mxu0 %v18705_v13 }
 0xc8b   : > { %v8113_v40 = vmax.f32 %v8049_v3, 0.0 }
 0xc8c   : > { %v8171_v28 = vpack.c.bf16 %v8115_v25, %v8114_v10 }
 0xc8d   : > { %v8170_v45 = vpack.c.bf16 %v8113_v40, %v8112_v61  ;;  %v17071_v42 = vpop.f32.mrb[208].mxu1  ;;  %17208 = vmatpush3.bf16.msra.mxu0 %v18705_v13 }
 0xc8e   : > { %v8054_v49 = vadd.f32 %v17071_v42, %v20722_v1  ;;  %v7837_v31 = vpop.f32.mrb[209].mxu1  ;;  %17209 = vmatprep.subr.bf16.mxu0 %v18706_v30 }
 0xc8f   : > { %v8052_v21 = vadd.f32 %v20722_v1, %v7837_v31  ;;  %v17072_v44 = vpop.f32.mrb[210].mxu1  ;;  %17145 = vmatprep.mubr.bf16.mxu0 %v8170_v45 }
 0xc90   : > { %v8055_v50 = vadd.f32 %v17072_v44, %v20722_v1  ;;  %v7840_v52 = vpop.f32.mrb[211].mxu1  ;;  %17146 = vmatmul.mubr.bf16.gmra.mrb[12].mxu0 %v8171_v28  ;;  %v8118_v14 = vmax.f32 %v8054_v49, 0.0 }
 0xc91   : > { %v8053_v27 = vadd.f32 %v20722_v1, %v7840_v52  ;;  %17210 = vmatpush3.bf16.msra.mxu0 %v18706_v30  ;;  %v8116_v16 = vmax.f32 %v8052_v21, 0.0 }
 0xc92   : > { %v8119_v17 = vmax.f32 %v8055_v50, 0.0  ;;  %17211 = vmatprep.subr.bf16.mxu0 %v18707_v47 }
 0xc93   : > { %v8117_v38 = vmax.f32 %v8053_v27, 0.0 }
 0xc94   : > { %v8173_v8 = vpack.c.bf16 %v8119_v17, %v8118_v14 }
 0xc95   : > { %v8172_v22 = vpack.c.bf16 %v8117_v38, %v8116_v16  ;;  %v17075_v7 = vpop.f32.mrb[212].mxu1  ;;  %17212 = vmatpush3.bf16.msra.mxu0 %v18707_v47 }
 0xc96   : > { %v8058_v2 = vadd.f32 %v17075_v7, %v20722_v1  ;;  %v7853_v23 = vpop.f32.mrb[213].mxu1 }
 0xc97   : > { %v8056_v13 = vadd.f32 %v20722_v1, %v7853_v23  ;;  %v17076_v4 = vpop.f32.mrb[214].mxu1  ;;  %17149 = vmatprep.mubr.bf16.mxu0 %v8172_v22 }
 0xc98   : > { %v8059_v19 = vadd.f32 %v17076_v4, %v20722_v1  ;;  %v7856_v11 = vpop.f32.mrb[215].mxu1  ;;  %17150 = vmatmul.mubr.bf16.gmra.mrb[16].mxu0 %v8173_v8  ;;  %v8122_v3 = vmax.f32 %v8058_v2, 0.0 }
 0xc99   : > { %v8057_v24 = vadd.f32 %v20722_v1, %v7856_v11  ;;  %v8120_v25 = vmax.f32 %v8056_v13, 0.0 }
 0xc9a   : > { %v8123_v10 = vmax.f32 %v8059_v19, 0.0 }
 0xc9b   : > { %v8121_v30 = vmax.f32 %v8057_v24, 0.0 }
 0xc9c   : > { %v8175_v61 = vpack.c.bf16 %v8123_v10, %v8122_v3 }
 0xc9d   : > { %v8174_v40 = vpack.c.bf16 %v8121_v30, %v8120_v25  ;;  %v17079_v28 = vpop.f32.mrb[216].mxu1 }
 0xc9e   : > { %v8062_v45 = vadd.f32 %v17079_v28, %v20722_v1  ;;  %v7869_v42 = vpop.f32.mrb[217].mxu1 }
 0xc9f   : > { %v8060_v49 = vadd.f32 %v20722_v1, %v7869_v42  ;;  %v17080_v31 = vpop.f32.mrb[218].mxu1  ;;  %17153 = vmatprep.mubr.bf16.mxu0 %v8174_v40 }
 0xca0   : > { %v8063_v47 = vadd.f32 %v17080_v31, %v20722_v1  ;;  %v7872_v21 = vpop.f32.mrb[219].mxu1  ;;  %17154 = vmatmul.mubr.bf16.gmra.mrb[20].mxu0 %v8175_v61  ;;  %v8126_v50 = vmax.f32 %v8062_v45, 0.0 }
 0xca1   : > { %v8061_v44 = vadd.f32 %v20722_v1, %v7872_v21  ;;  %v8124_v27 = vmax.f32 %v8060_v49, 0.0 }
 0xca2   : > { %v8127_v52 = vmax.f32 %v8063_v47, 0.0 }
 0xca3   : > { %v8125_v14 = vmax.f32 %v8061_v44, 0.0 }
 0xca4   : > { %v8177_v17 = vpack.c.bf16 %v8127_v52, %v8126_v50 }
 0xca5   : > { %v8176_v16 = vpack.c.bf16 %v8125_v14, %v8124_v27  ;;  %v17083_v38 = vpop.f32.mrb[220].mxu1 }
 0xca6   : > { %v8066_v8 = vadd.f32 %v17083_v38, %v20722_v1  ;;  %v7885_v22 = vpop.f32.mrb[221].mxu1 }
 0xca7   : > { %v8064_v7 = vadd.f32 %v20722_v1, %v7885_v22  ;;  %v17084_v2 = vpop.f32.mrb[222].mxu1  ;;  %17157 = vmatprep.mubr.bf16.mxu0 %v8176_v16 }
 0xca8   : > { %v8067_v23 = vadd.f32 %v17084_v2, %v20722_v1  ;;  %v7888_v13 = vpop.f32.mrb[223].mxu1  ;;  %17158 = vmatmul.mubr.bf16.gmra.mrb[24].mxu0 %v8177_v17  ;;  %v8130_v19 = vmax.f32 %v8066_v8, 0.0 }
 0xca9   : > { %v8065_v4 = vadd.f32 %v20722_v1, %v7888_v13  ;;  %v8128_v24 = vmax.f32 %v8064_v7, 0.0 }
 0xcaa   : > { %v8131_v11 = vmax.f32 %v8067_v23, 0.0 }
 0xcab   : > { %v8129_v3 = vmax.f32 %v8065_v4, 0.0 }
 0xcac   : > { %v8179_v10 = vpack.c.bf16 %v8131_v11, %v8130_v19 }
 0xcad   : > { %v8178_v25 = vpack.c.bf16 %v8129_v3, %v8128_v24  ;;  %v17087_v30 = vpop.f32.mrb[224].mxu1 }
 0xcae   : > { %v8070_v61 = vadd.f32 %v17087_v30, %v20722_v1  ;;  %v7901_v40 = vpop.f32.mrb[225].mxu1 }
 0xcaf   : > { %v8068_v28 = vadd.f32 %v20722_v1, %v7901_v40  ;;  %v17088_v45 = vpop.f32.mrb[226].mxu1  ;;  %17161 = vmatprep.mubr.bf16.mxu0 %v8178_v25 }
 0xcb0   : > { %v8071_v42 = vadd.f32 %v17088_v45, %v20722_v1  ;;  %v7904_v49 = vpop.f32.mrb[227].mxu1  ;;  %17162 = vmatmul.mubr.bf16.gmra.mrb[28].mxu0 %v8179_v10  ;;  %v8134_v47 = vmax.f32 %v8070_v61, 0.0 }
 0xcb1   : > { %v8069_v31 = vadd.f32 %v20722_v1, %v7904_v49  ;;  %v8132_v44 = vmax.f32 %v8068_v28, 0.0 }
 0xcb2   : > { %v8135_v21 = vmax.f32 %v8071_v42, 0.0 }
 0xcb3   : > { %v8133_v50 = vmax.f32 %v8069_v31, 0.0 }
 0xcb4   : > { %v8181_v52 = vpack.c.bf16 %v8135_v21, %v8134_v47 }
 0xcb5   : > { %v8180_v27 = vpack.c.bf16 %v8133_v50, %v8132_v44  ;;  %v17091_v14 = vpop.f32.mrb[228].mxu1 }
 0xcb6   : > { %v8074_v17 = vadd.f32 %v17091_v14, %v20722_v1  ;;  %v7917_v16 = vpop.f32.mrb[229].mxu1 }
 0xcb7   : > { %v8072_v38 = vadd.f32 %v20722_v1, %v7917_v16  ;;  %v17092_v8 = vpop.f32.mrb[230].mxu1  ;;  %17165 = vmatprep.mubr.bf16.mxu0 %v8180_v27 }
 0xcb8   : > { %v8075_v22 = vadd.f32 %v17092_v8, %v20722_v1  ;;  %v7920_v7 = vpop.f32.mrb[231].mxu1  ;;  %17166 = vmatmul.mubr.bf16.gmra.mrb[32].mxu0 %v8181_v52  ;;  %v8138_v23 = vmax.f32 %v8074_v17, 0.0 }
 0xcb9   : > { %v8073_v2 = vadd.f32 %v20722_v1, %v7920_v7  ;;  %v8136_v4 = vmax.f32 %v8072_v38, 0.0 }
 0xcba   : > { %v8139_v13 = vmax.f32 %v8075_v22, 0.0 }
 0xcbb   : > { %v8137_v19 = vmax.f32 %v8073_v2, 0.0 }
 0xcbc   : > { %v8183_v11 = vpack.c.bf16 %v8139_v13, %v8138_v23 }
 0xcbd   : > { %v8182_v24 = vpack.c.bf16 %v8137_v19, %v8136_v4  ;;  %v17095_v3 = vpop.f32.mrb[232].mxu1 }
 0xcbe   : > { %v8078_v10 = vadd.f32 %v17095_v3, %v20722_v1  ;;  %v7933_v25 = vpop.f32.mrb[233].mxu1 }
 0xcbf   : > { %v8076_v30 = vadd.f32 %v20722_v1, %v7933_v25  ;;  %v17096_v61 = vpop.f32.mrb[234].mxu1  ;;  %17169 = vmatprep.mubr.bf16.mxu0 %v8182_v24 }
 0xcc0   : > { %v8079_v40 = vadd.f32 %v17096_v61, %v20722_v1  ;;  %v7936_v28 = vpop.f32.mrb[235].mxu1  ;;  %17170 = vmatmul.mubr.bf16.gmra.mrb[36].mxu0 %v8183_v11  ;;  %v8142_v42 = vmax.f32 %v8078_v10, 0.0 }
 0xcc1   : > { %v8077_v45 = vadd.f32 %v20722_v1, %v7936_v28  ;;  %v8140_v31 = vmax.f32 %v8076_v30, 0.0 }
 0xcc2   : > { %v8143_v49 = vmax.f32 %v8079_v40, 0.0 }
 0xcc3   : > { %v8141_v47 = vmax.f32 %v8077_v45, 0.0 }
 0xcc4   : > { %v8185_v21 = vpack.c.bf16 %v8143_v49, %v8142_v42 }
 0xcc5   : > { %v8184_v44 = vpack.c.bf16 %v8141_v47, %v8140_v31  ;;  %v17099_v50 = vpop.f32.mrb[236].mxu1 }
 0xcc6   : > { %v8082_v52 = vadd.f32 %v17099_v50, %v20722_v1  ;;  %v7949_v27 = vpop.f32.mrb[237].mxu1 }
 0xcc7   : > { %v8080_v14 = vadd.f32 %v20722_v1, %v7949_v27  ;;  %v17100_v17 = vpop.f32.mrb[238].mxu1  ;;  %17173 = vmatprep.mubr.bf16.mxu0 %v8184_v44 }
 0xcc8   : > { %v8083_v16 = vadd.f32 %v17100_v17, %v20722_v1  ;;  %v7952_v38 = vpop.f32.mrb[239].mxu1  ;;  %17174 = vmatmul.mubr.bf16.gmra.mrb[40].mxu0 %v8185_v21  ;;  %v8146_v22 = vmax.f32 %v8082_v52, 0.0 }
 0xcc9   : > { %v8081_v8 = vadd.f32 %v20722_v1, %v7952_v38  ;;  %v8144_v2 = vmax.f32 %v8080_v14, 0.0 }
 0xcca   : > { %v8147_v7 = vmax.f32 %v8083_v16, 0.0 }
 0xccb   : > { %v8145_v23 = vmax.f32 %v8081_v8, 0.0 }
 0xccc   : > { %v8187_v13 = vpack.c.bf16 %v8147_v7, %v8146_v22 }
 0xccd   : > { %v8186_v4 = vpack.c.bf16 %v8145_v23, %v8144_v2  ;;  %v17103_v19 = vpop.f32.mrb[240].mxu1 }
 0xcce   : > { %v8086_v11 = vadd.f32 %v17103_v19, %v20722_v1  ;;  %v7965_v24 = vpop.f32.mrb[241].mxu1 }
 0xccf   : > { %v8084_v3 = vadd.f32 %v20722_v1, %v7965_v24  ;;  %v17104_v10 = vpop.f32.mrb[242].mxu1  ;;  %17177 = vmatprep.mubr.bf16.mxu0 %v8186_v4 }
 0xcd0   : > { %v8087_v25 = vadd.f32 %v17104_v10, %v20722_v1  ;;  %v7968_v30 = vpop.f32.mrb[243].mxu1  ;;  %17178 = vmatmul.mubr.bf16.gmra.mrb[44].mxu0 %v8187_v13  ;;  %v8150_v40 = vmax.f32 %v8086_v11, 0.0 }
 0xcd1   : > { %v8085_v61 = vadd.f32 %v20722_v1, %v7968_v30  ;;  %v8148_v45 = vmax.f32 %v8084_v3, 0.0 }
 0xcd2   : > { %v8151_v28 = vmax.f32 %v8087_v25, 0.0 }
 0xcd3   : > { %v8149_v42 = vmax.f32 %v8085_v61, 0.0 }
 0xcd4   : > { %v8189_v49 = vpack.c.bf16 %v8151_v28, %v8150_v40 }
 0xcd5   : > { %v8188_v31 = vpack.c.bf16 %v8149_v42, %v8148_v45  ;;  %v17107_v47 = vpop.f32.mrb[244].mxu1 }
 0xcd6   : > { %v8090_v21 = vadd.f32 %v17107_v47, %v20722_v1  ;;  %v7981_v44 = vpop.f32.mrb[245].mxu1 }
 0xcd7   : > { %v8088_v50 = vadd.f32 %v20722_v1, %v7981_v44  ;;  %v17108_v52 = vpop.f32.mrb[246].mxu1  ;;  %17181 = vmatprep.mubr.bf16.mxu0 %v8188_v31 }
 0xcd8   : > { %v8091_v27 = vadd.f32 %v17108_v52, %v20722_v1  ;;  %v7984_v14 = vpop.f32.mrb[247].mxu1  ;;  %17182 = vmatmul.mubr.bf16.gmra.mrb[48].mxu0 %v8189_v49  ;;  %v8154_v16 = vmax.f32 %v8090_v21, 0.0 }
 0xcd9   : > { %v8089_v17 = vadd.f32 %v20722_v1, %v7984_v14  ;;  %v8152_v8 = vmax.f32 %v8088_v50, 0.0 }
 0xcda   : > { %v8155_v38 = vmax.f32 %v8091_v27, 0.0 }
 0xcdb   : > { %v8153_v22 = vmax.f32 %v8089_v17, 0.0 }
 0xcdc   : > { %v8191_v7 = vpack.c.bf16 %v8155_v38, %v8154_v16 }
 0xcdd   : > { %v8190_v2 = vpack.c.bf16 %v8153_v22, %v8152_v8  ;;  %v17111_v23 = vpop.f32.mrb[248].mxu1  ;;  %v18708_v22 = vld [vmem:[%s22031_s4 + $0x440] sm:$0xff]  }
 0xcde   : > { %v8094_v13 = vadd.f32 %v17111_v23, %v20722_v1  ;;  %v7997_v4 = vpop.f32.mrb[249].mxu1  ;;  %17277 = vmatprep.subr.bf16.mxu1 %v18708_v22 }
 0xcdf   : > { %v8092_v19 = vadd.f32 %v20722_v1, %v7997_v4  ;;  %v17112_v11 = vpop.f32.mrb[250].mxu1  ;;  %17185 = vmatprep.mubr.bf16.mxu0 %v8190_v2  ;;  %17278 = vmatpush3.bf16.msra.mxu1 %v18708_v22 }
 0xce0   : > { %v8095_v24 = vadd.f32 %v17112_v11, %v20722_v1  ;;  %v8000_v3 = vpop.f32.mrb[251].mxu1  ;;  %17186 = vmatmul.mubr.bf16.gmra.mrb[52].mxu0 %v8191_v7  ;;  %v8158_v25 = vmax.f32 %v8094_v13, 0.0  ;;  %v18709_v7 = vld [vmem:[%s22031_s4 + $0x448] sm:$0xff]  }
 0xce1   : > { %v8093_v10 = vadd.f32 %v20722_v1, %v8000_v3  ;;  %v8156_v61 = vmax.f32 %v8092_v19, 0.0  ;;  %17279 = vmatprep.subr.bf16.mxu1 %v18709_v7  ;;  %v18710_v3 = vld [vmem:[%s22031_s4 + $0x450] sm:$0xff]  }
 0xce2   : > { %v8159_v30 = vmax.f32 %v8095_v24, 0.0 }
 0xce3   : > { %v8157_v40 = vmax.f32 %v8093_v10, 0.0  ;;  %17280 = vmatpush3.bf16.msra.mxu1 %v18709_v7  ;;  %v18711_v10 = vld [vmem:[%s22031_s4 + $0x458] sm:$0xff]  }
 0xce4   : > { %v8193_v28 = vpack.c.bf16 %v8159_v30, %v8158_v25  ;;  %17281 = vmatprep.subr.bf16.mxu1 %v18710_v3 }
 0xce5   : > { %v8192_v45 = vpack.c.bf16 %v8157_v40, %v8156_v61  ;;  %v17115_v42 = vpop.f32.mrb[252].mxu1 }
 0xce6   : > { %v8098_v49 = vadd.f32 %v17115_v42, %v20722_v1  ;;  %v8013_v31 = vpop.f32.mrb[253].mxu1  ;;  %v18712_v42 = vld [vmem:[%s22031_s4 + $0x460] sm:$0xff]  }
 0xce7   : > { %v8096_v47 = vadd.f32 %v20722_v1, %v8013_v31  ;;  %v17116_v21 = vpop.f32.mrb[254].mxu1  ;;  %17189 = vmatprep.mubr.bf16.mxu0 %v8192_v45  ;;  %17282 = vmatpush3.bf16.msra.mxu1 %v18710_v3 }
 0xce8   : > { %v8099_v44 = vadd.f32 %v17116_v21, %v20722_v1  ;;  %v8016_v50 = vpop.f32.mrb[255].mxu1  ;;  %17190 = vmatmul.mubr.bf16.gmra.mrb[56].mxu0 %v8193_v28  ;;  %v8162_v27 = vmax.f32 %v8098_v49, 0.0  ;;  %17283 = vmatprep.subr.bf16.mxu1 %v18711_v10 }
 0xce9   : > { %v8097_v52 = vadd.f32 %v20722_v1, %v8016_v50  ;;  %v8160_v17 = vmax.f32 %v8096_v47, 0.0  ;;  %v20818_v1 = vld [vmem:[%s22033_s6 + $0xd] ss:$0 sm:$0xff] }
 0xcea   : > { %v8163_v14 = vmax.f32 %v8099_v44, 0.0 }
 0xceb   : > { %v8161_v16 = vmax.f32 %v8097_v52, 0.0  ;;  %17284 = vmatpush3.bf16.msra.mxu1 %v18711_v10 }
 0xcec   : > { %v8195_v38 = vpack.c.bf16 %v8163_v14, %v8162_v27  ;;  %17285 = vmatprep.subr.bf16.mxu1 %v18712_v42  ;;  %v18713_v14 = vld [vmem:[%s22031_s4 + $0x468] sm:$0xff]  }
 0xced   : > { %v8194_v8 = vpack.c.bf16 %v8161_v16, %v8160_v17 }
 0xcef   : > { %17193 = vmatprep.mubr.bf16.mxu0 %v8194_v8  ;;  %17286 = vmatpush3.bf16.msra.mxu1 %v18712_v42 }
 0xcf0   : > { %17194 = vmatmul.mubr.bf16.gmra.mrb[60].mxu0 %v8195_v38  ;;  %17287 = vmatprep.subr.bf16.mxu1 %v18713_v14 }
 0xcf3   : > { %17288 = vmatpush3.bf16.msra.mxu1 %v18713_v14 }
 0xd4b   : > { %v17135_v2 = vpop.f32.mrb[0].mxu0 }
 0xd4c   : > { %v8312_v23 = vadd.f32 %v17135_v2, %v20818_v1  ;;  %v8303_v13 = vpop.f32.mrb[1].mxu0  ;;  %v18714_v2 = vld [vmem:[%s22031_s4 + $0x470] sm:$0xff]  }
 0xd4d   : > { %v8304_v4 = vadd.f32 %v20818_v1, %v8303_v13  ;;  %v17136_v19 = vpop.f32.mrb[2].mxu0  ;;  %17289 = vmatprep.subr.bf16.mxu1 %v18714_v2 }
 0xd4e   : > { %v8315_v11 = vadd.f32 %v17136_v19, %v20818_v1  ;;  %v8306_v24 = vpop.f32.mrb[3].mxu0  ;;  %v8560_v30 = vmax.f32 %v8312_v23, 0.0  ;;  %17290 = vmatpush3.bf16.msra.mxu1 %v18714_v2 }
 0xd4f   : > { %v8307_v25 = vadd.f32 %v20818_v1, %v8306_v24  ;;  %v8558_v40 = vmax.f32 %v8304_v4, 0.0 }
 0xd50   : > { %v8561_v61 = vmax.f32 %v8315_v11, 0.0 }
 0xd51   : > { %v8559_v28 = vmax.f32 %v8307_v25, 0.0  ;;  %v18715_v25 = vld [vmem:[%s22031_s4 + $0x478] sm:$0xff]  }
 0xd52   : > { %v8623_v45 = vpack.c.bf16 %v8561_v61, %v8560_v30  ;;  %17291 = vmatprep.subr.bf16.mxu1 %v18715_v25 }
 0xd53   : > { %v17139_v49 = vpop.f32.mrb[4].mxu0  ;;  %v8622_v31 = vpack.c.bf16 %v8559_v28, %v8558_v40  ;;  %17292 = vmatpush3.bf16.msra.mxu1 %v18715_v25 }
 0xd54   : > { %v8328_v47 = vadd.f32 %v17139_v49, %v20818_v1  ;;  %v8319_v21 = vpop.f32.mrb[5].mxu0 }
 0xd55   : > { %v8320_v44 = vadd.f32 %v20818_v1, %v8319_v21  ;;  %v17140_v50 = vpop.f32.mrb[6].mxu0  ;;  %17213 = vmatprep.mubr.bf16.mxu0 %v8622_v31 }
 0xd56   : > { %v8331_v52 = vadd.f32 %v17140_v50, %v20818_v1  ;;  %v8322_v27 = vpop.f32.mrb[7].mxu0  ;;  %17214 = vmatmul.mubr.bf16.vlgmr.msra.gmra.mrb[64].mxu0 %v8623_v45  ;;  %v8564_v16 = vmax.f32 %v8328_v47, 0.0 }
 0xd57   : > { %v8323_v17 = vadd.f32 %v20818_v1, %v8322_v27  ;;  %v8562_v8 = vmax.f32 %v8320_v44, 0.0 }
 0xd58   : > { %v8565_v38 = vmax.f32 %v8331_v52, 0.0 }
 0xd59   : > { %v8563_v22 = vmax.f32 %v8323_v17, 0.0 }
 0xd5a   : > { %v8625_v7 = vpack.c.bf16 %v8565_v38, %v8564_v16 }
 0xd5b   : > { %v17143_v23 = vpop.f32.mrb[8].mxu0  ;;  %v8624_v13 = vpack.c.bf16 %v8563_v22, %v8562_v8 }
 0xd5c   : > { %v8344_v4 = vadd.f32 %v17143_v23, %v20818_v1  ;;  %v8335_v19 = vpop.f32.mrb[9].mxu0 }
 0xd5d   : > { %v8336_v11 = vadd.f32 %v20818_v1, %v8335_v19  ;;  %v17144_v24 = vpop.f32.mrb[10].mxu0  ;;  %17217 = vmatprep.mubr.bf16.mxu0 %v8624_v13 }
 0xd5e   : > { %v8347_v3 = vadd.f32 %v17144_v24, %v20818_v1  ;;  %v8338_v10 = vpop.f32.mrb[11].mxu0  ;;  %17218 = vmatmul.mubr.bf16.gmra.mrb[68].mxu0 %v8625_v7  ;;  %v8568_v61 = vmax.f32 %v8344_v4, 0.0 }
 0xd5f   : > { %v8339_v30 = vadd.f32 %v20818_v1, %v8338_v10  ;;  %v8566_v28 = vmax.f32 %v8336_v11, 0.0 }
 0xd60   : > { %v8569_v40 = vmax.f32 %v8347_v3, 0.0 }
 0xd61   : > { %v8567_v45 = vmax.f32 %v8339_v30, 0.0 }
 0xd62   : > { %v8627_v42 = vpack.c.bf16 %v8569_v40, %v8568_v61 }
 0xd63   : > { %v17147_v49 = vpop.f32.mrb[12].mxu0  ;;  %v8626_v31 = vpack.c.bf16 %v8567_v45, %v8566_v28 }
 0xd64   : > { %v8360_v47 = vadd.f32 %v17147_v49, %v20818_v1  ;;  %v8351_v21 = vpop.f32.mrb[13].mxu0 }
 0xd65   : > { %v8352_v44 = vadd.f32 %v20818_v1, %v8351_v21  ;;  %v17148_v50 = vpop.f32.mrb[14].mxu0  ;;  %17221 = vmatprep.mubr.bf16.mxu0 %v8626_v31 }
 0xd66   : > { %v8363_v52 = vadd.f32 %v17148_v50, %v20818_v1  ;;  %v8354_v27 = vpop.f32.mrb[15].mxu0  ;;  %17222 = vmatmul.mubr.bf16.gmra.mrb[72].mxu0 %v8627_v42  ;;  %v8572_v17 = vmax.f32 %v8360_v47, 0.0 }
 0xd67   : > { %v8355_v14 = vadd.f32 %v20818_v1, %v8354_v27  ;;  %v8570_v38 = vmax.f32 %v8352_v44, 0.0 }
 0xd68   : > { %v8573_v16 = vmax.f32 %v8363_v52, 0.0 }
 0xd69   : > { %v8571_v8 = vmax.f32 %v8355_v14, 0.0 }
 0xd6a   : > { %v8629_v22 = vpack.c.bf16 %v8573_v16, %v8572_v17 }
 0xd6b   : > { %v17151_v7 = vpop.f32.mrb[16].mxu0  ;;  %v8628_v2 = vpack.c.bf16 %v8571_v8, %v8570_v38 }
 0xd6c   : > { %v8376_v23 = vadd.f32 %v17151_v7, %v20818_v1  ;;  %v8367_v13 = vpop.f32.mrb[17].mxu0 }
 0xd6d   : > { %v8368_v4 = vadd.f32 %v20818_v1, %v8367_v13  ;;  %v17152_v19 = vpop.f32.mrb[18].mxu0  ;;  %17225 = vmatprep.mubr.bf16.mxu0 %v8628_v2 }
 0xd6e   : > { %v8379_v11 = vadd.f32 %v17152_v19, %v20818_v1  ;;  %v8370_v24 = vpop.f32.mrb[19].mxu0  ;;  %17226 = vmatmul.mubr.bf16.gmra.mrb[76].mxu0 %v8629_v22  ;;  %v8576_v10 = vmax.f32 %v8376_v23, 0.0 }
 0xd6f   : > { %v8371_v3 = vadd.f32 %v20818_v1, %v8370_v24  ;;  %v8574_v30 = vmax.f32 %v8368_v4, 0.0 }
 0xd70   : > { %v8577_v25 = vmax.f32 %v8379_v11, 0.0 }
 0xd71   : > { %v8575_v61 = vmax.f32 %v8371_v3, 0.0 }
 0xd72   : > { %v8631_v40 = vpack.c.bf16 %v8577_v25, %v8576_v10 }
 0xd73   : > { %v17155_v28 = vpop.f32.mrb[20].mxu0  ;;  %v8630_v45 = vpack.c.bf16 %v8575_v61, %v8574_v30 }
 0xd74   : > { %v8392_v42 = vadd.f32 %v17155_v28, %v20818_v1  ;;  %v8383_v49 = vpop.f32.mrb[21].mxu0 }
 0xd75   : > { %v8384_v31 = vadd.f32 %v20818_v1, %v8383_v49  ;;  %v17156_v47 = vpop.f32.mrb[22].mxu0  ;;  %17229 = vmatprep.mubr.bf16.mxu0 %v8630_v45 }
 0xd76   : > { %v8395_v21 = vadd.f32 %v17156_v47, %v20818_v1  ;;  %v8386_v44 = vpop.f32.mrb[23].mxu0  ;;  %17230 = vmatmul.mubr.bf16.gmra.mrb[80].mxu0 %v8631_v40  ;;  %v8580_v52 = vmax.f32 %v8392_v42, 0.0 }
 0xd77   : > { %v8387_v50 = vadd.f32 %v20818_v1, %v8386_v44  ;;  %v8578_v14 = vmax.f32 %v8384_v31, 0.0 }
 0xd78   : > { %v8581_v27 = vmax.f32 %v8395_v21, 0.0 }
 0xd79   : > { %v8579_v17 = vmax.f32 %v8387_v50, 0.0 }
 0xd7a   : > { %v8633_v16 = vpack.c.bf16 %v8581_v27, %v8580_v52 }
 0xd7b   : > { %v17159_v38 = vpop.f32.mrb[24].mxu0  ;;  %v8632_v8 = vpack.c.bf16 %v8579_v17, %v8578_v14 }
 0xd7c   : > { %v8408_v22 = vadd.f32 %v17159_v38, %v20818_v1  ;;  %v8399_v7 = vpop.f32.mrb[25].mxu0 }
 0xd7d   : > { %v8400_v2 = vadd.f32 %v20818_v1, %v8399_v7  ;;  %v17160_v23 = vpop.f32.mrb[26].mxu0  ;;  %17233 = vmatprep.mubr.bf16.mxu0 %v8632_v8 }
 0xd7e   : > { %v8411_v13 = vadd.f32 %v17160_v23, %v20818_v1  ;;  %v8402_v4 = vpop.f32.mrb[27].mxu0  ;;  %17234 = vmatmul.mubr.bf16.gmra.mrb[84].mxu0 %v8633_v16  ;;  %v8584_v11 = vmax.f32 %v8408_v22, 0.0 }
 0xd7f   : > { %v8403_v19 = vadd.f32 %v20818_v1, %v8402_v4  ;;  %v8582_v3 = vmax.f32 %v8400_v2, 0.0 }
 0xd80   : > { %v8585_v24 = vmax.f32 %v8411_v13, 0.0 }
 0xd81   : > { %v8583_v10 = vmax.f32 %v8403_v19, 0.0 }
 0xd82   : > { %v8635_v25 = vpack.c.bf16 %v8585_v24, %v8584_v11 }
 0xd83   : > { %v17163_v30 = vpop.f32.mrb[28].mxu0  ;;  %v8634_v61 = vpack.c.bf16 %v8583_v10, %v8582_v3 }
 0xd84   : > { %v8424_v40 = vadd.f32 %v17163_v30, %v20818_v1  ;;  %v8415_v28 = vpop.f32.mrb[29].mxu0 }
 0xd85   : > { %v8416_v45 = vadd.f32 %v20818_v1, %v8415_v28  ;;  %v17164_v42 = vpop.f32.mrb[30].mxu0  ;;  %17237 = vmatprep.mubr.bf16.mxu0 %v8634_v61 }
 0xd86   : > { %v8427_v49 = vadd.f32 %v17164_v42, %v20818_v1  ;;  %v8418_v31 = vpop.f32.mrb[31].mxu0  ;;  %17238 = vmatmul.mubr.bf16.gmra.mrb[88].mxu0 %v8635_v25  ;;  %v8588_v21 = vmax.f32 %v8424_v40, 0.0 }
 0xd87   : > { %v8419_v47 = vadd.f32 %v20818_v1, %v8418_v31  ;;  %v8586_v50 = vmax.f32 %v8416_v45, 0.0 }
 0xd88   : > { %v8589_v44 = vmax.f32 %v8427_v49, 0.0 }
 0xd89   : > { %v8587_v52 = vmax.f32 %v8419_v47, 0.0 }
 0xd8a   : > { %v8637_v27 = vpack.c.bf16 %v8589_v44, %v8588_v21 }
 0xd8b   : > { %v17167_v14 = vpop.f32.mrb[32].mxu0  ;;  %v8636_v17 = vpack.c.bf16 %v8587_v52, %v8586_v50 }
 0xd8c   : > { %v8440_v16 = vadd.f32 %v17167_v14, %v20818_v1  ;;  %v8431_v38 = vpop.f32.mrb[33].mxu0 }
 0xd8d   : > { %v8432_v8 = vadd.f32 %v20818_v1, %v8431_v38  ;;  %v17168_v22 = vpop.f32.mrb[34].mxu0  ;;  %17241 = vmatprep.mubr.bf16.mxu0 %v8636_v17 }
 0xd8e   : > { %v8443_v7 = vadd.f32 %v17168_v22, %v20818_v1  ;;  %v8434_v2 = vpop.f32.mrb[35].mxu0  ;;  %17242 = vmatmul.mubr.bf16.gmra.mrb[92].mxu0 %v8637_v27  ;;  %v8592_v13 = vmax.f32 %v8440_v16, 0.0 }
 0xd8f   : > { %v8435_v23 = vadd.f32 %v20818_v1, %v8434_v2  ;;  %v8590_v19 = vmax.f32 %v8432_v8, 0.0 }
 0xd90   : > { %v8593_v4 = vmax.f32 %v8443_v7, 0.0 }
 0xd91   : > { %v8591_v11 = vmax.f32 %v8435_v23, 0.0 }
 0xd92   : > { %v8639_v24 = vpack.c.bf16 %v8593_v4, %v8592_v13 }
 0xd93   : > { %v17171_v3 = vpop.f32.mrb[36].mxu0  ;;  %v8638_v10 = vpack.c.bf16 %v8591_v11, %v8590_v19 }
 0xd94   : > { %v8456_v25 = vadd.f32 %v17171_v3, %v20818_v1  ;;  %v8447_v30 = vpop.f32.mrb[37].mxu0 }
 0xd95   : > { %v8448_v61 = vadd.f32 %v20818_v1, %v8447_v30  ;;  %v17172_v40 = vpop.f32.mrb[38].mxu0  ;;  %17245 = vmatprep.mubr.bf16.mxu0 %v8638_v10 }
 0xd96   : > { %v8459_v28 = vadd.f32 %v17172_v40, %v20818_v1  ;;  %v8450_v45 = vpop.f32.mrb[39].mxu0  ;;  %17246 = vmatmul.mubr.bf16.gmra.mrb[96].mxu0 %v8639_v24  ;;  %v8596_v49 = vmax.f32 %v8456_v25, 0.0 }
 0xd97   : > { %v8451_v42 = vadd.f32 %v20818_v1, %v8450_v45  ;;  %v8594_v47 = vmax.f32 %v8448_v61, 0.0 }
 0xd98   : > { %v8597_v31 = vmax.f32 %v8459_v28, 0.0 }
 0xd99   : > { %v8595_v21 = vmax.f32 %v8451_v42, 0.0 }
 0xd9a   : > { %v8641_v44 = vpack.c.bf16 %v8597_v31, %v8596_v49 }
 0xd9b   : > { %v17175_v50 = vpop.f32.mrb[40].mxu0  ;;  %v8640_v52 = vpack.c.bf16 %v8595_v21, %v8594_v47 }
 0xd9c   : > { %v8472_v27 = vadd.f32 %v17175_v50, %v20818_v1  ;;  %v8463_v14 = vpop.f32.mrb[41].mxu0 }
 0xd9d   : > { %v8464_v17 = vadd.f32 %v20818_v1, %v8463_v14  ;;  %v17176_v16 = vpop.f32.mrb[42].mxu0  ;;  %17249 = vmatprep.mubr.bf16.mxu0 %v8640_v52 }
 0xd9e   : > { %v8475_v38 = vadd.f32 %v17176_v16, %v20818_v1  ;;  %v8466_v8 = vpop.f32.mrb[43].mxu0  ;;  %17250 = vmatmul.mubr.bf16.gmra.mrb[100].mxu0 %v8641_v44  ;;  %v8600_v7 = vmax.f32 %v8472_v27, 0.0 }
 0xd9f   : > { %v8467_v22 = vadd.f32 %v20818_v1, %v8466_v8  ;;  %v8598_v23 = vmax.f32 %v8464_v17, 0.0 }
 0xda0   : > { %v8601_v2 = vmax.f32 %v8475_v38, 0.0 }
 0xda1   : > { %v8599_v13 = vmax.f32 %v8467_v22, 0.0 }
 0xda2   : > { %v8643_v4 = vpack.c.bf16 %v8601_v2, %v8600_v7 }
 0xda3   : > { %v17179_v19 = vpop.f32.mrb[44].mxu0  ;;  %v8642_v11 = vpack.c.bf16 %v8599_v13, %v8598_v23 }
 0xda4   : > { %v8488_v24 = vadd.f32 %v17179_v19, %v20818_v1  ;;  %v8479_v3 = vpop.f32.mrb[45].mxu0 }
 0xda5   : > { %v8480_v10 = vadd.f32 %v20818_v1, %v8479_v3  ;;  %v17180_v25 = vpop.f32.mrb[46].mxu0  ;;  %17253 = vmatprep.mubr.bf16.mxu0 %v8642_v11 }
 0xda6   : > { %v8491_v30 = vadd.f32 %v17180_v25, %v20818_v1  ;;  %v8482_v61 = vpop.f32.mrb[47].mxu0  ;;  %17254 = vmatmul.mubr.bf16.gmra.mrb[104].mxu0 %v8643_v4  ;;  %v8604_v28 = vmax.f32 %v8488_v24, 0.0 }
 0xda7   : > { %v8483_v40 = vadd.f32 %v20818_v1, %v8482_v61  ;;  %v8602_v42 = vmax.f32 %v8480_v10, 0.0 }
 0xda8   : > { %v8605_v45 = vmax.f32 %v8491_v30, 0.0 }
 0xda9   : > { %v8603_v49 = vmax.f32 %v8483_v40, 0.0 }
 0xdaa   : > { %v8645_v31 = vpack.c.bf16 %v8605_v45, %v8604_v28 }
 0xdab   : > { %v17183_v47 = vpop.f32.mrb[48].mxu0  ;;  %v8644_v21 = vpack.c.bf16 %v8603_v49, %v8602_v42 }
 0xdac   : > { %v8504_v44 = vadd.f32 %v17183_v47, %v20818_v1  ;;  %v8495_v50 = vpop.f32.mrb[49].mxu0 }
 0xdad   : > { %v8496_v52 = vadd.f32 %v20818_v1, %v8495_v50  ;;  %v17184_v27 = vpop.f32.mrb[50].mxu0  ;;  %17257 = vmatprep.mubr.bf16.mxu0 %v8644_v21 }
 0xdae   : > { %v8507_v14 = vadd.f32 %v17184_v27, %v20818_v1  ;;  %v8498_v17 = vpop.f32.mrb[51].mxu0  ;;  %17258 = vmatmul.mubr.bf16.gmra.mrb[108].mxu0 %v8645_v31  ;;  %v8608_v38 = vmax.f32 %v8504_v44, 0.0 }
 0xdaf   : > { %v8499_v16 = vadd.f32 %v20818_v1, %v8498_v17  ;;  %v8606_v22 = vmax.f32 %v8496_v52, 0.0 }
 0xdb0   : > { %v8609_v8 = vmax.f32 %v8507_v14, 0.0 }
 0xdb1   : > { %v8607_v7 = vmax.f32 %v8499_v16, 0.0 }
 0xdb2   : > { %v8647_v2 = vpack.c.bf16 %v8609_v8, %v8608_v38 }
 0xdb3   : > { %v17187_v23 = vpop.f32.mrb[52].mxu0  ;;  %v8646_v13 = vpack.c.bf16 %v8607_v7, %v8606_v22 }
 0xdb4   : > { %v8520_v4 = vadd.f32 %v17187_v23, %v20818_v1  ;;  %v8511_v19 = vpop.f32.mrb[53].mxu0 }
 0xdb5   : > { %v8512_v11 = vadd.f32 %v20818_v1, %v8511_v19  ;;  %v17188_v24 = vpop.f32.mrb[54].mxu0  ;;  %17261 = vmatprep.mubr.bf16.mxu0 %v8646_v13 }
 0xdb6   : > { %v8523_v3 = vadd.f32 %v17188_v24, %v20818_v1  ;;  %v8514_v10 = vpop.f32.mrb[55].mxu0  ;;  %17262 = vmatmul.mubr.bf16.gmra.mrb[112].mxu0 %v8647_v2  ;;  %v8612_v30 = vmax.f32 %v8520_v4, 0.0 }
 0xdb7   : > { %v8515_v25 = vadd.f32 %v20818_v1, %v8514_v10  ;;  %v8610_v40 = vmax.f32 %v8512_v11, 0.0 }
 0xdb8   : > { %v8613_v61 = vmax.f32 %v8523_v3, 0.0 }
 0xdb9   : > { %v8611_v28 = vmax.f32 %v8515_v25, 0.0 }
 0xdba   : > { %v8649_v45 = vpack.c.bf16 %v8613_v61, %v8612_v30 }
 0xdbb   : > { %v17191_v42 = vpop.f32.mrb[56].mxu0  ;;  %v8648_v49 = vpack.c.bf16 %v8611_v28, %v8610_v40  ;;  %v18716_v28 = vld [vmem:[%s22031_s4 + $0x4c0] sm:$0xff]  }
 0xdbc   : > { %v8536_v31 = vadd.f32 %v17191_v42, %v20818_v1  ;;  %v8527_v47 = vpop.f32.mrb[57].mxu0  ;;  %17437 = vmatprep.subr.bf16.mxu1 %v18716_v28  ;;  %v20914_v42 = vld [vmem:[%s22033_s6 + $0xe] ss:$0 sm:$0xff] }
 0xdbd   : > { %v8528_v21 = vadd.f32 %v20818_v1, %v8527_v47  ;;  %v17192_v44 = vpop.f32.mrb[58].mxu0  ;;  %17265 = vmatprep.mubr.bf16.mxu0 %v8648_v49 }
 0xdbe   : > { %v8539_v50 = vadd.f32 %v17192_v44, %v20818_v1  ;;  %v8530_v52 = vpop.f32.mrb[59].mxu0  ;;  %17266 = vmatmul.mubr.bf16.gmra.mrb[116].mxu0 %v8649_v45  ;;  %v8616_v14 = vmax.f32 %v8536_v31, 0.0  ;;  %v18719_v45 = vld [vmem:[%s22031_s4 + $0x480] sm:$0xff]  }
 0xdbf   : > { %v8531_v27 = vadd.f32 %v20818_v1, %v8530_v52  ;;  %v8614_v16 = vmax.f32 %v8528_v21, 0.0  ;;  %17357 = vmatprep.subr.bf16.mxu0 %v18719_v45 }
 0xdc0   : > { %v8617_v17 = vmax.f32 %v8539_v50, 0.0  ;;  %17358 = vmatpush3.bf16.msra.mxu0 %v18719_v45 }
 0xdc1   : > { %v8615_v38 = vmax.f32 %v8531_v27, 0.0 }
 0xdc2   : > { %v8651_v8 = vpack.c.bf16 %v8617_v17, %v8616_v14  ;;  %v18726_v14 = vld [vmem:[%s22031_s4 + $0x490] sm:$0xff]  }
 0xdc3   : > { %v17195_v22 = vpop.f32.mrb[60].mxu0  ;;  %v8650_v7 = vpack.c.bf16 %v8615_v38, %v8614_v16 }
 0xdc4   : > { %v8552_v2 = vadd.f32 %v17195_v22, %v20818_v1  ;;  %v8543_v23 = vpop.f32.mrb[61].mxu0 }
 0xdc5   : > { %v8544_v13 = vadd.f32 %v20818_v1, %v8543_v23  ;;  %v17196_v4 = vpop.f32.mrb[62].mxu0  ;;  %17269 = vmatprep.mubr.bf16.mxu0 %v8650_v7 }
 0xdc6   : > { %v8555_v19 = vadd.f32 %v17196_v4, %v20818_v1  ;;  %v8546_v11 = vpop.f32.mrb[63].mxu0  ;;  %17270 = vmatmul.mubr.bf16.gmra.mrb[120].mxu0 %v8651_v8  ;;  %v8620_v3 = vmax.f32 %v8552_v2, 0.0  ;;  %v18717_v4 = vld [vmem:[%s22031_s4 + $0x4c8] sm:$0xff]  }
 0xdc7   : > { %v8547_v24 = vadd.f32 %v20818_v1, %v8546_v11  ;;  %v8618_v25 = vmax.f32 %v8544_v13, 0.0  ;;  %v18721_v1 = vld [vmem:[%s22031_s4 + $0x488] sm:$0xff]  }
 0xdc8   : > { %v8621_v10 = vmax.f32 %v8555_v19, 0.0  ;;  %17359 = vmatprep.subr.bf16.mxu0 %v18721_v1 }
 0xdc9   : > { %v8619_v30 = vmax.f32 %v8547_v24, 0.0  ;;  %17360 = vmatpush3.bf16.msra.mxu0 %v18721_v1 }
 0xdca   : > { %v8653_v61 = vpack.c.bf16 %v8621_v10, %v8620_v3  ;;  %17361 = vmatprep.subr.bf16.mxu0 %v18726_v14 }
 0xdcb   : > { %v8652_v40 = vpack.c.bf16 %v8619_v30, %v8618_v25 }
 0xdcd   : > { %17273 = vmatprep.mubr.bf16.mxu0 %v8652_v40  ;;  %17362 = vmatpush3.bf16.msra.mxu0 %v18726_v14 }
 0xdce   : > { %17274 = vmatmul.mubr.bf16.gmra.mrb[124].mxu0 %v8653_v61  ;;  %v18718_v61 = vld [vmem:[%s22031_s4 + $0x4d0] sm:$0xff]  }
 0xe29   : > { %v17215_v49 = vpop.f32.mrb[64].mxu0 }
 0xe2a   : > { %v8770_v31 = vadd.f32 %v17215_v49, %v20914_v42  ;;  %v8761_v47 = vpop.f32.mrb[65].mxu0 }
 0xe2b   : > { %v8762_v21 = vadd.f32 %v20914_v42, %v8761_v47  ;;  %v17216_v44 = vpop.f32.mrb[66].mxu0 }
 0xe2c   : > { %v8773_v50 = vadd.f32 %v17216_v44, %v20914_v42  ;;  %v8764_v52 = vpop.f32.mrb[67].mxu0  ;;  %v9018_v17 = vmax.f32 %v8770_v31, 0.0 }
 0xe2d   : > { %v8765_v27 = vadd.f32 %v20914_v42, %v8764_v52  ;;  %v9016_v38 = vmax.f32 %v8762_v21, 0.0 }
 0xe2e   : > { %v9019_v16 = vmax.f32 %v8773_v50, 0.0 }
 0xe2f   : > { %v9017_v8 = vmax.f32 %v8765_v27, 0.0 }
 0xe30   : > { %v9081_v22 = vpack.c.bf16 %v9019_v16, %v9018_v17  ;;  %v18727_v17 = vld [vmem:[%s22031_s4 + $0x498] sm:$0xff]  }
 0xe31   : > { %v17219_v7 = vpop.f32.mrb[68].mxu0  ;;  %v9080_v2 = vpack.c.bf16 %v9017_v8, %v9016_v38  ;;  %v18722_v8 = vld [vmem:[%s22031_s4 + $0x4e0] sm:$0xff]   ;;  %17363 = vmatprep.subr.bf16.mxu0 %v18727_v17 }
 0xe32   : > { %v8786_v23 = vadd.f32 %v17219_v7, %v20914_v42  ;;  %v8777_v13 = vpop.f32.mrb[69].mxu0  ;;  %17364 = vmatpush3.bf16.msra.mxu0 %v18727_v17 }
 0xe33   : > { %v8778_v19 = vadd.f32 %v20914_v42, %v8777_v13  ;;  %v17220_v11 = vpop.f32.mrb[70].mxu0  ;;  %17293 = vmatprep.mubr.bf16.mxu1 %v9080_v2 }
 0xe34   : > { %v8789_v24 = vadd.f32 %v17220_v11, %v20914_v42  ;;  %v8780_v3 = vpop.f32.mrb[71].mxu0  ;;  %17294 = vmatmul.mubr.bf16.vlgmr.msra.gmra.mrb[0].mxu1 %v9081_v22  ;;  %v9022_v25 = vmax.f32 %v8786_v23, 0.0  ;;  %v18723_v11 = vld [vmem:[%s22031_s4 + $0x4e8] sm:$0xff]  }
 0xe35   : > { %v8781_v10 = vadd.f32 %v20914_v42, %v8780_v3  ;;  %17438 = vmatpush3.bf16.msra.mxu1 %v18716_v28  ;;  %v9020_v40 = vmax.f32 %v8778_v19, 0.0  ;;  %v18720_v28 = vld [vmem:[%s22031_s4 + $0x4d8] sm:$0xff]  }
 0xe36   : > { %v9023_v30 = vmax.f32 %v8789_v24, 0.0  ;;  %17439 = vmatprep.subr.bf16.mxu1 %v18717_v4 }
 0xe37   : > { %v9021_v45 = vmax.f32 %v8781_v10, 0.0 }
 0xe38   : > { %v9083_v1 = vpack.c.bf16 %v9023_v30, %v9022_v25 }
 0xe39   : > { %v17223_v49 = vpop.f32.mrb[72].mxu0  ;;  %v9082_v31 = vpack.c.bf16 %v9021_v45, %v9020_v40  ;;  %17440 = vmatpush3.bf16.msra.mxu1 %v18717_v4  ;;  %v18724_v45 = vld [vmem:[%s22031_s4 + $0x4f0] sm:$0xff]  }
 0xe3a   : > { %v8802_v47 = vadd.f32 %v17223_v49, %v20914_v42  ;;  %v8793_v21 = vpop.f32.mrb[73].mxu0  ;;  %17441 = vmatprep.subr.bf16.mxu1 %v18718_v61 }
 0xe3b   : > { %v8794_v44 = vadd.f32 %v20914_v42, %v8793_v21  ;;  %v17224_v50 = vpop.f32.mrb[74].mxu0  ;;  %17297 = vmatprep.mubr.bf16.mxu1 %v9082_v31 }
 0xe3c   : > { %v8805_v52 = vadd.f32 %v17224_v50, %v20914_v42  ;;  %v8796_v27 = vpop.f32.mrb[75].mxu0  ;;  %17298 = vmatmul.mubr.bf16.gmra.mrb[4].mxu1 %v9083_v1  ;;  %v9026_v16 = vmax.f32 %v8802_v47, 0.0  ;;  %v18725_v50 = vld [vmem:[%s22031_s4 + $0x4f8] sm:$0xff]  }
 0xe3d   : > { %v8797_v14 = vadd.f32 %v20914_v42, %v8796_v27  ;;  %17442 = vmatpush3.bf16.msra.mxu1 %v18718_v61  ;;  %v9024_v22 = vmax.f32 %v8794_v44, 0.0 }
 0xe3e   : > { %v9027_v38 = vmax.f32 %v8805_v52, 0.0  ;;  %17443 = vmatprep.subr.bf16.mxu1 %v18720_v28 }
 0xe3f   : > { %v9025_v7 = vmax.f32 %v8797_v14, 0.0 }
 0xe40   : > { %v9085_v2 = vpack.c.bf16 %v9027_v38, %v9026_v16  ;;  %v18728_v38 = vld [vmem:[%s22031_s4 + $0x4a0] sm:$0xff]  }
 0xe41   : > { %v17227_v23 = vpop.f32.mrb[76].mxu0  ;;  %v9084_v13 = vpack.c.bf16 %v9025_v7, %v9024_v22  ;;  %17444 = vmatpush3.bf16.msra.mxu1 %v18720_v28  ;;  %17365 = vmatprep.subr.bf16.mxu0 %v18728_v38 }
 0xe42   : > { %v8818_v4 = vadd.f32 %v17227_v23, %v20914_v42  ;;  %v8809_v19 = vpop.f32.mrb[77].mxu0  ;;  %17445 = vmatprep.subr.bf16.mxu1 %v18722_v8  ;;  %17366 = vmatpush3.bf16.msra.mxu0 %v18728_v38 }
 0xe43   : > { %v8810_v24 = vadd.f32 %v20914_v42, %v8809_v19  ;;  %v17228_v3 = vpop.f32.mrb[78].mxu0  ;;  %17301 = vmatprep.mubr.bf16.mxu1 %v9084_v13 }
 0xe44   : > { %v8821_v10 = vadd.f32 %v17228_v3, %v20914_v42  ;;  %v8812_v25 = vpop.f32.mrb[79].mxu0  ;;  %17302 = vmatmul.mubr.bf16.gmra.mrb[8].mxu1 %v9085_v2  ;;  %v9030_v61 = vmax.f32 %v8818_v4, 0.0 }
 0xe45   : > { %v8813_v30 = vadd.f32 %v20914_v42, %v8812_v25  ;;  %17446 = vmatpush3.bf16.msra.mxu1 %v18722_v8  ;;  %v9028_v1 = vmax.f32 %v8810_v24, 0.0 }
 0xe46   : > { %v9031_v40 = vmax.f32 %v8821_v10, 0.0  ;;  %17447 = vmatprep.subr.bf16.mxu1 %v18723_v11 }
 0xe47   : > { %v9029_v49 = vmax.f32 %v8813_v30, 0.0 }
 0xe48   : > { %v9087_v31 = vpack.c.bf16 %v9031_v40, %v9030_v61 }
 0xe49   : > { %v17231_v47 = vpop.f32.mrb[80].mxu0  ;;  %v9086_v21 = vpack.c.bf16 %v9029_v49, %v9028_v1  ;;  %17448 = vmatpush3.bf16.msra.mxu1 %v18723_v11 }
 0xe4a   : > { %v8834_v28 = vadd.f32 %v17231_v47, %v20914_v42  ;;  %v8825_v44 = vpop.f32.mrb[81].mxu0  ;;  %17449 = vmatprep.subr.bf16.mxu1 %v18724_v45 }
 0xe4b   : > { %v8826_v52 = vadd.f32 %v20914_v42, %v8825_v44  ;;  %v17232_v27 = vpop.f32.mrb[82].mxu0  ;;  %17305 = vmatprep.mubr.bf16.mxu1 %v9086_v21 }
 0xe4c   : > { %v8837_v14 = vadd.f32 %v17232_v27, %v20914_v42  ;;  %v8828_v17 = vpop.f32.mrb[83].mxu0  ;;  %17306 = vmatmul.mubr.bf16.gmra.mrb[12].mxu1 %v9087_v31  ;;  %v9034_v8 = vmax.f32 %v8834_v28, 0.0 }
 0xe4d   : > { %v8829_v16 = vadd.f32 %v20914_v42, %v8828_v17  ;;  %17450 = vmatpush3.bf16.msra.mxu1 %v18724_v45  ;;  %v9032_v7 = vmax.f32 %v8826_v52, 0.0  ;;  %v18729_v17 = vld [vmem:[%s22031_s4 + $0x4a8] sm:$0xff]  }
 0xe4e   : > { %v9035_v22 = vmax.f32 %v8837_v14, 0.0  ;;  %17451 = vmatprep.subr.bf16.mxu1 %v18725_v50  ;;  %17367 = vmatprep.subr.bf16.mxu0 %v18729_v17 }
 0xe4f   : > { %v9033_v2 = vmax.f32 %v8829_v16, 0.0  ;;  %17368 = vmatpush3.bf16.msra.mxu0 %v18729_v17 }
 0xe50   : > { %v9089_v23 = vpack.c.bf16 %v9035_v22, %v9034_v8 }
 0xe51   : > { %v17235_v13 = vpop.f32.mrb[84].mxu0  ;;  %v9088_v4 = vpack.c.bf16 %v9033_v2, %v9032_v7  ;;  %17452 = vmatpush3.bf16.msra.mxu1 %v18725_v50 }
 0xe52   : > { %v8850_v19 = vadd.f32 %v17235_v13, %v20914_v42  ;;  %v8841_v11 = vpop.f32.mrb[85].mxu0 }
 0xe53   : > { %v8842_v24 = vadd.f32 %v20914_v42, %v8841_v11  ;;  %v17236_v3 = vpop.f32.mrb[86].mxu0  ;;  %17309 = vmatprep.mubr.bf16.mxu1 %v9088_v4 }
 0xe54   : > { %v8853_v10 = vadd.f32 %v17236_v3, %v20914_v42  ;;  %v8844_v25 = vpop.f32.mrb[87].mxu0  ;;  %17310 = vmatmul.mubr.bf16.gmra.mrb[16].mxu1 %v9089_v23  ;;  %v9038_v61 = vmax.f32 %v8850_v19, 0.0 }
 0xe55   : > { %v8845_v30 = vadd.f32 %v20914_v42, %v8844_v25  ;;  %v9036_v45 = vmax.f32 %v8842_v24, 0.0 }
 0xe56   : > { %v9039_v40 = vmax.f32 %v8853_v10, 0.0 }
 0xe57   : > { %v9037_v1 = vmax.f32 %v8845_v30, 0.0 }
 0xe58   : > { %v9091_v49 = vpack.c.bf16 %v9039_v40, %v9038_v61 }
 0xe59   : > { %v17239_v31 = vpop.f32.mrb[88].mxu0  ;;  %v9090_v47 = vpack.c.bf16 %v9037_v1, %v9036_v45 }
 0xe5a   : > { %v8866_v21 = vadd.f32 %v17239_v31, %v20914_v42  ;;  %v8857_v28 = vpop.f32.mrb[89].mxu0 }
 0xe5b   : > { %v8858_v44 = vadd.f32 %v20914_v42, %v8857_v28  ;;  %v17240_v50 = vpop.f32.mrb[90].mxu0  ;;  %17313 = vmatprep.mubr.bf16.mxu1 %v9090_v47 }
 0xe5c   : > { %v8869_v52 = vadd.f32 %v17240_v50, %v20914_v42  ;;  %v8860_v27 = vpop.f32.mrb[91].mxu0  ;;  %17314 = vmatmul.mubr.bf16.gmra.mrb[20].mxu1 %v9091_v49  ;;  %v9042_v16 = vmax.f32 %v8866_v21, 0.0 }
 0xe5d   : > { %v8861_v14 = vadd.f32 %v20914_v42, %v8860_v27  ;;  %v9040_v8 = vmax.f32 %v8858_v44, 0.0  ;;  %v20988_v27 = vld [vmem:[%s22032_s5 + $0x10] sm:$0xff]  }
 0xe5e   : > { %v9043_v38 = vmax.f32 %v8869_v52, 0.0  ;;  %17517 = vmatprep.subr.bf16.mxu1 %v20988_v27 }
 0xe5f   : > { %v9041_v22 = vmax.f32 %v8861_v14, 0.0  ;;  %v18731_v14 = vld [vmem:[%s22031_s4 + $0x4b0] sm:$0xff]  }
 0xe60   : > { %v9093_v7 = vpack.c.bf16 %v9043_v38, %v9042_v16  ;;  %17369 = vmatprep.subr.bf16.mxu0 %v18731_v14 }
 0xe61   : > { %v17243_v2 = vpop.f32.mrb[92].mxu0  ;;  %v9092_v23 = vpack.c.bf16 %v9041_v22, %v9040_v8  ;;  %17370 = vmatpush3.bf16.msra.mxu0 %v18731_v14 }
 0xe62   : > { %v8882_v13 = vadd.f32 %v17243_v2, %v20914_v42  ;;  %v8873_v4 = vpop.f32.mrb[93].mxu0 }
 0xe63   : > { %v8874_v19 = vadd.f32 %v20914_v42, %v8873_v4  ;;  %v17244_v11 = vpop.f32.mrb[94].mxu0  ;;  %17317 = vmatprep.mubr.bf16.mxu1 %v9092_v23 }
 0xe64   : > { %v8885_v24 = vadd.f32 %v17244_v11, %v20914_v42  ;;  %v8876_v3 = vpop.f32.mrb[95].mxu0  ;;  %17318 = vmatmul.mubr.bf16.gmra.mrb[24].mxu1 %v9093_v7  ;;  %v9046_v25 = vmax.f32 %v8882_v13, 0.0 }
 0xe65   : > { %v8877_v10 = vadd.f32 %v20914_v42, %v8876_v3  ;;  %v9044_v61 = vmax.f32 %v8874_v19, 0.0 }
 0xe66   : > { %v9047_v30 = vmax.f32 %v8885_v24, 0.0 }
 0xe67   : > { %v9045_v40 = vmax.f32 %v8877_v10, 0.0 }
 0xe68   : > { %v9095_v45 = vpack.c.bf16 %v9047_v30, %v9046_v25 }
 0xe69   : > { %v17247_v1 = vpop.f32.mrb[96].mxu0  ;;  %v9094_v49 = vpack.c.bf16 %v9045_v40, %v9044_v61 }
 0xe6a   : > { %v8898_v31 = vadd.f32 %v17247_v1, %v20914_v42  ;;  %v8889_v47 = vpop.f32.mrb[97].mxu0 }
 0xe6b   : > { %v8890_v21 = vadd.f32 %v20914_v42, %v8889_v47  ;;  %v17248_v28 = vpop.f32.mrb[98].mxu0  ;;  %17321 = vmatprep.mubr.bf16.mxu1 %v9094_v49 }
 0xe6c   : > { %v8901_v44 = vadd.f32 %v17248_v28, %v20914_v42  ;;  %v8892_v50 = vpop.f32.mrb[99].mxu0  ;;  %17322 = vmatmul.mubr.bf16.gmra.mrb[28].mxu1 %v9095_v45  ;;  %v9050_v17 = vmax.f32 %v8898_v31, 0.0 }
 0xe6d   : > { %v8893_v52 = vadd.f32 %v20914_v42, %v8892_v50  ;;  %v9048_v38 = vmax.f32 %v8890_v21, 0.0 }
 0xe6e   : > { %v9051_v16 = vmax.f32 %v8901_v44, 0.0 }
 0xe6f   : > { %v9049_v8 = vmax.f32 %v8893_v52, 0.0  ;;  %v18732_v52 = vld [vmem:[%s22031_s4 + $0x4b8] sm:$0xff]  }
 0xe70   : > { %v9097_v22 = vpack.c.bf16 %v9051_v16, %v9050_v17  ;;  %17371 = vmatprep.subr.bf16.mxu0 %v18732_v52 }
 0xe71   : > { %v17251_v7 = vpop.f32.mrb[100].mxu0  ;;  %v9096_v2 = vpack.c.bf16 %v9049_v8, %v9048_v38  ;;  %17372 = vmatpush3.bf16.msra.mxu0 %v18732_v52 }
 0xe72   : > { %v8914_v23 = vadd.f32 %v17251_v7, %v20914_v42  ;;  %v8905_v13 = vpop.f32.mrb[101].mxu0 }
 0xe73   : > { %v8906_v4 = vadd.f32 %v20914_v42, %v8905_v13  ;;  %v17252_v19 = vpop.f32.mrb[102].mxu0  ;;  %17325 = vmatprep.mubr.bf16.mxu1 %v9096_v2 }
 0xe74   : > { %v8917_v11 = vadd.f32 %v17252_v19, %v20914_v42  ;;  %v8908_v24 = vpop.f32.mrb[103].mxu0  ;;  %17326 = vmatmul.mubr.bf16.gmra.mrb[32].mxu1 %v9097_v22  ;;  %v9054_v10 = vmax.f32 %v8914_v23, 0.0 }
 0xe75   : > { %v8909_v3 = vadd.f32 %v20914_v42, %v8908_v24  ;;  %v9052_v30 = vmax.f32 %v8906_v4, 0.0 }
 0xe76   : > { %v9055_v25 = vmax.f32 %v8917_v11, 0.0 }
 0xe77   : > { %v9053_v61 = vmax.f32 %v8909_v3, 0.0 }
 0xe78   : > { %v9099_v40 = vpack.c.bf16 %v9055_v25, %v9054_v10 }
 0xe79   : > { %v17255_v45 = vpop.f32.mrb[104].mxu0  ;;  %v9098_v1 = vpack.c.bf16 %v9053_v61, %v9052_v30 }
 0xe7a   : > { %v8930_v49 = vadd.f32 %v17255_v45, %v20914_v42  ;;  %v8921_v31 = vpop.f32.mrb[105].mxu0 }
 0xe7b   : > { %v8922_v47 = vadd.f32 %v20914_v42, %v8921_v31  ;;  %v17256_v21 = vpop.f32.mrb[106].mxu0  ;;  %17329 = vmatprep.mubr.bf16.mxu1 %v9098_v1 }
 0xe7c   : > { %v8933_v28 = vadd.f32 %v17256_v21, %v20914_v42  ;;  %v8924_v44 = vpop.f32.mrb[107].mxu0  ;;  %17330 = vmatmul.mubr.bf16.gmra.mrb[36].mxu1 %v9099_v40  ;;  %v9058_v14 = vmax.f32 %v8930_v49, 0.0 }
 0xe7d   : > { %v8925_v50 = vadd.f32 %v20914_v42, %v8924_v44  ;;  %v9056_v16 = vmax.f32 %v8922_v47, 0.0 }
 0xe7e   : > { %v9059_v17 = vmax.f32 %v8933_v28, 0.0 }
 0xe7f   : > { %v9057_v38 = vmax.f32 %v8925_v50, 0.0 }
 0xe80   : > { %v9101_v8 = vpack.c.bf16 %v9059_v17, %v9058_v14 }
 0xe81   : > { %v17259_v22 = vpop.f32.mrb[108].mxu0  ;;  %v9100_v7 = vpack.c.bf16 %v9057_v38, %v9056_v16 }
 0xe82   : > { %v8946_v2 = vadd.f32 %v17259_v22, %v20914_v42  ;;  %v8937_v23 = vpop.f32.mrb[109].mxu0 }
 0xe83   : > { %v8938_v13 = vadd.f32 %v20914_v42, %v8937_v23  ;;  %v17260_v4 = vpop.f32.mrb[110].mxu0  ;;  %17333 = vmatprep.mubr.bf16.mxu1 %v9100_v7 }
 0xe84   : > { %v8949_v19 = vadd.f32 %v17260_v4, %v20914_v42  ;;  %v8940_v11 = vpop.f32.mrb[111].mxu0  ;;  %17334 = vmatmul.mubr.bf16.gmra.mrb[40].mxu1 %v9101_v8  ;;  %v9062_v3 = vmax.f32 %v8946_v2, 0.0 }
 0xe85   : > { %v8941_v24 = vadd.f32 %v20914_v42, %v8940_v11  ;;  %v9060_v25 = vmax.f32 %v8938_v13, 0.0 }
 0xe86   : > { %v9063_v10 = vmax.f32 %v8949_v19, 0.0 }
 0xe87   : > { %v9061_v30 = vmax.f32 %v8941_v24, 0.0 }
 0xe88   : > { %v9103_v61 = vpack.c.bf16 %v9063_v10, %v9062_v3 }
 0xe89   : > { %v17263_v40 = vpop.f32.mrb[112].mxu0  ;;  %v9102_v45 = vpack.c.bf16 %v9061_v30, %v9060_v25 }
 0xe8a   : > { %v8962_v1 = vadd.f32 %v17263_v40, %v20914_v42  ;;  %v8953_v49 = vpop.f32.mrb[113].mxu0 }
 0xe8b   : > { %v8954_v31 = vadd.f32 %v20914_v42, %v8953_v49  ;;  %v17264_v47 = vpop.f32.mrb[114].mxu0  ;;  %17337 = vmatprep.mubr.bf16.mxu1 %v9102_v45 }
 0xe8c   : > { %v8965_v21 = vadd.f32 %v17264_v47, %v20914_v42  ;;  %v8956_v28 = vpop.f32.mrb[115].mxu0  ;;  %17338 = vmatmul.mubr.bf16.gmra.mrb[44].mxu1 %v9103_v61  ;;  %v9066_v50 = vmax.f32 %v8962_v1, 0.0 }
 0xe8d   : > { %v8957_v44 = vadd.f32 %v20914_v42, %v8956_v28  ;;  %v9064_v14 = vmax.f32 %v8954_v31, 0.0 }
 0xe8e   : > { %v9067_v52 = vmax.f32 %v8965_v21, 0.0 }
 0xe8f   : > { %v9065_v17 = vmax.f32 %v8957_v44, 0.0 }
 0xe90   : > { %v9105_v16 = vpack.c.bf16 %v9067_v52, %v9066_v50 }
 0xe91   : > { %v17267_v38 = vpop.f32.mrb[116].mxu0  ;;  %v9104_v8 = vpack.c.bf16 %v9065_v17, %v9064_v14 }
 0xe92   : > { %v8978_v22 = vadd.f32 %v17267_v38, %v20914_v42  ;;  %v8969_v7 = vpop.f32.mrb[117].mxu0 }
 0xe93   : > { %v8970_v2 = vadd.f32 %v20914_v42, %v8969_v7  ;;  %v17268_v23 = vpop.f32.mrb[118].mxu0  ;;  %17341 = vmatprep.mubr.bf16.mxu1 %v9104_v8 }
 0xe94   : > { %v8981_v13 = vadd.f32 %v17268_v23, %v20914_v42  ;;  %v8972_v4 = vpop.f32.mrb[119].mxu0  ;;  %17342 = vmatmul.mubr.bf16.gmra.mrb[48].mxu1 %v9105_v16  ;;  %v9070_v11 = vmax.f32 %v8978_v22, 0.0 }
 0xe95   : > { %v8973_v19 = vadd.f32 %v20914_v42, %v8972_v4  ;;  %v9068_v3 = vmax.f32 %v8970_v2, 0.0 }
 0xe96   : > { %v9071_v24 = vmax.f32 %v8981_v13, 0.0 }
 0xe97   : > { %v9069_v10 = vmax.f32 %v8973_v19, 0.0 }
 0xe98   : > { %v9107_v25 = vpack.c.bf16 %v9071_v24, %v9070_v11 }
 0xe99   : > { %v17271_v30 = vpop.f32.mrb[120].mxu0  ;;  %v9106_v61 = vpack.c.bf16 %v9069_v10, %v9068_v3 }
 0xe9a   : > { %v8994_v40 = vadd.f32 %v17271_v30, %v20914_v42  ;;  %v8985_v45 = vpop.f32.mrb[121].mxu0 }
 0xe9b   : > { %v8986_v1 = vadd.f32 %v20914_v42, %v8985_v45  ;;  %v17272_v49 = vpop.f32.mrb[122].mxu0  ;;  %17345 = vmatprep.mubr.bf16.mxu1 %v9106_v61 }
 0xe9c   : > { %v8997_v31 = vadd.f32 %v17272_v49, %v20914_v42  ;;  %v8988_v47 = vpop.f32.mrb[123].mxu0  ;;  %17346 = vmatmul.mubr.bf16.gmra.mrb[52].mxu1 %v9107_v25  ;;  %v9074_v28 = vmax.f32 %v8994_v40, 0.0 }
 0xe9d   : > { %v8989_v21 = vadd.f32 %v20914_v42, %v8988_v47  ;;  %v9072_v50 = vmax.f32 %v8986_v1, 0.0 }
 0xe9e   : > { %v9075_v44 = vmax.f32 %v8997_v31, 0.0 }
 0xe9f   : > { %v9073_v52 = vmax.f32 %v8989_v21, 0.0 }
 0xea0   : > { %v9109_v14 = vpack.c.bf16 %v9075_v44, %v9074_v28 }
 0xea1   : > { %v17275_v17 = vpop.f32.mrb[124].mxu0  ;;  %v9108_v16 = vpack.c.bf16 %v9073_v52, %v9072_v50 }
 0xea2   : > { %v9010_v38 = vadd.f32 %v17275_v17, %v20914_v42  ;;  %v9001_v8 = vpop.f32.mrb[125].mxu0 }
 0xea3   : > { %v9002_v22 = vadd.f32 %v20914_v42, %v9001_v8  ;;  %v17276_v7 = vpop.f32.mrb[126].mxu0  ;;  %17349 = vmatprep.mubr.bf16.mxu1 %v9108_v16 }
 0xea4   : > { %v9013_v2 = vadd.f32 %v17276_v7, %v20914_v42  ;;  %v9004_v23 = vpop.f32.mrb[127].mxu0  ;;  %17350 = vmatmul.mubr.bf16.gmra.mrb[56].mxu1 %v9109_v14  ;;  %v9078_v4 = vmax.f32 %v9010_v38, 0.0 }
 0xea5   : > { %v9005_v13 = vadd.f32 %v20914_v42, %v9004_v23  ;;  %v9076_v11 = vmax.f32 %v9002_v22, 0.0  ;;  %v21046_v42 = vld [vmem:[%s22031_s4 + $0x500] sm:$0xff]  }
 0xea6   : > { %v9079_v19 = vmax.f32 %v9013_v2, 0.0 }
 0xea7   : > { %v9077_v24 = vmax.f32 %v9005_v13, 0.0 }
 0xea8   : > { %v9111_v3 = vpack.c.bf16 %v9079_v19, %v9078_v4 }
 0xea9   : > { %v9110_v10 = vpack.c.bf16 %v9077_v24, %v9076_v11 }
 0xeab   : > { %17353 = vmatprep.mubr.bf16.mxu1 %v9110_v10 }
 0xeac   : > { %17354 = vmatmul.mubr.bf16.gmra.mrb[60].mxu1 %v9111_v3 }
 0xead   : > { %17453 = vmatprep.mubr.bf16.mxu1 %v20468_v0 }
 0xeb4   : > { %17454 = vmatmul.mubr.bf16.vlgmr.msra.gmra.mrb[64].mxu1 %v20466_v55 }
 0xeb5   : > { %17457 = vmatprep.mubr.bf16.mxu1 %v20478_v6  ;;  %17518 = vmatpush3.bf16.msra.mxu1 %v20988_v27  ;;  %v21058_v27 = vld [vmem:[%s22033_s6 + $0xf] ss:$0 sm:$0xff] }
 0xeb6   : > { %17583 = vmatprep.subr.bf16.mxu1 %v21046_v42 }
 0xebc   : > { %17458 = vmatmul.mubr.bf16.gmra.mrb[68].mxu1 %v20476_v5 }
 0xebd   : > { %17461 = vmatprep.mubr.bf16.mxu1 %v20488_v29 }
 0xec4   : > { %17462 = vmatmul.mubr.bf16.gmra.mrb[72].mxu1 %v20486_v20 }
 0xec5   : > { %17465 = vmatprep.mubr.bf16.mxu1 %v20498_v33 }
 0xecc   : > { %17466 = vmatmul.mubr.bf16.gmra.mrb[76].mxu1 %v20496_v46 }
 0xecd   : > { %17469 = vmatprep.mubr.bf16.mxu1 %v20508_v36 }
 0xed4   : > { %17470 = vmatmul.mubr.bf16.gmra.mrb[80].mxu1 %v20506_v63 }
 0xed5   : > { %17473 = vmatprep.mubr.bf16.mxu1 %v20518_v48 }
 0xedc   : > { %17474 = vmatmul.mubr.bf16.gmra.mrb[84].mxu1 %v20516_v12 }
 0xedd   : > { %17477 = vmatprep.mubr.bf16.mxu1 %v20528_v32 }
 0xee4   : > { %17478 = vmatmul.mubr.bf16.gmra.mrb[88].mxu1 %v20526_v9 }
 0xee5   : > { %17481 = vmatprep.mubr.bf16.mxu1 %v20538_v41 }
 0xeec   : > { %17482 = vmatmul.mubr.bf16.gmra.mrb[92].mxu1 %v20536_v15 }
 0xeed   : > { %17485 = vmatprep.mubr.bf16.mxu1 %v20554_v54 }
 0xef4   : > { %17486 = vmatmul.mubr.bf16.gmra.mrb[96].mxu1 %v20552_v43 }
 0xef5   : > { %17489 = vmatprep.mubr.bf16.mxu1 %v20564_v18 }
 0xefc   : > { %17490 = vmatmul.mubr.bf16.gmra.mrb[100].mxu1 %v20562_v35 }
 0xefd   : > { %17493 = vmatprep.mubr.bf16.mxu1 %v20574_v37 }
 0xf04   : > { %17494 = vmatmul.mubr.bf16.gmra.mrb[104].mxu1 %v20572_v39 }
 0xf05   : > { %17497 = vmatprep.mubr.bf16.mxu1 %v20584_v51 }
 0xf07   : > { %v17295_v25 = vpop.f32.mrb[0].mxu1 }
 0xf08   : > { %v9228_v30 = vadd.f32 %v17295_v25, %v21058_v27  ;;  %v9219_v61 = vpop.f32.mrb[1].mxu1 }
 0xf09   : > { %v9220_v40 = vadd.f32 %v21058_v27, %v9219_v61  ;;  %v17296_v45 = vpop.f32.mrb[2].mxu1 }
 0xf0a   : > { %v9231_v1 = vadd.f32 %v17296_v45, %v21058_v27  ;;  %v9222_v49 = vpop.f32.mrb[3].mxu1  ;;  %v9476_v47 = vmax.f32 %v9228_v30, 0.0 }
 0xf0b   : > { %v9223_v31 = vadd.f32 %v21058_v27, %v9222_v49  ;;  %v9474_v28 = vmax.f32 %v9220_v40, 0.0 }
 0xf0c   : > { %v9477_v21 = vmax.f32 %v9231_v1, 0.0  ;;  %17498 = vmatmul.mubr.bf16.gmra.mrb[108].mxu1 %v20582_v60 }
 0xf0d   : > { %v9475_v44 = vmax.f32 %v9223_v31, 0.0  ;;  %17501 = vmatprep.mubr.bf16.mxu1 %v20594_v57 }
 0xf0e   : > { %v9539_v50 = vpack.c.bf16 %v9477_v21, %v9476_v47 }
 0xf0f   : > { %v9538_v52 = vpack.c.bf16 %v9475_v44, %v9474_v28  ;;  %v17299_v14 = vpop.f32.mrb[4].mxu1 }
 0xf10   : > { %v9244_v17 = vadd.f32 %v17299_v14, %v21058_v27  ;;  %v9235_v16 = vpop.f32.mrb[5].mxu1 }
 0xf11   : > { %v9236_v38 = vadd.f32 %v21058_v27, %v9235_v16  ;;  %v17300_v8 = vpop.f32.mrb[6].mxu1  ;;  %17373 = vmatprep.mubr.bf16.mxu0 %v9538_v52 }
 0xf12   : > { %v9247_v22 = vadd.f32 %v17300_v8, %v21058_v27  ;;  %v9238_v7 = vpop.f32.mrb[7].mxu1  ;;  %17374 = vmatmul.mubr.bf16.vlgmr.msra.gmra.mrb[128].mxu0 %v9539_v50  ;;  %v9480_v23 = vmax.f32 %v9244_v17, 0.0 }
 0xf13   : > { %v9239_v2 = vadd.f32 %v21058_v27, %v9238_v7  ;;  %v9478_v4 = vmax.f32 %v9236_v38, 0.0 }
 0xf14   : > { %v9481_v13 = vmax.f32 %v9247_v22, 0.0  ;;  %17502 = vmatmul.mubr.bf16.gmra.mrb[112].mxu1 %v20592_v53 }
 0xf15   : > { %v9479_v19 = vmax.f32 %v9239_v2, 0.0  ;;  %17505 = vmatprep.mubr.bf16.mxu1 %v20604_v26 }
 0xf16   : > { %v9541_v11 = vpack.c.bf16 %v9481_v13, %v9480_v23 }
 0xf17   : > { %v9540_v24 = vpack.c.bf16 %v9479_v19, %v9478_v4  ;;  %v17303_v3 = vpop.f32.mrb[8].mxu1 }
 0xf18   : > { %v9260_v10 = vadd.f32 %v17303_v3, %v21058_v27  ;;  %v9251_v25 = vpop.f32.mrb[9].mxu1 }
 0xf19   : > { %v9252_v30 = vadd.f32 %v21058_v27, %v9251_v25  ;;  %v17304_v61 = vpop.f32.mrb[10].mxu1  ;;  %17377 = vmatprep.mubr.bf16.mxu0 %v9540_v24 }
 0xf1a   : > { %v9263_v40 = vadd.f32 %v17304_v61, %v21058_v27  ;;  %v9254_v45 = vpop.f32.mrb[11].mxu1  ;;  %17378 = vmatmul.mubr.bf16.gmra.mrb[132].mxu0 %v9541_v11  ;;  %v9484_v49 = vmax.f32 %v9260_v10, 0.0 }
 0xf1b   : > { %v9255_v1 = vadd.f32 %v21058_v27, %v9254_v45  ;;  %v9482_v47 = vmax.f32 %v9252_v30, 0.0 }
 0xf1c   : > { %v9485_v31 = vmax.f32 %v9263_v40, 0.0  ;;  %17506 = vmatmul.mubr.bf16.gmra.mrb[116].mxu1 %v20602_v34 }
 0xf1d   : > { %v9483_v21 = vmax.f32 %v9255_v1, 0.0  ;;  %17509 = vmatprep.mubr.bf16.mxu1 %v20617_v59 }
 0xf1e   : > { %v9543_v28 = vpack.c.bf16 %v9485_v31, %v9484_v49 }
 0xf1f   : > { %v9542_v44 = vpack.c.bf16 %v9483_v21, %v9482_v47  ;;  %v17307_v50 = vpop.f32.mrb[12].mxu1  ;;  %v18846_v47 = vld [vmem:[%s20546_s14] sm:$0xff]  }
 0xf20   : > { %v9276_v52 = vadd.f32 %v17307_v50, %v21058_v27  ;;  %v9267_v14 = vpop.f32.mrb[13].mxu1 }
 0xf21   : > { %v9268_v17 = vadd.f32 %v21058_v27, %v9267_v14  ;;  %v17308_v16 = vpop.f32.mrb[14].mxu1  ;;  %17381 = vmatprep.mubr.bf16.mxu0 %v9542_v44 }
 0xf22   : > { %v9279_v38 = vadd.f32 %v17308_v16, %v21058_v27  ;;  %v9270_v8 = vpop.f32.mrb[15].mxu1  ;;  %17382 = vmatmul.mubr.bf16.gmra.mrb[136].mxu0 %v9543_v28  ;;  %v9488_v7 = vmax.f32 %v9276_v52, 0.0 }
 0xf23   : > { %v9271_v22 = vadd.f32 %v21058_v27, %v9270_v8  ;;  %v9486_v23 = vmax.f32 %v9268_v17, 0.0  ;;  %v18734_v8 = vld [vmem:[%s22031_s4 + $0x508] sm:$0xff]  }
 0xf24   : > { %v9489_v2 = vmax.f32 %v9279_v38, 0.0  ;;  %17510 = vmatmul.mubr.bf16.gmra.mrb[120].mxu1 %v20615_v56 }
 0xf25   : > { %v9487_v13 = vmax.f32 %v9271_v22, 0.0  ;;  %17513 = vmatprep.mubr.bf16.mxu1 %v20630_v62 }
 0xf26   : > { %v9545_v4 = vpack.c.bf16 %v9489_v2, %v9488_v7 }
 0xf27   : > { %v9544_v19 = vpack.c.bf16 %v9487_v13, %v9486_v23  ;;  %v17311_v11 = vpop.f32.mrb[16].mxu1  ;;  %v18847_v23 = vld [vmem:[%s20546_s14 + $0x8] sm:$0xff]  }
 0xf28   : > { %v9292_v24 = vadd.f32 %v17311_v11, %v21058_v27  ;;  %v9283_v3 = vpop.f32.mrb[17].mxu1 }
 0xf29   : > { %v9284_v10 = vadd.f32 %v21058_v27, %v9283_v3  ;;  %v17312_v25 = vpop.f32.mrb[18].mxu1  ;;  %17385 = vmatprep.mubr.bf16.mxu0 %v9544_v19  ;;  %v18848_v19 = vld [vmem:[%s20546_s14 + $0x10] sm:$0xff]  }
 0xf2a   : > { %v9295_v30 = vadd.f32 %v17312_v25, %v21058_v27  ;;  %v9286_v61 = vpop.f32.mrb[19].mxu1  ;;  %17386 = vmatmul.mubr.bf16.gmra.mrb[140].mxu0 %v9545_v4  ;;  %v9492_v45 = vmax.f32 %v9292_v24, 0.0  ;;  %v18735_v24 = vld [vmem:[%s22031_s4 + $0x510] sm:$0xff]  }
 0xf2b   : > { %v9287_v40 = vadd.f32 %v21058_v27, %v9286_v61  ;;  %v9490_v49 = vmax.f32 %v9284_v10, 0.0 }
 0xf2c   : > { %v9493_v1 = vmax.f32 %v9295_v30, 0.0  ;;  %17514 = vmatmul.mubr.bf16.gmra.mrb[124].mxu1 %v20628_v58 }
 0xf2d   : > { %v9491_v31 = vmax.f32 %v9287_v40, 0.0  ;;  %17519 = vmatprep.mubr.msk.bf16.mxu1 %vm861_vm0, %v18846_v47 }
 0xf2e   : > { %v9547_v21 = vpack.c.bf16 %v9493_v1, %v9492_v45  ;;  %v18736_v1 = vld [vmem:[%s22031_s4 + $0x518] sm:$0xff]  }
 0xf2f   : > { %v9546_v28 = vpack.c.bf16 %v9491_v31, %v9490_v49  ;;  %v17315_v44 = vpop.f32.mrb[20].mxu1 }
 0xf30   : > { %v9308_v50 = vadd.f32 %v17315_v44, %v21058_v27  ;;  %v9299_v52 = vpop.f32.mrb[21].mxu1 }
 0xf31   : > { %v9300_v14 = vadd.f32 %v21058_v27, %v9299_v52  ;;  %v17316_v17 = vpop.f32.mrb[22].mxu1  ;;  %17389 = vmatprep.mubr.bf16.mxu0 %v9546_v28 }
 0xf32   : > { %v9311_v16 = vadd.f32 %v17316_v17, %v21058_v27  ;;  %v9302_v38 = vpop.f32.mrb[23].mxu1  ;;  %17390 = vmatmul.mubr.bf16.gmra.mrb[144].mxu0 %v9547_v21  ;;  %v9496_v7 = vmax.f32 %v9308_v50, 0.0  ;;  %v18849_v21 = vld [vmem:[%s20546_s14 + $0x18] sm:$0xff]   ;;  %v18850_v50 = vld [vmem:[%s20546_s14 + $0x20] sm:$0xff]  }
 0xf33   : > { %v9303_v22 = vadd.f32 %v21058_v27, %v9302_v38  ;;  %v9494_v13 = vmax.f32 %v9300_v14, 0.0  ;;  %v18737_v14 = vld [vmem:[%s22031_s4 + $0x520] sm:$0xff]  }
 0xf34   : > { %v9497_v2 = vmax.f32 %v9311_v16, 0.0  ;;  %17520 = vmatmul.mubr.msk.bf16.vlgmr.msra.gmra.mrb[64].mxu1 %vm861_vm0, %v18847_v23 }
 0xf35   : > { %v9495_v4 = vmax.f32 %v9303_v22, 0.0  ;;  %17584 = vmatpush3.bf16.msra.mxu1 %v21046_v42  ;;  %17523 = vmatprep.mubr.msk.bf16.mxu1 %vm861_vm0, %v18848_v19 }
 0xf36   : > { %v9549_v11 = vpack.c.bf16 %v9497_v2, %v9496_v7  ;;  %17585 = vmatprep.subr.bf16.mxu1 %v18734_v8 }
 0xf37   : > { %v9548_v3 = vpack.c.bf16 %v9495_v4, %v9494_v13  ;;  %v17319_v10 = vpop.f32.mrb[24].mxu1  ;;  %v18738_v13 = vld [vmem:[%s22031_s4 + $0x528] sm:$0xff]  }
 0xf38   : > { %v9324_v25 = vadd.f32 %v17319_v10, %v21058_v27  ;;  %v9315_v30 = vpop.f32.mrb[25].mxu1 }
 0xf39   : > { %v9316_v61 = vadd.f32 %v21058_v27, %v9315_v30  ;;  %v17320_v40 = vpop.f32.mrb[26].mxu1  ;;  %17393 = vmatprep.mubr.bf16.mxu0 %v9548_v3  ;;  %17586 = vmatpush3.bf16.msra.mxu1 %v18734_v8 }
 0xf3a   : > { %v9327_v42 = vadd.f32 %v17320_v40, %v21058_v27  ;;  %v9318_v45 = vpop.f32.mrb[27].mxu1  ;;  %17394 = vmatmul.mubr.bf16.gmra.mrb[148].mxu0 %v9549_v11  ;;  %17587 = vmatprep.subr.bf16.mxu1 %v18735_v24  ;;  %v9500_v31 = vmax.f32 %v9324_v25, 0.0  ;;  %v18852_v25 = vld [vmem:[%s20546_s14 + $0x30] sm:$0xff]  }
 0xf3b   : > { %v9319_v49 = vadd.f32 %v21058_v27, %v9318_v45  ;;  %v9498_v28 = vmax.f32 %v9316_v61, 0.0  ;;  %v18739_v61 = vld [vmem:[%s22031_s4 + $0x530] sm:$0xff]  }
 0xf3c   : > { %v9501_v47 = vmax.f32 %v9327_v42, 0.0  ;;  %17524 = vmatmul.mubr.msk.bf16.gmra.mrb[68].mxu1 %vm861_vm0, %v18849_v21 }
 0xf3d   : > { %v9499_v44 = vmax.f32 %v9319_v49, 0.0  ;;  %17527 = vmatprep.mubr.msk.bf16.mxu1 %vm861_vm0, %v18850_v50  ;;  %17588 = vmatpush3.bf16.msra.mxu1 %v18735_v24  ;;  %v18851_v24 = vld [vmem:[%s20546_s14 + $0x28] sm:$0xff]  }
 0xf3e   : > { %v9551_v52 = vpack.c.bf16 %v9501_v47, %v9500_v31  ;;  %17589 = vmatprep.subr.bf16.mxu1 %v18736_v1 }
 0xf3f   : > { %v9550_v17 = vpack.c.bf16 %v9499_v44, %v9498_v28  ;;  %v17323_v16 = vpop.f32.mrb[28].mxu1  ;;  %v18740_v28 = vld [vmem:[%s22031_s4 + $0x538] sm:$0xff]  }
 0xf40   : > { %v9340_v38 = vadd.f32 %v17323_v16, %v21058_v27  ;;  %v9331_v8 = vpop.f32.mrb[29].mxu1 }
 0xf41   : > { %v9332_v22 = vadd.f32 %v21058_v27, %v9331_v8  ;;  %v17324_v7 = vpop.f32.mrb[30].mxu1  ;;  %17397 = vmatprep.mubr.bf16.mxu0 %v9550_v17  ;;  %17590 = vmatpush3.bf16.msra.mxu1 %v18736_v1 }
 0xf42   : > { %v9343_v2 = vadd.f32 %v17324_v7, %v21058_v27  ;;  %v9334_v23 = vpop.f32.mrb[31].mxu1  ;;  %17398 = vmatmul.mubr.bf16.gmra.mrb[152].mxu0 %v9551_v52  ;;  %17591 = vmatprep.subr.bf16.mxu1 %v18737_v14  ;;  %v9504_v19 = vmax.f32 %v9340_v38, 0.0  ;;  %v18854_v38 = vld [vmem:[%s20546_s14 + $0x40] sm:$0xff]  }
 0xf43   : > { %v9335_v4 = vadd.f32 %v21058_v27, %v9334_v23  ;;  %v9502_v3 = vmax.f32 %v9332_v22, 0.0 }
 0xf44   : > { %v9505_v11 = vmax.f32 %v9343_v2, 0.0  ;;  %17528 = vmatmul.mubr.msk.bf16.gmra.mrb[72].mxu1 %vm861_vm0, %v18851_v24 }
 0xf45   : > { %v9503_v10 = vmax.f32 %v9335_v4, 0.0  ;;  %17531 = vmatprep.mubr.msk.bf16.mxu1 %vm861_vm0, %v18852_v25  ;;  %17592 = vmatpush3.bf16.msra.mxu1 %v18737_v14  ;;  %v18853_v14 = vld [vmem:[%s20546_s14 + $0x38] sm:$0xff]   ;;  %v18855_v25 = vld [vmem:[%s20546_s14 + $0x48] sm:$0xff]  }
 0xf46   : > { %v9553_v30 = vpack.c.bf16 %v9505_v11, %v9504_v19  ;;  %17593 = vmatprep.subr.bf16.mxu1 %v18738_v13 }
 0xf47   : > { %v9552_v40 = vpack.c.bf16 %v9503_v10, %v9502_v3  ;;  %v17327_v42 = vpop.f32.mrb[32].mxu1 }
 0xf48   : > { %v9356_v45 = vadd.f32 %v17327_v42, %v21058_v27  ;;  %v9347_v1 = vpop.f32.mrb[33].mxu1 }
 0xf49   : > { %v9348_v49 = vadd.f32 %v21058_v27, %v9347_v1  ;;  %v17328_v31 = vpop.f32.mrb[34].mxu1  ;;  %17401 = vmatprep.mubr.bf16.mxu0 %v9552_v40  ;;  %17594 = vmatpush3.bf16.msra.mxu1 %v18738_v13  ;;  %v18856_v40 = vld [vmem:[%s20546_s14 + $0x50] sm:$0xff]  }
 0xf4a   : > { %v9359_v47 = vadd.f32 %v17328_v31, %v21058_v27  ;;  %v9350_v21 = vpop.f32.mrb[35].mxu1  ;;  %17402 = vmatmul.mubr.bf16.gmra.mrb[156].mxu0 %v9553_v30  ;;  %17595 = vmatprep.subr.bf16.mxu1 %v18739_v61  ;;  %v9508_v50 = vmax.f32 %v9356_v45, 0.0 }
 0xf4b   : > { %v9351_v44 = vadd.f32 %v21058_v27, %v9350_v21  ;;  %v9506_v17 = vmax.f32 %v9348_v49, 0.0 }
 0xf4c   : > { %v9509_v52 = vmax.f32 %v9359_v47, 0.0  ;;  %17532 = vmatmul.mubr.msk.bf16.gmra.mrb[76].mxu1 %vm861_vm0, %v18853_v14 }
 0xf4d   : > { %v9507_v16 = vmax.f32 %v9351_v44, 0.0  ;;  %17535 = vmatprep.mubr.msk.bf16.mxu1 %vm861_vm0, %v18854_v38  ;;  %17596 = vmatpush3.bf16.msra.mxu1 %v18739_v61 }
 0xf4e   : > { %v9555_v8 = vpack.c.bf16 %v9509_v52, %v9508_v50  ;;  %17597 = vmatprep.subr.bf16.mxu1 %v18740_v28 }
 0xf4f   : > { %v9554_v22 = vpack.c.bf16 %v9507_v16, %v9506_v17  ;;  %v17331_v7 = vpop.f32.mrb[36].mxu1  ;;  %v18857_v17 = vld [vmem:[%s20546_s14 + $0x58] sm:$0xff]  }
 0xf50   : > { %v9372_v2 = vadd.f32 %v17331_v7, %v21058_v27  ;;  %v9363_v23 = vpop.f32.mrb[37].mxu1 }
 0xf51   : > { %v9364_v13 = vadd.f32 %v21058_v27, %v9363_v23  ;;  %v17332_v4 = vpop.f32.mrb[38].mxu1  ;;  %17405 = vmatprep.mubr.bf16.mxu0 %v9554_v22  ;;  %17598 = vmatpush3.bf16.msra.mxu1 %v18740_v28 }
 0xf52   : > { %v9375_v19 = vadd.f32 %v17332_v4, %v21058_v27  ;;  %v9366_v11 = vpop.f32.mrb[39].mxu1  ;;  %17406 = vmatmul.mubr.bf16.gmra.mrb[160].mxu0 %v9555_v8  ;;  %v9512_v3 = vmax.f32 %v9372_v2, 0.0  ;;  %v18858_v8 = vld [vmem:[%s20546_s14 + $0x60] sm:$0xff]  }
 0xf53   : > { %v9367_v24 = vadd.f32 %v21058_v27, %v9366_v11  ;;  %v9510_v30 = vmax.f32 %v9364_v13, 0.0 }
 0xf54   : > { %v9513_v10 = vmax.f32 %v9375_v19, 0.0  ;;  %17536 = vmatmul.mubr.msk.bf16.gmra.mrb[80].mxu1 %vm861_vm0, %v18855_v25 }
 0xf55   : > { %v9511_v61 = vmax.f32 %v9367_v24, 0.0  ;;  %17539 = vmatprep.mubr.msk.bf16.mxu1 %vm861_vm0, %v18856_v40 }
 0xf56   : > { %v9557_v42 = vpack.c.bf16 %v9513_v10, %v9512_v3 }
 0xf57   : > { %v9556_v45 = vpack.c.bf16 %v9511_v61, %v9510_v30  ;;  %v17335_v1 = vpop.f32.mrb[40].mxu1  ;;  %v18859_v30 = vld [vmem:[%s20546_s14 + $0x68] sm:$0xff]  }
 0xf58   : > { %v9388_v49 = vadd.f32 %v17335_v1, %v21058_v27  ;;  %v9379_v31 = vpop.f32.mrb[41].mxu1 }
 0xf59   : > { %v9380_v47 = vadd.f32 %v21058_v27, %v9379_v31  ;;  %v17336_v21 = vpop.f32.mrb[42].mxu1  ;;  %17409 = vmatprep.mubr.bf16.mxu0 %v9556_v45 }
 0xf5a   : > { %v9391_v28 = vadd.f32 %v17336_v21, %v21058_v27  ;;  %v9382_v44 = vpop.f32.mrb[43].mxu1  ;;  %17410 = vmatmul.mubr.bf16.gmra.mrb[164].mxu0 %v9557_v42  ;;  %v9516_v52 = vmax.f32 %v9388_v49, 0.0  ;;  %v18860_v42 = vld [vmem:[%s20546_s14 + $0x70] sm:$0xff]  }
 0xf5b   : > { %v9383_v50 = vadd.f32 %v21058_v27, %v9382_v44  ;;  %v9514_v16 = vmax.f32 %v9380_v47, 0.0 }
 0xf5c   : > { %v9517_v14 = vmax.f32 %v9391_v28, 0.0  ;;  %17540 = vmatmul.mubr.msk.bf16.gmra.mrb[84].mxu1 %vm861_vm0, %v18857_v17 }
 0xf5d   : > { %v9515_v38 = vmax.f32 %v9383_v50, 0.0  ;;  %17543 = vmatprep.mubr.msk.bf16.mxu1 %vm861_vm0, %v18858_v8 }
 0xf5e   : > { %v9559_v22 = vpack.c.bf16 %v9517_v14, %v9516_v52 }
 0xf5f   : > { %v9558_v7 = vpack.c.bf16 %v9515_v38, %v9514_v16  ;;  %v17339_v2 = vpop.f32.mrb[44].mxu1  ;;  %v18861_v16 = vld [vmem:[%s20546_s14 + $0x78] sm:$0xff]  }
 0xf60   : > { %v9404_v23 = vadd.f32 %v17339_v2, %v21058_v27  ;;  %v9395_v13 = vpop.f32.mrb[45].mxu1 }
 0xf61   : > { %v9396_v4 = vadd.f32 %v21058_v27, %v9395_v13  ;;  %v17340_v19 = vpop.f32.mrb[46].mxu1  ;;  %17413 = vmatprep.mubr.bf16.mxu0 %v9558_v7 }
 0xf62   : > { %v9407_v11 = vadd.f32 %v17340_v19, %v21058_v27  ;;  %v9398_v24 = vpop.f32.mrb[47].mxu1  ;;  %17414 = vmatmul.mubr.bf16.gmra.mrb[168].mxu0 %v9559_v22  ;;  %v9520_v10 = vmax.f32 %v9404_v23, 0.0  ;;  %v18862_v22 = vld [vmem:[%s20546_s14 + $0x80] sm:$0xff]  }
 0xf63   : > { %v9399_v3 = vadd.f32 %v21058_v27, %v9398_v24  ;;  %v9518_v61 = vmax.f32 %v9396_v4, 0.0 }
 0xf64   : > { %v9521_v25 = vmax.f32 %v9407_v11, 0.0  ;;  %17544 = vmatmul.mubr.msk.bf16.gmra.mrb[88].mxu1 %vm861_vm0, %v18859_v30 }
 0xf65   : > { %v9519_v40 = vmax.f32 %v9399_v3, 0.0  ;;  %17547 = vmatprep.mubr.msk.bf16.mxu1 %vm861_vm0, %v18860_v42 }
 0xf66   : > { %v9561_v45 = vpack.c.bf16 %v9521_v25, %v9520_v10 }
 0xf67   : > { %v9560_v1 = vpack.c.bf16 %v9519_v40, %v9518_v61  ;;  %v17343_v49 = vpop.f32.mrb[48].mxu1  ;;  %v18863_v61 = vld [vmem:[%s20546_s14 + $0x88] sm:$0xff]  }
 0xf68   : > { %v9420_v31 = vadd.f32 %v17343_v49, %v21058_v27  ;;  %v9411_v47 = vpop.f32.mrb[49].mxu1 }
 0xf69   : > { %v9412_v21 = vadd.f32 %v21058_v27, %v9411_v47  ;;  %v17344_v28 = vpop.f32.mrb[50].mxu1  ;;  %17417 = vmatprep.mubr.bf16.mxu0 %v9560_v1 }
 0xf6a   : > { %v9423_v44 = vadd.f32 %v17344_v28, %v21058_v27  ;;  %v9414_v50 = vpop.f32.mrb[51].mxu1  ;;  %17418 = vmatmul.mubr.bf16.gmra.mrb[172].mxu0 %v9561_v45  ;;  %v9524_v14 = vmax.f32 %v9420_v31, 0.0  ;;  %v18864_v45 = vld [vmem:[%s20546_s14 + $0x90] sm:$0xff]  }
 0xf6b   : > { %v9415_v52 = vadd.f32 %v21058_v27, %v9414_v50  ;;  %v9522_v38 = vmax.f32 %v9412_v21, 0.0 }
 0xf6c   : > { %v9525_v17 = vmax.f32 %v9423_v44, 0.0  ;;  %17548 = vmatmul.mubr.msk.bf16.gmra.mrb[92].mxu1 %vm861_vm0, %v18861_v16 }
 0xf6d   : > { %v9523_v8 = vmax.f32 %v9415_v52, 0.0  ;;  %17551 = vmatprep.mubr.msk.bf16.mxu1 %vm861_vm0, %v18862_v22 }
 0xf6e   : > { %v9563_v7 = vpack.c.bf16 %v9525_v17, %v9524_v14 }
 0xf6f   : > { %v9562_v2 = vpack.c.bf16 %v9523_v8, %v9522_v38  ;;  %v17347_v23 = vpop.f32.mrb[52].mxu1  ;;  %v18865_v38 = vld [vmem:[%s20546_s14 + $0x98] sm:$0xff]  }
 0xf70   : > { %v9436_v13 = vadd.f32 %v17347_v23, %v21058_v27  ;;  %v9427_v4 = vpop.f32.mrb[53].mxu1 }
 0xf71   : > { %v9428_v19 = vadd.f32 %v21058_v27, %v9427_v4  ;;  %v17348_v11 = vpop.f32.mrb[54].mxu1  ;;  %17421 = vmatprep.mubr.bf16.mxu0 %v9562_v2 }
 0xf72   : > { %v9439_v24 = vadd.f32 %v17348_v11, %v21058_v27  ;;  %v9430_v3 = vpop.f32.mrb[55].mxu1  ;;  %17422 = vmatmul.mubr.bf16.gmra.mrb[176].mxu0 %v9563_v7  ;;  %v9528_v25 = vmax.f32 %v9436_v13, 0.0  ;;  %v18866_v7 = vld [vmem:[%s20546_s14 + $0xa0] sm:$0xff]  }
 0xf73   : > { %v9431_v10 = vadd.f32 %v21058_v27, %v9430_v3  ;;  %v9526_v40 = vmax.f32 %v9428_v19, 0.0 }
 0xf74   : > { %v9529_v30 = vmax.f32 %v9439_v24, 0.0  ;;  %17552 = vmatmul.mubr.msk.bf16.gmra.mrb[96].mxu1 %vm861_vm0, %v18863_v61 }
 0xf75   : > { %v9527_v42 = vmax.f32 %v9431_v10, 0.0  ;;  %17555 = vmatprep.mubr.msk.bf16.mxu1 %vm861_vm0, %v18864_v45 }
 0xf76   : > { %v9565_v1 = vpack.c.bf16 %v9529_v30, %v9528_v25 }
 0xf77   : > { %v9564_v49 = vpack.c.bf16 %v9527_v42, %v9526_v40  ;;  %v17351_v31 = vpop.f32.mrb[56].mxu1  ;;  %v18867_v40 = vld [vmem:[%s20546_s14 + $0xa8] sm:$0xff]  }
 0xf78   : > { %v9452_v47 = vadd.f32 %v17351_v31, %v21058_v27  ;;  %v9443_v21 = vpop.f32.mrb[57].mxu1 }
 0xf79   : > { %v9444_v28 = vadd.f32 %v21058_v27, %v9443_v21  ;;  %v17352_v44 = vpop.f32.mrb[58].mxu1  ;;  %17425 = vmatprep.mubr.bf16.mxu0 %v9564_v49  ;;  %v18871_v21 = vld [vmem:[%s20546_s14 + $0xc8] sm:$0xff]  }
 0xf7a   : > { %v9455_v50 = vadd.f32 %v17352_v44, %v21058_v27  ;;  %v9446_v52 = vpop.f32.mrb[59].mxu1  ;;  %17426 = vmatmul.mubr.bf16.gmra.mrb[180].mxu0 %v9565_v1  ;;  %v9532_v17 = vmax.f32 %v9452_v47, 0.0  ;;  %v18868_v1 = vld [vmem:[%s20546_s14 + $0xb0] sm:$0xff]   ;;  %v18870_v47 = vld [vmem:[%s20546_s14 + $0xc0] sm:$0xff]   ;;  %v18873_v44 = vld [vmem:[%s20546_s14 + $0xd8] sm:$0xff]  }
 0xf7b   : > { %v9447_v14 = vadd.f32 %v21058_v27, %v9446_v52  ;;  %v9530_v8 = vmax.f32 %v9444_v28, 0.0  ;;  %v18872_v28 = vld [vmem:[%s20546_s14 + $0xd0] sm:$0xff]   ;;  %v18875_v52 = vld [vmem:[%s20546_s14 + $0xe8] sm:$0xff]  }
 0xf7c   : > { %v9533_v16 = vmax.f32 %v9455_v50, 0.0  ;;  %17556 = vmatmul.mubr.msk.bf16.gmra.mrb[100].mxu1 %vm861_vm0, %v18865_v38  ;;  %v18874_v50 = vld [vmem:[%s20546_s14 + $0xe0] sm:$0xff]  }
 0xf7d   : > { %v9531_v22 = vmax.f32 %v9447_v14, 0.0  ;;  %17559 = vmatprep.mubr.msk.bf16.mxu1 %vm861_vm0, %v18866_v7  ;;  %v18876_v14 = vld [vmem:[%s20546_s14 + $0xf0] sm:$0xff]   ;;  %v18741_v38 = vld [vmem:[%s22031_s4 + $0x540] sm:$0xff]  }
 0xf7e   : > { %v9567_v2 = vpack.c.bf16 %v9533_v16, %v9532_v17  ;;  %v18877_v17 = vld [vmem:[%s20546_s14 + $0xf8] sm:$0xff]   ;;  %v18742_v16 = vld [vmem:[%s22035_s8] sm:$0xff]   ;;  %17663 = vmatprep.subr.bf16.mxu0 %v18741_v38 }
 0xf7f   : > { %v9566_v23 = vpack.c.bf16 %v9531_v22, %v9530_v8  ;;  %v17355_v13 = vpop.f32.mrb[60].mxu1  ;;  %18129 = vmatprep.subr.bf16.mxu1 %v18742_v16  ;;  %17664 = vmatpush3.bf16.msra.mxu0 %v18741_v38  ;;  %v18746_v8 = vld [vmem:[%s22031_s4 + $0x548] sm:$0xff]   ;;  %v21231_v22 = vld [vmem:[%s22033_s6 + $0x10] ss:$0 sm:$0xff] }
 0xf80   : > { %v9468_v4 = vadd.f32 %v17355_v13, %v21058_v27  ;;  %v9459_v19 = vpop.f32.mrb[61].mxu1  ;;  %17665 = vmatprep.subr.bf16.mxu0 %v18746_v8 }
 0xf81   : > { %v9460_v11 = vadd.f32 %v21058_v27, %v9459_v19  ;;  %v17356_v24 = vpop.f32.mrb[62].mxu1  ;;  %17429 = vmatprep.mubr.bf16.mxu0 %v9566_v23 }
 0xf82   : > { %v9471_v3 = vadd.f32 %v17356_v24, %v21058_v27  ;;  %v9462_v10 = vpop.f32.mrb[63].mxu1  ;;  %17430 = vmatmul.mubr.bf16.gmra.mrb[184].mxu0 %v9567_v2  ;;  %v9536_v30 = vmax.f32 %v9468_v4, 0.0 }
 0xf83   : > { %v9463_v25 = vadd.f32 %v21058_v27, %v9462_v10  ;;  %v9534_v42 = vmax.f32 %v9460_v11, 0.0  ;;  %v18869_v27 = vld [vmem:[%s20546_s14 + $0xb8] sm:$0xff]   ;;  %17666 = vmatpush3.bf16.msra.mxu0 %v18746_v8 }
 0xf84   : > { %v9537_v61 = vmax.f32 %v9471_v3, 0.0  ;;  %17560 = vmatmul.mubr.msk.bf16.gmra.mrb[104].mxu1 %vm861_vm0, %v18867_v40  ;;  %v18751_v3 = vld [vmem:[%s22031_s4 + $0x550] sm:$0xff]  }
 0xf85   : > { %v9535_v45 = vmax.f32 %v9463_v25, 0.0  ;;  %17563 = vmatprep.mubr.msk.bf16.mxu1 %vm861_vm0, %v18868_v1  ;;  %17667 = vmatprep.subr.bf16.mxu0 %v18751_v3 }
 0xf86   : > { %v9569_v49 = vpack.c.bf16 %v9537_v61, %v9536_v30 }
 0xf87   : > { %v9568_v31 = vpack.c.bf16 %v9535_v45, %v9534_v42  ;;  %17668 = vmatpush3.bf16.msra.mxu0 %v18751_v3 }
 0xf89   : > { %17433 = vmatprep.mubr.bf16.mxu0 %v9568_v31  ;;  %v18743_v31 = vld [vmem:[%s22035_s8 + $0x8] sm:$0xff]  }
 0xf8a   : > { %17434 = vmatmul.mubr.bf16.gmra.mrb[188].mxu0 %v9569_v49 }
 0xf8c   : > { %17564 = vmatmul.mubr.msk.bf16.gmra.mrb[108].mxu1 %vm861_vm0, %v18869_v27 }
 0xf8d   : > { %17567 = vmatprep.mubr.msk.bf16.mxu1 %vm861_vm0, %v18870_v47 }
 0xf94   : > { %17568 = vmatmul.mubr.msk.bf16.gmra.mrb[112].mxu1 %vm861_vm0, %v18871_v21 }
 0xf95   : > { %17571 = vmatprep.mubr.msk.bf16.mxu1 %vm861_vm0, %v18872_v28 }
 0xf9c   : > { %17572 = vmatmul.mubr.msk.bf16.gmra.mrb[116].mxu1 %vm861_vm0, %v18873_v44 }
 0xf9d   : > { %17575 = vmatprep.mubr.msk.bf16.mxu1 %vm861_vm0, %v18874_v50 }
 0xfa4   : > { %17576 = vmatmul.mubr.msk.bf16.gmra.mrb[120].mxu1 %vm861_vm0, %v18875_v52 }
 0xfa5   : > { %17579 = vmatprep.mubr.msk.bf16.mxu1 %vm861_vm0, %v18876_v14  ;;  %v18744_v14 = vld [vmem:[%s22035_s8 + $0x10] sm:$0xff]  }
 0xfac   : > { %17580 = vmatmul.mubr.msk.bf16.gmra.mrb[124].mxu1 %vm861_vm0, %v18877_v17 }
 0xfe5   : > { %v17375_v7 = vpop.f32.mrb[128].mxu0 }
 0xfe6   : > { %v9686_v2 = vadd.f32 %v17375_v7, %v21231_v22  ;;  %v9677_v23 = vpop.f32.mrb[129].mxu0 }
 0xfe7   : > { %v9678_v13 = vadd.f32 %v21231_v22, %v9677_v23  ;;  %v17376_v4 = vpop.f32.mrb[130].mxu0 }
 0xfe8   : > { %v9689_v19 = vadd.f32 %v17376_v4, %v21231_v22  ;;  %v9680_v11 = vpop.f32.mrb[131].mxu0  ;;  %v9934_v10 = vmax.f32 %v9686_v2, 0.0 }
 0xfe9   : > { %v9681_v24 = vadd.f32 %v21231_v22, %v9680_v11  ;;  %v9932_v30 = vmax.f32 %v9678_v13, 0.0 }
 0xfea   : > { %v9935_v25 = vmax.f32 %v9689_v19, 0.0 }
 0xfeb   : > { %v9933_v61 = vmax.f32 %v9681_v24, 0.0 }
 0xfec   : > { %v9997_v40 = vpack.c.bf16 %v9935_v25, %v9934_v10  ;;  %v18752_v10 = vld [vmem:[%s22031_s4 + $0x558] sm:$0xff]  }
 0xfed   : > { %v17379_v42 = vpop.f32.mrb[132].mxu0  ;;  %v9996_v45 = vpack.c.bf16 %v9933_v61, %v9932_v30  ;;  %v18747_v61 = vld [vmem:[%s22035_s8 + $0x20] sm:$0xff]   ;;  %17669 = vmatprep.subr.bf16.mxu0 %v18752_v10 }
 0xfee   : > { %v9702_v1 = vadd.f32 %v17379_v42, %v21231_v22  ;;  %v9693_v49 = vpop.f32.mrb[133].mxu0  ;;  %17670 = vmatpush3.bf16.msra.mxu0 %v18752_v10 }
 0xfef   : > { %v9694_v27 = vadd.f32 %v21231_v22, %v9693_v49  ;;  %v17380_v47 = vpop.f32.mrb[134].mxu0  ;;  %17599 = vmatprep.mubr.bf16.mxu1 %v9996_v45 }
 0xff0   : > { %v9705_v21 = vadd.f32 %v17380_v47, %v21231_v22  ;;  %v9696_v28 = vpop.f32.mrb[135].mxu0  ;;  %17600 = vmatmul.mubr.bf16.vlgmr.msra.gmra.mrb[64].mxu1 %v9997_v40  ;;  %v9938_v50 = vmax.f32 %v9702_v1, 0.0  ;;  %v18748_v47 = vld [vmem:[%s22035_s8 + $0x28] sm:$0xff]  }
 0xff1   : > { %v9697_v44 = vadd.f32 %v21231_v22, %v9696_v28  ;;  %18137 = vmatpush3.bf16.msra.mxu1 %v18742_v16  ;;  %v9936_v17 = vmax.f32 %v9694_v27, 0.0  ;;  %v18745_v16 = vld [vmem:[%s22035_s8 + $0x18] sm:$0xff]  }
 0xff2   : > { %v9939_v52 = vmax.f32 %v9705_v21, 0.0  ;;  %18130 = vmatprep.subr.bf16.mxu1 %v18743_v31 }
 0xff3   : > { %v9937_v38 = vmax.f32 %v9697_v44, 0.0 }
 0xff4   : > { %v9999_v8 = vpack.c.bf16 %v9939_v52, %v9938_v50 }
 0xff5   : > { %v9998_v7 = vpack.c.bf16 %v9937_v38, %v9936_v17  ;;  %v17383_v2 = vpop.f32.mrb[136].mxu0  ;;  %18138 = vmatpush3.bf16.msra.mxu1 %v18743_v31  ;;  %v18749_v38 = vld [vmem:[%s22035_s8 + $0x30] sm:$0xff]  }
 0xff6   : > { %v9718_v23 = vadd.f32 %v17383_v2, %v21231_v22  ;;  %v9709_v13 = vpop.f32.mrb[137].mxu0  ;;  %18131 = vmatprep.subr.bf16.mxu1 %v18744_v14 }
 0xff7   : > { %v9710_v4 = vadd.f32 %v21231_v22, %v9709_v13  ;;  %v17384_v19 = vpop.f32.mrb[138].mxu0  ;;  %17603 = vmatprep.mubr.bf16.mxu1 %v9998_v7 }
 0xff8   : > { %v9721_v11 = vadd.f32 %v17384_v19, %v21231_v22  ;;  %v9712_v24 = vpop.f32.mrb[139].mxu0  ;;  %17604 = vmatmul.mubr.bf16.gmra.mrb[68].mxu1 %v9999_v8  ;;  %v9942_v25 = vmax.f32 %v9718_v23, 0.0  ;;  %v18750_v19 = vld [vmem:[%s22035_s8 + $0x38] sm:$0xff]  }
 0xff9   : > { %v9713_v3 = vadd.f32 %v21231_v22, %v9712_v24  ;;  %18139 = vmatpush3.bf16.msra.mxu1 %v18744_v14  ;;  %v9940_v40 = vmax.f32 %v9710_v4, 0.0 }
 0xffa   : > { %v9943_v30 = vmax.f32 %v9721_v11, 0.0  ;;  %18132 = vmatprep.subr.bf16.mxu1 %v18745_v16 }
 0xffb   : > { %v9941_v42 = vmax.f32 %v9713_v3, 0.0 }
 0xffc   : > { %v10001_v45 = vpack.c.bf16 %v9943_v30, %v9942_v25  ;;  %v18753_v30 = vld [vmem:[%s22031_s4 + $0x560] sm:$0xff]  }
 0xffd   : > { %v10000_v1 = vpack.c.bf16 %v9941_v42, %v9940_v40  ;;  %v17387_v49 = vpop.f32.mrb[140].mxu0  ;;  %18140 = vmatpush3.bf16.msra.mxu1 %v18745_v16  ;;  %17671 = vmatprep.subr.bf16.mxu0 %v18753_v30 }
 0xffe   : > { %v9734_v31 = vadd.f32 %v17387_v49, %v21231_v22  ;;  %v9725_v27 = vpop.f32.mrb[141].mxu0  ;;  %18133 = vmatprep.subr.bf16.mxu1 %v18747_v61  ;;  %17672 = vmatpush3.bf16.msra.mxu0 %v18753_v30 }
 0xfff   : > { %v9726_v21 = vadd.f32 %v21231_v22, %v9725_v27  ;;  %v17388_v28 = vpop.f32.mrb[142].mxu0  ;;  %17607 = vmatprep.mubr.bf16.mxu1 %v10000_v1 }
0x1000   : > { %v9737_v44 = vadd.f32 %v17388_v28, %v21231_v22  ;;  %v9728_v50 = vpop.f32.mrb[143].mxu0  ;;  %17608 = vmatmul.mubr.bf16.gmra.mrb[72].mxu1 %v10001_v45  ;;  %v9946_v14 = vmax.f32 %v9734_v31, 0.0 }
0x1001   : > { %v9729_v52 = vadd.f32 %v21231_v22, %v9728_v50  ;;  %18141 = vmatpush3.bf16.msra.mxu1 %v18747_v61  ;;  %v9944_v8 = vmax.f32 %v9726_v21, 0.0 }
0x1002   : > { %v9947_v17 = vmax.f32 %v9737_v44, 0.0  ;;  %18134 = vmatprep.subr.bf16.mxu1 %v18748_v47 }
0x1003   : > { %v9945_v7 = vmax.f32 %v9729_v52, 0.0 }
0x1004   : > { %v10003_v2 = vpack.c.bf16 %v9947_v17, %v9946_v14 }
0x1005   : > { %v10002_v23 = vpack.c.bf16 %v9945_v7, %v9944_v8  ;;  %v17391_v13 = vpop.f32.mrb[144].mxu0  ;;  %18142 = vmatpush3.bf16.msra.mxu1 %v18748_v47 }
0x1006   : > { %v9750_v16 = vadd.f32 %v17391_v13, %v21231_v22  ;;  %v9741_v4 = vpop.f32.mrb[145].mxu0  ;;  %18135 = vmatprep.subr.bf16.mxu1 %v18749_v38 }
0x1007   : > { %v9742_v11 = vadd.f32 %v21231_v22, %v9741_v4  ;;  %v17392_v24 = vpop.f32.mrb[146].mxu0  ;;  %17611 = vmatprep.mubr.bf16.mxu1 %v10002_v23 }
0x1008   : > { %v9753_v3 = vadd.f32 %v17392_v24, %v21231_v22  ;;  %v9744_v10 = vpop.f32.mrb[147].mxu0  ;;  %17612 = vmatmul.mubr.bf16.gmra.mrb[76].mxu1 %v10003_v2  ;;  %v9950_v61 = vmax.f32 %v9750_v16, 0.0 }
0x1009   : > { %v9745_v25 = vadd.f32 %v21231_v22, %v9744_v10  ;;  %18143 = vmatpush3.bf16.msra.mxu1 %v18749_v38  ;;  %v9948_v42 = vmax.f32 %v9742_v11, 0.0  ;;  %v18754_v10 = vld [vmem:[%s22031_s4 + $0x568] sm:$0xff]  }
0x100a   : > { %v9951_v40 = vmax.f32 %v9753_v3, 0.0  ;;  %18136 = vmatprep.subr.bf16.mxu1 %v18750_v19  ;;  %17673 = vmatprep.subr.bf16.mxu0 %v18754_v10 }
0x100b   : > { %v9949_v45 = vmax.f32 %v9745_v25, 0.0  ;;  %17674 = vmatpush3.bf16.msra.mxu0 %v18754_v10 }
0x100c   : > { %v10005_v1 = vpack.c.bf16 %v9951_v40, %v9950_v61 }
0x100d   : > { %v10004_v49 = vpack.c.bf16 %v9949_v45, %v9948_v42  ;;  %v17395_v31 = vpop.f32.mrb[148].mxu0  ;;  %18144 = vmatpush3.bf16.msra.mxu1 %v18750_v19 }
0x100e   : > { %v9766_v27 = vadd.f32 %v17395_v31, %v21231_v22  ;;  %v9757_v47 = vpop.f32.mrb[149].mxu0 }
0x100f   : > { %v9758_v21 = vadd.f32 %v21231_v22, %v9757_v47  ;;  %v17396_v28 = vpop.f32.mrb[150].mxu0  ;;  %17615 = vmatprep.mubr.bf16.mxu1 %v10004_v49 }
0x1010   : > { %v9769_v44 = vadd.f32 %v17396_v28, %v21231_v22  ;;  %v9760_v50 = vpop.f32.mrb[151].mxu0  ;;  %17616 = vmatmul.mubr.bf16.gmra.mrb[80].mxu1 %v10005_v1  ;;  %v9954_v14 = vmax.f32 %v9766_v27, 0.0 }
0x1011   : > { %v9761_v52 = vadd.f32 %v21231_v22, %v9760_v50  ;;  %v9952_v38 = vmax.f32 %v9758_v21, 0.0 }
0x1012   : > { %v9955_v17 = vmax.f32 %v9769_v44, 0.0 }
0x1013   : > { %v9953_v8 = vmax.f32 %v9761_v52, 0.0 }
0x1014   : > { %v10007_v7 = vpack.c.bf16 %v9955_v17, %v9954_v14 }
0x1015   : > { %v10006_v2 = vpack.c.bf16 %v9953_v8, %v9952_v38  ;;  %v17399_v23 = vpop.f32.mrb[152].mxu0 }
0x1016   : > { %v9782_v13 = vadd.f32 %v17399_v23, %v21231_v22  ;;  %v9773_v16 = vpop.f32.mrb[153].mxu0 }
0x1017   : > { %v9774_v4 = vadd.f32 %v21231_v22, %v9773_v16  ;;  %v17400_v19 = vpop.f32.mrb[154].mxu0  ;;  %17619 = vmatprep.mubr.bf16.mxu1 %v10006_v2 }
0x1018   : > { %v9785_v11 = vadd.f32 %v17400_v19, %v21231_v22  ;;  %v9776_v24 = vpop.f32.mrb[155].mxu0  ;;  %17620 = vmatmul.mubr.bf16.gmra.mrb[84].mxu1 %v10007_v7  ;;  %v9958_v25 = vmax.f32 %v9782_v13, 0.0 }
0x1019   : > { %v9777_v3 = vadd.f32 %v21231_v22, %v9776_v24  ;;  %v9956_v61 = vmax.f32 %v9774_v4, 0.0  ;;  %v18755_v24 = vld [vmem:[%s22031_s4 + $0x570] sm:$0xff]  }
0x101a   : > { %v9959_v30 = vmax.f32 %v9785_v11, 0.0  ;;  %17675 = vmatprep.subr.bf16.mxu0 %v18755_v24 }
0x101b   : > { %v9957_v40 = vmax.f32 %v9777_v3, 0.0  ;;  %17676 = vmatpush3.bf16.msra.mxu0 %v18755_v24 }
0x101c   : > { %v10009_v42 = vpack.c.bf16 %v9959_v30, %v9958_v25 }
0x101d   : > { %v10008_v45 = vpack.c.bf16 %v9957_v40, %v9956_v61  ;;  %v17403_v1 = vpop.f32.mrb[156].mxu0 }
0x101e   : > { %v9798_v49 = vadd.f32 %v17403_v1, %v21231_v22  ;;  %v9789_v31 = vpop.f32.mrb[157].mxu0 }
0x101f   : > { %v9790_v27 = vadd.f32 %v21231_v22, %v9789_v31  ;;  %v17404_v47 = vpop.f32.mrb[158].mxu0  ;;  %17623 = vmatprep.mubr.bf16.mxu1 %v10008_v45 }
0x1020   : > { %v9801_v21 = vadd.f32 %v17404_v47, %v21231_v22  ;;  %v9792_v28 = vpop.f32.mrb[159].mxu0  ;;  %17624 = vmatmul.mubr.bf16.gmra.mrb[88].mxu1 %v10009_v42  ;;  %v9962_v50 = vmax.f32 %v9798_v49, 0.0 }
0x1021   : > { %v9793_v44 = vadd.f32 %v21231_v22, %v9792_v28  ;;  %v9960_v14 = vmax.f32 %v9790_v27, 0.0 }
0x1022   : > { %v9963_v52 = vmax.f32 %v9801_v21, 0.0 }
0x1023   : > { %v9961_v17 = vmax.f32 %v9793_v44, 0.0 }
0x1024   : > { %v10011_v38 = vpack.c.bf16 %v9963_v52, %v9962_v50 }
0x1025   : > { %v10010_v8 = vpack.c.bf16 %v9961_v17, %v9960_v14  ;;  %v17407_v7 = vpop.f32.mrb[160].mxu0 }
0x1026   : > { %v9814_v2 = vadd.f32 %v17407_v7, %v21231_v22  ;;  %v9805_v23 = vpop.f32.mrb[161].mxu0 }
0x1027   : > { %v9806_v13 = vadd.f32 %v21231_v22, %v9805_v23  ;;  %v17408_v16 = vpop.f32.mrb[162].mxu0  ;;  %17627 = vmatprep.mubr.bf16.mxu1 %v10010_v8 }
0x1028   : > { %v9817_v4 = vadd.f32 %v17408_v16, %v21231_v22  ;;  %v9808_v19 = vpop.f32.mrb[163].mxu0  ;;  %17628 = vmatmul.mubr.bf16.gmra.mrb[92].mxu1 %v10011_v38  ;;  %v9966_v3 = vmax.f32 %v9814_v2, 0.0 }
0x1029   : > { %v9809_v11 = vadd.f32 %v21231_v22, %v9808_v19  ;;  %v9964_v25 = vmax.f32 %v9806_v13, 0.0  ;;  %v18756_v19 = vld [vmem:[%s22031_s4 + $0x578] sm:$0xff]  }
0x102a   : > { %v9967_v10 = vmax.f32 %v9817_v4, 0.0  ;;  %17677 = vmatprep.subr.bf16.mxu0 %v18756_v19 }
0x102b   : > { %v9965_v30 = vmax.f32 %v9809_v11, 0.0  ;;  %17678 = vmatpush3.bf16.msra.mxu0 %v18756_v19 }
0x102c   : > { %v10013_v61 = vpack.c.bf16 %v9967_v10, %v9966_v3 }
0x102d   : > { %v10012_v40 = vpack.c.bf16 %v9965_v30, %v9964_v25  ;;  %v17411_v42 = vpop.f32.mrb[164].mxu0 }
0x102e   : > { %v9830_v45 = vadd.f32 %v17411_v42, %v21231_v22  ;;  %v9821_v1 = vpop.f32.mrb[165].mxu0 }
0x102f   : > { %v9822_v49 = vadd.f32 %v21231_v22, %v9821_v1  ;;  %v17412_v31 = vpop.f32.mrb[166].mxu0  ;;  %17631 = vmatprep.mubr.bf16.mxu1 %v10012_v40 }
0x1030   : > { %v9833_v27 = vadd.f32 %v17412_v31, %v21231_v22  ;;  %v9824_v47 = vpop.f32.mrb[167].mxu0  ;;  %17632 = vmatmul.mubr.bf16.gmra.mrb[96].mxu1 %v10013_v61  ;;  %v9970_v28 = vmax.f32 %v9830_v45, 0.0 }
0x1031   : > { %v9825_v21 = vadd.f32 %v21231_v22, %v9824_v47  ;;  %v9968_v50 = vmax.f32 %v9822_v49, 0.0 }
0x1032   : > { %v9971_v44 = vmax.f32 %v9833_v27, 0.0 }
0x1033   : > { %v9969_v52 = vmax.f32 %v9825_v21, 0.0 }
0x1034   : > { %v10015_v14 = vpack.c.bf16 %v9971_v44, %v9970_v28 }
0x1035   : > { %v10014_v17 = vpack.c.bf16 %v9969_v52, %v9968_v50  ;;  %v17415_v38 = vpop.f32.mrb[168].mxu0 }
0x1036   : > { %v9846_v8 = vadd.f32 %v17415_v38, %v21231_v22  ;;  %v9837_v7 = vpop.f32.mrb[169].mxu0 }
0x1037   : > { %v9838_v2 = vadd.f32 %v21231_v22, %v9837_v7  ;;  %v17416_v23 = vpop.f32.mrb[170].mxu0  ;;  %17635 = vmatprep.mubr.bf16.mxu1 %v10014_v17 }
0x1038   : > { %v9849_v13 = vadd.f32 %v17416_v23, %v21231_v22  ;;  %v9840_v16 = vpop.f32.mrb[171].mxu0  ;;  %17636 = vmatmul.mubr.bf16.gmra.mrb[100].mxu1 %v10015_v14  ;;  %v9974_v11 = vmax.f32 %v9846_v8, 0.0 }
0x1039   : > { %v9841_v4 = vadd.f32 %v21231_v22, %v9840_v16  ;;  %v9972_v3 = vmax.f32 %v9838_v2, 0.0 }
0x103a   : > { %v9975_v24 = vmax.f32 %v9849_v13, 0.0 }
0x103b   : > { %v9973_v10 = vmax.f32 %v9841_v4, 0.0 }
0x103c   : > { %v10017_v25 = vpack.c.bf16 %v9975_v24, %v9974_v11 }
0x103d   : > { %v10016_v30 = vpack.c.bf16 %v9973_v10, %v9972_v3  ;;  %v17419_v61 = vpop.f32.mrb[172].mxu0 }
0x103e   : > { %v9862_v40 = vadd.f32 %v17419_v61, %v21231_v22  ;;  %v9853_v42 = vpop.f32.mrb[173].mxu0 }
0x103f   : > { %v9854_v45 = vadd.f32 %v21231_v22, %v9853_v42  ;;  %v17420_v1 = vpop.f32.mrb[174].mxu0  ;;  %17639 = vmatprep.mubr.bf16.mxu1 %v10016_v30 }
0x1040   : > { %v9865_v49 = vadd.f32 %v17420_v1, %v21231_v22  ;;  %v9856_v31 = vpop.f32.mrb[175].mxu0  ;;  %17640 = vmatmul.mubr.bf16.gmra.mrb[104].mxu1 %v10017_v25  ;;  %v9978_v47 = vmax.f32 %v9862_v40, 0.0 }
0x1041   : > { %v9857_v27 = vadd.f32 %v21231_v22, %v9856_v31  ;;  %v9976_v28 = vmax.f32 %v9854_v45, 0.0 }
0x1042   : > { %v9979_v21 = vmax.f32 %v9865_v49, 0.0 }
0x1043   : > { %v9977_v44 = vmax.f32 %v9857_v27, 0.0 }
0x1044   : > { %v10019_v50 = vpack.c.bf16 %v9979_v21, %v9978_v47 }
0x1045   : > { %v10018_v52 = vpack.c.bf16 %v9977_v44, %v9976_v28  ;;  %v17423_v14 = vpop.f32.mrb[176].mxu0 }
0x1046   : > { %v9878_v17 = vadd.f32 %v17423_v14, %v21231_v22  ;;  %v9869_v38 = vpop.f32.mrb[177].mxu0 }
0x1047   : > { %v9870_v8 = vadd.f32 %v21231_v22, %v9869_v38  ;;  %v17424_v7 = vpop.f32.mrb[178].mxu0  ;;  %17643 = vmatprep.mubr.bf16.mxu1 %v10018_v52 }
0x1048   : > { %v9881_v2 = vadd.f32 %v17424_v7, %v21231_v22  ;;  %v9872_v23 = vpop.f32.mrb[179].mxu0  ;;  %17644 = vmatmul.mubr.bf16.gmra.mrb[108].mxu1 %v10019_v50  ;;  %v9982_v16 = vmax.f32 %v9878_v17, 0.0 }
0x1049   : > { %v9873_v13 = vadd.f32 %v21231_v22, %v9872_v23  ;;  %v9980_v19 = vmax.f32 %v9870_v8, 0.0 }
0x104a   : > { %v9983_v4 = vmax.f32 %v9881_v2, 0.0 }
0x104b   : > { %v9981_v11 = vmax.f32 %v9873_v13, 0.0 }
0x104c   : > { %v10021_v24 = vpack.c.bf16 %v9983_v4, %v9982_v16 }
0x104d   : > { %v10020_v3 = vpack.c.bf16 %v9981_v11, %v9980_v19  ;;  %v17427_v10 = vpop.f32.mrb[180].mxu0 }
0x104e   : > { %v9894_v25 = vadd.f32 %v17427_v10, %v21231_v22  ;;  %v9885_v30 = vpop.f32.mrb[181].mxu0 }
0x104f   : > { %v9886_v61 = vadd.f32 %v21231_v22, %v9885_v30  ;;  %v17428_v40 = vpop.f32.mrb[182].mxu0  ;;  %17647 = vmatprep.mubr.bf16.mxu1 %v10020_v3 }
0x1050   : > { %v9897_v42 = vadd.f32 %v17428_v40, %v21231_v22  ;;  %v9888_v45 = vpop.f32.mrb[183].mxu0  ;;  %17648 = vmatmul.mubr.bf16.gmra.mrb[112].mxu1 %v10021_v24  ;;  %v9986_v49 = vmax.f32 %v9894_v25, 0.0 }
0x1051   : > { %v9889_v1 = vadd.f32 %v21231_v22, %v9888_v45  ;;  %v9984_v27 = vmax.f32 %v9886_v61, 0.0 }
0x1052   : > { %v9987_v31 = vmax.f32 %v9897_v42, 0.0 }
0x1053   : > { %v9985_v47 = vmax.f32 %v9889_v1, 0.0 }
0x1054   : > { %v10023_v21 = vpack.c.bf16 %v9987_v31, %v9986_v49 }
0x1055   : > { %v10022_v28 = vpack.c.bf16 %v9985_v47, %v9984_v27  ;;  %v17431_v44 = vpop.f32.mrb[184].mxu0 }
0x1056   : > { %v9910_v50 = vadd.f32 %v17431_v44, %v21231_v22  ;;  %v9901_v52 = vpop.f32.mrb[185].mxu0 }
0x1057   : > { %v9902_v14 = vadd.f32 %v21231_v22, %v9901_v52  ;;  %v17432_v17 = vpop.f32.mrb[186].mxu0  ;;  %17651 = vmatprep.mubr.bf16.mxu1 %v10022_v28 }
0x1058   : > { %v9913_v38 = vadd.f32 %v17432_v17, %v21231_v22  ;;  %v9904_v8 = vpop.f32.mrb[187].mxu0  ;;  %17652 = vmatmul.mubr.bf16.gmra.mrb[116].mxu1 %v10023_v21  ;;  %v9990_v2 = vmax.f32 %v9910_v50, 0.0  ;;  %v18759_v21 = vld [vmem:[%s22031_s4 + $0x590] sm:$0xff]  }
0x1059   : > { %v9905_v7 = vadd.f32 %v21231_v22, %v9904_v8  ;;  %v9988_v13 = vmax.f32 %v9902_v14, 0.0 }
0x105a   : > { %v9991_v23 = vmax.f32 %v9913_v38, 0.0 }
0x105b   : > { %v9989_v16 = vmax.f32 %v9905_v7, 0.0 }
0x105c   : > { %v10025_v4 = vpack.c.bf16 %v9991_v23, %v9990_v2 }
0x105d   : > { %v10024_v19 = vpack.c.bf16 %v9989_v16, %v9988_v13  ;;  %v17435_v11 = vpop.f32.mrb[188].mxu0 }
0x105e   : > { %v9926_v24 = vadd.f32 %v17435_v11, %v21231_v22  ;;  %v9917_v3 = vpop.f32.mrb[189].mxu0 }
0x105f   : > { %v9918_v10 = vadd.f32 %v21231_v22, %v9917_v3  ;;  %v17436_v25 = vpop.f32.mrb[190].mxu0  ;;  %17655 = vmatprep.mubr.bf16.mxu1 %v10024_v19 }
0x1060   : > { %v9929_v30 = vadd.f32 %v17436_v25, %v21231_v22  ;;  %v9920_v61 = vpop.f32.mrb[191].mxu0  ;;  %17656 = vmatmul.mubr.bf16.gmra.mrb[120].mxu1 %v10025_v4  ;;  %v9994_v42 = vmax.f32 %v9926_v24, 0.0  ;;  %v18761_v4 = vld [vmem:[%s22031_s4 + $0x5a0] sm:$0xff]  }
0x1061   : > { %v9921_v40 = vadd.f32 %v21231_v22, %v9920_v61  ;;  %v9992_v1 = vmax.f32 %v9918_v10, 0.0 }
0x1062   : > { %v9995_v45 = vmax.f32 %v9929_v30, 0.0 }
0x1063   : > { %v9993_v49 = vmax.f32 %v9921_v40, 0.0 }
0x1064   : > { %v10027_v31 = vpack.c.bf16 %v9995_v45, %v9994_v42 }
0x1065   : > { %v10026_v27 = vpack.c.bf16 %v9993_v49, %v9992_v1 }
0x1067   : > { %17659 = vmatprep.mubr.bf16.mxu1 %v10026_v27 }
0x1068   : > { %17660 = vmatmul.mubr.bf16.gmra.mrb[124].mxu1 %v10027_v31  ;;  %v18763_v31 = vld [vmem:[%s22031_s4 + $0x5b0] sm:$0xff]  }
0x1069   : > { %17989 = vmatprep.mubr.bf16.mxu1 %v20478_v6  ;;  %v21365_v6 = vld [vmem:[%s22033_s6 + $0x11] ss:$0 sm:$0xff] }
0x1070   : > { %17990 = vmatmul.mubr.bf16.vlgmr.msra.gmra.mrb[128].mxu1 %v20476_v5  ;;  %v18757_v5 = vld [vmem:[%s22031_s4 + $0x580] sm:$0xff]  }
0x1071   : > { %17993 = vmatprep.mubr.bf16.mxu1 %v20488_v29  ;;  %17743 = vmatprep.subr.bf16.mxu0 %v18757_v5 }
0x1078   : > { %17994 = vmatmul.mubr.bf16.gmra.mrb[132].mxu1 %v20486_v20 }
0x1079   : > { %17997 = vmatprep.mubr.bf16.mxu1 %v20498_v33 }
0x1080   : > { %17998 = vmatmul.mubr.bf16.gmra.mrb[136].mxu1 %v20496_v46 }
0x1081   : > { %18001 = vmatprep.mubr.bf16.mxu1 %v20508_v36 }
0x1088   : > { %18002 = vmatmul.mubr.bf16.gmra.mrb[140].mxu1 %v20506_v63 }
0x1089   : > { %18005 = vmatprep.mubr.bf16.mxu1 %v20518_v48 }
0x1090   : > { %18006 = vmatmul.mubr.bf16.gmra.mrb[144].mxu1 %v20516_v12 }
0x1091   : > { %18009 = vmatprep.mubr.bf16.mxu1 %v20528_v32 }
0x1098   : > { %18010 = vmatmul.mubr.bf16.gmra.mrb[148].mxu1 %v20526_v9 }
0x1099   : > { %18013 = vmatprep.mubr.bf16.mxu1 %v20538_v41 }
0x10a0   : > { %18014 = vmatmul.mubr.bf16.gmra.mrb[152].mxu1 %v20536_v15 }
0x10a1   : > { %18017 = vmatprep.mubr.bf16.mxu1 %v20554_v54 }
0x10a8   : > { %18018 = vmatmul.mubr.bf16.gmra.mrb[156].mxu1 %v20552_v43 }
0x10a9   : > { %18021 = vmatprep.mubr.bf16.mxu1 %v20564_v18 }
0x10b0   : > { %18022 = vmatmul.mubr.bf16.gmra.mrb[160].mxu1 %v20562_v35 }
0x10b1   : > { %18025 = vmatprep.mubr.bf16.mxu1 %v20574_v37  ;;  %v18758_v37 = vld [vmem:[%s22031_s4 + $0x588] sm:$0xff]  }
0x10b8   : > { %18026 = vmatmul.mubr.bf16.gmra.mrb[164].mxu1 %v20572_v39 }
0x10b9   : > { %18029 = vmatprep.mubr.bf16.mxu1 %v20584_v51 }
0x10c0   : > { %18030 = vmatmul.mubr.bf16.gmra.mrb[168].mxu1 %v20582_v60 }
0x10c1   : > { %18033 = vmatprep.mubr.bf16.mxu1 %v20594_v57 }
0x10c3   : > { %v17601_v20 = vpop.f32.mrb[64].mxu1 }
0x10c4   : > { %v11108_v29 = vadd.f32 %v17601_v20, %v21365_v6  ;;  %v10779_v46 = vpop.f32.mrb[65].mxu1 }
0x10c5   : > { %v11106_v33 = vadd.f32 %v21365_v6, %v10779_v46  ;;  %v17602_v63 = vpop.f32.mrb[66].mxu1 }
0x10c6   : > { %v11109_v36 = vadd.f32 %v17602_v63, %v21365_v6  ;;  %v10782_v12 = vpop.f32.mrb[67].mxu1  ;;  %v11172_v9 = vmax.f32 %v11108_v29, 0.0 }
0x10c7   : > { %v11107_v48 = vadd.f32 %v21365_v6, %v10782_v12  ;;  %v11170_v15 = vmax.f32 %v11106_v33, 0.0 }
0x10c8   : > { %v11173_v32 = vmax.f32 %v11109_v36, 0.0  ;;  %18034 = vmatmul.mubr.bf16.gmra.mrb[172].mxu1 %v20592_v53  ;;  %v18764_v36 = vld [vmem:[%s22031_s4 + $0x5b8] sm:$0xff]  }
0x10c9   : > { %v11171_v41 = vmax.f32 %v11107_v48, 0.0  ;;  %18037 = vmatprep.mubr.bf16.mxu1 %v20604_v26 }
0x10ca   : > { %v11235_v43 = vpack.c.bf16 %v11173_v32, %v11172_v9 }
0x10cb   : > { %v11234_v54 = vpack.c.bf16 %v11171_v41, %v11170_v15  ;;  %v17605_v35 = vpop.f32.mrb[68].mxu1 }
0x10cc   : > { %v11112_v18 = vadd.f32 %v17605_v35, %v21365_v6  ;;  %v10795_v39 = vpop.f32.mrb[69].mxu1 }
0x10cd   : > { %v11110_v60 = vadd.f32 %v21365_v6, %v10795_v39  ;;  %v17606_v51 = vpop.f32.mrb[70].mxu1  ;;  %17679 = vmatprep.mubr.bf16.mxu0 %v11234_v54 }
0x10ce   : > { %v11113_v53 = vadd.f32 %v17606_v51, %v21365_v6  ;;  %v10798_v57 = vpop.f32.mrb[71].mxu1  ;;  %17680 = vmatmul.mubr.bf16.vlgmr.msra.gmra.mrb[192].mxu0 %v11235_v43  ;;  %v11176_v22 = vmax.f32 %v11112_v18, 0.0 }
0x10cf   : > { %v11111_v26 = vadd.f32 %v21365_v6, %v10798_v57  ;;  %17744 = vmatpush3.bf16.msra.mxu0 %v18757_v5  ;;  %v11174_v28 = vmax.f32 %v11110_v60, 0.0 }
0x10d0   : > { %v11177_v47 = vmax.f32 %v11113_v53, 0.0  ;;  %18038 = vmatmul.mubr.bf16.gmra.mrb[176].mxu1 %v20602_v34  ;;  %17745 = vmatprep.subr.bf16.mxu0 %v18758_v37  ;;  %v18760_v34 = vld [vmem:[%s22031_s4 + $0x598] sm:$0xff]  }
0x10d1   : > { %v11175_v44 = vmax.f32 %v11111_v26, 0.0  ;;  %18041 = vmatprep.mubr.bf16.mxu1 %v20617_v59 }
0x10d2   : > { %v11237_v50 = vpack.c.bf16 %v11177_v47, %v11176_v22 }
0x10d3   : > { %v11236_v52 = vpack.c.bf16 %v11175_v44, %v11174_v28  ;;  %v17609_v14 = vpop.f32.mrb[72].mxu1  ;;  %17746 = vmatpush3.bf16.msra.mxu0 %v18758_v37 }
0x10d4   : > { %v11116_v17 = vadd.f32 %v17609_v14, %v21365_v6  ;;  %v10811_v38 = vpop.f32.mrb[73].mxu1  ;;  %17747 = vmatprep.subr.bf16.mxu0 %v18759_v21 }
0x10d5   : > { %v11114_v8 = vadd.f32 %v21365_v6, %v10811_v38  ;;  %v17610_v7 = vpop.f32.mrb[74].mxu1  ;;  %17683 = vmatprep.mubr.bf16.mxu0 %v11236_v52 }
0x10d6   : > { %v11117_v2 = vadd.f32 %v17610_v7, %v21365_v6  ;;  %v10814_v23 = vpop.f32.mrb[75].mxu1  ;;  %17684 = vmatmul.mubr.bf16.gmra.mrb[196].mxu0 %v11237_v50  ;;  %v11180_v13 = vmax.f32 %v11116_v17, 0.0 }
0x10d7   : > { %v11115_v59 = vadd.f32 %v21365_v6, %v10814_v23  ;;  %17748 = vmatpush3.bf16.msra.mxu0 %v18759_v21  ;;  %v11178_v19 = vmax.f32 %v11114_v8, 0.0 }
0x10d8   : > { %v11181_v16 = vmax.f32 %v11117_v2, 0.0  ;;  %18042 = vmatmul.mubr.bf16.gmra.mrb[180].mxu1 %v20615_v56  ;;  %17749 = vmatprep.subr.bf16.mxu0 %v18760_v34  ;;  %v18762_v56 = vld [vmem:[%s22031_s4 + $0x5a8] sm:$0xff]  }
0x10d9   : > { %v11179_v11 = vmax.f32 %v11115_v59, 0.0  ;;  %18045 = vmatprep.mubr.bf16.mxu1 %v20630_v62 }
0x10da   : > { %v11239_v24 = vpack.c.bf16 %v11181_v16, %v11180_v13 }
0x10db   : > { %v11238_v3 = vpack.c.bf16 %v11179_v11, %v11178_v19  ;;  %v17613_v10 = vpop.f32.mrb[76].mxu1  ;;  %17750 = vmatpush3.bf16.msra.mxu0 %v18760_v34 }
0x10dc   : > { %v11120_v25 = vadd.f32 %v17613_v10, %v21365_v6  ;;  %v10827_v30 = vpop.f32.mrb[77].mxu1  ;;  %17751 = vmatprep.subr.bf16.mxu0 %v18761_v4 }
0x10dd   : > { %v11118_v61 = vadd.f32 %v21365_v6, %v10827_v30  ;;  %v17614_v40 = vpop.f32.mrb[78].mxu1  ;;  %17687 = vmatprep.mubr.bf16.mxu0 %v11238_v3 }
0x10de   : > { %v11121_v42 = vadd.f32 %v17614_v40, %v21365_v6  ;;  %v10830_v45 = vpop.f32.mrb[79].mxu1  ;;  %17688 = vmatmul.mubr.bf16.gmra.mrb[200].mxu0 %v11239_v24  ;;  %v11184_v1 = vmax.f32 %v11120_v25, 0.0 }
0x10df   : > { %v11119_v62 = vadd.f32 %v21365_v6, %v10830_v45  ;;  %17752 = vmatpush3.bf16.msra.mxu0 %v18761_v4  ;;  %v11182_v27 = vmax.f32 %v11118_v61, 0.0 }
0x10e0   : > { %v11185_v49 = vmax.f32 %v11121_v42, 0.0  ;;  %18046 = vmatmul.mubr.bf16.gmra.mrb[184].mxu1 %v20628_v58  ;;  %17753 = vmatprep.subr.bf16.mxu0 %v18762_v56 }
0x10e1   : > { %v11183_v5 = vmax.f32 %v11119_v62, 0.0 }
0x10e2   : > { %v11241_v20 = vpack.c.bf16 %v11185_v49, %v11184_v1 }
0x10e3   : > { %v11240_v29 = vpack.c.bf16 %v11183_v5, %v11182_v27  ;;  %v17617_v46 = vpop.f32.mrb[80].mxu1  ;;  %17754 = vmatpush3.bf16.msra.mxu0 %v18762_v56 }
0x10e4   : > { %v11124_v33 = vadd.f32 %v17617_v46, %v21365_v6  ;;  %v10843_v63 = vpop.f32.mrb[81].mxu1  ;;  %17755 = vmatprep.subr.bf16.mxu0 %v18763_v31 }
0x10e5   : > { %v11122_v58 = vadd.f32 %v21365_v6, %v10843_v63  ;;  %v17618_v12 = vpop.f32.mrb[82].mxu1  ;;  %17691 = vmatprep.mubr.bf16.mxu0 %v11240_v29 }
0x10e6   : > { %v11125_v48 = vadd.f32 %v17618_v12, %v21365_v6  ;;  %v10846_v9 = vpop.f32.mrb[83].mxu1  ;;  %17692 = vmatmul.mubr.bf16.gmra.mrb[204].mxu0 %v11241_v20  ;;  %v11188_v15 = vmax.f32 %v11124_v33, 0.0 }
0x10e7   : > { %v11123_v32 = vadd.f32 %v21365_v6, %v10846_v9  ;;  %17756 = vmatpush3.bf16.msra.mxu0 %v18763_v31  ;;  %v11186_v43 = vmax.f32 %v11122_v58, 0.0 }
0x10e8   : > { %v11189_v41 = vmax.f32 %v11125_v48, 0.0  ;;  %17757 = vmatprep.subr.bf16.mxu0 %v18764_v36 }
0x10e9   : > { %v11187_v54 = vmax.f32 %v11123_v32, 0.0 }
0x10ea   : > { %v11243_v35 = vpack.c.bf16 %v11189_v41, %v11188_v15 }
0x10eb   : > { %v11242_v18 = vpack.c.bf16 %v11187_v54, %v11186_v43  ;;  %v17621_v39 = vpop.f32.mrb[84].mxu1  ;;  %17758 = vmatpush3.bf16.msra.mxu0 %v18764_v36 }
0x10ec   : > { %v11128_v37 = vadd.f32 %v17621_v39, %v21365_v6  ;;  %v10859_v60 = vpop.f32.mrb[85].mxu1 }
0x10ed   : > { %v11126_v51 = vadd.f32 %v21365_v6, %v10859_v60  ;;  %v17622_v53 = vpop.f32.mrb[86].mxu1  ;;  %17695 = vmatprep.mubr.bf16.mxu0 %v11242_v18 }
0x10ee   : > { %v11129_v57 = vadd.f32 %v17622_v53, %v21365_v6  ;;  %v10862_v26 = vpop.f32.mrb[87].mxu1  ;;  %17696 = vmatmul.mubr.bf16.gmra.mrb[208].mxu0 %v11243_v35  ;;  %v11192_v47 = vmax.f32 %v11128_v37, 0.0 }
0x10ef   : > { %v11127_v22 = vadd.f32 %v21365_v6, %v10862_v26  ;;  %v11190_v28 = vmax.f32 %v11126_v51, 0.0 }
0x10f0   : > { %v11193_v21 = vmax.f32 %v11129_v57, 0.0 }
0x10f1   : > { %v11191_v44 = vmax.f32 %v11127_v22, 0.0 }
0x10f2   : > { %v11245_v50 = vpack.c.bf16 %v11193_v21, %v11192_v47 }
0x10f3   : > { %v11244_v52 = vpack.c.bf16 %v11191_v44, %v11190_v28  ;;  %v17625_v14 = vpop.f32.mrb[88].mxu1 }
0x10f4   : > { %v11132_v17 = vadd.f32 %v17625_v14, %v21365_v6  ;;  %v10875_v38 = vpop.f32.mrb[89].mxu1 }
0x10f5   : > { %v11130_v34 = vadd.f32 %v21365_v6, %v10875_v38  ;;  %v17626_v8 = vpop.f32.mrb[90].mxu1  ;;  %17699 = vmatprep.mubr.bf16.mxu0 %v11244_v52 }
0x10f6   : > { %v11133_v7 = vadd.f32 %v17626_v8, %v21365_v6  ;;  %v10878_v2 = vpop.f32.mrb[91].mxu1  ;;  %17700 = vmatmul.mubr.bf16.gmra.mrb[212].mxu0 %v11245_v50  ;;  %v11196_v59 = vmax.f32 %v11132_v17, 0.0 }
0x10f7   : > { %v11131_v23 = vadd.f32 %v21365_v6, %v10878_v2  ;;  %v11194_v16 = vmax.f32 %v11130_v34, 0.0 }
0x10f8   : > { %v11197_v13 = vmax.f32 %v11133_v7, 0.0 }
0x10f9   : > { %v11195_v4 = vmax.f32 %v11131_v23, 0.0 }
0x10fa   : > { %v11247_v19 = vpack.c.bf16 %v11197_v13, %v11196_v59 }
0x10fb   : > { %v11246_v11 = vpack.c.bf16 %v11195_v4, %v11194_v16  ;;  %v17629_v24 = vpop.f32.mrb[92].mxu1 }
0x10fc   : > { %v11136_v3 = vadd.f32 %v17629_v24, %v21365_v6  ;;  %v10891_v10 = vpop.f32.mrb[93].mxu1 }
0x10fd   : > { %v11134_v25 = vadd.f32 %v21365_v6, %v10891_v10  ;;  %v17630_v30 = vpop.f32.mrb[94].mxu1  ;;  %17703 = vmatprep.mubr.bf16.mxu0 %v11246_v11 }
0x10fe   : > { %v11137_v56 = vadd.f32 %v17630_v30, %v21365_v6  ;;  %v10894_v61 = vpop.f32.mrb[95].mxu1  ;;  %17704 = vmatmul.mubr.bf16.gmra.mrb[216].mxu0 %v11247_v19  ;;  %v11200_v42 = vmax.f32 %v11136_v3, 0.0 }
0x10ff   : > { %v11135_v40 = vadd.f32 %v21365_v6, %v10894_v61  ;;  %v11198_v62 = vmax.f32 %v11134_v25, 0.0 }
0x1100   : > { %v11201_v45 = vmax.f32 %v11137_v56, 0.0 }
0x1101   : > { %v11199_v1 = vmax.f32 %v11135_v40, 0.0 }
0x1102   : > { %v11249_v49 = vpack.c.bf16 %v11201_v45, %v11200_v42 }
0x1103   : > { %v11248_v31 = vpack.c.bf16 %v11199_v1, %v11198_v62  ;;  %v17633_v27 = vpop.f32.mrb[96].mxu1 }
0x1104   : > { %v11140_v5 = vadd.f32 %v17633_v27, %v21365_v6  ;;  %v10907_v20 = vpop.f32.mrb[97].mxu1 }
0x1105   : > { %v11138_v29 = vadd.f32 %v21365_v6, %v10907_v20  ;;  %v17634_v46 = vpop.f32.mrb[98].mxu1  ;;  %17707 = vmatprep.mubr.bf16.mxu0 %v11248_v31 }
0x1106   : > { %v11141_v33 = vadd.f32 %v17634_v46, %v21365_v6  ;;  %v10910_v63 = vpop.f32.mrb[99].mxu1  ;;  %17708 = vmatmul.mubr.bf16.gmra.mrb[220].mxu0 %v11249_v49  ;;  %v11204_v58 = vmax.f32 %v11140_v5, 0.0 }
0x1107   : > { %v11139_v36 = vadd.f32 %v21365_v6, %v10910_v63  ;;  %v11202_v48 = vmax.f32 %v11138_v29, 0.0 }
0x1108   : > { %v11205_v12 = vmax.f32 %v11141_v33, 0.0 }
0x1109   : > { %v11203_v9 = vmax.f32 %v11139_v36, 0.0 }
0x110a   : > { %v11251_v32 = vpack.c.bf16 %v11205_v12, %v11204_v58 }
0x110b   : > { %v11250_v15 = vpack.c.bf16 %v11203_v9, %v11202_v48  ;;  %v17637_v41 = vpop.f32.mrb[100].mxu1 }
0x110c   : > { %v11144_v43 = vadd.f32 %v17637_v41, %v21365_v6  ;;  %v10923_v54 = vpop.f32.mrb[101].mxu1 }
0x110d   : > { %v11142_v35 = vadd.f32 %v21365_v6, %v10923_v54  ;;  %v17638_v18 = vpop.f32.mrb[102].mxu1  ;;  %17711 = vmatprep.mubr.bf16.mxu0 %v11250_v15 }
0x110e   : > { %v11145_v39 = vadd.f32 %v17638_v18, %v21365_v6  ;;  %v10926_v37 = vpop.f32.mrb[103].mxu1  ;;  %17712 = vmatmul.mubr.bf16.gmra.mrb[224].mxu0 %v11251_v32  ;;  %v11208_v51 = vmax.f32 %v11144_v43, 0.0 }
0x110f   : > { %v11143_v60 = vadd.f32 %v21365_v6, %v10926_v37  ;;  %v11206_v57 = vmax.f32 %v11142_v35, 0.0 }
0x1110   : > { %v11209_v53 = vmax.f32 %v11145_v39, 0.0 }
0x1111   : > { %v11207_v26 = vmax.f32 %v11143_v60, 0.0 }
0x1112   : > { %v11253_v22 = vpack.c.bf16 %v11209_v53, %v11208_v51 }
0x1113   : > { %v11252_v47 = vpack.c.bf16 %v11207_v26, %v11206_v57  ;;  %v17641_v21 = vpop.f32.mrb[104].mxu1 }
0x1114   : > { %v11148_v28 = vadd.f32 %v17641_v21, %v21365_v6  ;;  %v10939_v44 = vpop.f32.mrb[105].mxu1 }
0x1115   : > { %v11146_v50 = vadd.f32 %v21365_v6, %v10939_v44  ;;  %v17642_v52 = vpop.f32.mrb[106].mxu1  ;;  %17715 = vmatprep.mubr.bf16.mxu0 %v11252_v47 }
0x1116   : > { %v11149_v14 = vadd.f32 %v17642_v52, %v21365_v6  ;;  %v10942_v17 = vpop.f32.mrb[107].mxu1  ;;  %17716 = vmatmul.mubr.bf16.gmra.mrb[228].mxu0 %v11253_v22  ;;  %v11212_v34 = vmax.f32 %v11148_v28, 0.0 }
0x1117   : > { %v11147_v38 = vadd.f32 %v21365_v6, %v10942_v17  ;;  %v11210_v7 = vmax.f32 %v11146_v50, 0.0 }
0x1118   : > { %v11213_v8 = vmax.f32 %v11149_v14, 0.0 }
0x1119   : > { %v11211_v2 = vmax.f32 %v11147_v38, 0.0 }
0x111a   : > { %v11255_v23 = vpack.c.bf16 %v11213_v8, %v11212_v34 }
0x111b   : > { %v11254_v59 = vpack.c.bf16 %v11211_v2, %v11210_v7  ;;  %v17645_v13 = vpop.f32.mrb[108].mxu1 }
0x111c   : > { %v11152_v16 = vadd.f32 %v17645_v13, %v21365_v6  ;;  %v10955_v4 = vpop.f32.mrb[109].mxu1 }
0x111d   : > { %v11150_v19 = vadd.f32 %v21365_v6, %v10955_v4  ;;  %v17646_v11 = vpop.f32.mrb[110].mxu1  ;;  %17719 = vmatprep.mubr.bf16.mxu0 %v11254_v59 }
0x111e   : > { %v11153_v24 = vadd.f32 %v17646_v11, %v21365_v6  ;;  %v10958_v3 = vpop.f32.mrb[111].mxu1  ;;  %17720 = vmatmul.mubr.bf16.gmra.mrb[232].mxu0 %v11255_v23  ;;  %v11216_v25 = vmax.f32 %v11152_v16, 0.0 }
0x111f   : > { %v11151_v10 = vadd.f32 %v21365_v6, %v10958_v3  ;;  %v11214_v56 = vmax.f32 %v11150_v19, 0.0 }
0x1120   : > { %v11217_v30 = vmax.f32 %v11153_v24, 0.0 }
0x1121   : > { %v11215_v61 = vmax.f32 %v11151_v10, 0.0 }
0x1122   : > { %v11257_v40 = vpack.c.bf16 %v11217_v30, %v11216_v25  ;;  %v18765_v30 = vld [vmem:[%s22031_s4 + $0x5c0] sm:$0xff]  }
0x1123   : > { %v11256_v42 = vpack.c.bf16 %v11215_v61, %v11214_v56  ;;  %v17649_v45 = vpop.f32.mrb[112].mxu1  ;;  %17823 = vmatprep.subr.bf16.mxu0 %v18765_v30  ;;  %v21465_v56 = vld [vmem:[%s22033_s6 + $0x12] ss:$0 sm:$0xff] }
0x1124   : > { %v11156_v62 = vadd.f32 %v17649_v45, %v21365_v6  ;;  %v10971_v1 = vpop.f32.mrb[113].mxu1 }
0x1125   : > { %v11154_v49 = vadd.f32 %v21365_v6, %v10971_v1  ;;  %v17650_v31 = vpop.f32.mrb[114].mxu1  ;;  %17723 = vmatprep.mubr.bf16.mxu0 %v11256_v42 }
0x1126   : > { %v11157_v27 = vadd.f32 %v17650_v31, %v21365_v6  ;;  %v10974_v5 = vpop.f32.mrb[115].mxu1  ;;  %17724 = vmatmul.mubr.bf16.gmra.mrb[236].mxu0 %v11257_v40  ;;  %v11220_v29 = vmax.f32 %v11156_v62, 0.0 }
0x1127   : > { %v11155_v20 = vadd.f32 %v21365_v6, %v10974_v5  ;;  %v11218_v33 = vmax.f32 %v11154_v49, 0.0 }
0x1128   : > { %v11221_v46 = vmax.f32 %v11157_v27, 0.0 }
0x1129   : > { %v11219_v63 = vmax.f32 %v11155_v20, 0.0 }
0x112a   : > { %v11259_v36 = vpack.c.bf16 %v11221_v46, %v11220_v29 }
0x112b   : > { %v11258_v58 = vpack.c.bf16 %v11219_v63, %v11218_v33  ;;  %v17653_v12 = vpop.f32.mrb[116].mxu1 }
0x112c   : > { %v11160_v48 = vadd.f32 %v17653_v12, %v21365_v6  ;;  %v10987_v9 = vpop.f32.mrb[117].mxu1 }
0x112d   : > { %v11158_v32 = vadd.f32 %v21365_v6, %v10987_v9  ;;  %v17654_v15 = vpop.f32.mrb[118].mxu1  ;;  %17727 = vmatprep.mubr.bf16.mxu0 %v11258_v58  ;;  %v18766_v58 = vld [vmem:[%s22031_s4 + $0x5c8] sm:$0xff]  }
0x112e   : > { %v11161_v41 = vadd.f32 %v17654_v15, %v21365_v6  ;;  %v10990_v43 = vpop.f32.mrb[119].mxu1  ;;  %17728 = vmatmul.mubr.bf16.gmra.mrb[240].mxu0 %v11259_v36  ;;  %v11224_v35 = vmax.f32 %v11160_v48, 0.0 }
0x112f   : > { %v11159_v54 = vadd.f32 %v21365_v6, %v10990_v43  ;;  %v11222_v39 = vmax.f32 %v11158_v32, 0.0 }
0x1130   : > { %v11225_v18 = vmax.f32 %v11161_v41, 0.0 }
0x1131   : > { %v11223_v37 = vmax.f32 %v11159_v54, 0.0  ;;  %v18767_v54 = vld [vmem:[%s22031_s4 + $0x5d0] sm:$0xff]  }
0x1132   : > { %v11261_v60 = vpack.c.bf16 %v11225_v18, %v11224_v35 }
0x1133   : > { %v11260_v51 = vpack.c.bf16 %v11223_v37, %v11222_v39  ;;  %v17657_v53 = vpop.f32.mrb[120].mxu1 }
0x1134   : > { %v11164_v57 = vadd.f32 %v17657_v53, %v21365_v6  ;;  %v11003_v26 = vpop.f32.mrb[121].mxu1 }
0x1135   : > { %v11162_v22 = vadd.f32 %v21365_v6, %v11003_v26  ;;  %v17658_v47 = vpop.f32.mrb[122].mxu1  ;;  %17731 = vmatprep.mubr.bf16.mxu0 %v11260_v51 }
0x1136   : > { %v11165_v21 = vadd.f32 %v17658_v47, %v21365_v6  ;;  %v11006_v28 = vpop.f32.mrb[123].mxu1  ;;  %17732 = vmatmul.mubr.bf16.gmra.mrb[244].mxu0 %v11261_v60  ;;  %v11228_v50 = vmax.f32 %v11164_v57, 0.0  ;;  %v18768_v57 = vld [vmem:[%s22031_s4 + $0x5d8] sm:$0xff]  }
0x1137   : > { %v11163_v44 = vadd.f32 %v21365_v6, %v11006_v28  ;;  %v11226_v14 = vmax.f32 %v11162_v22, 0.0 }
0x1138   : > { %v11229_v52 = vmax.f32 %v11165_v21, 0.0 }
0x1139   : > { %v11227_v17 = vmax.f32 %v11163_v44, 0.0 }
0x113a   : > { %v11263_v38 = vpack.c.bf16 %v11229_v52, %v11228_v50  ;;  %v18769_v52 = vld [vmem:[%s22031_s4 + $0x5e0] sm:$0xff]  }
0x113b   : > { %v11262_v34 = vpack.c.bf16 %v11227_v17, %v11226_v14  ;;  %v17661_v8 = vpop.f32.mrb[124].mxu1 }
0x113c   : > { %v11168_v7 = vadd.f32 %v17661_v8, %v21365_v6  ;;  %v11019_v2 = vpop.f32.mrb[125].mxu1 }
0x113d   : > { %v11166_v23 = vadd.f32 %v21365_v6, %v11019_v2  ;;  %v17662_v59 = vpop.f32.mrb[126].mxu1  ;;  %17735 = vmatprep.mubr.bf16.mxu0 %v11262_v34 }
0x113e   : > { %v11169_v13 = vadd.f32 %v17662_v59, %v21365_v6  ;;  %v11022_v16 = vpop.f32.mrb[127].mxu1  ;;  %17736 = vmatmul.mubr.bf16.gmra.mrb[248].mxu0 %v11263_v38  ;;  %v11232_v19 = vmax.f32 %v11168_v7, 0.0 }
0x113f   : > { %v11167_v4 = vadd.f32 %v21365_v6, %v11022_v16  ;;  %v11230_v24 = vmax.f32 %v11166_v23, 0.0  ;;  %v18770_v23 = vld [vmem:[%s22031_s4 + $0x5e8] sm:$0xff]  }
0x1140   : > { %v11233_v11 = vmax.f32 %v11169_v13, 0.0 }
0x1141   : > { %v11231_v3 = vmax.f32 %v11167_v4, 0.0 }
0x1142   : > { %v11265_v10 = vpack.c.bf16 %v11233_v11, %v11232_v19 }
0x1143   : > { %v11264_v25 = vpack.c.bf16 %v11231_v3, %v11230_v24  ;;  %v18771_v3 = vld [vmem:[%s22031_s4 + $0x5f0] sm:$0xff]  }
0x1145   : > { %17739 = vmatprep.mubr.bf16.mxu0 %v11264_v25 }
0x1146   : > { %17740 = vmatmul.mubr.bf16.gmra.mrb[252].mxu0 %v11265_v10 }
0x11a1   : > { %v17681_v61 = vpop.f32.mrb[192].mxu0 }
0x11a2   : > { %v11382_v6 = vadd.f32 %v17681_v61, %v21465_v56  ;;  %v11373_v40 = vpop.f32.mrb[193].mxu0 }
0x11a3   : > { %v11374_v42 = vadd.f32 %v21465_v56, %v11373_v40  ;;  %v17682_v45 = vpop.f32.mrb[194].mxu0 }
0x11a4   : > { %v11385_v62 = vadd.f32 %v17682_v45, %v21465_v56  ;;  %v11376_v1 = vpop.f32.mrb[195].mxu0  ;;  %v11630_v31 = vmax.f32 %v11382_v6, 0.0  ;;  %v18772_v45 = vld [vmem:[%s22031_s4 + $0x5f8] sm:$0xff]  }
0x11a5   : > { %v11377_v49 = vadd.f32 %v21465_v56, %v11376_v1  ;;  %v11628_v5 = vmax.f32 %v11374_v42, 0.0 }
0x11a6   : > { %v11631_v27 = vmax.f32 %v11385_v62, 0.0 }
0x11a7   : > { %v11629_v20 = vmax.f32 %v11377_v49, 0.0 }
0x11a8   : > { %v11693_v29 = vpack.c.bf16 %v11631_v27, %v11630_v31 }
0x11a9   : > { %v11692_v46 = vpack.c.bf16 %v11629_v20, %v11628_v5  ;;  %v17685_v33 = vpop.f32.mrb[196].mxu0 }
0x11aa   : > { %v11398_v63 = vadd.f32 %v17685_v33, %v21465_v56  ;;  %v11389_v36 = vpop.f32.mrb[197].mxu0 }
0x11ab   : > { %v11390_v12 = vadd.f32 %v21465_v56, %v11389_v36  ;;  %v17686_v48 = vpop.f32.mrb[198].mxu0  ;;  %17759 = vmatprep.mubr.bf16.mxu0 %v11692_v46 }
0x11ac   : > { %v11401_v9 = vadd.f32 %v17686_v48, %v21465_v56  ;;  %v11392_v32 = vpop.f32.mrb[199].mxu0  ;;  %17760 = vmatmul.mubr.bf16.vlgmr.msra.gmra.mrb[0].mxu0 %v11693_v29  ;;  %v11634_v41 = vmax.f32 %v11398_v63, 0.0 }
0x11ad   : > { %v11393_v15 = vadd.f32 %v21465_v56, %v11392_v32  ;;  %17824 = vmatpush3.bf16.msra.mxu0 %v18765_v30  ;;  %v11632_v35 = vmax.f32 %v11390_v12, 0.0 }
0x11ae   : > { %v11635_v43 = vmax.f32 %v11401_v9, 0.0  ;;  %17825 = vmatprep.subr.bf16.mxu0 %v18766_v58 }
0x11af   : > { %v11633_v18 = vmax.f32 %v11393_v15, 0.0 }
0x11b0   : > { %v11695_v39 = vpack.c.bf16 %v11635_v43, %v11634_v41 }
0x11b1   : > { %v11694_v37 = vpack.c.bf16 %v11633_v18, %v11632_v35  ;;  %v17689_v60 = vpop.f32.mrb[200].mxu0  ;;  %17826 = vmatpush3.bf16.msra.mxu0 %v18766_v58 }
0x11b2   : > { %v11414_v51 = vadd.f32 %v17689_v60, %v21465_v56  ;;  %v11405_v53 = vpop.f32.mrb[201].mxu0  ;;  %17827 = vmatprep.subr.bf16.mxu0 %v18767_v54 }
0x11b3   : > { %v11406_v26 = vadd.f32 %v21465_v56, %v11405_v53  ;;  %v17690_v22 = vpop.f32.mrb[202].mxu0  ;;  %17763 = vmatprep.mubr.bf16.mxu0 %v11694_v37 }
0x11b4   : > { %v11417_v47 = vadd.f32 %v17690_v22, %v21465_v56  ;;  %v11408_v21 = vpop.f32.mrb[203].mxu0  ;;  %17764 = vmatmul.mubr.bf16.gmra.mrb[4].mxu0 %v11695_v39  ;;  %v11638_v44 = vmax.f32 %v11414_v51, 0.0 }
0x11b5   : > { %v11409_v28 = vadd.f32 %v21465_v56, %v11408_v21  ;;  %17828 = vmatpush3.bf16.msra.mxu0 %v18767_v54  ;;  %v11636_v14 = vmax.f32 %v11406_v26, 0.0 }
0x11b6   : > { %v11639_v50 = vmax.f32 %v11417_v47, 0.0  ;;  %17829 = vmatprep.subr.bf16.mxu0 %v18768_v57 }
0x11b7   : > { %v11637_v17 = vmax.f32 %v11409_v28, 0.0 }
0x11b8   : > { %v11697_v38 = vpack.c.bf16 %v11639_v50, %v11638_v44 }
0x11b9   : > { %v11696_v34 = vpack.c.bf16 %v11637_v17, %v11636_v14  ;;  %v17693_v8 = vpop.f32.mrb[204].mxu0  ;;  %17830 = vmatpush3.bf16.msra.mxu0 %v18768_v57 }
0x11ba   : > { %v11430_v7 = vadd.f32 %v17693_v8, %v21465_v56  ;;  %v11421_v2 = vpop.f32.mrb[205].mxu0  ;;  %17831 = vmatprep.subr.bf16.mxu0 %v18769_v52 }
0x11bb   : > { %v11422_v59 = vadd.f32 %v21465_v56, %v11421_v2  ;;  %v17694_v13 = vpop.f32.mrb[206].mxu0  ;;  %17767 = vmatprep.mubr.bf16.mxu0 %v11696_v34 }
0x11bc   : > { %v11433_v16 = vadd.f32 %v17694_v13, %v21465_v56  ;;  %v11424_v4 = vpop.f32.mrb[207].mxu0  ;;  %17768 = vmatmul.mubr.bf16.gmra.mrb[8].mxu0 %v11697_v38  ;;  %v11642_v11 = vmax.f32 %v11430_v7, 0.0 }
0x11bd   : > { %v11425_v19 = vadd.f32 %v21465_v56, %v11424_v4  ;;  %17832 = vmatpush3.bf16.msra.mxu0 %v18769_v52  ;;  %v11640_v10 = vmax.f32 %v11422_v59, 0.0 }
0x11be   : > { %v11643_v24 = vmax.f32 %v11433_v16, 0.0  ;;  %17833 = vmatprep.subr.bf16.mxu0 %v18770_v23 }
0x11bf   : > { %v11641_v25 = vmax.f32 %v11425_v19, 0.0 }
0x11c0   : > { %v11699_v30 = vpack.c.bf16 %v11643_v24, %v11642_v11 }
0x11c1   : > { %v11698_v61 = vpack.c.bf16 %v11641_v25, %v11640_v10  ;;  %v17697_v6 = vpop.f32.mrb[208].mxu0  ;;  %17834 = vmatpush3.bf16.msra.mxu0 %v18770_v23 }
0x11c2   : > { %v11446_v40 = vadd.f32 %v17697_v6, %v21465_v56  ;;  %v11437_v42 = vpop.f32.mrb[209].mxu0  ;;  %17835 = vmatprep.subr.bf16.mxu0 %v18771_v3 }
0x11c3   : > { %v11438_v62 = vadd.f32 %v21465_v56, %v11437_v42  ;;  %v17698_v1 = vpop.f32.mrb[210].mxu0  ;;  %17771 = vmatprep.mubr.bf16.mxu0 %v11698_v61 }
0x11c4   : > { %v11449_v49 = vadd.f32 %v17698_v1, %v21465_v56  ;;  %v11440_v31 = vpop.f32.mrb[211].mxu0  ;;  %17772 = vmatmul.mubr.bf16.gmra.mrb[12].mxu0 %v11699_v30  ;;  %v11646_v5 = vmax.f32 %v11446_v40, 0.0 }
0x11c5   : > { %v11441_v27 = vadd.f32 %v21465_v56, %v11440_v31  ;;  %17836 = vmatpush3.bf16.msra.mxu0 %v18771_v3  ;;  %v11644_v29 = vmax.f32 %v11438_v62, 0.0 }
0x11c6   : > { %v11647_v20 = vmax.f32 %v11449_v49, 0.0  ;;  %17837 = vmatprep.subr.bf16.mxu0 %v18772_v45 }
0x11c7   : > { %v11645_v46 = vmax.f32 %v11441_v27, 0.0 }
0x11c8   : > { %v11701_v33 = vpack.c.bf16 %v11647_v20, %v11646_v5 }
0x11c9   : > { %v11700_v63 = vpack.c.bf16 %v11645_v46, %v11644_v29  ;;  %v17701_v36 = vpop.f32.mrb[212].mxu0  ;;  %17838 = vmatpush3.bf16.msra.mxu0 %v18772_v45 }
0x11ca   : > { %v11462_v58 = vadd.f32 %v17701_v36, %v21465_v56  ;;  %v11453_v12 = vpop.f32.mrb[213].mxu0 }
0x11cb   : > { %v11454_v48 = vadd.f32 %v21465_v56, %v11453_v12  ;;  %v17702_v9 = vpop.f32.mrb[214].mxu0  ;;  %17775 = vmatprep.mubr.bf16.mxu0 %v11700_v63 }
0x11cc   : > { %v11465_v32 = vadd.f32 %v17702_v9, %v21465_v56  ;;  %v11456_v15 = vpop.f32.mrb[215].mxu0  ;;  %17776 = vmatmul.mubr.bf16.gmra.mrb[16].mxu0 %v11701_v33  ;;  %v11650_v43 = vmax.f32 %v11462_v58, 0.0 }
0x11cd   : > { %v11457_v41 = vadd.f32 %v21465_v56, %v11456_v15  ;;  %v11648_v35 = vmax.f32 %v11454_v48, 0.0 }
0x11ce   : > { %v11651_v54 = vmax.f32 %v11465_v32, 0.0 }
0x11cf   : > { %v11649_v18 = vmax.f32 %v11457_v41, 0.0 }
0x11d0   : > { %v11703_v39 = vpack.c.bf16 %v11651_v54, %v11650_v43 }
0x11d1   : > { %v11702_v37 = vpack.c.bf16 %v11649_v18, %v11648_v35  ;;  %v17705_v60 = vpop.f32.mrb[216].mxu0 }
0x11d2   : > { %v11478_v51 = vadd.f32 %v17705_v60, %v21465_v56  ;;  %v11469_v53 = vpop.f32.mrb[217].mxu0 }
0x11d3   : > { %v11470_v57 = vadd.f32 %v21465_v56, %v11469_v53  ;;  %v17706_v26 = vpop.f32.mrb[218].mxu0  ;;  %17779 = vmatprep.mubr.bf16.mxu0 %v11702_v37 }
0x11d4   : > { %v11481_v22 = vadd.f32 %v17706_v26, %v21465_v56  ;;  %v11472_v47 = vpop.f32.mrb[219].mxu0  ;;  %17780 = vmatmul.mubr.bf16.gmra.mrb[20].mxu0 %v11703_v39  ;;  %v11654_v28 = vmax.f32 %v11478_v51, 0.0 }
0x11d5   : > { %v11473_v21 = vadd.f32 %v21465_v56, %v11472_v47  ;;  %v11652_v50 = vmax.f32 %v11470_v57, 0.0 }
0x11d6   : > { %v11655_v44 = vmax.f32 %v11481_v22, 0.0 }
0x11d7   : > { %v11653_v52 = vmax.f32 %v11473_v21, 0.0 }
0x11d8   : > { %v11705_v14 = vpack.c.bf16 %v11655_v44, %v11654_v28 }
0x11d9   : > { %v11704_v17 = vpack.c.bf16 %v11653_v52, %v11652_v50  ;;  %v17709_v38 = vpop.f32.mrb[220].mxu0 }
0x11da   : > { %v11494_v34 = vadd.f32 %v17709_v38, %v21465_v56  ;;  %v11485_v8 = vpop.f32.mrb[221].mxu0 }
0x11db   : > { %v11486_v7 = vadd.f32 %v21465_v56, %v11485_v8  ;;  %v17710_v2 = vpop.f32.mrb[222].mxu0  ;;  %17783 = vmatprep.mubr.bf16.mxu0 %v11704_v17 }
0x11dc   : > { %v11497_v23 = vadd.f32 %v17710_v2, %v21465_v56  ;;  %v11488_v59 = vpop.f32.mrb[223].mxu0  ;;  %17784 = vmatmul.mubr.bf16.gmra.mrb[24].mxu0 %v11705_v14  ;;  %v11658_v16 = vmax.f32 %v11494_v34, 0.0 }
0x11dd   : > { %v11489_v13 = vadd.f32 %v21465_v56, %v11488_v59  ;;  %v11656_v19 = vmax.f32 %v11486_v7, 0.0 }
0x11de   : > { %v11659_v4 = vmax.f32 %v11497_v23, 0.0 }
0x11df   : > { %v11657_v11 = vmax.f32 %v11489_v13, 0.0 }
0x11e0   : > { %v11707_v24 = vpack.c.bf16 %v11659_v4, %v11658_v16 }
0x11e1   : > { %v11706_v3 = vpack.c.bf16 %v11657_v11, %v11656_v19  ;;  %v17713_v10 = vpop.f32.mrb[224].mxu0 }
0x11e2   : > { %v11510_v25 = vadd.f32 %v17713_v10, %v21465_v56  ;;  %v11501_v30 = vpop.f32.mrb[225].mxu0 }
0x11e3   : > { %v11502_v61 = vadd.f32 %v21465_v56, %v11501_v30  ;;  %v17714_v6 = vpop.f32.mrb[226].mxu0  ;;  %17787 = vmatprep.mubr.bf16.mxu0 %v11706_v3 }
0x11e4   : > { %v11513_v40 = vadd.f32 %v17714_v6, %v21465_v56  ;;  %v11504_v42 = vpop.f32.mrb[227].mxu0  ;;  %17788 = vmatmul.mubr.bf16.gmra.mrb[28].mxu0 %v11707_v24  ;;  %v11662_v62 = vmax.f32 %v11510_v25, 0.0 }
0x11e5   : > { %v11505_v45 = vadd.f32 %v21465_v56, %v11504_v42  ;;  %v11660_v49 = vmax.f32 %v11502_v61, 0.0 }
0x11e6   : > { %v11663_v1 = vmax.f32 %v11513_v40, 0.0 }
0x11e7   : > { %v11661_v31 = vmax.f32 %v11505_v45, 0.0 }
0x11e8   : > { %v11709_v27 = vpack.c.bf16 %v11663_v1, %v11662_v62 }
0x11e9   : > { %v11708_v5 = vpack.c.bf16 %v11661_v31, %v11660_v49  ;;  %v17717_v20 = vpop.f32.mrb[228].mxu0 }
0x11ea   : > { %v11526_v29 = vadd.f32 %v17717_v20, %v21465_v56  ;;  %v11517_v46 = vpop.f32.mrb[229].mxu0 }
0x11eb   : > { %v11518_v33 = vadd.f32 %v21465_v56, %v11517_v46  ;;  %v17718_v63 = vpop.f32.mrb[230].mxu0  ;;  %17791 = vmatprep.mubr.bf16.mxu0 %v11708_v5 }
0x11ec   : > { %v11529_v36 = vadd.f32 %v17718_v63, %v21465_v56  ;;  %v11520_v58 = vpop.f32.mrb[231].mxu0  ;;  %17792 = vmatmul.mubr.bf16.gmra.mrb[32].mxu0 %v11709_v27  ;;  %v11666_v48 = vmax.f32 %v11526_v29, 0.0 }
0x11ed   : > { %v11521_v12 = vadd.f32 %v21465_v56, %v11520_v58  ;;  %v11664_v32 = vmax.f32 %v11518_v33, 0.0 }
0x11ee   : > { %v11667_v9 = vmax.f32 %v11529_v36, 0.0  ;;  %v21547_v36 = vld [vmem:[%s22032_s5 + $0x18] sm:$0xff]  }
0x11ef   : > { %v11665_v15 = vmax.f32 %v11521_v12, 0.0  ;;  %17903 = vmatprep.subr.bf16.mxu0 %v21547_v36 }
0x11f0   : > { %v11711_v41 = vpack.c.bf16 %v11667_v9, %v11666_v48 }
0x11f1   : > { %v11710_v43 = vpack.c.bf16 %v11665_v15, %v11664_v32  ;;  %v17721_v54 = vpop.f32.mrb[232].mxu0 }
0x11f2   : > { %v11542_v35 = vadd.f32 %v17721_v54, %v21465_v56  ;;  %v11533_v18 = vpop.f32.mrb[233].mxu0 }
0x11f3   : > { %v11534_v39 = vadd.f32 %v21465_v56, %v11533_v18  ;;  %v17722_v37 = vpop.f32.mrb[234].mxu0  ;;  %17795 = vmatprep.mubr.bf16.mxu0 %v11710_v43 }
0x11f4   : > { %v11545_v60 = vadd.f32 %v17722_v37, %v21465_v56  ;;  %v11536_v51 = vpop.f32.mrb[235].mxu0  ;;  %17796 = vmatmul.mubr.bf16.gmra.mrb[36].mxu0 %v11711_v41  ;;  %v11670_v57 = vmax.f32 %v11542_v35, 0.0 }
0x11f5   : > { %v11537_v53 = vadd.f32 %v21465_v56, %v11536_v51  ;;  %v11668_v22 = vmax.f32 %v11534_v39, 0.0 }
0x11f6   : > { %v11671_v26 = vmax.f32 %v11545_v60, 0.0 }
0x11f7   : > { %v11669_v47 = vmax.f32 %v11537_v53, 0.0 }
0x11f8   : > { %v11713_v21 = vpack.c.bf16 %v11671_v26, %v11670_v57 }
0x11f9   : > { %v11712_v28 = vpack.c.bf16 %v11669_v47, %v11668_v22  ;;  %v17725_v44 = vpop.f32.mrb[236].mxu0 }
0x11fa   : > { %v11558_v50 = vadd.f32 %v17725_v44, %v21465_v56  ;;  %v11549_v52 = vpop.f32.mrb[237].mxu0 }
0x11fb   : > { %v11550_v14 = vadd.f32 %v21465_v56, %v11549_v52  ;;  %v17726_v17 = vpop.f32.mrb[238].mxu0  ;;  %17799 = vmatprep.mubr.bf16.mxu0 %v11712_v28 }
0x11fc   : > { %v11561_v38 = vadd.f32 %v17726_v17, %v21465_v56  ;;  %v11552_v34 = vpop.f32.mrb[239].mxu0  ;;  %17800 = vmatmul.mubr.bf16.gmra.mrb[40].mxu0 %v11713_v21  ;;  %v11674_v7 = vmax.f32 %v11558_v50, 0.0 }
0x11fd   : > { %v11553_v8 = vadd.f32 %v21465_v56, %v11552_v34  ;;  %v11672_v23 = vmax.f32 %v11550_v14, 0.0 }
0x11fe   : > { %v11675_v2 = vmax.f32 %v11561_v38, 0.0 }
0x11ff   : > { %v11673_v59 = vmax.f32 %v11553_v8, 0.0 }
0x1200   : > { %v11715_v13 = vpack.c.bf16 %v11675_v2, %v11674_v7 }
0x1201   : > { %v11714_v16 = vpack.c.bf16 %v11673_v59, %v11672_v23  ;;  %v17729_v4 = vpop.f32.mrb[240].mxu0  ;;  %v21561_v23 = vld [vmem:[%s22033_s6 + $0x13] ss:$0 sm:$0xff] }
0x1202   : > { %v11574_v19 = vadd.f32 %v17729_v4, %v21465_v56  ;;  %v11565_v11 = vpop.f32.mrb[241].mxu0 }
0x1203   : > { %v11566_v24 = vadd.f32 %v21465_v56, %v11565_v11  ;;  %v17730_v3 = vpop.f32.mrb[242].mxu0  ;;  %17803 = vmatprep.mubr.bf16.mxu0 %v11714_v16 }
0x1204   : > { %v11577_v10 = vadd.f32 %v17730_v3, %v21465_v56  ;;  %v11568_v25 = vpop.f32.mrb[243].mxu0  ;;  %17804 = vmatmul.mubr.bf16.gmra.mrb[44].mxu0 %v11715_v13  ;;  %v11678_v61 = vmax.f32 %v11574_v19, 0.0 }
0x1205   : > { %v11569_v30 = vadd.f32 %v21465_v56, %v11568_v25  ;;  %v11676_v40 = vmax.f32 %v11566_v24, 0.0 }
0x1206   : > { %v11679_v6 = vmax.f32 %v11577_v10, 0.0 }
0x1207   : > { %v11677_v42 = vmax.f32 %v11569_v30, 0.0 }
0x1208   : > { %v11717_v45 = vpack.c.bf16 %v11679_v6, %v11678_v61 }
0x1209   : > { %v11716_v62 = vpack.c.bf16 %v11677_v42, %v11676_v40  ;;  %v17733_v1 = vpop.f32.mrb[244].mxu0 }
0x120a   : > { %v11590_v49 = vadd.f32 %v17733_v1, %v21465_v56  ;;  %v11581_v31 = vpop.f32.mrb[245].mxu0 }
0x120b   : > { %v11582_v27 = vadd.f32 %v21465_v56, %v11581_v31  ;;  %v17734_v5 = vpop.f32.mrb[246].mxu0  ;;  %17807 = vmatprep.mubr.bf16.mxu0 %v11716_v62 }
0x120c   : > { %v11593_v20 = vadd.f32 %v17734_v5, %v21465_v56  ;;  %v11584_v29 = vpop.f32.mrb[247].mxu0  ;;  %17808 = vmatmul.mubr.bf16.gmra.mrb[48].mxu0 %v11717_v45  ;;  %v11682_v33 = vmax.f32 %v11590_v49, 0.0 }
0x120d   : > { %v11585_v46 = vadd.f32 %v21465_v56, %v11584_v29  ;;  %v11680_v58 = vmax.f32 %v11582_v27, 0.0  ;;  %v21581_v29 = vld [vmem:[%s22035_s8] sm:$0xff]  }
0x120e   : > { %v11683_v63 = vmax.f32 %v11593_v20, 0.0 }
0x120f   : > { %v11681_v12 = vmax.f32 %v11585_v46, 0.0 }
0x1210   : > { %v11719_v48 = vpack.c.bf16 %v11683_v63, %v11682_v33 }
0x1211   : > { %v11718_v9 = vpack.c.bf16 %v11681_v12, %v11680_v58  ;;  %v17737_v32 = vpop.f32.mrb[248].mxu0 }
0x1212   : > { %v11606_v15 = vadd.f32 %v17737_v32, %v21465_v56  ;;  %v11597_v41 = vpop.f32.mrb[249].mxu0 }
0x1213   : > { %v11598_v43 = vadd.f32 %v21465_v56, %v11597_v41  ;;  %v17738_v54 = vpop.f32.mrb[250].mxu0  ;;  %17811 = vmatprep.mubr.bf16.mxu0 %v11718_v9 }
0x1214   : > { %v11609_v35 = vadd.f32 %v17738_v54, %v21465_v56  ;;  %v11600_v18 = vpop.f32.mrb[251].mxu0  ;;  %17812 = vmatmul.mubr.bf16.gmra.mrb[52].mxu0 %v11719_v48  ;;  %v11686_v37 = vmax.f32 %v11606_v15, 0.0 }
0x1215   : > { %v11601_v39 = vadd.f32 %v21465_v56, %v11600_v18  ;;  %v11684_v51 = vmax.f32 %v11598_v43, 0.0 }
0x1216   : > { %v11687_v60 = vmax.f32 %v11609_v35, 0.0 }
0x1217   : > { %v11685_v53 = vmax.f32 %v11601_v39, 0.0 }
0x1218   : > { %v11721_v57 = vpack.c.bf16 %v11687_v60, %v11686_v37 }
0x1219   : > { %v11720_v26 = vpack.c.bf16 %v11685_v53, %v11684_v51  ;;  %v17741_v22 = vpop.f32.mrb[252].mxu0 }
0x121a   : > { %v11622_v47 = vadd.f32 %v17741_v22, %v21465_v56  ;;  %v11613_v21 = vpop.f32.mrb[253].mxu0 }
0x121b   : > { %v11614_v28 = vadd.f32 %v21465_v56, %v11613_v21  ;;  %v17742_v44 = vpop.f32.mrb[254].mxu0  ;;  %17815 = vmatprep.mubr.bf16.mxu0 %v11720_v26 }
0x121c   : > { %v11625_v50 = vadd.f32 %v17742_v44, %v21465_v56  ;;  %v11616_v52 = vpop.f32.mrb[255].mxu0  ;;  %17816 = vmatmul.mubr.bf16.gmra.mrb[56].mxu0 %v11721_v57  ;;  %v11690_v17 = vmax.f32 %v11622_v47, 0.0 }
0x121d   : > { %v11617_v14 = vadd.f32 %v21465_v56, %v11616_v52  ;;  %v11688_v34 = vmax.f32 %v11614_v28, 0.0 }
0x121e   : > { %v11691_v38 = vmax.f32 %v11625_v50, 0.0 }
0x121f   : > { %v11689_v8 = vmax.f32 %v11617_v14, 0.0 }
0x1220   : > { %v11723_v7 = vpack.c.bf16 %v11691_v38, %v11690_v17 }
0x1221   : > { %v11722_v2 = vpack.c.bf16 %v11689_v8, %v11688_v34 }
0x1223   : > { %17819 = vmatprep.mubr.bf16.mxu0 %v11722_v2 }
0x1224   : > { %17820 = vmatmul.mubr.bf16.gmra.mrb[60].mxu0 %v11723_v7 }
0x127f   : > { %v17761_v59 = vpop.f32.mrb[0].mxu0 }
0x1280   : > { %v11840_v13 = vadd.f32 %v17761_v59, %v21561_v23  ;;  %v11831_v16 = vpop.f32.mrb[1].mxu0 }
0x1281   : > { %v11832_v56 = vadd.f32 %v21561_v23, %v11831_v16  ;;  %v17762_v4 = vpop.f32.mrb[2].mxu0 }
0x1282   : > { %v11843_v19 = vadd.f32 %v17762_v4, %v21561_v23  ;;  %v11834_v11 = vpop.f32.mrb[3].mxu0  ;;  %v12088_v3 = vmax.f32 %v11840_v13, 0.0 }
0x1283   : > { %v11835_v24 = vadd.f32 %v21561_v23, %v11834_v11  ;;  %v12086_v25 = vmax.f32 %v11832_v56, 0.0 }
0x1284   : > { %v12089_v10 = vmax.f32 %v11843_v19, 0.0 }
0x1285   : > { %v12087_v30 = vmax.f32 %v11835_v24, 0.0 }
0x1286   : > { %v12151_v61 = vpack.c.bf16 %v12089_v10, %v12088_v3 }
0x1287   : > { %v12150_v6 = vpack.c.bf16 %v12087_v30, %v12086_v25  ;;  %v17765_v40 = vpop.f32.mrb[4].mxu0 }
0x1288   : > { %v11856_v42 = vadd.f32 %v17765_v40, %v21561_v23  ;;  %v11847_v45 = vpop.f32.mrb[5].mxu0 }
0x1289   : > { %v11848_v62 = vadd.f32 %v21561_v23, %v11847_v45  ;;  %v17766_v1 = vpop.f32.mrb[6].mxu0  ;;  %17839 = vmatprep.mubr.bf16.mxu0 %v12150_v6 }
0x128a   : > { %v11859_v49 = vadd.f32 %v17766_v1, %v21561_v23  ;;  %v11850_v31 = vpop.f32.mrb[7].mxu0  ;;  %17840 = vmatmul.mubr.bf16.vlgmr.msra.gmra.mrb[64].mxu0 %v12151_v61  ;;  %v12092_v5 = vmax.f32 %v11856_v42, 0.0 }
0x128b   : > { %v11851_v27 = vadd.f32 %v21561_v23, %v11850_v31  ;;  %17904 = vmatpush3.bf16.msra.mxu0 %v21547_v36  ;;  %v12090_v46 = vmax.f32 %v11848_v62, 0.0 }
0x128c   : > { %v12093_v20 = vmax.f32 %v11859_v49, 0.0  ;;  %17969 = vmatprep.subr.bf16.mxu0 %v21581_v29 }
0x128d   : > { %v12091_v33 = vmax.f32 %v11851_v27, 0.0 }
0x128e   : > { %v12153_v63 = vpack.c.bf16 %v12093_v20, %v12092_v5 }
0x128f   : > { %v12152_v58 = vpack.c.bf16 %v12091_v33, %v12090_v46  ;;  %v17769_v12 = vpop.f32.mrb[8].mxu0 }
0x1290   : > { %v11872_v48 = vadd.f32 %v17769_v12, %v21561_v23  ;;  %v11863_v9 = vpop.f32.mrb[9].mxu0 }
0x1291   : > { %v11864_v32 = vadd.f32 %v21561_v23, %v11863_v9  ;;  %v17770_v36 = vpop.f32.mrb[10].mxu0  ;;  %17843 = vmatprep.mubr.bf16.mxu0 %v12152_v58 }
0x1292   : > { %v11875_v15 = vadd.f32 %v17770_v36, %v21561_v23  ;;  %v11866_v41 = vpop.f32.mrb[11].mxu0  ;;  %17844 = vmatmul.mubr.bf16.gmra.mrb[68].mxu0 %v12153_v63  ;;  %v12096_v54 = vmax.f32 %v11872_v48, 0.0 }
0x1293   : > { %v11867_v43 = vadd.f32 %v21561_v23, %v11866_v41  ;;  %v12094_v18 = vmax.f32 %v11864_v32, 0.0 }
0x1294   : > { %v12097_v35 = vmax.f32 %v11875_v15, 0.0 }
0x1295   : > { %v12095_v39 = vmax.f32 %v11867_v43, 0.0 }
0x1296   : > { %v12155_v37 = vpack.c.bf16 %v12097_v35, %v12096_v54 }
0x1297   : > { %v12154_v60 = vpack.c.bf16 %v12095_v39, %v12094_v18  ;;  %v17773_v51 = vpop.f32.mrb[12].mxu0 }
0x1298   : > { %v11888_v53 = vadd.f32 %v17773_v51, %v21561_v23  ;;  %v11879_v57 = vpop.f32.mrb[13].mxu0 }
0x1299   : > { %v11880_v26 = vadd.f32 %v21561_v23, %v11879_v57  ;;  %v17774_v22 = vpop.f32.mrb[14].mxu0  ;;  %17847 = vmatprep.mubr.bf16.mxu0 %v12154_v60 }
0x129a   : > { %v11891_v47 = vadd.f32 %v17774_v22, %v21561_v23  ;;  %v11882_v21 = vpop.f32.mrb[15].mxu0  ;;  %17848 = vmatmul.mubr.bf16.gmra.mrb[72].mxu0 %v12155_v37  ;;  %v12100_v44 = vmax.f32 %v11888_v53, 0.0 }
0x129b   : > { %v11883_v28 = vadd.f32 %v21561_v23, %v11882_v21  ;;  %v12098_v52 = vmax.f32 %v11880_v26, 0.0 }
0x129c   : > { %v12101_v50 = vmax.f32 %v11891_v47, 0.0 }
0x129d   : > { %v12099_v14 = vmax.f32 %v11883_v28, 0.0 }
0x129e   : > { %v12157_v17 = vpack.c.bf16 %v12101_v50, %v12100_v44 }
0x129f   : > { %v12156_v38 = vpack.c.bf16 %v12099_v14, %v12098_v52  ;;  %v17777_v34 = vpop.f32.mrb[16].mxu0 }
0x12a0   : > { %v11904_v8 = vadd.f32 %v17777_v34, %v21561_v23  ;;  %v11895_v7 = vpop.f32.mrb[17].mxu0 }
0x12a1   : > { %v11896_v2 = vadd.f32 %v21561_v23, %v11895_v7  ;;  %v17778_v59 = vpop.f32.mrb[18].mxu0  ;;  %17851 = vmatprep.mubr.bf16.mxu0 %v12156_v38 }
0x12a2   : > { %v11907_v13 = vadd.f32 %v17778_v59, %v21561_v23  ;;  %v11898_v16 = vpop.f32.mrb[19].mxu0  ;;  %17852 = vmatmul.mubr.bf16.gmra.mrb[76].mxu0 %v12157_v17  ;;  %v12104_v4 = vmax.f32 %v11904_v8, 0.0 }
0x12a3   : > { %v11899_v56 = vadd.f32 %v21561_v23, %v11898_v16  ;;  %v12102_v11 = vmax.f32 %v11896_v2, 0.0 }
0x12a4   : > { %v12105_v19 = vmax.f32 %v11907_v13, 0.0 }
0x12a5   : > { %v12103_v24 = vmax.f32 %v11899_v56, 0.0 }
0x12a6   : > { %v12159_v3 = vpack.c.bf16 %v12105_v19, %v12104_v4 }
0x12a7   : > { %v12158_v10 = vpack.c.bf16 %v12103_v24, %v12102_v11  ;;  %v17781_v25 = vpop.f32.mrb[20].mxu0 }
0x12a8   : > { %v11920_v30 = vadd.f32 %v17781_v25, %v21561_v23  ;;  %v11911_v61 = vpop.f32.mrb[21].mxu0 }
0x12a9   : > { %v11912_v6 = vadd.f32 %v21561_v23, %v11911_v61  ;;  %v17782_v40 = vpop.f32.mrb[22].mxu0  ;;  %17855 = vmatprep.mubr.bf16.mxu0 %v12158_v10 }
0x12aa   : > { %v11923_v42 = vadd.f32 %v17782_v40, %v21561_v23  ;;  %v11914_v45 = vpop.f32.mrb[23].mxu0  ;;  %17856 = vmatmul.mubr.bf16.gmra.mrb[80].mxu0 %v12159_v3  ;;  %v12108_v1 = vmax.f32 %v11920_v30, 0.0 }
0x12ab   : > { %v11915_v62 = vadd.f32 %v21561_v23, %v11914_v45  ;;  %v12106_v31 = vmax.f32 %v11912_v6, 0.0 }
0x12ac   : > { %v12109_v49 = vmax.f32 %v11923_v42, 0.0 }
0x12ad   : > { %v12107_v27 = vmax.f32 %v11915_v62, 0.0 }
0x12ae   : > { %v12161_v5 = vpack.c.bf16 %v12109_v49, %v12108_v1 }
0x12af   : > { %v12160_v20 = vpack.c.bf16 %v12107_v27, %v12106_v31  ;;  %v17785_v46 = vpop.f32.mrb[24].mxu0 }
0x12b0   : > { %v11936_v33 = vadd.f32 %v17785_v46, %v21561_v23  ;;  %v11927_v63 = vpop.f32.mrb[25].mxu0 }
0x12b1   : > { %v11928_v58 = vadd.f32 %v21561_v23, %v11927_v63  ;;  %v17786_v12 = vpop.f32.mrb[26].mxu0  ;;  %17859 = vmatprep.mubr.bf16.mxu0 %v12160_v20 }
0x12b2   : > { %v11939_v48 = vadd.f32 %v17786_v12, %v21561_v23  ;;  %v11930_v9 = vpop.f32.mrb[27].mxu0  ;;  %17860 = vmatmul.mubr.bf16.gmra.mrb[84].mxu0 %v12161_v5  ;;  %v12112_v36 = vmax.f32 %v11936_v33, 0.0 }
0x12b3   : > { %v11931_v32 = vadd.f32 %v21561_v23, %v11930_v9  ;;  %v12110_v41 = vmax.f32 %v11928_v58, 0.0 }
0x12b4   : > { %v12113_v15 = vmax.f32 %v11939_v48, 0.0 }
0x12b5   : > { %v12111_v43 = vmax.f32 %v11931_v32, 0.0 }
0x12b6   : > { %v12163_v54 = vpack.c.bf16 %v12113_v15, %v12112_v36 }
0x12b7   : > { %v12162_v35 = vpack.c.bf16 %v12111_v43, %v12110_v41  ;;  %v17789_v18 = vpop.f32.mrb[28].mxu0 }
0x12b8   : > { %v11952_v39 = vadd.f32 %v17789_v18, %v21561_v23  ;;  %v11943_v37 = vpop.f32.mrb[29].mxu0 }
0x12b9   : > { %v11944_v60 = vadd.f32 %v21561_v23, %v11943_v37  ;;  %v17790_v51 = vpop.f32.mrb[30].mxu0  ;;  %17863 = vmatprep.mubr.bf16.mxu0 %v12162_v35 }
0x12ba   : > { %v11955_v53 = vadd.f32 %v17790_v51, %v21561_v23  ;;  %v11946_v57 = vpop.f32.mrb[31].mxu0  ;;  %17864 = vmatmul.mubr.bf16.gmra.mrb[88].mxu0 %v12163_v54  ;;  %v12116_v22 = vmax.f32 %v11952_v39, 0.0 }
0x12bb   : > { %v11947_v26 = vadd.f32 %v21561_v23, %v11946_v57  ;;  %v12114_v21 = vmax.f32 %v11944_v60, 0.0 }
0x12bc   : > { %v12117_v47 = vmax.f32 %v11955_v53, 0.0 }
0x12bd   : > { %v12115_v28 = vmax.f32 %v11947_v26, 0.0 }
0x12be   : > { %v12165_v44 = vpack.c.bf16 %v12117_v47, %v12116_v22 }
0x12bf   : > { %v12164_v50 = vpack.c.bf16 %v12115_v28, %v12114_v21  ;;  %v17793_v52 = vpop.f32.mrb[32].mxu0 }
0x12c0   : > { %v11968_v14 = vadd.f32 %v17793_v52, %v21561_v23  ;;  %v11959_v17 = vpop.f32.mrb[33].mxu0 }
0x12c1   : > { %v11960_v38 = vadd.f32 %v21561_v23, %v11959_v17  ;;  %v17794_v34 = vpop.f32.mrb[34].mxu0  ;;  %17867 = vmatprep.mubr.bf16.mxu0 %v12164_v50 }
0x12c2   : > { %v11971_v8 = vadd.f32 %v17794_v34, %v21561_v23  ;;  %v11962_v7 = vpop.f32.mrb[35].mxu0  ;;  %17868 = vmatmul.mubr.bf16.gmra.mrb[92].mxu0 %v12165_v44  ;;  %v12120_v59 = vmax.f32 %v11968_v14, 0.0 }
0x12c3   : > { %v11963_v2 = vadd.f32 %v21561_v23, %v11962_v7  ;;  %v12118_v16 = vmax.f32 %v11960_v38, 0.0 }
0x12c4   : > { %v12121_v13 = vmax.f32 %v11971_v8, 0.0 }
0x12c5   : > { %v12119_v56 = vmax.f32 %v11963_v2, 0.0 }
0x12c6   : > { %v12167_v4 = vpack.c.bf16 %v12121_v13, %v12120_v59 }
0x12c7   : > { %v12166_v19 = vpack.c.bf16 %v12119_v56, %v12118_v16  ;;  %v17797_v11 = vpop.f32.mrb[36].mxu0 }
0x12c8   : > { %v11984_v24 = vadd.f32 %v17797_v11, %v21561_v23  ;;  %v11975_v3 = vpop.f32.mrb[37].mxu0 }
0x12c9   : > { %v11976_v10 = vadd.f32 %v21561_v23, %v11975_v3  ;;  %v17798_v25 = vpop.f32.mrb[38].mxu0  ;;  %17871 = vmatprep.mubr.bf16.mxu0 %v12166_v19 }
0x12ca   : > { %v11987_v30 = vadd.f32 %v17798_v25, %v21561_v23  ;;  %v11978_v61 = vpop.f32.mrb[39].mxu0  ;;  %17872 = vmatmul.mubr.bf16.gmra.mrb[96].mxu0 %v12167_v4  ;;  %v12124_v40 = vmax.f32 %v11984_v24, 0.0 }
0x12cb   : > { %v11979_v6 = vadd.f32 %v21561_v23, %v11978_v61  ;;  %v12122_v45 = vmax.f32 %v11976_v10, 0.0  ;;  %v18800_v10 = vld [vmem:[%s22034_s7] sm:$0xff]  }
0x12cc   : > { %v12125_v42 = vmax.f32 %v11987_v30, 0.0  ;;  %18049 = vmatprep.subr.bf16.mxu1 %v18800_v10 }
0x12cd   : > { %v12123_v62 = vmax.f32 %v11979_v6, 0.0  ;;  %18050 = vmatpush3.bf16.msra.mxu1 %v18800_v10  ;;  %v18786_v10 = vld [vmem:[%s21570_s16 + $0x60] sm:$0xff]  }
0x12ce   : > { %v12169_v1 = vpack.c.bf16 %v12125_v42, %v12124_v40 }
0x12cf   : > { %v12168_v49 = vpack.c.bf16 %v12123_v62, %v12122_v45  ;;  %v17801_v31 = vpop.f32.mrb[40].mxu0 }
0x12d0   : > { %v12000_v27 = vadd.f32 %v17801_v31, %v21561_v23  ;;  %v11991_v5 = vpop.f32.mrb[41].mxu0 }
0x12d1   : > { %v11992_v20 = vadd.f32 %v21561_v23, %v11991_v5  ;;  %v17802_v46 = vpop.f32.mrb[42].mxu0  ;;  %17875 = vmatprep.mubr.bf16.mxu0 %v12168_v49 }
0x12d2   : > { %v12003_v33 = vadd.f32 %v17802_v46, %v21561_v23  ;;  %v11994_v63 = vpop.f32.mrb[43].mxu0  ;;  %17876 = vmatmul.mubr.bf16.gmra.mrb[100].mxu0 %v12169_v1  ;;  %v12128_v12 = vmax.f32 %v12000_v27, 0.0 }
0x12d3   : > { %v11995_v58 = vadd.f32 %v21561_v23, %v11994_v63  ;;  %v12126_v9 = vmax.f32 %v11992_v20, 0.0 }
0x12d4   : > { %v12129_v48 = vmax.f32 %v12003_v33, 0.0 }
0x12d5   : > { %v12127_v32 = vmax.f32 %v11995_v58, 0.0 }
0x12d6   : > { %v12171_v36 = vpack.c.bf16 %v12129_v48, %v12128_v12 }
0x12d7   : > { %v12170_v15 = vpack.c.bf16 %v12127_v32, %v12126_v9  ;;  %v17805_v41 = vpop.f32.mrb[44].mxu0 }
0x12d8   : > { %v12016_v43 = vadd.f32 %v17805_v41, %v21561_v23  ;;  %v12007_v54 = vpop.f32.mrb[45].mxu0 }
0x12d9   : > { %v12008_v35 = vadd.f32 %v21561_v23, %v12007_v54  ;;  %v17806_v18 = vpop.f32.mrb[46].mxu0  ;;  %17879 = vmatprep.mubr.bf16.mxu0 %v12170_v15 }
0x12da   : > { %v12019_v39 = vadd.f32 %v17806_v18, %v21561_v23  ;;  %v12010_v37 = vpop.f32.mrb[47].mxu0  ;;  %17880 = vmatmul.mubr.bf16.gmra.mrb[104].mxu0 %v12171_v36  ;;  %v12132_v51 = vmax.f32 %v12016_v43, 0.0  ;;  %v18805_v18 = vld [vmem:[%s22034_s7 + $0x8] sm:$0xff]  }
0x12db   : > { %v12011_v60 = vadd.f32 %v21561_v23, %v12010_v37  ;;  %v12130_v57 = vmax.f32 %v12008_v35, 0.0  ;;  %18051 = vmatprep.subr.bf16.mxu1 %v18805_v18 }
0x12dc   : > { %v12133_v53 = vmax.f32 %v12019_v39, 0.0  ;;  %18052 = vmatpush3.bf16.msra.mxu1 %v18805_v18 }
0x12dd   : > { %v12131_v26 = vmax.f32 %v12011_v60, 0.0 }
0x12de   : > { %v12173_v22 = vpack.c.bf16 %v12133_v53, %v12132_v51 }
0x12df   : > { %v12172_v47 = vpack.c.bf16 %v12131_v26, %v12130_v57  ;;  %v17809_v21 = vpop.f32.mrb[48].mxu0 }
0x12e0   : > { %v12032_v28 = vadd.f32 %v17809_v21, %v21561_v23  ;;  %v12023_v44 = vpop.f32.mrb[49].mxu0  ;;  %v18776_v21 = vld [vmem:[%s21570_s16 + $0x10] sm:$0xff]  }
0x12e1   : > { %v12024_v50 = vadd.f32 %v21561_v23, %v12023_v44  ;;  %v17810_v52 = vpop.f32.mrb[50].mxu0  ;;  %17883 = vmatprep.mubr.bf16.mxu0 %v12172_v47  ;;  %v18775_v47 = vld [vmem:[%s21570_s16 + $0x8] sm:$0xff]  }
0x12e2   : > { %v12035_v14 = vadd.f32 %v17810_v52, %v21561_v23  ;;  %v12026_v17 = vpop.f32.mrb[51].mxu0  ;;  %17884 = vmatmul.mubr.bf16.gmra.mrb[108].mxu0 %v12173_v22  ;;  %v12136_v34 = vmax.f32 %v12032_v28, 0.0  ;;  %v18774_v22 = vld [vmem:[%s21570_s16] sm:$0xff]   ;;  %v18809_v28 = vld [vmem:[%s22034_s7 + $0x18] sm:$0xff]   ;;  %v18879_v44 = vld [vmem:[%s22035_s8 + $0x8] sm:$0xff]  }
0x12e3   : > { %v12027_v38 = vadd.f32 %v21561_v23, %v12026_v17  ;;  %v12134_v7 = vmax.f32 %v12024_v50, 0.0  ;;  %v18777_v50 = vld [vmem:[%s21570_s16 + $0x18] sm:$0xff]   ;;  %v18810_v52 = vld [vmem:[%s22034_s7 + $0x20] sm:$0xff]   ;;  %v18811_v17 = vld [vmem:[%s22034_s7 + $0x28] sm:$0xff]  }
0x12e4   : > { %v12137_v8 = vmax.f32 %v12035_v14, 0.0  ;;  %v18778_v14 = vld [vmem:[%s21570_s16 + $0x20] sm:$0xff]  }
0x12e5   : > { %v12135_v2 = vmax.f32 %v12027_v38, 0.0  ;;  %v18881_v38 = vld [vmem:[%s22035_s8 + $0x18] sm:$0xff]  }
0x12e6   : > { %v12175_v59 = vpack.c.bf16 %v12137_v8, %v12136_v34  ;;  %v18779_v34 = vld [vmem:[%s21570_s16 + $0x28] sm:$0xff]   ;;  %v18812_v8 = vld [vmem:[%s22034_s7 + $0x30] sm:$0xff]  }
0x12e7   : > { %v12174_v13 = vpack.c.bf16 %v12135_v2, %v12134_v7  ;;  %v17813_v16 = vpop.f32.mrb[52].mxu0  ;;  %v18780_v7 = vld [vmem:[%s21570_s16 + $0x30] sm:$0xff]   ;;  %v18882_v2 = vld [vmem:[%s22035_s8 + $0x20] sm:$0xff]  }
0x12e8   : > { %v12048_v56 = vadd.f32 %v17813_v16, %v21561_v23  ;;  %v12039_v4 = vpop.f32.mrb[53].mxu0  ;;  %v18781_v16 = vld [vmem:[%s21570_s16 + $0x38] sm:$0xff]  }
0x12e9   : > { %v12040_v19 = vadd.f32 %v21561_v23, %v12039_v4  ;;  %v17814_v11 = vpop.f32.mrb[54].mxu0  ;;  %17887 = vmatprep.mubr.bf16.mxu0 %v12174_v13  ;;  %v18883_v13 = vld [vmem:[%s22035_s8 + $0x28] sm:$0xff]   ;;  %v18884_v4 = vld [vmem:[%s22035_s8 + $0x30] sm:$0xff]  }
0x12ea   : > { %v12051_v24 = vadd.f32 %v17814_v11, %v21561_v23  ;;  %v12042_v3 = vpop.f32.mrb[55].mxu0  ;;  %17888 = vmatmul.mubr.bf16.gmra.mrb[112].mxu0 %v12175_v59  ;;  %v12140_v30 = vmax.f32 %v12048_v56, 0.0  ;;  %v18813_v59 = vld [vmem:[%s22034_s7 + $0x38] sm:$0xff]   ;;  %v18782_v56 = vld [vmem:[%s21570_s16 + $0x40] sm:$0xff]   ;;  %v18783_v11 = vld [vmem:[%s21570_s16 + $0x48] sm:$0xff]  }
0x12eb   : > { %v12043_v25 = vadd.f32 %v21561_v23, %v12042_v3  ;;  %v12138_v6 = vmax.f32 %v12040_v19, 0.0  ;;  %v18885_v19 = vld [vmem:[%s22035_s8 + $0x38] sm:$0xff]  }
0x12ec   : > { %v12141_v61 = vmax.f32 %v12051_v24, 0.0  ;;  %v18784_v24 = vld [vmem:[%s21570_s16 + $0x50] sm:$0xff]   ;;  %v18785_v3 = vld [vmem:[%s21570_s16 + $0x58] sm:$0xff]  }
0x12ed   : > { %v12139_v40 = vmax.f32 %v12043_v25, 0.0  ;;  %v18787_v25 = vld [vmem:[%s21570_s16 + $0x68] sm:$0xff]  }
0x12ee   : > { %v12177_v42 = vpack.c.bf16 %v12141_v61, %v12140_v30  ;;  %v18788_v30 = vld [vmem:[%s21570_s16 + $0x70] sm:$0xff]   ;;  %v18789_v61 = vld [vmem:[%s21570_s16 + $0x78] sm:$0xff]  }
0x12ef   : > { %v12176_v45 = vpack.c.bf16 %v12139_v40, %v12138_v6  ;;  %v17817_v62 = vpop.f32.mrb[56].mxu0  ;;  %v18790_v6 = vld [vmem:[%s21570_s16 + $0x80] sm:$0xff]   ;;  %v18791_v40 = vld [vmem:[%s21570_s16 + $0x88] sm:$0xff]  }
0x12f0   : > { %v12064_v1 = vadd.f32 %v17817_v62, %v21561_v23  ;;  %v12055_v49 = vpop.f32.mrb[57].mxu0  ;;  %v18794_v62 = vld [vmem:[%s21570_s16 + $0xa0] sm:$0xff]  }
0x12f1   : > { %v12056_v31 = vadd.f32 %v21561_v23, %v12055_v49  ;;  %v17818_v27 = vpop.f32.mrb[58].mxu0  ;;  %17891 = vmatprep.mubr.bf16.mxu0 %v12176_v45  ;;  %v18793_v45 = vld [vmem:[%s21570_s16 + $0x98] sm:$0xff]   ;;  %v18796_v49 = vld [vmem:[%s21570_s16 + $0xb0] sm:$0xff]  }
0x12f2   : > { %v12067_v5 = vadd.f32 %v17818_v27, %v21561_v23  ;;  %v12058_v20 = vpop.f32.mrb[59].mxu0  ;;  %17892 = vmatmul.mubr.bf16.gmra.mrb[116].mxu0 %v12177_v42  ;;  %v12144_v33 = vmax.f32 %v12064_v1, 0.0  ;;  %v18792_v42 = vld [vmem:[%s21570_s16 + $0x90] sm:$0xff]   ;;  %v18795_v1 = vld [vmem:[%s21570_s16 + $0xa8] sm:$0xff]   ;;  %v18798_v27 = vld [vmem:[%s21570_s16 + $0xc0] sm:$0xff]  }
0x12f3   : > { %v12059_v46 = vadd.f32 %v21561_v23, %v12058_v20  ;;  %v12142_v58 = vmax.f32 %v12056_v31, 0.0  ;;  %v18797_v31 = vld [vmem:[%s21570_s16 + $0xb8] sm:$0xff]   ;;  %v18801_v20 = vld [vmem:[%s21570_s16 + $0xd0] sm:$0xff]  }
0x12f4   : > { %v12145_v63 = vmax.f32 %v12067_v5, 0.0  ;;  %v18799_v5 = vld [vmem:[%s21570_s16 + $0xc8] sm:$0xff]  }
0x12f5   : > { %v12143_v12 = vmax.f32 %v12059_v46, 0.0  ;;  %v18802_v46 = vld [vmem:[%s21570_s16 + $0xd8] sm:$0xff]  }
0x12f6   : > { %v12179_v48 = vpack.c.bf16 %v12145_v63, %v12144_v33  ;;  %v18803_v33 = vld [vmem:[%s21570_s16 + $0xe0] sm:$0xff]   ;;  %v18804_v63 = vld [vmem:[%s21570_s16 + $0xe8] sm:$0xff]  }
0x12f7   : > { %v12178_v9 = vpack.c.bf16 %v12143_v12, %v12142_v58  ;;  %v17821_v32 = vpop.f32.mrb[60].mxu0  ;;  %v18806_v58 = vld [vmem:[%s21570_s16 + $0xf0] sm:$0xff]   ;;  %v18807_v12 = vld [vmem:[%s21570_s16 + $0xf8] sm:$0xff]   ;;  %s14206_s16 = sshll.u32 %s22039_s17, 3 }
0x12f8   : > { %v12080_v36 = vadd.f32 %v17821_v32, %v21561_v23  ;;  %v12071_v15 = vpop.f32.mrb[61].mxu0  ;;  %s21830_s23 = scalar_lea.vmem %s22037_s10, %s14206_s16 }
0x12f9   : > { %v12072_v41 = vadd.f32 %v21561_v23, %v12071_v15  ;;  %v17822_v43 = vpop.f32.mrb[62].mxu0  ;;  %17895 = vmatprep.mubr.bf16.mxu0 %v12178_v9 }
0x12fa   : > { %v12083_v54 = vadd.f32 %v17822_v43, %v21561_v23  ;;  %v12074_v35 = vpop.f32.mrb[63].mxu0  ;;  %17896 = vmatmul.mubr.bf16.gmra.mrb[120].mxu0 %v12179_v48  ;;  %v12148_v37 = vmax.f32 %v12080_v36, 0.0  ;;  %v21755_v48 = vld [vmem:[%s22033_s6 + $0x14] ss:$0 sm:$0xff] }
0x12fb   : > { %v12075_v39 = vadd.f32 %v21561_v23, %v12074_v35  ;;  %v12146_v51 = vmax.f32 %v12072_v41, 0.0  ;;  %v18808_v23 = vld [vmem:[%s22034_s7 + $0x10] sm:$0xff]  }
0x12fc   : > { %v12149_v60 = vmax.f32 %v12083_v54, 0.0  ;;  %18053 = vmatprep.subr.bf16.mxu1 %v18808_v23 }
0x12fd   : > { %v12147_v53 = vmax.f32 %v12075_v39, 0.0  ;;  %18054 = vmatpush3.bf16.msra.mxu1 %v18808_v23 }
0x12fe   : > { %v12181_v57 = vpack.c.bf16 %v12149_v60, %v12148_v37  ;;  %18055 = vmatprep.subr.bf16.mxu1 %v18809_v28 }
0x12ff   : > { %v12180_v26 = vpack.c.bf16 %v12147_v53, %v12146_v51 }
0x1301   : > { %17899 = vmatprep.mubr.bf16.mxu0 %v12180_v26  ;;  %18056 = vmatpush3.bf16.msra.mxu1 %v18809_v28 }
0x1302   : > { %17900 = vmatmul.mubr.bf16.gmra.mrb[124].mxu0 %v12181_v57  ;;  %18057 = vmatprep.subr.bf16.mxu1 %v18810_v52 }
0x1303   : > { %17905 = vmatprep.mubr.msk.bf16.mxu0 %vm861_vm0, %v18774_v22 }
0x1305   : > { %18058 = vmatpush3.bf16.msra.mxu1 %v18810_v52 }
0x1306   : > { %18059 = vmatprep.subr.bf16.mxu1 %v18811_v17 }
0x1309   : > { %18060 = vmatpush3.bf16.msra.mxu1 %v18811_v17 }
0x130a   : > { %17906 = vmatmul.mubr.msk.bf16.vlgmr.msra.gmra.mrb[64].mxu0 %vm861_vm0, %v18775_v47  ;;  %18061 = vmatprep.subr.bf16.mxu1 %v18812_v8 }
0x130b   : > { %17909 = vmatprep.mubr.msk.bf16.mxu0 %vm861_vm0, %v18776_v21  ;;  %17970 = vmatpush3.bf16.msra.mxu0 %v21581_v29  ;;  %v18880_v29 = vld [vmem:[%s22035_s8 + $0x10] sm:$0xff]  }
0x130c   : > { %17971 = vmatprep.subr.bf16.mxu0 %v18879_v44 }
0x130d   : > { %18062 = vmatpush3.bf16.msra.mxu1 %v18812_v8 }
0x130e   : > { %18063 = vmatprep.subr.bf16.mxu1 %v18813_v59 }
0x130f   : > { %17972 = vmatpush3.bf16.msra.mxu0 %v18879_v44 }
0x1310   : > { %17973 = vmatprep.subr.bf16.mxu0 %v18880_v29 }
0x1311   : > { %18064 = vmatpush3.bf16.msra.mxu1 %v18813_v59 }
0x1312   : > { %17910 = vmatmul.mubr.msk.bf16.gmra.mrb[68].mxu0 %vm861_vm0, %v18777_v50 }
0x1313   : > { %17913 = vmatprep.mubr.msk.bf16.mxu0 %vm861_vm0, %v18778_v14  ;;  %17974 = vmatpush3.bf16.msra.mxu0 %v18880_v29 }
0x1314   : > { %17975 = vmatprep.subr.bf16.mxu0 %v18881_v38 }
0x1317   : > { %17976 = vmatpush3.bf16.msra.mxu0 %v18881_v38 }
0x1318   : > { %17977 = vmatprep.subr.bf16.mxu0 %v18882_v2 }
0x131a   : > { %17914 = vmatmul.mubr.msk.bf16.gmra.mrb[72].mxu0 %vm861_vm0, %v18779_v34 }
0x131b   : > { %17917 = vmatprep.mubr.msk.bf16.mxu0 %vm861_vm0, %v18780_v7  ;;  %17978 = vmatpush3.bf16.msra.mxu0 %v18882_v2 }
0x131c   : > { %17979 = vmatprep.subr.bf16.mxu0 %v18883_v13 }
0x131f   : > { %17980 = vmatpush3.bf16.msra.mxu0 %v18883_v13 }
0x1320   : > { %17981 = vmatprep.subr.bf16.mxu0 %v18884_v4 }
0x1322   : > { %17918 = vmatmul.mubr.msk.bf16.gmra.mrb[76].mxu0 %vm861_vm0, %v18781_v16 }
0x1323   : > { %17921 = vmatprep.mubr.msk.bf16.mxu0 %vm861_vm0, %v18782_v56  ;;  %17982 = vmatpush3.bf16.msra.mxu0 %v18884_v4 }
0x1324   : > { %17983 = vmatprep.subr.bf16.mxu0 %v18885_v19 }
0x1327   : > { %17984 = vmatpush3.bf16.msra.mxu0 %v18885_v19 }
0x132a   : > { %17922 = vmatmul.mubr.msk.bf16.gmra.mrb[80].mxu0 %vm861_vm0, %v18783_v11 }
0x132b   : > { %17925 = vmatprep.mubr.msk.bf16.mxu0 %vm861_vm0, %v18784_v24 }
0x1332   : > { %17926 = vmatmul.mubr.msk.bf16.gmra.mrb[84].mxu0 %vm861_vm0, %v18785_v3 }
0x1333   : > { %17929 = vmatprep.mubr.msk.bf16.mxu0 %vm861_vm0, %v18786_v10 }
0x133a   : > { %17930 = vmatmul.mubr.msk.bf16.gmra.mrb[88].mxu0 %vm861_vm0, %v18787_v25 }
0x133b   : > { %17933 = vmatprep.mubr.msk.bf16.mxu0 %vm861_vm0, %v18788_v30 }
0x1342   : > { %17934 = vmatmul.mubr.msk.bf16.gmra.mrb[92].mxu0 %vm861_vm0, %v18789_v61 }
0x1343   : > { %17937 = vmatprep.mubr.msk.bf16.mxu0 %vm861_vm0, %v18790_v6 }
0x134a   : > { %17938 = vmatmul.mubr.msk.bf16.gmra.mrb[96].mxu0 %vm861_vm0, %v18791_v40 }
0x134b   : > { %17941 = vmatprep.mubr.msk.bf16.mxu0 %vm861_vm0, %v18792_v42 }
0x1352   : > { %17942 = vmatmul.mubr.msk.bf16.gmra.mrb[100].mxu0 %vm861_vm0, %v18793_v45 }
0x1353   : > { %17945 = vmatprep.mubr.msk.bf16.mxu0 %vm861_vm0, %v18794_v62 }
0x135a   : > { %17946 = vmatmul.mubr.msk.bf16.gmra.mrb[104].mxu0 %vm861_vm0, %v18795_v1 }
0x135b   : > { %17949 = vmatprep.mubr.msk.bf16.mxu0 %vm861_vm0, %v18796_v49 }
0x1362   : > { %17950 = vmatmul.mubr.msk.bf16.gmra.mrb[108].mxu0 %vm861_vm0, %v18797_v31 }
0x1363   : > { %17953 = vmatprep.mubr.msk.bf16.mxu0 %vm861_vm0, %v18798_v27 }
0x136a   : > { %17954 = vmatmul.mubr.msk.bf16.gmra.mrb[112].mxu0 %vm861_vm0, %v18799_v5 }
0x136b   : > { %17957 = vmatprep.mubr.msk.bf16.mxu0 %vm861_vm0, %v18801_v20 }
0x1372   : > { %17958 = vmatmul.mubr.msk.bf16.gmra.mrb[116].mxu0 %vm861_vm0, %v18802_v46 }
0x1373   : > { %17961 = vmatprep.mubr.msk.bf16.mxu0 %vm861_vm0, %v18803_v33 }
0x137a   : > { %17962 = vmatmul.mubr.msk.bf16.gmra.mrb[120].mxu0 %vm861_vm0, %v18804_v63 }
0x137b   : > { %17965 = vmatprep.mubr.msk.bf16.mxu0 %vm861_vm0, %v18806_v58 }
0x1382   : > { %17966 = vmatmul.mubr.msk.bf16.gmra.mrb[124].mxu0 %vm861_vm0, %v18807_v12 }
0x1383   : > { %17985 = vmatprep.mubr.bf16.mxu0 %v20468_v0 }
0x138a   : > { %17986 = vmatmul.mubr.bf16.vlgmr.msra.gmra.mrb[128].mxu0 %v20466_v55 }
0x13dd   : > { %v17907_v9 = vpop.f32.mrb[64].mxu0 }
0x13de   : > { %v13100_v32 = vadd.f32 %v17907_v9, %v21755_v48  ;;  %v12835_v36 = vpop.f32.mrb[65].mxu0 }
0x13df   : > { %v13098_v15 = vadd.f32 %v21755_v48, %v12835_v36  ;;  %v17908_v41 = vpop.f32.mrb[66].mxu0 }
0x13e0   : > { %v13101_v43 = vadd.f32 %v17908_v41, %v21755_v48  ;;  %v12838_v54 = vpop.f32.mrb[67].mxu0  ;;  %v13164_v0 = vmax.f32 %v13100_v32, 0.0 }
0x13e1   : > { %v13099_v35 = vadd.f32 %v21755_v48, %v12838_v54  ;;  %v13162_v55 = vmax.f32 %v13098_v15, 0.0 }
0x13e2   : > { %v13165_v18 = vmax.f32 %v13101_v43, 0.0 }
0x13e3   : > { %v13163_v39 = vmax.f32 %v13099_v35, 0.0 }
0x13e4   : > { %v13227_v37 = vpack.c.bf16 %v13165_v18, %v13164_v0 }
0x13e5   : > { %v13226_v60 = vpack.c.bf16 %v13163_v39, %v13162_v55  ;;  %v17911_v51 = vpop.f32.mrb[68].mxu0 }
0x13e6   : > { %v13104_v53 = vadd.f32 %v17911_v51, %v21755_v48  ;;  %v12851_v57 = vpop.f32.mrb[69].mxu0 }
0x13e7   : > { %v13102_v26 = vadd.f32 %v21755_v48, %v12851_v57  ;;  %v17912_v22 = vpop.f32.mrb[70].mxu0  ;;  %18065 = vmatprep.mubr.bf16.mxu1 %v13226_v60 }
0x13e8   : > { %v13105_v47 = vadd.f32 %v17912_v22, %v21755_v48  ;;  %v12854_v21 = vpop.f32.mrb[71].mxu0  ;;  %18066 = vmatmul.mubr.bf16.vlgmr.msra.gmra.mrb[188].mxu1 %v13227_v37  ;;  %v13168_v28 = vmax.f32 %v13104_v53, 0.0 }
0x13e9   : > { %v13103_v23 = vadd.f32 %v21755_v48, %v12854_v21  ;;  %v13166_v50 = vmax.f32 %v13102_v26, 0.0 }
0x13ea   : > { %v13169_v44 = vmax.f32 %v13105_v47, 0.0 }
0x13eb   : > { %v13167_v52 = vmax.f32 %v13103_v23, 0.0 }
0x13ec   : > { %v13229_v14 = vpack.c.bf16 %v13169_v44, %v13168_v28 }
0x13ed   : > { %v13228_v29 = vpack.c.bf16 %v13167_v52, %v13166_v50  ;;  %v17915_v17 = vpop.f32.mrb[72].mxu0 }
0x13ee   : > { %v13108_v38 = vadd.f32 %v17915_v17, %v21755_v48  ;;  %v12867_v34 = vpop.f32.mrb[73].mxu0 }
0x13ef   : > { %v13106_v8 = vadd.f32 %v21755_v48, %v12867_v34  ;;  %v17916_v7 = vpop.f32.mrb[74].mxu0  ;;  %18069 = vmatprep.mubr.bf16.mxu1 %v13228_v29 }
0x13f0   : > { %v13109_v2 = vadd.f32 %v17916_v7, %v21755_v48  ;;  %v12870_v59 = vpop.f32.mrb[75].mxu0  ;;  %18070 = vmatmul.mubr.bf16.gmra.mrb[128].mxu1 %v13229_v14  ;;  %v13172_v16 = vmax.f32 %v13108_v38, 0.0 }
0x13f1   : > { %v13107_v13 = vadd.f32 %v21755_v48, %v12870_v59  ;;  %v13170_v4 = vmax.f32 %v13106_v8, 0.0 }
0x13f2   : > { %v13173_v56 = vmax.f32 %v13109_v2, 0.0 }
0x13f3   : > { %v13171_v19 = vmax.f32 %v13107_v13, 0.0 }
0x13f4   : > { %v13231_v11 = vpack.c.bf16 %v13173_v56, %v13172_v16 }
0x13f5   : > { %v13230_v24 = vpack.c.bf16 %v13171_v19, %v13170_v4  ;;  %v17919_v3 = vpop.f32.mrb[76].mxu0 }
0x13f6   : > { %v13112_v10 = vadd.f32 %v17919_v3, %v21755_v48  ;;  %v12883_v25 = vpop.f32.mrb[77].mxu0 }
0x13f7   : > { %v13110_v30 = vadd.f32 %v21755_v48, %v12883_v25  ;;  %v17920_v61 = vpop.f32.mrb[78].mxu0  ;;  %18073 = vmatprep.mubr.bf16.mxu1 %v13230_v24 }
0x13f8   : > { %v13113_v6 = vadd.f32 %v17920_v61, %v21755_v48  ;;  %v12886_v40 = vpop.f32.mrb[79].mxu0  ;;  %18074 = vmatmul.mubr.bf16.gmra.mrb[132].mxu1 %v13231_v11  ;;  %v13176_v45 = vmax.f32 %v13112_v10, 0.0 }
0x13f9   : > { %v13111_v42 = vadd.f32 %v21755_v48, %v12886_v40  ;;  %v13174_v1 = vmax.f32 %v13110_v30, 0.0 }
0x13fa   : > { %v13177_v62 = vmax.f32 %v13113_v6, 0.0 }
0x13fb   : > { %v13175_v49 = vmax.f32 %v13111_v42, 0.0 }
0x13fc   : > { %v13233_v31 = vpack.c.bf16 %v13177_v62, %v13176_v45 }
0x13fd   : > { %v13232_v27 = vpack.c.bf16 %v13175_v49, %v13174_v1  ;;  %v17923_v5 = vpop.f32.mrb[80].mxu0 }
0x13fe   : > { %v13116_v20 = vadd.f32 %v17923_v5, %v21755_v48  ;;  %v12899_v46 = vpop.f32.mrb[81].mxu0 }
0x13ff   : > { %v13114_v33 = vadd.f32 %v21755_v48, %v12899_v46  ;;  %v17924_v63 = vpop.f32.mrb[82].mxu0  ;;  %18077 = vmatprep.mubr.bf16.mxu1 %v13232_v27 }
0x1400   : > { %v13117_v58 = vadd.f32 %v17924_v63, %v21755_v48  ;;  %v12902_v12 = vpop.f32.mrb[83].mxu0  ;;  %18078 = vmatmul.mubr.bf16.gmra.mrb[136].mxu1 %v13233_v31  ;;  %v13180_v32 = vmax.f32 %v13116_v20, 0.0 }
0x1401   : > { %v13115_v9 = vadd.f32 %v21755_v48, %v12902_v12  ;;  %v13178_v15 = vmax.f32 %v13114_v33, 0.0 }
0x1402   : > { %v13181_v36 = vmax.f32 %v13117_v58, 0.0 }
0x1403   : > { %v13179_v41 = vmax.f32 %v13115_v9, 0.0 }
0x1404   : > { %v13235_v43 = vpack.c.bf16 %v13181_v36, %v13180_v32 }
0x1405   : > { %v13234_v54 = vpack.c.bf16 %v13179_v41, %v13178_v15  ;;  %v17927_v35 = vpop.f32.mrb[84].mxu0 }
0x1406   : > { %v13120_v0 = vadd.f32 %v17927_v35, %v21755_v48  ;;  %v12915_v18 = vpop.f32.mrb[85].mxu0 }
0x1407   : > { %v13118_v55 = vadd.f32 %v21755_v48, %v12915_v18  ;;  %v17928_v39 = vpop.f32.mrb[86].mxu0  ;;  %18081 = vmatprep.mubr.bf16.mxu1 %v13234_v54 }
0x1408   : > { %v13121_v37 = vadd.f32 %v17928_v39, %v21755_v48  ;;  %v12918_v60 = vpop.f32.mrb[87].mxu0  ;;  %18082 = vmatmul.mubr.bf16.gmra.mrb[140].mxu1 %v13235_v43  ;;  %v13184_v53 = vmax.f32 %v13120_v0, 0.0 }
0x1409   : > { %v13119_v51 = vadd.f32 %v21755_v48, %v12918_v60  ;;  %v13182_v26 = vmax.f32 %v13118_v55, 0.0 }
0x140a   : > { %v13185_v57 = vmax.f32 %v13121_v37, 0.0 }
0x140b   : > { %v13183_v22 = vmax.f32 %v13119_v51, 0.0 }
0x140c   : > { %v13237_v47 = vpack.c.bf16 %v13185_v57, %v13184_v53 }
0x140d   : > { %v13236_v21 = vpack.c.bf16 %v13183_v22, %v13182_v26  ;;  %v17931_v23 = vpop.f32.mrb[88].mxu0 }
0x140e   : > { %v13124_v28 = vadd.f32 %v17931_v23, %v21755_v48  ;;  %v12931_v44 = vpop.f32.mrb[89].mxu0 }
0x140f   : > { %v13122_v50 = vadd.f32 %v21755_v48, %v12931_v44  ;;  %v17932_v52 = vpop.f32.mrb[90].mxu0  ;;  %18085 = vmatprep.mubr.bf16.mxu1 %v13236_v21 }
0x1410   : > { %v13125_v14 = vadd.f32 %v17932_v52, %v21755_v48  ;;  %v12934_v29 = vpop.f32.mrb[91].mxu0  ;;  %18086 = vmatmul.mubr.bf16.gmra.mrb[144].mxu1 %v13237_v47  ;;  %v13188_v38 = vmax.f32 %v13124_v28, 0.0 }
0x1411   : > { %v13123_v17 = vadd.f32 %v21755_v48, %v12934_v29  ;;  %v13186_v8 = vmax.f32 %v13122_v50, 0.0 }
0x1412   : > { %v13189_v34 = vmax.f32 %v13125_v14, 0.0 }
0x1413   : > { %v13187_v7 = vmax.f32 %v13123_v17, 0.0 }
0x1414   : > { %v13239_v2 = vpack.c.bf16 %v13189_v34, %v13188_v38 }
0x1415   : > { %v13238_v59 = vpack.c.bf16 %v13187_v7, %v13186_v8  ;;  %v17935_v13 = vpop.f32.mrb[92].mxu0 }
0x1416   : > { %v13128_v16 = vadd.f32 %v17935_v13, %v21755_v48  ;;  %v12947_v56 = vpop.f32.mrb[93].mxu0 }
0x1417   : > { %v13126_v4 = vadd.f32 %v21755_v48, %v12947_v56  ;;  %v17936_v19 = vpop.f32.mrb[94].mxu0  ;;  %18089 = vmatprep.mubr.bf16.mxu1 %v13238_v59 }
0x1418   : > { %v13129_v11 = vadd.f32 %v17936_v19, %v21755_v48  ;;  %v12950_v24 = vpop.f32.mrb[95].mxu0  ;;  %18090 = vmatmul.mubr.bf16.gmra.mrb[148].mxu1 %v13239_v2  ;;  %v13192_v10 = vmax.f32 %v13128_v16, 0.0 }
0x1419   : > { %v13127_v3 = vadd.f32 %v21755_v48, %v12950_v24  ;;  %v13190_v30 = vmax.f32 %v13126_v4, 0.0 }
0x141a   : > { %v13193_v25 = vmax.f32 %v13129_v11, 0.0 }
0x141b   : > { %v13191_v61 = vmax.f32 %v13127_v3, 0.0 }
0x141c   : > { %v13241_v6 = vpack.c.bf16 %v13193_v25, %v13192_v10 }
0x141d   : > { %v13240_v40 = vpack.c.bf16 %v13191_v61, %v13190_v30  ;;  %v17939_v42 = vpop.f32.mrb[96].mxu0 }
0x141e   : > { %v13132_v45 = vadd.f32 %v17939_v42, %v21755_v48  ;;  %v12963_v62 = vpop.f32.mrb[97].mxu0 }
0x141f   : > { %v13130_v1 = vadd.f32 %v21755_v48, %v12963_v62  ;;  %v17940_v49 = vpop.f32.mrb[98].mxu0  ;;  %18093 = vmatprep.mubr.bf16.mxu1 %v13240_v40 }
0x1420   : > { %v13133_v31 = vadd.f32 %v17940_v49, %v21755_v48  ;;  %v12966_v27 = vpop.f32.mrb[99].mxu0  ;;  %18094 = vmatmul.mubr.bf16.gmra.mrb[152].mxu1 %v13241_v6  ;;  %v13196_v20 = vmax.f32 %v13132_v45, 0.0 }
0x1421   : > { %v13131_v5 = vadd.f32 %v21755_v48, %v12966_v27  ;;  %v13194_v33 = vmax.f32 %v13130_v1, 0.0 }
0x1422   : > { %v13197_v46 = vmax.f32 %v13133_v31, 0.0 }
0x1423   : > { %v13195_v63 = vmax.f32 %v13131_v5, 0.0 }
0x1424   : > { %v13243_v58 = vpack.c.bf16 %v13197_v46, %v13196_v20 }
0x1425   : > { %v13242_v12 = vpack.c.bf16 %v13195_v63, %v13194_v33  ;;  %v17943_v9 = vpop.f32.mrb[100].mxu0 }
0x1426   : > { %v13136_v32 = vadd.f32 %v17943_v9, %v21755_v48  ;;  %v12979_v36 = vpop.f32.mrb[101].mxu0 }
0x1427   : > { %v13134_v15 = vadd.f32 %v21755_v48, %v12979_v36  ;;  %v17944_v41 = vpop.f32.mrb[102].mxu0  ;;  %18097 = vmatprep.mubr.bf16.mxu1 %v13242_v12 }
0x1428   : > { %v13137_v43 = vadd.f32 %v17944_v41, %v21755_v48  ;;  %v12982_v54 = vpop.f32.mrb[103].mxu0  ;;  %18098 = vmatmul.mubr.bf16.gmra.mrb[156].mxu1 %v13243_v58  ;;  %v13200_v0 = vmax.f32 %v13136_v32, 0.0 }
0x1429   : > { %v13135_v35 = vadd.f32 %v21755_v48, %v12982_v54  ;;  %v13198_v55 = vmax.f32 %v13134_v15, 0.0 }
0x142a   : > { %v13201_v18 = vmax.f32 %v13137_v43, 0.0 }
0x142b   : > { %v13199_v39 = vmax.f32 %v13135_v35, 0.0 }
0x142c   : > { %v13245_v37 = vpack.c.bf16 %v13201_v18, %v13200_v0 }
0x142d   : > { %v13244_v60 = vpack.c.bf16 %v13199_v39, %v13198_v55  ;;  %v17947_v51 = vpop.f32.mrb[104].mxu0 }
0x142e   : > { %v13140_v53 = vadd.f32 %v17947_v51, %v21755_v48  ;;  %v12995_v57 = vpop.f32.mrb[105].mxu0 }
0x142f   : > { %v13138_v26 = vadd.f32 %v21755_v48, %v12995_v57  ;;  %v17948_v22 = vpop.f32.mrb[106].mxu0  ;;  %18101 = vmatprep.mubr.bf16.mxu1 %v13244_v60 }
0x1430   : > { %v13141_v47 = vadd.f32 %v17948_v22, %v21755_v48  ;;  %v12998_v21 = vpop.f32.mrb[107].mxu0  ;;  %18102 = vmatmul.mubr.bf16.gmra.mrb[160].mxu1 %v13245_v37  ;;  %v13204_v28 = vmax.f32 %v13140_v53, 0.0 }
0x1431   : > { %v13139_v23 = vadd.f32 %v21755_v48, %v12998_v21  ;;  %v13202_v50 = vmax.f32 %v13138_v26, 0.0 }
0x1432   : > { %v13205_v44 = vmax.f32 %v13141_v47, 0.0 }
0x1433   : > { %v13203_v52 = vmax.f32 %v13139_v23, 0.0 }
0x1434   : > { %v13247_v14 = vpack.c.bf16 %v13205_v44, %v13204_v28 }
0x1435   : > { %v13246_v29 = vpack.c.bf16 %v13203_v52, %v13202_v50  ;;  %v17951_v17 = vpop.f32.mrb[108].mxu0 }
0x1436   : > { %v13144_v38 = vadd.f32 %v17951_v17, %v21755_v48  ;;  %v13011_v34 = vpop.f32.mrb[109].mxu0 }
0x1437   : > { %v13142_v8 = vadd.f32 %v21755_v48, %v13011_v34  ;;  %v17952_v7 = vpop.f32.mrb[110].mxu0  ;;  %18105 = vmatprep.mubr.bf16.mxu1 %v13246_v29 }
0x1438   : > { %v13145_v2 = vadd.f32 %v17952_v7, %v21755_v48  ;;  %v13014_v59 = vpop.f32.mrb[111].mxu0  ;;  %18106 = vmatmul.mubr.bf16.gmra.mrb[164].mxu1 %v13247_v14  ;;  %v13208_v16 = vmax.f32 %v13144_v38, 0.0 }
0x1439   : > { %v13143_v13 = vadd.f32 %v21755_v48, %v13014_v59  ;;  %v13206_v4 = vmax.f32 %v13142_v8, 0.0 }
0x143a   : > { %v13209_v56 = vmax.f32 %v13145_v2, 0.0 }
0x143b   : > { %v13207_v19 = vmax.f32 %v13143_v13, 0.0 }
0x143c   : > { %v13249_v11 = vpack.c.bf16 %v13209_v56, %v13208_v16 }
0x143d   : > { %v13248_v24 = vpack.c.bf16 %v13207_v19, %v13206_v4  ;;  %v17955_v3 = vpop.f32.mrb[112].mxu0 }
0x143e   : > { %v13148_v10 = vadd.f32 %v17955_v3, %v21755_v48  ;;  %v13027_v25 = vpop.f32.mrb[113].mxu0 }
0x143f   : > { %v13146_v30 = vadd.f32 %v21755_v48, %v13027_v25  ;;  %v17956_v61 = vpop.f32.mrb[114].mxu0  ;;  %18109 = vmatprep.mubr.bf16.mxu1 %v13248_v24 }
0x1440   : > { %v13149_v6 = vadd.f32 %v17956_v61, %v21755_v48  ;;  %v13030_v40 = vpop.f32.mrb[115].mxu0  ;;  %18110 = vmatmul.mubr.bf16.gmra.mrb[168].mxu1 %v13249_v11  ;;  %v13212_v45 = vmax.f32 %v13148_v10, 0.0  ;;  %v21825_v11 = vld [vmem:[%s22036_s9] ss:$0 sm:$0xff] }
0x1441   : > { %v13147_v42 = vadd.f32 %v21755_v48, %v13030_v40  ;;  %v13210_v1 = vmax.f32 %v13146_v30, 0.0 }
0x1442   : > { %v13213_v62 = vmax.f32 %v13149_v6, 0.0 }
0x1443   : > { %v13211_v49 = vmax.f32 %v13147_v42, 0.0 }
0x1444   : > { %v13251_v31 = vpack.c.bf16 %v13213_v62, %v13212_v45 }
0x1445   : > { %v13250_v27 = vpack.c.bf16 %v13211_v49, %v13210_v1  ;;  %v17959_v5 = vpop.f32.mrb[116].mxu0 }
0x1446   : > { %v13152_v20 = vadd.f32 %v17959_v5, %v21755_v48  ;;  %v13043_v46 = vpop.f32.mrb[117].mxu0 }
0x1447   : > { %v13150_v33 = vadd.f32 %v21755_v48, %v13043_v46  ;;  %v17960_v63 = vpop.f32.mrb[118].mxu0  ;;  %18113 = vmatprep.mubr.bf16.mxu1 %v13250_v27 }
0x1448   : > { %v13153_v58 = vadd.f32 %v17960_v63, %v21755_v48  ;;  %v13046_v12 = vpop.f32.mrb[119].mxu0  ;;  %18114 = vmatmul.mubr.bf16.gmra.mrb[172].mxu1 %v13251_v31  ;;  %v13216_v32 = vmax.f32 %v13152_v20, 0.0 }
0x1449   : > { %v13151_v9 = vadd.f32 %v21755_v48, %v13046_v12  ;;  %v13214_v15 = vmax.f32 %v13150_v33, 0.0 }
0x144a   : > { %v13217_v36 = vmax.f32 %v13153_v58, 0.0 }
0x144b   : > { %v13215_v41 = vmax.f32 %v13151_v9, 0.0 }
0x144c   : > { %v13253_v43 = vpack.c.bf16 %v13217_v36, %v13216_v32 }
0x144d   : > { %v13252_v54 = vpack.c.bf16 %v13215_v41, %v13214_v15  ;;  %v17963_v35 = vpop.f32.mrb[120].mxu0 }
0x144e   : > { %v13156_v0 = vadd.f32 %v17963_v35, %v21755_v48  ;;  %v13059_v18 = vpop.f32.mrb[121].mxu0 }
0x144f   : > { %v13154_v55 = vadd.f32 %v21755_v48, %v13059_v18  ;;  %v17964_v39 = vpop.f32.mrb[122].mxu0  ;;  %18117 = vmatprep.mubr.bf16.mxu1 %v13252_v54 }
0x1450   : > { %v13157_v37 = vadd.f32 %v17964_v39, %v21755_v48  ;;  %v13062_v60 = vpop.f32.mrb[123].mxu0  ;;  %18118 = vmatmul.mubr.bf16.gmra.mrb[176].mxu1 %v13253_v43  ;;  %v13220_v53 = vmax.f32 %v13156_v0, 0.0 }
0x1451   : > { %v13155_v51 = vadd.f32 %v21755_v48, %v13062_v60  ;;  %v13218_v26 = vmax.f32 %v13154_v55, 0.0 }
0x1452   : > { %v13221_v57 = vmax.f32 %v13157_v37, 0.0 }
0x1453   : > { %v13219_v22 = vmax.f32 %v13155_v51, 0.0 }
0x1454   : > { %v13255_v47 = vpack.c.bf16 %v13221_v57, %v13220_v53 }
0x1455   : > { %v13254_v21 = vpack.c.bf16 %v13219_v22, %v13218_v26  ;;  %v17967_v23 = vpop.f32.mrb[124].mxu0 }
0x1456   : > { %v13160_v28 = vadd.f32 %v17967_v23, %v21755_v48  ;;  %v13075_v44 = vpop.f32.mrb[125].mxu0 }
0x1457   : > { %v13158_v50 = vadd.f32 %v21755_v48, %v13075_v44  ;;  %v17968_v52 = vpop.f32.mrb[126].mxu0  ;;  %18121 = vmatprep.mubr.bf16.mxu1 %v13254_v21 }
0x1458   : > { %v13161_v14 = vadd.f32 %v17968_v52, %v21755_v48  ;;  %v13078_v29 = vpop.f32.mrb[127].mxu0  ;;  %18122 = vmatmul.mubr.bf16.gmra.mrb[180].mxu1 %v13255_v47  ;;  %v13224_v38 = vmax.f32 %v13160_v28, 0.0 }
0x1459   : > { %v13159_v17 = vadd.f32 %v21755_v48, %v13078_v29  ;;  %v13222_v8 = vmax.f32 %v13158_v50, 0.0 }
0x145a   : > { %v13225_v34 = vmax.f32 %v13161_v14, 0.0 }
0x145b   : > { %v13223_v7 = vmax.f32 %v13159_v17, 0.0 }
0x145c   : > { %v13257_v2 = vpack.c.bf16 %v13225_v34, %v13224_v38 }
0x145d   : > { %v13256_v59 = vpack.c.bf16 %v13223_v7, %v13222_v8  ;;  %v17987_v13 = vpop.f32.mrb[128].mxu0 }
0x145e   : > { %v13372_v16 = vpop.f32.mrb[129].mxu0 }
0x145f   : > { %v17988_v56 = vpop.f32.mrb[130].mxu0  ;;  %18125 = vmatprep.mubr.bf16.mxu1 %v13256_v59 }
0x1460   : > { %v13375_v4 = vpop.f32.mrb[131].mxu0  ;;  %18126 = vmatmul.mubr.bf16.gmra.mrb[184].mxu1 %v13257_v2 }
0x14bb   : > { %v18067_v19 = vpop.f32.mrb[188].mxu1 }
0x14bc   : > { %v13718_v48 = vadd.f32 %v18067_v19, %v17987_v13  ;;  %v13709_v24 = vpop.f32.mrb[189].mxu1 }
0x14bd   : > { %v13710_v3 = vadd.f32 %v13709_v24, %v13372_v16  ;;  %v18068_v10 = vpop.f32.mrb[190].mxu1 }
0x14be   : > { %v13973_v25 = vadd.f32 %v21825_v11, %v13718_v48  ;;  %v13721_v30 = vadd.f32 %v18068_v10, %v17988_v56  ;;  %v13712_v61 = vpop.f32.mrb[191].mxu1 }
0x14bf   : > { %v13971_v6 = vadd.f32 %v21825_v11, %v13710_v3  ;;  %v13713_v40 = vadd.f32 %v13712_v61, %v13375_v4 }
0x14c0   : > { %14038 = vst.msk [vmem:[%s21830_s23 + $0x10] sm:$0xff] %vm14035_vm1, %v13973_v25  ;;  %v13974_v42 = vadd.f32 %v21825_v11, %v13721_v30 }
0x14c1   : > { %14036 = vst.msk [vmem:[%s21830_s23] sm:$0xff] %vm14035_vm1, %v13971_v6  ;;  %v13972_v45 = vadd.f32 %v21825_v11, %v13713_v40 }
0x14c2   : > { %14039 = vst.msk [vmem:[%s21830_s23 + $0x18] sm:$0xff] %vm14035_vm1, %v13974_v42 }
0x14c3   : > { %14037 = vst.msk [vmem:[%s21830_s23 + $0x8] sm:$0xff] %vm14035_vm1, %v13972_v45  ;;  %v18071_v62 = vpop.f32.mrb[128].mxu1 }
0x14c4   : > { %v13977_v1 = vadd.f32 %v18071_v62, %v21825_v11  ;;  %v13725_v49 = vpop.f32.mrb[129].mxu1 }
0x14c5   : > { %v13975_v31 = vadd.f32 %v21825_v11, %v13725_v49  ;;  %v18072_v27 = vpop.f32.mrb[130].mxu1 }
0x14c6   : > { %14042 = vst.msk [vmem:[%s21830_s23 + $0x30] sm:$0xff] %vm14035_vm1, %v13977_v1  ;;  %v13978_v5 = vadd.f32 %v18072_v27, %v21825_v11  ;;  %v13728_v20 = vpop.f32.mrb[131].mxu1 }
0x14c7   : > { %14040 = vst.msk [vmem:[%s21830_s23 + $0x20] sm:$0xff] %vm14035_vm1, %v13975_v31  ;;  %v13976_v46 = vadd.f32 %v21825_v11, %v13728_v20 }
0x14c8   : > { %14043 = vst.msk [vmem:[%s21830_s23 + $0x38] sm:$0xff] %vm14035_vm1, %v13978_v5 }
0x14c9   : > { %14041 = vst.msk [vmem:[%s21830_s23 + $0x28] sm:$0xff] %vm14035_vm1, %v13976_v46 }
0x14cb   : > { %v18075_v33 = vpop.f32.mrb[132].mxu1 }
0x14cc   : > { %v13981_v63 = vadd.f32 %v18075_v33, %v21825_v11  ;;  %v13741_v58 = vpop.f32.mrb[133].mxu1 }
0x14cd   : > { %v13979_v12 = vadd.f32 %v21825_v11, %v13741_v58  ;;  %v18076_v9 = vpop.f32.mrb[134].mxu1 }
0x14ce   : > { %14046 = vst.msk [vmem:[%s21830_s23 + $0x50] sm:$0xff] %vm14035_vm1, %v13981_v63  ;;  %v13982_v32 = vadd.f32 %v18076_v9, %v21825_v11  ;;  %v13744_v36 = vpop.f32.mrb[135].mxu1 }
0x14cf   : > { %14044 = vst.msk [vmem:[%s21830_s23 + $0x40] sm:$0xff] %vm14035_vm1, %v13979_v12  ;;  %v13980_v15 = vadd.f32 %v21825_v11, %v13744_v36 }
0x14d0   : > { %14047 = vst.msk [vmem:[%s21830_s23 + $0x58] sm:$0xff] %vm14035_vm1, %v13982_v32 }
0x14d1   : > { %14045 = vst.msk [vmem:[%s21830_s23 + $0x48] sm:$0xff] %vm14035_vm1, %v13980_v15 }
0x14d3   : > { %v18079_v41 = vpop.f32.mrb[136].mxu1 }
0x14d4   : > { %v13985_v43 = vadd.f32 %v18079_v41, %v21825_v11  ;;  %v13757_v54 = vpop.f32.mrb[137].mxu1 }
0x14d5   : > { %v13983_v35 = vadd.f32 %v21825_v11, %v13757_v54  ;;  %v18080_v0 = vpop.f32.mrb[138].mxu1 }
0x14d6   : > { %14050 = vst.msk [vmem:[%s21830_s23 + $0x70] sm:$0xff] %vm14035_vm1, %v13985_v43  ;;  %v13986_v18 = vadd.f32 %v18080_v0, %v21825_v11  ;;  %v13760_v55 = vpop.f32.mrb[139].mxu1 }
0x14d7   : > { %14048 = vst.msk [vmem:[%s21830_s23 + $0x60] sm:$0xff] %vm14035_vm1, %v13983_v35  ;;  %v13984_v39 = vadd.f32 %v21825_v11, %v13760_v55 }
0x14d8   : > { %14051 = vst.msk [vmem:[%s21830_s23 + $0x78] sm:$0xff] %vm14035_vm1, %v13986_v18 }
0x14d9   : > { %14049 = vst.msk [vmem:[%s21830_s23 + $0x68] sm:$0xff] %vm14035_vm1, %v13984_v39 }
0x14db   : > { %v18083_v37 = vpop.f32.mrb[140].mxu1 }
0x14dc   : > { %v13989_v60 = vadd.f32 %v18083_v37, %v21825_v11  ;;  %v13773_v51 = vpop.f32.mrb[141].mxu1 }
0x14dd   : > { %v13987_v53 = vadd.f32 %v21825_v11, %v13773_v51  ;;  %v18084_v57 = vpop.f32.mrb[142].mxu1 }
0x14de   : > { %14054 = vst.msk [vmem:[%s21830_s23 + $0x90] sm:$0xff] %vm14035_vm1, %v13989_v60  ;;  %v13990_v26 = vadd.f32 %v18084_v57, %v21825_v11  ;;  %v13776_v22 = vpop.f32.mrb[143].mxu1 }
0x14df   : > { %14052 = vst.msk [vmem:[%s21830_s23 + $0x80] sm:$0xff] %vm14035_vm1, %v13987_v53  ;;  %v13988_v47 = vadd.f32 %v21825_v11, %v13776_v22 }
0x14e0   : > { %14055 = vst.msk [vmem:[%s21830_s23 + $0x98] sm:$0xff] %vm14035_vm1, %v13990_v26 }
0x14e1   : > { %14053 = vst.msk [vmem:[%s21830_s23 + $0x88] sm:$0xff] %vm14035_vm1, %v13988_v47 }
0x14e3   : > { %v18087_v21 = vpop.f32.mrb[144].mxu1 }
0x14e4   : > { %v13993_v23 = vadd.f32 %v18087_v21, %v21825_v11  ;;  %v13789_v28 = vpop.f32.mrb[145].mxu1 }
0x14e5   : > { %v13991_v44 = vadd.f32 %v21825_v11, %v13789_v28  ;;  %v18088_v50 = vpop.f32.mrb[146].mxu1 }
0x14e6   : > { %14058 = vst.msk [vmem:[%s21830_s23 + $0xb0] sm:$0xff] %vm14035_vm1, %v13993_v23  ;;  %v13994_v52 = vadd.f32 %v18088_v50, %v21825_v11  ;;  %v13792_v14 = vpop.f32.mrb[147].mxu1 }
0x14e7   : > { %14056 = vst.msk [vmem:[%s21830_s23 + $0xa0] sm:$0xff] %vm14035_vm1, %v13991_v44  ;;  %v13992_v29 = vadd.f32 %v21825_v11, %v13792_v14 }
0x14e8   : > { %14059 = vst.msk [vmem:[%s21830_s23 + $0xb8] sm:$0xff] %vm14035_vm1, %v13994_v52 }
0x14e9   : > { %14057 = vst.msk [vmem:[%s21830_s23 + $0xa8] sm:$0xff] %vm14035_vm1, %v13992_v29 }
0x14eb   : > { %v18091_v17 = vpop.f32.mrb[148].mxu1 }
0x14ec   : > { %v13997_v38 = vadd.f32 %v18091_v17, %v21825_v11  ;;  %v13805_v34 = vpop.f32.mrb[149].mxu1 }
0x14ed   : > { %v13995_v8 = vadd.f32 %v21825_v11, %v13805_v34  ;;  %v18092_v7 = vpop.f32.mrb[150].mxu1 }
0x14ee   : > { %14062 = vst.msk [vmem:[%s21830_s23 + $0xd0] sm:$0xff] %vm14035_vm1, %v13997_v38  ;;  %v13998_v2 = vadd.f32 %v18092_v7, %v21825_v11  ;;  %v13808_v59 = vpop.f32.mrb[151].mxu1 }
0x14ef   : > { %14060 = vst.msk [vmem:[%s21830_s23 + $0xc0] sm:$0xff] %vm14035_vm1, %v13995_v8  ;;  %v13996_v13 = vadd.f32 %v21825_v11, %v13808_v59 }
0x14f0   : > { %14063 = vst.msk [vmem:[%s21830_s23 + $0xd8] sm:$0xff] %vm14035_vm1, %v13998_v2 }
0x14f1   : > { %14061 = vst.msk [vmem:[%s21830_s23 + $0xc8] sm:$0xff] %vm14035_vm1, %v13996_v13 }
0x14f3   : > { %v18095_v16 = vpop.f32.mrb[152].mxu1 }
0x14f4   : > { %v14001_v56 = vadd.f32 %v18095_v16, %v21825_v11  ;;  %v13821_v4 = vpop.f32.mrb[153].mxu1 }
0x14f5   : > { %v13999_v19 = vadd.f32 %v21825_v11, %v13821_v4  ;;  %v18096_v48 = vpop.f32.mrb[154].mxu1 }
0x14f6   : > { %14066 = vst.msk [vmem:[%s21830_s23 + $0xf0] sm:$0xff] %vm14035_vm1, %v14001_v56  ;;  %v14002_v24 = vadd.f32 %v18096_v48, %v21825_v11  ;;  %v13824_v3 = vpop.f32.mrb[155].mxu1 }
0x14f7   : > { %14064 = vst.msk [vmem:[%s21830_s23 + $0xe0] sm:$0xff] %vm14035_vm1, %v13999_v19  ;;  %v14000_v10 = vadd.f32 %v21825_v11, %v13824_v3 }
0x14f8   : > { %14067 = vst.msk [vmem:[%s21830_s23 + $0xf8] sm:$0xff] %vm14035_vm1, %v14002_v24 }
0x14f9   : > { %14065 = vst.msk [vmem:[%s21830_s23 + $0xe8] sm:$0xff] %vm14035_vm1, %v14000_v10 }
0x14fb   : > { %v18099_v25 = vpop.f32.mrb[156].mxu1 }
0x14fc   : > { %v14005_v30 = vadd.f32 %v18099_v25, %v21825_v11  ;;  %v13837_v61 = vpop.f32.mrb[157].mxu1 }
0x14fd   : > { %v14003_v6 = vadd.f32 %v21825_v11, %v13837_v61  ;;  %v18100_v40 = vpop.f32.mrb[158].mxu1 }
0x14fe   : > { %14070 = vst.msk [vmem:[%s21830_s23 + $0x110] sm:$0xff] %vm14035_vm1, %v14005_v30  ;;  %v14006_v42 = vadd.f32 %v18100_v40, %v21825_v11  ;;  %v13840_v45 = vpop.f32.mrb[159].mxu1 }
0x14ff   : > { %14068 = vst.msk [vmem:[%s21830_s23 + $0x100] sm:$0xff] %vm14035_vm1, %v14003_v6  ;;  %v14004_v62 = vadd.f32 %v21825_v11, %v13840_v45 }
0x1500   : > { %14071 = vst.msk [vmem:[%s21830_s23 + $0x118] sm:$0xff] %vm14035_vm1, %v14006_v42 }
0x1501   : > { %14069 = vst.msk [vmem:[%s21830_s23 + $0x108] sm:$0xff] %vm14035_vm1, %v14004_v62 }
0x1503   : > { %v18103_v1 = vpop.f32.mrb[160].mxu1 }
0x1504   : > { %v14009_v49 = vadd.f32 %v18103_v1, %v21825_v11  ;;  %v13853_v31 = vpop.f32.mrb[161].mxu1 }
0x1505   : > { %v14007_v27 = vadd.f32 %v21825_v11, %v13853_v31  ;;  %v18104_v5 = vpop.f32.mrb[162].mxu1 }
0x1506   : > { %14074 = vst.msk [vmem:[%s21830_s23 + $0x130] sm:$0xff] %vm14035_vm1, %v14009_v49  ;;  %v14010_v20 = vadd.f32 %v18104_v5, %v21825_v11  ;;  %v13856_v46 = vpop.f32.mrb[163].mxu1 }
0x1507   : > { %14072 = vst.msk [vmem:[%s21830_s23 + $0x120] sm:$0xff] %vm14035_vm1, %v14007_v27  ;;  %v14008_v33 = vadd.f32 %v21825_v11, %v13856_v46 }
0x1508   : > { %14075 = vst.msk [vmem:[%s21830_s23 + $0x138] sm:$0xff] %vm14035_vm1, %v14010_v20 }
0x1509   : > { %14073 = vst.msk [vmem:[%s21830_s23 + $0x128] sm:$0xff] %vm14035_vm1, %v14008_v33 }
0x150b   : > { %v18107_v63 = vpop.f32.mrb[164].mxu1 }
0x150c   : > { %v14013_v58 = vadd.f32 %v18107_v63, %v21825_v11  ;;  %v13869_v12 = vpop.f32.mrb[165].mxu1 }
0x150d   : > { %v14011_v9 = vadd.f32 %v21825_v11, %v13869_v12  ;;  %v18108_v32 = vpop.f32.mrb[166].mxu1 }
0x150e   : > { %14078 = vst.msk [vmem:[%s21830_s23 + $0x150] sm:$0xff] %vm14035_vm1, %v14013_v58  ;;  %v14014_v36 = vadd.f32 %v18108_v32, %v21825_v11  ;;  %v13872_v15 = vpop.f32.mrb[167].mxu1 }
0x150f   : > { %14076 = vst.msk [vmem:[%s21830_s23 + $0x140] sm:$0xff] %vm14035_vm1, %v14011_v9  ;;  %v14012_v41 = vadd.f32 %v21825_v11, %v13872_v15 }
0x1510   : > { %14079 = vst.msk [vmem:[%s21830_s23 + $0x158] sm:$0xff] %vm14035_vm1, %v14014_v36 }
0x1511   : > { %14077 = vst.msk [vmem:[%s21830_s23 + $0x148] sm:$0xff] %vm14035_vm1, %v14012_v41 }
0x1513   : > { %v18111_v43 = vpop.f32.mrb[168].mxu1 }
0x1514   : > { %v14017_v54 = vadd.f32 %v18111_v43, %v21825_v11  ;;  %v13885_v35 = vpop.f32.mrb[169].mxu1 }
0x1515   : > { %v14015_v0 = vadd.f32 %v21825_v11, %v13885_v35  ;;  %v18112_v18 = vpop.f32.mrb[170].mxu1 }
0x1516   : > { %14082 = vst.msk [vmem:[%s21830_s23 + $0x170] sm:$0xff] %vm14035_vm1, %v14017_v54  ;;  %v14018_v55 = vadd.f32 %v18112_v18, %v21825_v11  ;;  %v13888_v39 = vpop.f32.mrb[171].mxu1 }
0x1517   : > { %14080 = vst.msk [vmem:[%s21830_s23 + $0x160] sm:$0xff] %vm14035_vm1, %v14015_v0  ;;  %v14016_v37 = vadd.f32 %v21825_v11, %v13888_v39 }
0x1518   : > { %14083 = vst.msk [vmem:[%s21830_s23 + $0x178] sm:$0xff] %vm14035_vm1, %v14018_v55 }
0x1519   : > { %14081 = vst.msk [vmem:[%s21830_s23 + $0x168] sm:$0xff] %vm14035_vm1, %v14016_v37 }
0x151b   : > { %v18115_v60 = vpop.f32.mrb[172].mxu1 }
0x151c   : > { %v14021_v51 = vadd.f32 %v18115_v60, %v21825_v11  ;;  %v13901_v53 = vpop.f32.mrb[173].mxu1 }
0x151d   : > { %v14019_v57 = vadd.f32 %v21825_v11, %v13901_v53  ;;  %v18116_v26 = vpop.f32.mrb[174].mxu1 }
0x151e   : > { %14086 = vst.msk [vmem:[%s21830_s23 + $0x190] sm:$0xff] %vm14035_vm1, %v14021_v51  ;;  %v14022_v22 = vadd.f32 %v18116_v26, %v21825_v11  ;;  %v13904_v47 = vpop.f32.mrb[175].mxu1 }
0x151f   : > { %14084 = vst.msk [vmem:[%s21830_s23 + $0x180] sm:$0xff] %vm14035_vm1, %v14019_v57  ;;  %v14020_v21 = vadd.f32 %v21825_v11, %v13904_v47 }
0x1520   : > { %14087 = vst.msk [vmem:[%s21830_s23 + $0x198] sm:$0xff] %vm14035_vm1, %v14022_v22 }
0x1521   : > { %14085 = vst.msk [vmem:[%s21830_s23 + $0x188] sm:$0xff] %vm14035_vm1, %v14020_v21 }
0x1523   : > { %v18119_v23 = vpop.f32.mrb[176].mxu1 }
0x1524   : > { %v14025_v28 = vadd.f32 %v18119_v23, %v21825_v11  ;;  %v13917_v44 = vpop.f32.mrb[177].mxu1 }
0x1525   : > { %v14023_v50 = vadd.f32 %v21825_v11, %v13917_v44  ;;  %v18120_v52 = vpop.f32.mrb[178].mxu1 }
0x1526   : > { %14090 = vst.msk [vmem:[%s21830_s23 + $0x1b0] sm:$0xff] %vm14035_vm1, %v14025_v28  ;;  %v14026_v14 = vadd.f32 %v18120_v52, %v21825_v11  ;;  %v13920_v29 = vpop.f32.mrb[179].mxu1 }
0x1527   : > { %14088 = vst.msk [vmem:[%s21830_s23 + $0x1a0] sm:$0xff] %vm14035_vm1, %v14023_v50  ;;  %v14024_v17 = vadd.f32 %v21825_v11, %v13920_v29 }
0x1528   : > { %14091 = vst.msk [vmem:[%s21830_s23 + $0x1b8] sm:$0xff] %vm14035_vm1, %v14026_v14 }
0x1529   : > { %14089 = vst.msk [vmem:[%s21830_s23 + $0x1a8] sm:$0xff] %vm14035_vm1, %v14024_v17 }
0x152b   : > { %v18123_v38 = vpop.f32.mrb[180].mxu1 }
0x152c   : > { %v14029_v34 = vadd.f32 %v18123_v38, %v21825_v11  ;;  %v13933_v8 = vpop.f32.mrb[181].mxu1 }
0x152d   : > { %v14027_v7 = vadd.f32 %v21825_v11, %v13933_v8  ;;  %v18124_v2 = vpop.f32.mrb[182].mxu1 }
0x152e   : > { %14094 = vst.msk [vmem:[%s21830_s23 + $0x1d0] sm:$0xff] %vm14035_vm1, %v14029_v34  ;;  %v14030_v59 = vadd.f32 %v18124_v2, %v21825_v11  ;;  %v13936_v13 = vpop.f32.mrb[183].mxu1 }
0x152f   : > { %14092 = vst.msk [vmem:[%s21830_s23 + $0x1c0] sm:$0xff] %vm14035_vm1, %v14027_v7  ;;  %v14028_v16 = vadd.f32 %v21825_v11, %v13936_v13 }
0x1530   : > { %14095 = vst.msk [vmem:[%s21830_s23 + $0x1d8] sm:$0xff] %vm14035_vm1, %v14030_v59 }
0x1531   : > { %14093 = vst.msk [vmem:[%s21830_s23 + $0x1c8] sm:$0xff] %vm14035_vm1, %v14028_v16 }
0x1533   : > { %v18127_v56 = vpop.f32.mrb[184].mxu1 }
0x1534   : > { %v14033_v4 = vadd.f32 %v18127_v56, %v21825_v11  ;;  %v13949_v19 = vpop.f32.mrb[185].mxu1 }
0x1535   : > { %v14031_v48 = vadd.f32 %v21825_v11, %v13949_v19  ;;  %v18128_v24 = vpop.f32.mrb[186].mxu1 }
0x1536   : > { %14098 = vst.msk [vmem:[%s21830_s23 + $0x1f0] sm:$0xff] %vm14035_vm1, %v14033_v4  ;;  %v14034_v3 = vadd.f32 %v18128_v24, %v21825_v11  ;;  %v13952_v10 = vpop.f32.mrb[187].mxu1 }
0x1537   : > { %14096 = vst.msk [vmem:[%s21830_s23 + $0x1e0] sm:$0xff] %vm14035_vm1, %v14031_v48  ;;  %v14032_v25 = vadd.f32 %v21825_v11, %v13952_v10 }
0x1538   : > { %14099 = vst.msk [vmem:[%s21830_s23 + $0x1f8] sm:$0xff] %vm14035_vm1, %v14034_v3 }
0x1539   : > { %14097 = vst.msk [vmem:[%s21830_s23 + $0x1e8] sm:$0xff] %vm14035_vm1, %v14032_v25 }
0x153a PF: > { %s20_s13 = sadd.s32 1, %s18892_s13  }
0x153b   : > { %p17_p4 = scmp.ge.s32.totalorder %s20_s13, 10  }
0x153d   :  { %19 = sbr.rel (!%p17_p4) target bundleno = 1 (0x1), region = 145 }

</bundles_post_ra>
